<compile_context>
chip_gen: v6e
topology: v6e:2x2x1
jax: 0.10.0
libtpu: 0.0.40
codegen_flags: <defaults>
</compile_context>

<pallas_src>
import jax
import jax.numpy as jnp
from jax.experimental import pallas as pl
from jax.experimental.pallas import tpu as pltpu

_ROW_ALIGN = 128                    # pad node dim so in-kernel dots are (8,128)-tile aligned
_VMEM_LIMIT = 32 * 1024 * 1024      # explicit VMEM budget (fits scoped VMEM on v5e/v6e/v7x)


def _dot(a, b):
    # bf16 operands, f32 accumulation on the MXU.
    return jnp.dot(a, b, preferred_element_type=jnp.float32)


def _grb_identity_kernel(x_ref, a_ref, w1_ref, b1_ref, w2_ref, b2_ref, o_ref):
    """downsample is None:  out = ReLU(conv2(ReLU(conv1(x))) + x).

    Matmul operands are bf16 (native MXU input); accumulation, bias add, residual add and
    ReLU stay f32.  The result is stored at the padded (8,128)-aligned shape; the wrapper
    slices back to the exact node count.
    """
    x = x_ref[...]                                   # f32, kept for the residual add
    a = a_ref[...]                                   # bf16 (n_pad, n_pad)
    ax = _dot(a, x.astype(jnp.bfloat16)).astype(jnp.bfloat16)
    h1 = jnp.maximum(_dot(ax, w1_ref[...]) + b1_ref[...], 0.0).astype(jnp.bfloat16)
    h2 = _dot(_dot(a, h1).astype(jnp.bfloat16), w2_ref[...]) + b2_ref[...]
    o_ref[...] = jnp.maximum(h2 + x, 0.0).astype(o_ref.dtype)


def _grb_downsample_kernel(hex_ref, x_ref, a_ref, w1d_ref, b1d_ref, w2_ref, b2_ref,
                           o_ref, cat_scr):
    """downsample path: out = ReLU(hex_pool(conv2(ReLU(conv1(x)))) + hex_pool(conv_d(x))).

    conv1 and the downsample conv share A@x, so their weights are fused into one
    (c_in, 2*c_out) RHS and produced by a single 256-wide MXU pass.  conv2's output and
    the residual live side by side in one (n_pad, 2*c_out) scratch so the hex gather
    reads one lane-dense (1, 2*c_out) row per neighbour.
    """
    c = o_ref.shape[1]                               # c_out (=128, lane-aligned)
    a = a_ref[...]                                   # bf16 (n_pad, n_pad)
    x = x_ref[...]                                   # bf16 (n_pad, c_in)

    ax = _dot(a, x).astype(jnp.bfloat16)             # shared by conv1 and downsample conv
    cat = _dot(ax, w1d_ref[...]) + b1d_ref[...]      # f32 (n_pad, 2c): [conv1 | conv_d]
    h1 = jnp.maximum(cat[:, :c], 0.0).astype(jnp.bfloat16)
    h2 = _dot(_dot(a, h1).astype(jnp.bfloat16), w2_ref[...]) + b2_ref[...]

    cat_scr[:, :c] = h2                              # lanes 0:c   -> conv2 output
    cat_scr[:, c:] = cat[:, c:]                      # lanes c:2c  -> residual (conv_d)

    l_out = o_ref.shape[0]                           # static: (N + 6) // 4
    k_nbrs = hex_ref.shape[0] // l_out               # static: 7 (self + 6 hex neighbours)

    # hex_pooling as a gather, fully unrolled at trace time (static l_out) so the
    # scheduler gets independent load/max chains; neighbours reduced with a tree max.
    for l in range(l_out):
        base = l * k_nbrs                            # static -> static SMEM indices
        rows = [cat_scr[pl.ds(hex_ref[base + k], 1), :] for k in range(k_nbrs)]
        while len(rows) > 1:                         # pairwise tree max (depth 3 for 7)
            nxt = [jnp.maximum(rows[j], rows[j + 1]) for j in range(0, len(rows) - 1, 2)]
            if len(rows) % 2:
                nxt.append(rows[-1])
            rows = nxt
        m = rows[0]                                  # (1, 2c) max over the neighbourhood
        o_ref[pl.ds(l, 1), :] = jnp.maximum(m[:, :c] + m[:, c:], 0.0).astype(o_ref.dtype)


def graph_residual_block(x, a_norm, w1, b1, w2, b2, *, hex_tbl=None, wd=None, bd=None):
    """Pallas forward of GraphResidualBlock.  hex_tbl/wd/bd given => downsample path."""
    n, c_in = x.shape
    c_out = w1.shape[1]
    n_pad = pl.cdiv(n, _ROW_ALIGN) * _ROW_ALIGN

    x_p = jnp.pad(x, ((0, n_pad - n), (0, 0)))
    # a_norm is padded with zeros AFTER row-normalisation so padded nodes stay inert.
    a_p = jnp.pad(a_norm, ((0, n_pad - n), (0, n_pad - n))).astype(jnp.bfloat16)

    cparams = pltpu.CompilerParams(dimension_semantics=("arbitrary",),
                                   vmem_limit_bytes=_VMEM_LIMIT)
    # TODO(synk): on v7x, split the node dimension over a "parallel" grid axis (second
    # TensorCore) and K-tile the dense adjacency for graphs where it no longer fits VMEM;
    # at N=162 the whole block fits a single core comfortably.

    if hex_tbl is None:
        assert c_in == c_out, "identity residual requires inchannels == outchannels"
        flops = 4 * n_pad * n_pad * c_out + 4 * n_pad * c_out * c_out
        bytes_acc = (2 * n_pad * n_pad + 2 * 2 * c_out * c_out
                     + 4 * (2 * n_pad * c_out + 2 * c_out))
        out_p = pl.pallas_call(
            _grb_identity_kernel,
            out_shape=jax.ShapeDtypeStruct((n_pad, c_out), x.dtype),
            grid=(1,),
            in_specs=[
                pl.BlockSpec((n_pad, c_in), lambda i: (0, 0)),
                pl.BlockSpec((n_pad, n_pad), lambda i: (0, 0)),
                pl.BlockSpec((c_in, c_out), lambda i: (0, 0)),
                pl.BlockSpec((1, c_out), lambda i: (0, 0)),
                pl.BlockSpec((c_out, c_out), lambda i: (0, 0)),
                pl.BlockSpec((1, c_out), lambda i: (0, 0)),
            ],
            out_specs=pl.BlockSpec((n_pad, c_out), lambda i: (0, 0)),
            compiler_params=cparams,
            cost_estimate=pl.CostEstimate(flops=flops, transcendentals=0,
                                          bytes_accessed=bytes_acc),
        )(x_p, a_p, w1.astype(jnp.bfloat16), b1, w2.astype(jnp.bfloat16), b2)
        return out_p[:n]                             # drop padded rows in the wrapper

    assert wd is not None and bd is not None
    l_out = (n + 6) // 4
    # hex_pooling only reads the first L rows of the table; clamp so a stray index can
    # never read (bias-only) padded rows of the scratch.
    hex_flat = jnp.clip(hex_tbl[:l_out].reshape(-1), 0, n - 1).astype(jnp.int32)
    # conv1 and the downsample conv share A@x -> fuse their weights into one 2*c_out RHS.
    w1d = jnp.concatenate([w1, wd], axis=1).astype(jnp.bfloat16)      # (c_in, 2*c_out)
    b1d = jnp.concatenate([b1, bd], axis=1)                           # (1, 2*c_out) f32

    flops = (4 * n_pad * n_pad * c_out + 4 * n_pad * c_in * c_out
             + 2 * n_pad * c_out * c_out)
    bytes_acc = (2 * (n_pad * n_pad + n_pad * c_in + 2 * c_in * c_out + c_out * c_out)
                 + 4 * (l_out * c_out + 3 * c_out) + 4 * l_out * 7)

    grid_spec = pltpu.PrefetchScalarGridSpec(
        num_scalar_prefetch=1,                       # hexagon table -> SMEM gather indices
        grid=(1,),
        in_specs=[
            pl.BlockSpec((n_pad, c_in), lambda i, hx: (0, 0)),
            pl.BlockSpec((n_pad, n_pad), lambda i, hx: (0, 0)),
            pl.BlockSpec((c_in, 2 * c_out), lambda i, hx: (0, 0)),
            pl.BlockSpec((1, 2 * c_out), lambda i, hx: (0, 0)),
            pl.BlockSpec((c_out, c_out), lambda i, hx: (0, 0)),
            pl.BlockSpec((1, c_out), lambda i, hx: (0, 0)),
        ],
        out_specs=pl.BlockSpec((l_out, c_out), lambda i, hx: (0, 0)),
        scratch_shapes=[pltpu.VMEM((n_pad, 2 * c_out), jnp.float32)],
    )
    return pl.pallas_call(
        _grb_downsample_kernel,
        out_shape=jax.ShapeDtypeStruct((l_out, c_out), x.dtype),
        grid_spec=grid_spec,
        compiler_params=cparams,
        cost_estimate=pl.CostEstimate(flops=flops, transcendentals=0,
                                      bytes_accessed=bytes_acc),
    )(hex_flat, x_p.astype(jnp.bfloat16), a_p, w1d, b1d, w2.astype(jnp.bfloat16), b2)


# ----------------------------- pure-JAX reference ---------------------------------
def _conv_ref(h, a_norm, w, b):
    return jnp.dot(jnp.dot(a_norm, h), w) + b


def _hex_pool_ref(h, hex_tbl):
    l_out = (h.shape[0] + 6) // 4
    return jnp.max(h[hex_tbl], axis=1)[:l_out]


def _block_ref(x, a_norm, w1, b1, w2, b2, *, hex_tbl=None, wd=None, bd=None):
    h = jax.nn.relu(_conv_ref(x, a_norm, w1, b1))
    h = _conv_ref(h, a_norm, w2, b2)
    if hex_tbl is None:
        return jax.nn.relu(h + x)
    pooled = _hex_pool_ref(h, hex_tbl)
    residual = _hex_pool_ref(_conv_ref(x, a_norm, wd, bd), hex_tbl)
    return jax.nn.relu(pooled + residual)


if __name__ == "__main__":
    # Icosphere-level-2-like graph: 162 nodes -> 42 nodes after hex pooling.
    N, K, C = 162, 7, 128
    L = (N + 6) // 4

    key = jax.random.PRNGKey(0)
    ks = jax.random.split(key, 10)

    x = jax.random.normal(ks[0], (N, C), jnp.float32)

    # Synthetic, deterministic stand-ins for data/edge_index_*.npy and data/hexagons_*.npy.
    E = 6 * N
    src = jax.random.randint(ks[1], (E,), 0, N)
    dst = jax.random.randint(ks[2], (E,), 0, N)
    adj = jnp.zeros((N, N), jnp.float32).at[dst, src].add(1.0) + jnp.eye(N, dtype=jnp.float32)
    a_norm = adj / jnp.sum(adj, axis=1, keepdims=True)

    hex_tbl = jnp.concatenate(
        [jnp.arange(N, dtype=jnp.int32)[:, None],
         jax.random.randint(ks[3], (N, K - 1), 0, N, dtype=jnp.int32)], axis=1)

    def winit(k):
        return jax.random.normal(k, (C, C), jnp.float32) / jnp.sqrt(C)

    w1, w2, wd = winit(ks[4]), winit(ks[5]), winit(ks[6])
    b1 = 0.1 * jax.random.normal(ks[7], (1, C), jnp.float32)
    b2 = 0.1 * jax.random.normal(ks[8], (1, C), jnp.float32)
    bd = 0.1 * jax.random.normal(ks[9], (1, C), jnp.float32)

    # Downsample path (conv1 -> ReLU -> conv2 -> hex_pooling, residual = downsample(x, e)).
    y_down = jax.block_until_ready(
        graph_residual_block(x, a_norm, w1, b1, w2, b2, hex_tbl=hex_tbl, wd=wd, bd=bd))
    # Identity-residual path (downsample is None).
    y_id = jax.block_until_ready(graph_residual_block(x, a_norm, w1, b1, w2, b2))

    y_down_ref = _block_ref(x, a_norm, w1, b1, w2, b2, hex_tbl=hex_tbl, wd=wd, bd=bd)
    y_id_ref = _block_ref(x, a_norm, w1, b1, w2, b2)

    assert y_down.shape == (L, C) and y_down.dtype == jnp.float32
    assert y_id.shape == (N, C) and y_id.dtype == jnp.float32
    # Kernel feeds the MXU bf16 operands (f32 accumulation); reference is pure f32, so the
    # tolerance is slightly looser than the old all-f32 kernel's 1e-2.
    assert jnp.allclose(y_down, y_down_ref, atol=2e-2, rtol=2e-2), "downsample path mismatch"
    assert jnp.allclose(y_id, y_id_ref, atol=2e-2, rtol=2e-2), "identity path mismatch"
    print("KERNEL_OK")
</pallas_src>

<mosaic_0001>
module attributes {stable_mosaic.version = 11 : i64} {
  func.func @_grb_downsample_kernel(%arg0: i32, %arg1: memref<294xi32, #tpu.memory_space<smem>>, %arg2: memref<256x128xbf16, #tpu.memory_space<vmem>>, %arg3: memref<256x256xbf16, #tpu.memory_space<vmem>>, %arg4: memref<128x256xbf16, #tpu.memory_space<vmem>>, %arg5: memref<1x256xf32, #tpu.memory_space<vmem>>, %arg6: memref<128x128xbf16, #tpu.memory_space<vmem>>, %arg7: memref<1x128xf32, #tpu.memory_space<vmem>>, %arg8: memref<42x128xf32, #tpu.memory_space<vmem>>, %arg9: memref<256x256xf32, #tpu.memory_space<vmem>>) attributes {dimension_semantics = [#tpu.dimension_semantics<arbitrary>], iteration_bounds = array<i64: 1>, scalar_prefetch = 1 : i64, scratch_operands = 1 : i64, tpu.core_type = #tpu.core_type<tc>, window_params = [{pipeline_mode = #tpu.pipeline_mode<synchronous>, transform_indices = @transform_0, window_bounds = array<i64: 256, 128>}, {pipeline_mode = #tpu.pipeline_mode<synchronous>, transform_indices = @transform_1, window_bounds = array<i64: 256, 256>}, {pipeline_mode = #tpu.pipeline_mode<synchronous>, transform_indices = @transform_2, window_bounds = array<i64: 128, 256>}, {pipeline_mode = #tpu.pipeline_mode<synchronous>, transform_indices = @transform_3, window_bounds = array<i64: 1, 256>}, {pipeline_mode = #tpu.pipeline_mode<synchronous>, transform_indices = @transform_4, window_bounds = array<i64: 128, 128>}, {pipeline_mode = #tpu.pipeline_mode<synchronous>, transform_indices = @transform_5, window_bounds = array<i64: 1, 128>}, {pipeline_mode = #tpu.pipeline_mode<synchronous>, transform_indices = @transform_6, window_bounds = array<i64: 42, 128>}]} {
    %c0 = arith.constant 0 : index
    %c0_0 = arith.constant 0 : index
    %0 = vector.load %arg3[%c0, %c0_0] : memref<256x256xbf16, #tpu.memory_space<vmem>>, vector<256x256xbf16>
    %c0_1 = arith.constant 0 : index
    %c0_2 = arith.constant 0 : index
    %1 = vector.load %arg2[%c0_1, %c0_2] : memref<256x128xbf16, #tpu.memory_space<vmem>>, vector<256x128xbf16>
    %cst = arith.constant dense<0.000000e+00> : vector<256x128xf32>
    %2 = tpu.matmul %0, %1, %cst {dimension_numbers = #tpu.dot_dimension_numbers<[1], [0], [0], [1], [0, 0, 1, 1], [], []>} : vector<256x256xbf16>, vector<256x128xbf16>, vector<256x128xf32> -> vector<256x128xf32>
    %3 = arith.truncf %2 : vector<256x128xf32> to vector<256x128xbf16>
    %c0_3 = arith.constant 0 : index
    %c0_4 = arith.constant 0 : index
    %4 = vector.load %arg4[%c0_3, %c0_4] : memref<128x256xbf16, #tpu.memory_space<vmem>>, vector<128x256xbf16>
    %cst_5 = arith.constant dense<0.000000e+00> : vector<256x256xf32>
    %5 = tpu.matmul %3, %4, %cst_5 {dimension_numbers = #tpu.dot_dimension_numbers<[1], [0], [0], [1], [0, 0, 1, 1], [], []>} : vector<256x128xbf16>, vector<128x256xbf16>, vector<256x256xf32> -> vector<256x256xf32>
    %c0_6 = arith.constant 0 : index
    %c0_7 = arith.constant 0 : index
    %6 = vector.load %arg5[%c0_6, %c0_7] : memref<1x256xf32, #tpu.memory_space<vmem>>, vector<1x256xf32>
    %7 = vector.broadcast %6 : vector<1x256xf32> to vector<256x256xf32>
    %8 = arith.addf %5, %7 : vector<256x256xf32>
    %9 = vector.extract_strided_slice %8 {offsets = [0, 0], sizes = [256, 128], strides = [1, 1]} : vector<256x256xf32> to vector<256x128xf32>
    %cst_8 = arith.constant 0.000000e+00 : f32
    %10 = vector.broadcast %cst_8 : f32 to vector<256x128xf32>
    %11 = arith.maximumf %9, %10 : vector<256x128xf32>
    %12 = arith.truncf %11 : vector<256x128xf32> to vector<256x128xbf16>
    %cst_9 = arith.constant dense<0.000000e+00> : vector<256x128xf32>
    %13 = tpu.matmul %0, %12, %cst_9 {dimension_numbers = #tpu.dot_dimension_numbers<[1], [0], [0], [1], [0, 0, 1, 1], [], []>} : vector<256x256xbf16>, vector<256x128xbf16>, vector<256x128xf32> -> vector<256x128xf32>
    %14 = arith.truncf %13 : vector<256x128xf32> to vector<256x128xbf16>
    %c0_10 = arith.constant 0 : index
    %c0_11 = arith.constant 0 : index
    %15 = vector.load %arg6[%c0_10, %c0_11] : memref<128x128xbf16, #tpu.memory_space<vmem>>, vector<128x128xbf16>
    %cst_12 = arith.constant dense<0.000000e+00> : vector<256x128xf32>
    %16 = tpu.matmul %14, %15, %cst_12 {dimension_numbers = #tpu.dot_dimension_numbers<[1], [0], [0], [1], [0, 0, 1, 1], [], []>} : vector<256x128xbf16>, vector<128x128xbf16>, vector<256x128xf32> -> vector<256x128xf32>
    %c0_13 = arith.constant 0 : index
    %c0_14 = arith.constant 0 : index
    %17 = vector.load %arg7[%c0_13, %c0_14] : memref<1x128xf32, #tpu.memory_space<vmem>>, vector<1x128xf32>
    %18 = vector.broadcast %17 : vector<1x128xf32> to vector<256x128xf32>
    %19 = arith.addf %16, %18 : vector<256x128xf32>
    %c0_15 = arith.constant 0 : index
    %c0_16 = arith.constant 0 : index
    %20 = vector.load %arg9[%c0_15, %c0_16] : memref<256x256xf32, #tpu.memory_space<vmem>>, vector<256x128xf32>
    tpu.vector_store %arg9[%c0_15, %c0_16], %19 {strides = array<i32>} : memref<256x256xf32, #tpu.memory_space<vmem>>, vector<256x128xf32>,
    %21 = vector.extract_strided_slice %8 {offsets = [0, 128], sizes = [256, 128], strides = [1, 1]} : vector<256x256xf32> to vector<256x128xf32>
    %c0_17 = arith.constant 0 : index
    %c128 = arith.constant 128 : index
    %22 = vector.load %arg9[%c0_17, %c128] : memref<256x256xf32, #tpu.memory_space<vmem>>, vector<256x128xf32>
    tpu.vector_store %arg9[%c0_17, %c128], %21 {strides = array<i32>} : memref<256x256xf32, #tpu.memory_space<vmem>>, vector<256x128xf32>,
    %c0_18 = arith.constant 0 : index
    %23 = memref.load %arg1[%c0_18] : memref<294xi32, #tpu.memory_space<smem>>
    %24 = arith.index_cast %23 : i32 to index
    %c0_19 = arith.constant 0 : index
    %25 = vector.load %arg9[%24, %c0_19] : memref<256x256xf32, #tpu.memory_space<vmem>>, vector<1x256xf32>
    %c1 = arith.constant 1 : index
    %26 = memref.load %arg1[%c1] : memref<294xi32, #tpu.memory_space<smem>>
    %27 = arith.index_cast %26 : i32 to index
    %c0_20 = arith.constant 0 : index
    %28 = vector.load %arg9[%27, %c0_20] : memref<256x256xf32, #tpu.memory_space<vmem>>, vector<1x256xf32>
    %c2 = arith.constant 2 : index
    %29 = memref.load %arg1[%c2] : memref<294xi32, #tpu.memory_space<smem>>
    %30 = arith.index_cast %29 : i32 to index
    %c0_21 = arith.constant 0 : index
    %31 = vector.load %arg9[%30, %c0_21] : memref<256x256xf32, #tpu.memory_space<vmem>>, vector<1x256xf32>
    %c3 = arith.constant 3 : index
    %32 = memref.load %arg1[%c3] : memref<294xi32, #tpu.memory_space<smem>>
    %33 = arith.index_cast %32 : i32 to index
    %c0_22 = arith.constant 0 : index
    %34 = vector.load %arg9[%33, %c0_22] : memref<256x256xf32, #tpu.memory_space<vmem>>, vector<1x256xf32>
    %c4 = arith.constant 4 : index
    %35 = memref.load %arg1[%c4] : memref<294xi32, #tpu.memory_space<smem>>
    %36 = arith.index_cast %35 : i32 to index
    %c0_23 = arith.constant 0 : index
    %37 = vector.load %arg9[%36, %c0_23] : memref<256x256xf32, #tpu.memory_space<vmem>>, vector<1x256xf32>
    %c5 = arith.constant 5 : index
    %38 = memref.load %arg1[%c5] : memref<294xi32, #tpu.memory_space<smem>>
    %39 = arith.index_cast %38 : i32 to index
    %c0_24 = arith.constant 0 : index
    %40 = vector.load %arg9[%39, %c0_24] : memref<256x256xf32, #tpu.memory_space<vmem>>, vector<1x256xf32>
    %c6 = arith.constant 6 : index
    %41 = memref.load %arg1[%c6] : memref<294xi32, #tpu.memory_space<smem>>
    %42 = arith.index_cast %41 : i32 to index
    %c0_25 = arith.constant 0 : index
    %43 = vector.load %arg9[%42, %c0_25] : memref<256x256xf32, #tpu.memory_space<vmem>>, vector<1x256xf32>
    %44 = arith.maximumf %25, %28 : vector<1x256xf32>
    %45 = arith.maximumf %31, %34 : vector<1x256xf32>
    %46 = arith.maximumf %37, %40 : vector<1x256xf32>
    %47 = arith.maximumf %44, %45 : vector<1x256xf32>
    %48 = arith.maximumf %46, %43 : vector<1x256xf32>
    %49 = arith.maximumf %47, %48 : vector<1x256xf32>
    %50 = vector.extract_strided_slice %49 {offsets = [0, 0], sizes = [1, 128], strides = [1, 1]} : vector<1x256xf32> to vector<1x128xf32>
    %51 = vector.extract_strided_slice %49 {offsets = [0, 128], sizes = [1, 128], strides = [1, 1]} : vector<1x256xf32> to vector<1x128xf32>
    %52 = arith.addf %50, %51 : vector<1x128xf32>
    %cst_26 = arith.constant 0.000000e+00 : f32
    %53 = vector.broadcast %cst_26 : f32 to vector<1x128xf32>
    %54 = arith.maximumf %52, %53 : vector<1x128xf32>
    %c0_27 = arith.constant 0 : index
    %c0_28 = arith.constant 0 : index
    %55 = vector.load %arg8[%c0_27, %c0_28] : memref<42x128xf32, #tpu.memory_space<vmem>>, vector<1x128xf32>
    tpu.vector_store %arg8[%c0_27, %c0_28], %54 {strides = array<i32>} : memref<42x128xf32, #tpu.memory_space<vmem>>, vector<1x128xf32>,
    %c7 = arith.constant 7 : index
    %56 = memref.load %arg1[%c7] : memref<294xi32, #tpu.memory_space<smem>>
    %57 = arith.index_cast %56 : i32 to index
    %c0_29 = arith.constant 0 : index
    %58 = vector.load %arg9[%57, %c0_29] : memref<256x256xf32, #tpu.memory_space<vmem>>, vector<1x256xf32>
    %c8 = arith.constant 8 : index
    %59 = memref.load %arg1[%c8] : memref<294xi32, #tpu.memory_space<smem>>
    %60 = arith.index_cast %59 : i32 to index
    %c0_30 = arith.constant 0 : index
    %61 = vector.load %arg9[%60, %c0_30] : memref<256x256xf32, #tpu.memory_space<vmem>>, vector<1x256xf32>
    %c9 = arith.constant 9 : index
    %62 = memref.load %arg1[%c9] : memref<294xi32, #tpu.memory_space<smem>>
    %63 = arith.index_cast %62 : i32 to index
    %c0_31 = arith.constant 0 : index
    %64 = vector.load %arg9[%63, %c0_31] : memref<256x256xf32, #tpu.memory_space<vmem>>, vector<1x256xf32>
    %c10 = arith.constant 10 : index
    %65 = memref.load %arg1[%c10] : memref<294xi32, #tpu.memory_space<smem>>
    %66 = arith.index_cast %65 : i32 to index
    %c0_32 = arith.constant 0 : index
    %67 = vector.load %arg9[%66, %c0_32] : memref<256x256xf32, #tpu.memory_space<vmem>>, vector<1x256xf32>
    %c11 = arith.constant 11 : index
    %68 = memref.load %arg1[%c11] : memref<294xi32, #tpu.memory_space<smem>>
    %69 = arith.index_cast %68 : i32 to index
    %c0_33 = arith.constant 0 : index
    %70 = vector.load %arg9[%69, %c0_33] : memref<256x256xf32, #tpu.memory_space<vmem>>, vector<1x256xf32>
    %c12 = arith.constant 12 : index
    %71 = memref.load %arg1[%c12] : memref<294xi32, #tpu.memory_space<smem>>
    %72 = arith.index_cast %71 : i32 to index
    %c0_34 = arith.constant 0 : index
    %73 = vector.load %arg9[%72, %c0_34] : memref<256x256xf32, #tpu.memory_space<vmem>>, vector<1x256xf32>
    %c13 = arith.constant 13 : index
    %74 = memref.load %arg1[%c13] : memref<294xi32, #tpu.memory_space<smem>>
    %75 = arith.index_cast %74 : i32 to index
    %c0_35 = arith.constant 0 : index
    %76 = vector.load %arg9[%75, %c0_35] : memref<256x256xf32, #tpu.memory_space<vmem>>, vector<1x256xf32>
    %77 = arith.maximumf %58, %61 : vector<1x256xf32>
    %78 = arith.maximumf %64, %67 : vector<1x256xf32>
    %79 = arith.maximumf %70, %73 : vector<1x256xf32>
    %80 = arith.maximumf %77, %78 : vector<1x256xf32>
    %81 = arith.maximumf %79, %76 : vector<1x256xf32>
    %82 = arith.maximumf %80, %81 : vector<1x256xf32>
    %83 = vector.extract_strided_slice %82 {offsets = [0, 0], sizes = [1, 128], strides = [1, 1]} : vector<1x256xf32> to vector<1x128xf32>
    %84 = vector.extract_strided_slice %82 {offsets = [0, 128], sizes = [1, 128], strides = [1, 1]} : vector<1x256xf32> to vector<1x128xf32>
    %85 = arith.addf %83, %84 : vector<1x128xf32>
    %cst_36 = arith.constant 0.000000e+00 : f32
    %86 = vector.broadcast %cst_36 : f32 to vector<1x128xf32>
    %87 = arith.maximumf %85, %86 : vector<1x128xf32>
    %c1_37 = arith.constant 1 : index
    %c0_38 = arith.constant 0 : index
    %88 = vector.load %arg8[%c1_37, %c0_38] : memref<42x128xf32, #tpu.memory_space<vmem>>, vector<1x128xf32>
    tpu.vector_store %arg8[%c1_37, %c0_38], %87 {strides = array<i32>} : memref<42x128xf32, #tpu.memory_space<vmem>>, vector<1x128xf32>,
    %c14 = arith.constant 14 : index
    %89 = memref.load %arg1[%c14] : memref<294xi32, #tpu.memory_space<smem>>
    %90 = arith.index_cast %89 : i32 to index
    %c0_39 = arith.constant 0 : index
    %91 = vector.load %arg9[%90, %c0_39] : memref<256x256xf32, #tpu.memory_space<vmem>>, vector<1x256xf32>
    %c15 = arith.constant 15 : index
    %92 = memref.load %arg1[%c15] : memref<294xi32, #tpu.memory_space<smem>>
    %93 = arith.index_cast %92 : i32 to index
    %c0_40 = arith.constant 0 : index
    %94 = vector.load %arg9[%93, %c0_40] : memref<256x256xf32, #tpu.memory_space<vmem>>, vector<1x256xf32>
    %c16 = arith.constant 16 : index
    %95 = memref.load %arg1[%c16] : memref<294xi32, #tpu.memory_space<smem>>
    %96 = arith.index_cast %95 : i32 to index
    %c0_41 = arith.constant 0 : index
    %97 = vector.load %arg9[%96, %c0_41] : memref<256x256xf32, #tpu.memory_space<vmem>>, vector<1x256xf32>
    %c17 = arith.constant 17 : index
    %98 = memref.load %arg1[%c17] : memref<294xi32, #tpu.memory_space<smem>>
    %99 = arith.index_cast %98 : i32 to index
    %c0_42 = arith.constant 0 : index
    %100 = vector.load %arg9[%99, %c0_42] : memref<256x256xf32, #tpu.memory_space<vmem>>, vector<1x256xf32>
    %c18 = arith.constant 18 : index
    %101 = memref.load %arg1[%c18] : memref<294xi32, #tpu.memory_space<smem>>
    %102 = arith.index_cast %101 : i32 to index
    %c0_43 = arith.constant 0 : index
    %103 = vector.load %arg9[%102, %c0_43] : memref<256x256xf32, #tpu.memory_space<vmem>>, vector<1x256xf32>
    %c19 = arith.constant 19 : index
    %104 = memref.load %arg1[%c19] : memref<294xi32, #tpu.memory_space<smem>>
    %105 = arith.index_cast %104 : i32 to index
    %c0_44 = arith.constant 0 : index
    %106 = vector.load %arg9[%105, %c0_44] : memref<256x256xf32, #tpu.memory_space<vmem>>, vector<1x256xf32>
    %c20 = arith.constant 20 : index
    %107 = memref.load %arg1[%c20] : memref<294xi32, #tpu.memory_space<smem>>
    %108 = arith.index_cast %107 : i32 to index
    %c0_45 = arith.constant 0 : index
    %109 = vector.load %arg9[%108, %c0_45] : memref<256x256xf32, #tpu.memory_space<vmem>>, vector<1x256xf32>
    %110 = arith.maximumf %91, %94 : vector<1x256xf32>
    %111 = arith.maximumf %97, %100 : vector<1x256xf32>
    %112 = arith.maximumf %103, %106 : vector<1x256xf32>
    %113 = arith.maximumf %110, %111 : vector<1x256xf32>
    %114 = arith.maximumf %112, %109 : vector<1x256xf32>
    %115 = arith.maximumf %113, %114 : vector<1x256xf32>
    %116 = vector.extract_strided_slice %115 {offsets = [0, 0], sizes = [1, 128], strides = [1, 1]} : vector<1x256xf32> to vector<1x128xf32>
    %117 = vector.extract_strided_slice %115 {offsets = [0, 128], sizes = [1, 128], strides = [1, 1]} : vector<1x256xf32> to vector<1x128xf32>
    %118 = arith.addf %116, %117 : vector<1x128xf32>
    %cst_46 = arith.constant 0.000000e+00 : f32
    %119 = vector.broadcast %cst_46 : f32 to vector<1x128xf32>
    %120 = arith.maximumf %118, %119 : vector<1x128xf32>
    %c2_47 = arith.constant 2 : index
    %c0_48 = arith.constant 0 : index
    %121 = vector.load %arg8[%c2_47, %c0_48] : memref<42x128xf32, #tpu.memory_space<vmem>>, vector<1x128xf32>
    tpu.vector_store %arg8[%c2_47, %c0_48], %120 {strides = array<i32>} : memref<42x128xf32, #tpu.memory_space<vmem>>, vector<1x128xf32>,
    %c21 = arith.constant 21 : index
    %122 = memref.load %arg1[%c21] : memref<294xi32, #tpu.memory_space<smem>>
    %123 = arith.index_cast %122 : i32 to index
    %c0_49 = arith.constant 0 : index
    %124 = vector.load %arg9[%123, %c0_49] : memref<256x256xf32, #tpu.memory_space<vmem>>, vector<1x256xf32>
    %c22 = arith.constant 22 : index
    %125 = memref.load %arg1[%c22] : memref<294xi32, #tpu.memory_space<smem>>
    %126 = arith.index_cast %125 : i32 to index
    %c0_50 = arith.constant 0 : index
    %127 = vector.load %arg9[%126, %c0_50] : memref<256x256xf32, #tpu.memory_space<vmem>>, vector<1x256xf32>
    %c23 = arith.constant 23 : index
    %128 = memref.load %arg1[%c23] : memref<294xi32, #tpu.memory_space<smem>>
    %129 = arith.index_cast %128 : i32 to index
    %c0_51 = arith.constant 0 : index
    %130 = vector.load %arg9[%129, %c0_51] : memref<256x256xf32, #tpu.memory_space<vmem>>, vector<1x256xf32>
    %c24 = arith.constant 24 : index
    %131 = memref.load %arg1[%c24] : memref<294xi32, #tpu.memory_space<smem>>
    %132 = arith.index_cast %131 : i32 to index
    %c0_52 = arith.constant 0 : index
    %133 = vector.load %arg9[%132, %c0_52] : memref<256x256xf32, #tpu.memory_space<vmem>>, vector<1x256xf32>
    %c25 = arith.constant 25 : index
    %134 = memref.load %arg1[%c25] : memref<294xi32, #tpu.memory_space<smem>>
    %135 = arith.index_cast %134 : i32 to index
    %c0_53 = arith.constant 0 : index
    %136 = vector.load %arg9[%135, %c0_53] : memref<256x256xf32, #tpu.memory_space<vmem>>, vector<1x256xf32>
    %c26 = arith.constant 26 : index
    %137 = memref.load %arg1[%c26] : memref<294xi32, #tpu.memory_space<smem>>
    %138 = arith.index_cast %137 : i32 to index
    %c0_54 = arith.constant 0 : index
    %139 = vector.load %arg9[%138, %c0_54] : memref<256x256xf32, #tpu.memory_space<vmem>>, vector<1x256xf32>
    %c27 = arith.constant 27 : index
    %140 = memref.load %arg1[%c27] : memref<294xi32, #tpu.memory_space<smem>>
    %141 = arith.index_cast %140 : i32 to index
    %c0_55 = arith.constant 0 : index
    %142 = vector.load %arg9[%141, %c0_55] : memref<256x256xf32, #tpu.memory_space<vmem>>, vector<1x256xf32>
    %143 = arith.maximumf %124, %127 : vector<1x256xf32>
    %144 = arith.maximumf %130, %133 : vector<1x256xf32>
    %145 = arith.maximumf %136, %139 : vector<1x256xf32>
    %146 = arith.maximumf %143, %144 : vector<1x256xf32>
    %147 = arith.maximumf %145, %142 : vector<1x256xf32>
    %148 = arith.maximumf %146, %147 : vector<1x256xf32>
    %149 = vector.extract_strided_slice %148 {offsets = [0, 0], sizes = [1, 128], strides = [1, 1]} : vector<1x256xf32> to vector<1x128xf32>
    %150 = vector.extract_strided_slice %148 {offsets = [0, 128], sizes = [1, 128], strides = [1, 1]} : vector<1x256xf32> to vector<1x128xf32>
    %151 = arith.addf %149, %150 : vector<1x128xf32>
    %cst_56 = arith.constant 0.000000e+00 : f32
    %152 = vector.broadcast %cst_56 : f32 to vector<1x128xf32>
    %153 = arith.maximumf %151, %152 : vector<1x128xf32>
    %c3_57 = arith.constant 3 : index
    %c0_58 = arith.constant 0 : index
    %154 = vector.load %arg8[%c3_57, %c0_58] : memref<42x128xf32, #tpu.memory_space<vmem>>, vector<1x128xf32>
    tpu.vector_store %arg8[%c3_57, %c0_58], %153 {strides = array<i32>} : memref<42x128xf32, #tpu.memory_space<vmem>>, vector<1x128xf32>,
    %c28 = arith.constant 28 : index
    %155 = memref.load %arg1[%c28] : memref<294xi32, #tpu.memory_space<smem>>
    %156 = arith.index_cast %155 : i32 to index
    %c0_59 = arith.constant 0 : index
    %157 = vector.load %arg9[%156, %c0_59] : memref<256x256xf32, #tpu.memory_space<vmem>>, vector<1x256xf32>
    %c29 = arith.constant 29 : index
    %158 = memref.load %arg1[%c29] : memref<294xi32, #tpu.memory_space<smem>>
    %159 = arith.index_cast %158 : i32 to index
    %c0_60 = arith.constant 0 : index
    %160 = vector.load %arg9[%159, %c0_60] : memref<256x256xf32, #tpu.memory_space<vmem>>, vector<1x256xf32>
    %c30 = arith.constant 30 : index
    %161 = memref.load %arg1[%c30] : memref<294xi32, #tpu.memory_space<smem>>
    %162 = arith.index_cast %161 : i32 to index
    %c0_61 = arith.constant 0 : index
    %163 = vector.load %arg9[%162, %c0_61] : memref<256x256xf32, #tpu.memory_space<vmem>>, vector<1x256xf32>
    %c31 = arith.constant 31 : index
    %164 = memref.load %arg1[%c31] : memref<294xi32, #tpu.memory_space<smem>>
    %165 = arith.index_cast %164 : i32 to index
    %c0_62 = arith.constant 0 : index
    %166 = vector.load %arg9[%165, %c0_62] : memref<256x256xf32, #tpu.memory_space<vmem>>, vector<1x256xf32>
    %c32 = arith.constant 32 : index
    %167 = memref.load %arg1[%c32] : memref<294xi32, #tpu.memory_space<smem>>
    %168 = arith.index_cast %167 : i32 to index
    %c0_63 = arith.constant 0 : index
    %169 = vector.load %arg9[%168, %c0_63] : memref<256x256xf32, #tpu.memory_space<vmem>>, vector<1x256xf32>
    %c33 = arith.constant 33 : index
    %170 = memref.load %arg1[%c33] : memref<294xi32, #tpu.memory_space<smem>>
    %171 = arith.index_cast %170 : i32 to index
    %c0_64 = arith.constant 0 : index
    %172 = vector.load %arg9[%171, %c0_64] : memref<256x256xf32, #tpu.memory_space<vmem>>, vector<1x256xf32>
    %c34 = arith.constant 34 : index
    %173 = memref.load %arg1[%c34] : memref<294xi32, #tpu.memory_space<smem>>
    %174 = arith.index_cast %173 : i32 to index
    %c0_65 = arith.constant 0 : index
    %175 = vector.load %arg9[%174, %c0_65] : memref<256x256xf32, #tpu.memory_space<vmem>>, vector<1x256xf32>
    %176 = arith.maximumf %157, %160 : vector<1x256xf32>
    %177 = arith.maximumf %163, %166 : vector<1x256xf32>
    %178 = arith.maximumf %169, %172 : vector<1x256xf32>
    %179 = arith.maximumf %176, %177 : vector<1x256xf32>
    %180 = arith.maximumf %178, %175 : vector<1x256xf32>
    %181 = arith.maximumf %179, %180 : vector<1x256xf32>
    %182 = vector.extract_strided_slice %181 {offsets = [0, 0], sizes = [1, 128], strides = [1, 1]} : vector<1x256xf32> to vector<1x128xf32>
    %183 = vector.extract_strided_slice %181 {offsets = [0, 128], sizes = [1, 128], strides = [1, 1]} : vector<1x256xf32> to vector<1x128xf32>
    %184 = arith.addf %182, %183 : vector<1x128xf32>
    %cst_66 = arith.constant 0.000000e+00 : f32
    %185 = vector.broadcast %cst_66 : f32 to vector<1x128xf32>
    %186 = arith.maximumf %184, %185 : vector<1x128xf32>
    %c4_67 = arith.constant 4 : index
    %c0_68 = arith.constant 0 : index
    %187 = vector.load %arg8[%c4_67, %c0_68] : memref<42x128xf32, #tpu.memory_space<vmem>>, vector<1x128xf32>
    tpu.vector_store %arg8[%c4_67, %c0_68], %186 {strides = array<i32>} : memref<42x128xf32, #tpu.memory_space<vmem>>, vector<1x128xf32>,
    %c35 = arith.constant 35 : index
    %188 = memref.load %arg1[%c35] : memref<294xi32, #tpu.memory_space<smem>>
    %189 = arith.index_cast %188 : i32 to index
    %c0_69 = arith.constant 0 : index
    %190 = vector.load %arg9[%189, %c0_69] : memref<256x256xf32, #tpu.memory_space<vmem>>, vector<1x256xf32>
    %c36 = arith.constant 36 : index
    %191 = memref.load %arg1[%c36] : memref<294xi32, #tpu.memory_space<smem>>
    %192 = arith.index_cast %191 : i32 to index
    %c0_70 = arith.constant 0 : index
    %193 = vector.load %arg9[%192, %c0_70] : memref<256x256xf32, #tpu.memory_space<vmem>>, vector<1x256xf32>
    %c37 = arith.constant 37 : index
    %194 = memref.load %arg1[%c37] : memref<294xi32, #tpu.memory_space<smem>>
    %195 = arith.index_cast %194 : i32 to index
    %c0_71 = arith.constant 0 : index
    %196 = vector.load %arg9[%195, %c0_71] : memref<256x256xf32, #tpu.memory_space<vmem>>, vector<1x256xf32>
    %c38 = arith.constant 38 : index
    %197 = memref.load %arg1[%c38] : memref<294xi32, #tpu.memory_space<smem>>
    %198 = arith.index_cast %197 : i32 to index
    %c0_72 = arith.constant 0 : index
    %199 = vector.load %arg9[%198, %c0_72] : memref<256x256xf32, #tpu.memory_space<vmem>>, vector<1x256xf32>
    %c39 = arith.constant 39 : index
    %200 = memref.load %arg1[%c39] : memref<294xi32, #tpu.memory_space<smem>>
    %201 = arith.index_cast %200 : i32 to index
    %c0_73 = arith.constant 0 : index
    %202 = vector.load %arg9[%201, %c0_73] : memref<256x256xf32, #tpu.memory_space<vmem>>, vector<1x256xf32>
    %c40 = arith.constant 40 : index
    %203 = memref.load %arg1[%c40] : memref<294xi32, #tpu.memory_space<smem>>
    %204 = arith.index_cast %203 : i32 to index
    %c0_74 = arith.constant 0 : index
    %205 = vector.load %arg9[%204, %c0_74] : memref<256x256xf32, #tpu.memory_space<vmem>>, vector<1x256xf32>
    %c41 = arith.constant 41 : index
    %206 = memref.load %arg1[%c41] : memref<294xi32, #tpu.memory_space<smem>>
    %207 = arith.index_cast %206 : i32 to index
    %c0_75 = arith.constant 0 : index
    %208 = vector.load %arg9[%207, %c0_75] : memref<256x256xf32, #tpu.memory_space<vmem>>, vector<1x256xf32>
    %209 = arith.maximumf %190, %193 : vector<1x256xf32>
    %210 = arith.maximumf %196, %199 : vector<1x256xf32>
    %211 = arith.maximumf %202, %205 : vector<1x256xf32>
    %212 = arith.maximumf %209, %210 : vector<1x256xf32>
    %213 = arith.maximumf %211, %208 : vector<1x256xf32>
    %214 = arith.maximumf %212, %213 : vector<1x256xf32>
    %215 = vector.extract_strided_slice %214 {offsets = [0, 0], sizes = [1, 128], strides = [1, 1]} : vector<1x256xf32> to vector<1x128xf32>
    %216 = vector.extract_strided_slice %214 {offsets = [0, 128], sizes = [1, 128], strides = [1, 1]} : vector<1x256xf32> to vector<1x128xf32>
    %217 = arith.addf %215, %216 : vector<1x128xf32>
    %cst_76 = arith.constant 0.000000e+00 : f32
    %218 = vector.broadcast %cst_76 : f32 to vector<1x128xf32>
    %219 = arith.maximumf %217, %218 : vector<1x128xf32>
    %c5_77 = arith.constant 5 : index
    %c0_78 = arith.constant 0 : index
    %220 = vector.load %arg8[%c5_77, %c0_78] : memref<42x128xf32, #tpu.memory_space<vmem>>, vector<1x128xf32>
    tpu.vector_store %arg8[%c5_77, %c0_78], %219 {strides = array<i32>} : memref<42x128xf32, #tpu.memory_space<vmem>>, vector<1x128xf32>,
    %c42 = arith.constant 42 : index
    %221 = memref.load %arg1[%c42] : memref<294xi32, #tpu.memory_space<smem>>
    %222 = arith.index_cast %221 : i32 to index
    %c0_79 = arith.constant 0 : index
    %223 = vector.load %arg9[%222, %c0_79] : memref<256x256xf32, #tpu.memory_space<vmem>>, vector<1x256xf32>
    %c43 = arith.constant 43 : index
    %224 = memref.load %arg1[%c43] : memref<294xi32, #tpu.memory_space<smem>>
    %225 = arith.index_cast %224 : i32 to index
    %c0_80 = arith.constant 0 : index
    %226 = vector.load %arg9[%225, %c0_80] : memref<256x256xf32, #tpu.memory_space<vmem>>, vector<1x256xf32>
    %c44 = arith.constant 44 : index
    %227 = memref.load %arg1[%c44] : memref<294xi32, #tpu.memory_space<smem>>
    %228 = arith.index_cast %227 : i32 to index
    %c0_81 = arith.constant 0 : index
    %229 = vector.load %arg9[%228, %c0_81] : memref<256x256xf32, #tpu.memory_space<vmem>>, vector<1x256xf32>
    %c45 = arith.constant 45 : index
    %230 = memref.load %arg1[%c45] : memref<294xi32, #tpu.memory_space<smem>>
    %231 = arith.index_cast %230 : i32 to index
    %c0_82 = arith.constant 0 : index
    %232 = vector.load %arg9[%231, %c0_82] : memref<256x256xf32, #tpu.memory_space<vmem>>, vector<1x256xf32>
    %c46 = arith.constant 46 : index
    %233 = memref.load %arg1[%c46] : memref<294xi32, #tpu.memory_space<smem>>
    %234 = arith.index_cast %233 : i32 to index
    %c0_83 = arith.constant 0 : index
    %235 = vector.load %arg9[%234, %c0_83] : memref<256x256xf32, #tpu.memory_space<vmem>>, vector<1x256xf32>
    %c47 = arith.constant 47 : index
    %236 = memref.load %arg1[%c47] : memref<294xi32, #tpu.memory_space<smem>>
    %237 = arith.index_cast %236 : i32 to index
    %c0_84 = arith.constant 0 : index
    %238 = vector.load %arg9[%237, %c0_84] : memref<256x256xf32, #tpu.memory_space<vmem>>, vector<1x256xf32>
    %c48 = arith.constant 48 : index
    %239 = memref.load %arg1[%c48] : memref<294xi32, #tpu.memory_space<smem>>
    %240 = arith.index_cast %239 : i32 to index
    %c0_85 = arith.constant 0 : index
    %241 = vector.load %arg9[%240, %c0_85] : memref<256x256xf32, #tpu.memory_space<vmem>>, vector<1x256xf32>
    %242 = arith.maximumf %223, %226 : vector<1x256xf32>
    %243 = arith.maximumf %229, %232 : vector<1x256xf32>
    %244 = arith.maximumf %235, %238 : vector<1x256xf32>
    %245 = arith.maximumf %242, %243 : vector<1x256xf32>
    %246 = arith.maximumf %244, %241 : vector<1x256xf32>
    %247 = arith.maximumf %245, %246 : vector<1x256xf32>
    %248 = vector.extract_strided_slice %247 {offsets = [0, 0], sizes = [1, 128], strides = [1, 1]} : vector<1x256xf32> to vector<1x128xf32>
    %249 = vector.extract_strided_slice %247 {offsets = [0, 128], sizes = [1, 128], strides = [1, 1]} : vector<1x256xf32> to vector<1x128xf32>
    %250 = arith.addf %248, %249 : vector<1x128xf32>
    %cst_86 = arith.constant 0.000000e+00 : f32
    %251 = vector.broadcast %cst_86 : f32 to vector<1x128xf32>
    %252 = arith.maximumf %250, %251 : vector<1x128xf32>
    %c6_87 = arith.constant 6 : index
    %c0_88 = arith.constant 0 : index
    %253 = vector.load %arg8[%c6_87, %c0_88] : memref<42x128xf32, #tpu.memory_space<vmem>>, vector<1x128xf32>
    tpu.vector_store %arg8[%c6_87, %c0_88], %252 {strides = array<i32>} : memref<42x128xf32, #tpu.memory_space<vmem>>, vector<1x128xf32>,
    %c49 = arith.constant 49 : index
    %254 = memref.load %arg1[%c49] : memref<294xi32, #tpu.memory_space<smem>>
    %255 = arith.index_cast %254 : i32 to index
    %c0_89 = arith.constant 0 : index
    %256 = vector.load %arg9[%255, %c0_89] : memref<256x256xf32, #tpu.memory_space<vmem>>, vector<1x256xf32>
    %c50 = arith.constant 50 : index
    %257 = memref.load %arg1[%c50] : memref<294xi32, #tpu.memory_space<smem>>
    %258 = arith.index_cast %257 : i32 to index
    %c0_90 = arith.constant 0 : index
    %259 = vector.load %arg9[%258, %c0_90] : memref<256x256xf32, #tpu.memory_space<vmem>>, vector<1x256xf32>
    %c51 = arith.constant 51 : index
    %260 = memref.load %arg1[%c51] : memref<294xi32, #tpu.memory_space<smem>>
    %261 = arith.index_cast %260 : i32 to index
    %c0_91 = arith.constant 0 : index
    %262 = vector.load %arg9[%261, %c0_91] : memref<256x256xf32, #tpu.memory_space<vmem>>, vector<1x256xf32>
    %c52 = arith.constant 52 : index
    %263 = memref.load %arg1[%c52] : memref<294xi32, #tpu.memory_space<smem>>
    %264 = arith.index_cast %263 : i32 to index
    %c0_92 = arith.constant 0 : index
    %265 = vector.load %arg9[%264, %c0_92] : memref<256x256xf32, #tpu.memory_space<vmem>>, vector<1x256xf32>
    %c53 = arith.constant 53 : index
    %266 = memref.load %arg1[%c53] : memref<294xi32, #tpu.memory_space<smem>>
    %267 = arith.index_cast %266 : i32 to index
    %c0_93 = arith.constant 0 : index
    %268 = vector.load %arg9[%267, %c0_93] : memref<256x256xf32, #tpu.memory_space<vmem>>, vector<1x256xf32>
    %c54 = arith.constant 54 : index
    %269 = memref.load %arg1[%c54] : memref<294xi32, #tpu.memory_space<smem>>
    %270 = arith.index_cast %269 : i32 to index
    %c0_94 = arith.constant 0 : index
    %271 = vector.load %arg9[%270, %c0_94] : memref<256x256xf32, #tpu.memory_space<vmem>>, vector<1x256xf32>
    %c55 = arith.constant 55 : index
    %272 = memref.load %arg1[%c55] : memref<294xi32, #tpu.memory_space<smem>>
    %273 = arith.index_cast %272 : i32 to index
    %c0_95 = arith.constant 0 : index
    %274 = vector.load %arg9[%273, %c0_95] : memref<256x256xf32, #tpu.memory_space<vmem>>, vector<1x256xf32>
    %275 = arith.maximumf %256, %259 : vector<1x256xf32>
    %276 = arith.maximumf %262, %265 : vector<1x256xf32>
    %277 = arith.maximumf %268, %271 : vector<1x256xf32>
    %278 = arith.maximumf %275, %276 : vector<1x256xf32>
    %279 = arith.maximumf %277, %274 : vector<1x256xf32>
    %280 = arith.maximumf %278, %279 : vector<1x256xf32>
    %281 = vector.extract_strided_slice %280 {offsets = [0, 0], sizes = [1, 128], strides = [1, 1]} : vector<1x256xf32> to vector<1x128xf32>
    %282 = vector.extract_strided_slice %280 {offsets = [0, 128], sizes = [1, 128], strides = [1, 1]} : vector<1x256xf32> to vector<1x128xf32>
    %283 = arith.addf %281, %282 : vector<1x128xf32>
    %cst_96 = arith.constant 0.000000e+00 : f32
    %284 = vector.broadcast %cst_96 : f32 to vector<1x128xf32>
    %285 = arith.maximumf %283, %284 : vector<1x128xf32>
    %c7_97 = arith.constant 7 : index
    %c0_98 = arith.constant 0 : index
    %286 = vector.load %arg8[%c7_97, %c0_98] : memref<42x128xf32, #tpu.memory_space<vmem>>, vector<1x128xf32>
    tpu.vector_store %arg8[%c7_97, %c0_98], %285 {strides = array<i32>} : memref<42x128xf32, #tpu.memory_space<vmem>>, vector<1x128xf32>,
    %c56 = arith.constant 56 : index
    %287 = memref.load %arg1[%c56] : memref<294xi32, #tpu.memory_space<smem>>
    %288 = arith.index_cast %287 : i32 to index
    %c0_99 = arith.constant 0 : index
    %289 = vector.load %arg9[%288, %c0_99] : memref<256x256xf32, #tpu.memory_space<vmem>>, vector<1x256xf32>
    %c57 = arith.constant 57 : index
    %290 = memref.load %arg1[%c57] : memref<294xi32, #tpu.memory_space<smem>>
    %291 = arith.index_cast %290 : i32 to index
    %c0_100 = arith.constant 0 : index
    %292 = vector.load %arg9[%291, %c0_100] : memref<256x256xf32, #tpu.memory_space<vmem>>, vector<1x256xf32>
    %c58 = arith.constant 58 : index
    %293 = memref.load %arg1[%c58] : memref<294xi32, #tpu.memory_space<smem>>
    %294 = arith.index_cast %293 : i32 to index
    %c0_101 = arith.constant 0 : index
    %295 = vector.load %arg9[%294, %c0_101] : memref<256x256xf32, #tpu.memory_space<vmem>>, vector<1x256xf32>
    %c59 = arith.constant 59 : index
    %296 = memref.load %arg1[%c59] : memref<294xi32, #tpu.memory_space<smem>>
    %297 = arith.index_cast %296 : i32 to index
    %c0_102 = arith.constant 0 : index
    %298 = vector.load %arg9[%297, %c0_102] : memref<256x256xf32, #tpu.memory_space<vmem>>, vector<1x256xf32>
    %c60 = arith.constant 60 : index
    %299 = memref.load %arg1[%c60] : memref<294xi32, #tpu.memory_space<smem>>
    %300 = arith.index_cast %299 : i32 to index
    %c0_103 = arith.constant 0 : index
    %301 = vector.load %arg9[%300, %c0_103] : memref<256x256xf32, #tpu.memory_space<vmem>>, vector<1x256xf32>
    %c61 = arith.constant 61 : index
    %302 = memref.load %arg1[%c61] : memref<294xi32, #tpu.memory_space<smem>>
    %303 = arith.index_cast %302 : i32 to index
    %c0_104 = arith.constant 0 : index
    %304 = vector.load %arg9[%303, %c0_104] : memref<256x256xf32, #tpu.memory_space<vmem>>, vector<1x256xf32>
    %c62 = arith.constant 62 : index
    %305 = memref.load %arg1[%c62] : memref<294xi32, #tpu.memory_space<smem>>
    %306 = arith.index_cast %305 : i32 to index
    %c0_105 = arith.constant 0 : index
    %307 = vector.load %arg9[%306, %c0_105] : memref<256x256xf32, #tpu.memory_space<vmem>>, vector<1x256xf32>
    %308 = arith.maximumf %289, %292 : vector<1x256xf32>
    %309 = arith.maximumf %295, %298 : vector<1x256xf32>
    %310 = arith.maximumf %301, %304 : vector<1x256xf32>
    %311 = arith.maximumf %308, %309 : vector<1x256xf32>
    %312 = arith.maximumf %310, %307 : vector<1x256xf32>
    %313 = arith.maximumf %311, %312 : vector<1x256xf32>
    %314 = vector.extract_strided_slice %313 {offsets = [0, 0], sizes = [1, 128], strides = [1, 1]} : vector<1x256xf32> to vector<1x128xf32>
    %315 = vector.extract_strided_slice %313 {offsets = [0, 128], sizes = [1, 128], strides = [1, 1]} : vector<1x256xf32> to vector<1x128xf32>
    %316 = arith.addf %314, %315 : vector<1x128xf32>
    %cst_106 = arith.constant 0.000000e+00 : f32
    %317 = vector.broadcast %cst_106 : f32 to vector<1x128xf32>
    %318 = arith.maximumf %316, %317 : vector<1x128xf32>
    %c8_107 = arith.constant 8 : index
    %c0_108 = arith.constant 0 : index
    %319 = vector.load %arg8[%c8_107, %c0_108] : memref<42x128xf32, #tpu.memory_space<vmem>>, vector<1x128xf32>
    tpu.vector_store %arg8[%c8_107, %c0_108], %318 {strides = array<i32>} : memref<42x128xf32, #tpu.memory_space<vmem>>, vector<1x128xf32>,
    %c63 = arith.constant 63 : index
    %320 = memref.load %arg1[%c63] : memref<294xi32, #tpu.memory_space<smem>>
    %321 = arith.index_cast %320 : i32 to index
    %c0_109 = arith.constant 0 : index
    %322 = vector.load %arg9[%321, %c0_109] : memref<256x256xf32, #tpu.memory_space<vmem>>, vector<1x256xf32>
    %c64 = arith.constant 64 : index
    %323 = memref.load %arg1[%c64] : memref<294xi32, #tpu.memory_space<smem>>
    %324 = arith.index_cast %323 : i32 to index
    %c0_110 = arith.constant 0 : index
    %325 = vector.load %arg9[%324, %c0_110] : memref<256x256xf32, #tpu.memory_space<vmem>>, vector<1x256xf32>
    %c65 = arith.constant 65 : index
    %326 = memref.load %arg1[%c65] : memref<294xi32, #tpu.memory_space<smem>>
    %327 = arith.index_cast %326 : i32 to index
    %c0_111 = arith.constant 0 : index
    %328 = vector.load %arg9[%327, %c0_111] : memref<256x256xf32, #tpu.memory_space<vmem>>, vector<1x256xf32>
    %c66 = arith.constant 66 : index
    %329 = memref.load %arg1[%c66] : memref<294xi32, #tpu.memory_space<smem>>
    %330 = arith.index_cast %329 : i32 to index
    %c0_112 = arith.constant 0 : index
    %331 = vector.load %arg9[%330, %c0_112] : memref<256x256xf32, #tpu.memory_space<vmem>>, vector<1x256xf32>
    %c67 = arith.constant 67 : index
    %332 = memref.load %arg1[%c67] : memref<294xi32, #tpu.memory_space<smem>>
    %333 = arith.index_cast %332 : i32 to index
    %c0_113 = arith.constant 0 : index
    %334 = vector.load %arg9[%333, %c0_113] : memref<256x256xf32, #tpu.memory_space<vmem>>, vector<1x256xf32>
    %c68 = arith.constant 68 : index
    %335 = memref.load %arg1[%c68] : memref<294xi32, #tpu.memory_space<smem>>
    %336 = arith.index_cast %335 : i32 to index
    %c0_114 = arith.constant 0 : index
    %337 = vector.load %arg9[%336, %c0_114] : memref<256x256xf32, #tpu.memory_space<vmem>>, vector<1x256xf32>
    %c69 = arith.constant 69 : index
    %338 = memref.load %arg1[%c69] : memref<294xi32, #tpu.memory_space<smem>>
    %339 = arith.index_cast %338 : i32 to index
    %c0_115 = arith.constant 0 : index
    %340 = vector.load %arg9[%339, %c0_115] : memref<256x256xf32, #tpu.memory_space<vmem>>, vector<1x256xf32>
    %341 = arith.maximumf %322, %325 : vector<1x256xf32>
    %342 = arith.maximumf %328, %331 : vector<1x256xf32>
    %343 = arith.maximumf %334, %337 : vector<1x256xf32>
    %344 = arith.maximumf %341, %342 : vector<1x256xf32>
    %345 = arith.maximumf %343, %340 : vector<1x256xf32>
    %346 = arith.maximumf %344, %345 : vector<1x256xf32>
    %347 = vector.extract_strided_slice %346 {offsets = [0, 0], sizes = [1, 128], strides = [1, 1]} : vector<1x256xf32> to vector<1x128xf32>
    %348 = vector.extract_strided_slice %346 {offsets = [0, 128], sizes = [1, 128], strides = [1, 1]} : vector<1x256xf32> to vector<1x128xf32>
    %349 = arith.addf %347, %348 : vector<1x128xf32>
    %cst_116 = arith.constant 0.000000e+00 : f32
    %350 = vector.broadcast %cst_116 : f32 to vector<1x128xf32>
    %351 = arith.maximumf %349, %350 : vector<1x128xf32>
    %c9_117 = arith.constant 9 : index
    %c0_118 = arith.constant 0 : index
    %352 = vector.load %arg8[%c9_117, %c0_118] : memref<42x128xf32, #tpu.memory_space<vmem>>, vector<1x128xf32>
    tpu.vector_store %arg8[%c9_117, %c0_118], %351 {strides = array<i32>} : memref<42x128xf32, #tpu.memory_space<vmem>>, vector<1x128xf32>,
    %c70 = arith.constant 70 : index
    %353 = memref.load %arg1[%c70] : memref<294xi32, #tpu.memory_space<smem>>
    %354 = arith.index_cast %353 : i32 to index
    %c0_119 = arith.constant 0 : index
    %355 = vector.load %arg9[%354, %c0_119] : memref<256x256xf32, #tpu.memory_space<vmem>>, vector<1x256xf32>
    %c71 = arith.constant 71 : index
    %356 = memref.load %arg1[%c71] : memref<294xi32, #tpu.memory_space<smem>>
    %357 = arith.index_cast %356 : i32 to index
    %c0_120 = arith.constant 0 : index
    %358 = vector.load %arg9[%357, %c0_120] : memref<256x256xf32, #tpu.memory_space<vmem>>, vector<1x256xf32>
    %c72 = arith.constant 72 : index
    %359 = memref.load %arg1[%c72] : memref<294xi32, #tpu.memory_space<smem>>
    %360 = arith.index_cast %359 : i32 to index
    %c0_121 = arith.constant 0 : index
    %361 = vector.load %arg9[%360, %c0_121] : memref<256x256xf32, #tpu.memory_space<vmem>>, vector<1x256xf32>
    %c73 = arith.constant 73 : index
    %362 = memref.load %arg1[%c73] : memref<294xi32, #tpu.memory_space<smem>>
    %363 = arith.index_cast %362 : i32 to index
    %c0_122 = arith.constant 0 : index
    %364 = vector.load %arg9[%363, %c0_122] : memref<256x256xf32, #tpu.memory_space<vmem>>, vector<1x256xf32>
    %c74 = arith.constant 74 : index
    %365 = memref.load %arg1[%c74] : memref<294xi32, #tpu.memory_space<smem>>
    %366 = arith.index_cast %365 : i32 to index
    %c0_123 = arith.constant 0 : index
    %367 = vector.load %arg9[%366, %c0_123] : memref<256x256xf32, #tpu.memory_space<vmem>>, vector<1x256xf32>
    %c75 = arith.constant 75 : index
    %368 = memref.load %arg1[%c75] : memref<294xi32, #tpu.memory_space<smem>>
    %369 = arith.index_cast %368 : i32 to index
    %c0_124 = arith.constant 0 : index
    %370 = vector.load %arg9[%369, %c0_124] : memref<256x256xf32, #tpu.memory_space<vmem>>, vector<1x256xf32>
    %c76 = arith.constant 76 : index
    %371 = memref.load %arg1[%c76] : memref<294xi32, #tpu.memory_space<smem>>
    %372 = arith.index_cast %371 : i32 to index
    %c0_125 = arith.constant 0 : index
    %373 = vector.load %arg9[%372, %c0_125] : memref<256x256xf32, #tpu.memory_space<vmem>>, vector<1x256xf32>
    %374 = arith.maximumf %355, %358 : vector<1x256xf32>
    %375 = arith.maximumf %361, %364 : vector<1x256xf32>
    %376 = arith.maximumf %367, %370 : vector<1x256xf32>
    %377 = arith.maximumf %374, %375 : vector<1x256xf32>
    %378 = arith.maximumf %376, %373 : vector<1x256xf32>
    %379 = arith.maximumf %377, %378 : vector<1x256xf32>
    %380 = vector.extract_strided_slice %379 {offsets = [0, 0], sizes = [1, 128], strides = [1, 1]} : vector<1x256xf32> to vector<1x128xf32>
    %381 = vector.extract_strided_slice %379 {offsets = [0, 128], sizes = [1, 128], strides = [1, 1]} : vector<1x256xf32> to vector<1x128xf32>
    %382 = arith.addf %380, %381 : vector<1x128xf32>
    %cst_126 = arith.constant 0.000000e+00 : f32
    %383 = vector.broadcast %cst_126 : f32 to vector<1x128xf32>
    %384 = arith.maximumf %382, %383 : vector<1x128xf32>
    %c10_127 = arith.constant 10 : index
    %c0_128 = arith.constant 0 : index
    %385 = vector.load %arg8[%c10_127, %c0_128] : memref<42x128xf32, #tpu.memory_space<vmem>>, vector<1x128xf32>
    tpu.vector_store %arg8[%c10_127, %c0_128], %384 {strides = array<i32>} : memref<42x128xf32, #tpu.memory_space<vmem>>, vector<1x128xf32>,
    %c77 = arith.constant 77 : index
    %386 = memref.load %arg1[%c77] : memref<294xi32, #tpu.memory_space<smem>>
    %387 = arith.index_cast %386 : i32 to index
    %c0_129 = arith.constant 0 : index
    %388 = vector.load %arg9[%387, %c0_129] : memref<256x256xf32, #tpu.memory_space<vmem>>, vector<1x256xf32>
    %c78 = arith.constant 78 : index
    %389 = memref.load %arg1[%c78] : memref<294xi32, #tpu.memory_space<smem>>
    %390 = arith.index_cast %389 : i32 to index
    %c0_130 = arith.constant 0 : index
    %391 = vector.load %arg9[%390, %c0_130] : memref<256x256xf32, #tpu.memory_space<vmem>>, vector<1x256xf32>
    %c79 = arith.constant 79 : index
    %392 = memref.load %arg1[%c79] : memref<294xi32, #tpu.memory_space<smem>>
    %393 = arith.index_cast %392 : i32 to index
    %c0_131 = arith.constant 0 : index
    %394 = vector.load %arg9[%393, %c0_131] : memref<256x256xf32, #tpu.memory_space<vmem>>, vector<1x256xf32>
    %c80 = arith.constant 80 : index
    %395 = memref.load %arg1[%c80] : memref<294xi32, #tpu.memory_space<smem>>
    %396 = arith.index_cast %395 : i32 to index
    %c0_132 = arith.constant 0 : index
    %397 = vector.load %arg9[%396, %c0_132] : memref<256x256xf32, #tpu.memory_space<vmem>>, vector<1x256xf32>
    %c81 = arith.constant 81 : index
    %398 = memref.load %arg1[%c81] : memref<294xi32, #tpu.memory_space<smem>>
    %399 = arith.index_cast %398 : i32 to index
    %c0_133 = arith.constant 0 : index
    %400 = vector.load %arg9[%399, %c0_133] : memref<256x256xf32, #tpu.memory_space<vmem>>, vector<1x256xf32>
    %c82 = arith.constant 82 : index
    %401 = memref.load %arg1[%c82] : memref<294xi32, #tpu.memory_space<smem>>
    %402 = arith.index_cast %401 : i32 to index
    %c0_134 = arith.constant 0 : index
    %403 = vector.load %arg9[%402, %c0_134] : memref<256x256xf32, #tpu.memory_space<vmem>>, vector<1x256xf32>
    %c83 = arith.constant 83 : index
    %404 = memref.load %arg1[%c83] : memref<294xi32, #tpu.memory_space<smem>>
    %405 = arith.index_cast %404 : i32 to index
    %c0_135 = arith.constant 0 : index
    %406 = vector.load %arg9[%405, %c0_135] : memref<256x256xf32, #tpu.memory_space<vmem>>, vector<1x256xf32>
    %407 = arith.maximumf %388, %391 : vector<1x256xf32>
    %408 = arith.maximumf %394, %397 : vector<1x256xf32>
    %409 = arith.maximumf %400, %403 : vector<1x256xf32>
    %410 = arith.maximumf %407, %408 : vector<1x256xf32>
    %411 = arith.maximumf %409, %406 : vector<1x256xf32>
    %412 = arith.maximumf %410, %411 : vector<1x256xf32>
    %413 = vector.extract_strided_slice %412 {offsets = [0, 0], sizes = [1, 128], strides = [1, 1]} : vector<1x256xf32> to vector<1x128xf32>
    %414 = vector.extract_strided_slice %412 {offsets = [0, 128], sizes = [1, 128], strides = [1, 1]} : vector<1x256xf32> to vector<1x128xf32>
    %415 = arith.addf %413, %414 : vector<1x128xf32>
    %cst_136 = arith.constant 0.000000e+00 : f32
    %416 = vector.broadcast %cst_136 : f32 to vector<1x128xf32>
    %417 = arith.maximumf %415, %416 : vector<1x128xf32>
    %c11_137 = arith.constant 11 : index
    %c0_138 = arith.constant 0 : index
    %418 = vector.load %arg8[%c11_137, %c0_138] : memref<42x128xf32, #tpu.memory_space<vmem>>, vector<1x128xf32>
    tpu.vector_store %arg8[%c11_137, %c0_138], %417 {strides = array<i32>} : memref<42x128xf32, #tpu.memory_space<vmem>>, vector<1x128xf32>,
    %c84 = arith.constant 84 : index
    %419 = memref.load %arg1[%c84] : memref<294xi32, #tpu.memory_space<smem>>
    %420 = arith.index_cast %419 : i32 to index
    %c0_139 = arith.constant 0 : index
    %421 = vector.load %arg9[%420, %c0_139] : memref<256x256xf32, #tpu.memory_space<vmem>>, vector<1x256xf32>
    %c85 = arith.constant 85 : index
    %422 = memref.load %arg1[%c85] : memref<294xi32, #tpu.memory_space<smem>>
    %423 = arith.index_cast %422 : i32 to index
    %c0_140 = arith.constant 0 : index
    %424 = vector.load %arg9[%423, %c0_140] : memref<256x256xf32, #tpu.memory_space<vmem>>, vector<1x256xf32>
    %c86 = arith.constant 86 : index
    %425 = memref.load %arg1[%c86] : memref<294xi32, #tpu.memory_space<smem>>
    %426 = arith.index_cast %425 : i32 to index
    %c0_141 = arith.constant 0 : index
    %427 = vector.load %arg9[%426, %c0_141] : memref<256x256xf32, #tpu.memory_space<vmem>>, vector<1x256xf32>
    %c87 = arith.constant 87 : index
    %428 = memref.load %arg1[%c87] : memref<294xi32, #tpu.memory_space<smem>>
    %429 = arith.index_cast %428 : i32 to index
    %c0_142 = arith.constant 0 : index
    %430 = vector.load %arg9[%429, %c0_142] : memref<256x256xf32, #tpu.memory_space<vmem>>, vector<1x256xf32>
    %c88 = arith.constant 88 : index
    %431 = memref.load %arg1[%c88] : memref<294xi32, #tpu.memory_space<smem>>
    %432 = arith.index_cast %431 : i32 to index
    %c0_143 = arith.constant 0 : index
    %433 = vector.load %arg9[%432, %c0_143] : memref<256x256xf32, #tpu.memory_space<vmem>>, vector<1x256xf32>
    %c89 = arith.constant 89 : index
    %434 = memref.load %arg1[%c89] : memref<294xi32, #tpu.memory_space<smem>>
    %435 = arith.index_cast %434 : i32 to index
    %c0_144 = arith.constant 0 : index
    %436 = vector.load %arg9[%435, %c0_144] : memref<256x256xf32, #tpu.memory_space<vmem>>, vector<1x256xf32>
    %c90 = arith.constant 90 : index
    %437 = memref.load %arg1[%c90] : memref<294xi32, #tpu.memory_space<smem>>
    %438 = arith.index_cast %437 : i32 to index
    %c0_145 = arith.constant 0 : index
    %439 = vector.load %arg9[%438, %c0_145] : memref<256x256xf32, #tpu.memory_space<vmem>>, vector<1x256xf32>
    %440 = arith.maximumf %421, %424 : vector<1x256xf32>
    %441 = arith.maximumf %427, %430 : vector<1x256xf32>
    %442 = arith.maximumf %433, %436 : vector<1x256xf32>
    %443 = arith.maximumf %440, %441 : vector<1x256xf32>
    %444 = arith.maximumf %442, %439 : vector<1x256xf32>
    %445 = arith.maximumf %443, %444 : vector<1x256xf32>
    %446 = vector.extract_strided_slice %445 {offsets = [0, 0], sizes = [1, 128], strides = [1, 1]} : vector<1x256xf32> to vector<1x128xf32>
    %447 = vector.extract_strided_slice %445 {offsets = [0, 128], sizes = [1, 128], strides = [1, 1]} : vector<1x256xf32> to vector<1x128xf32>
    %448 = arith.addf %446, %447 : vector<1x128xf32>
    %cst_146 = arith.constant 0.000000e+00 : f32
    %449 = vector.broadcast %cst_146 : f32 to vector<1x128xf32>
    %450 = arith.maximumf %448, %449 : vector<1x128xf32>
    %c12_147 = arith.constant 12 : index
    %c0_148 = arith.constant 0 : index
    %451 = vector.load %arg8[%c12_147, %c0_148] : memref<42x128xf32, #tpu.memory_space<vmem>>, vector<1x128xf32>
    tpu.vector_store %arg8[%c12_147, %c0_148], %450 {strides = array<i32>} : memref<42x128xf32, #tpu.memory_space<vmem>>, vector<1x128xf32>,
    %c91 = arith.constant 91 : index
    %452 = memref.load %arg1[%c91] : memref<294xi32, #tpu.memory_space<smem>>
    %453 = arith.index_cast %452 : i32 to index
    %c0_149 = arith.constant 0 : index
    %454 = vector.load %arg9[%453, %c0_149] : memref<256x256xf32, #tpu.memory_space<vmem>>, vector<1x256xf32>
    %c92 = arith.constant 92 : index
    %455 = memref.load %arg1[%c92] : memref<294xi32, #tpu.memory_space<smem>>
    %456 = arith.index_cast %455 : i32 to index
    %c0_150 = arith.constant 0 : index
    %457 = vector.load %arg9[%456, %c0_150] : memref<256x256xf32, #tpu.memory_space<vmem>>, vector<1x256xf32>
    %c93 = arith.constant 93 : index
    %458 = memref.load %arg1[%c93] : memref<294xi32, #tpu.memory_space<smem>>
    %459 = arith.index_cast %458 : i32 to index
    %c0_151 = arith.constant 0 : index
    %460 = vector.load %arg9[%459, %c0_151] : memref<256x256xf32, #tpu.memory_space<vmem>>, vector<1x256xf32>
    %c94 = arith.constant 94 : index
    %461 = memref.load %arg1[%c94] : memref<294xi32, #tpu.memory_space<smem>>
    %462 = arith.index_cast %461 : i32 to index
    %c0_152 = arith.constant 0 : index
    %463 = vector.load %arg9[%462, %c0_152] : memref<256x256xf32, #tpu.memory_space<vmem>>, vector<1x256xf32>
    %c95 = arith.constant 95 : index
    %464 = memref.load %arg1[%c95] : memref<294xi32, #tpu.memory_space<smem>>
    %465 = arith.index_cast %464 : i32 to index
    %c0_153 = arith.constant 0 : index
    %466 = vector.load %arg9[%465, %c0_153] : memref<256x256xf32, #tpu.memory_space<vmem>>, vector<1x256xf32>
    %c96 = arith.constant 96 : index
    %467 = memref.load %arg1[%c96] : memref<294xi32, #tpu.memory_space<smem>>
    %468 = arith.index_cast %467 : i32 to index
    %c0_154 = arith.constant 0 : index
    %469 = vector.load %arg9[%468, %c0_154] : memref<256x256xf32, #tpu.memory_space<vmem>>, vector<1x256xf32>
    %c97 = arith.constant 97 : index
    %470 = memref.load %arg1[%c97] : memref<294xi32, #tpu.memory_space<smem>>
    %471 = arith.index_cast %470 : i32 to index
    %c0_155 = arith.constant 0 : index
    %472 = vector.load %arg9[%471, %c0_155] : memref<256x256xf32, #tpu.memory_space<vmem>>, vector<1x256xf32>
    %473 = arith.maximumf %454, %457 : vector<1x256xf32>
    %474 = arith.maximumf %460, %463 : vector<1x256xf32>
    %475 = arith.maximumf %466, %469 : vector<1x256xf32>
    %476 = arith.maximumf %473, %474 : vector<1x256xf32>
    %477 = arith.maximumf %475, %472 : vector<1x256xf32>
    %478 = arith.maximumf %476, %477 : vector<1x256xf32>
    %479 = vector.extract_strided_slice %478 {offsets = [0, 0], sizes = [1, 128], strides = [1, 1]} : vector<1x256xf32> to vector<1x128xf32>
    %480 = vector.extract_strided_slice %478 {offsets = [0, 128], sizes = [1, 128], strides = [1, 1]} : vector<1x256xf32> to vector<1x128xf32>
    %481 = arith.addf %479, %480 : vector<1x128xf32>
    %cst_156 = arith.constant 0.000000e+00 : f32
    %482 = vector.broadcast %cst_156 : f32 to vector<1x128xf32>
    %483 = arith.maximumf %481, %482 : vector<1x128xf32>
    %c13_157 = arith.constant 13 : index
    %c0_158 = arith.constant 0 : index
    %484 = vector.load %arg8[%c13_157, %c0_158] : memref<42x128xf32, #tpu.memory_space<vmem>>, vector<1x128xf32>
    tpu.vector_store %arg8[%c13_157, %c0_158], %483 {strides = array<i32>} : memref<42x128xf32, #tpu.memory_space<vmem>>, vector<1x128xf32>,
    %c98 = arith.constant 98 : index
    %485 = memref.load %arg1[%c98] : memref<294xi32, #tpu.memory_space<smem>>
    %486 = arith.index_cast %485 : i32 to index
    %c0_159 = arith.constant 0 : index
    %487 = vector.load %arg9[%486, %c0_159] : memref<256x256xf32, #tpu.memory_space<vmem>>, vector<1x256xf32>
    %c99 = arith.constant 99 : index
    %488 = memref.load %arg1[%c99] : memref<294xi32, #tpu.memory_space<smem>>
    %489 = arith.index_cast %488 : i32 to index
    %c0_160 = arith.constant 0 : index
    %490 = vector.load %arg9[%489, %c0_160] : memref<256x256xf32, #tpu.memory_space<vmem>>, vector<1x256xf32>
    %c100 = arith.constant 100 : index
    %491 = memref.load %arg1[%c100] : memref<294xi32, #tpu.memory_space<smem>>
    %492 = arith.index_cast %491 : i32 to index
    %c0_161 = arith.constant 0 : index
    %493 = vector.load %arg9[%492, %c0_161] : memref<256x256xf32, #tpu.memory_space<vmem>>, vector<1x256xf32>
    %c101 = arith.constant 101 : index
    %494 = memref.load %arg1[%c101] : memref<294xi32, #tpu.memory_space<smem>>
    %495 = arith.index_cast %494 : i32 to index
    %c0_162 = arith.constant 0 : index
    %496 = vector.load %arg9[%495, %c0_162] : memref<256x256xf32, #tpu.memory_space<vmem>>, vector<1x256xf32>
    %c102 = arith.constant 102 : index
    %497 = memref.load %arg1[%c102] : memref<294xi32, #tpu.memory_space<smem>>
    %498 = arith.index_cast %497 : i32 to index
    %c0_163 = arith.constant 0 : index
    %499 = vector.load %arg9[%498, %c0_163] : memref<256x256xf32, #tpu.memory_space<vmem>>, vector<1x256xf32>
    %c103 = arith.constant 103 : index
    %500 = memref.load %arg1[%c103] : memref<294xi32, #tpu.memory_space<smem>>
    %501 = arith.index_cast %500 : i32 to index
    %c0_164 = arith.constant 0 : index
    %502 = vector.load %arg9[%501, %c0_164] : memref<256x256xf32, #tpu.memory_space<vmem>>, vector<1x256xf32>
    %c104 = arith.constant 104 : index
    %503 = memref.load %arg1[%c104] : memref<294xi32, #tpu.memory_space<smem>>
    %504 = arith.index_cast %503 : i32 to index
    %c0_165 = arith.constant 0 : index
    %505 = vector.load %arg9[%504, %c0_165] : memref<256x256xf32, #tpu.memory_space<vmem>>, vector<1x256xf32>
    %506 = arith.maximumf %487, %490 : vector<1x256xf32>
    %507 = arith.maximumf %493, %496 : vector<1x256xf32>
    %508 = arith.maximumf %499, %502 : vector<1x256xf32>
    %509 = arith.maximumf %506, %507 : vector<1x256xf32>
    %510 = arith.maximumf %508, %505 : vector<1x256xf32>
    %511 = arith.maximumf %509, %510 : vector<1x256xf32>
    %512 = vector.extract_strided_slice %511 {offsets = [0, 0], sizes = [1, 128], strides = [1, 1]} : vector<1x256xf32> to vector<1x128xf32>
    %513 = vector.extract_strided_slice %511 {offsets = [0, 128], sizes = [1, 128], strides = [1, 1]} : vector<1x256xf32> to vector<1x128xf32>
    %514 = arith.addf %512, %513 : vector<1x128xf32>
    %cst_166 = arith.constant 0.000000e+00 : f32
    %515 = vector.broadcast %cst_166 : f32 to vector<1x128xf32>
    %516 = arith.maximumf %514, %515 : vector<1x128xf32>
    %c14_167 = arith.constant 14 : index
    %c0_168 = arith.constant 0 : index
    %517 = vector.load %arg8[%c14_167, %c0_168] : memref<42x128xf32, #tpu.memory_space<vmem>>, vector<1x128xf32>
    tpu.vector_store %arg8[%c14_167, %c0_168], %516 {strides = array<i32>} : memref<42x128xf32, #tpu.memory_space<vmem>>, vector<1x128xf32>,
    %c105 = arith.constant 105 : index
    %518 = memref.load %arg1[%c105] : memref<294xi32, #tpu.memory_space<smem>>
    %519 = arith.index_cast %518 : i32 to index
    %c0_169 = arith.constant 0 : index
    %520 = vector.load %arg9[%519, %c0_169] : memref<256x256xf32, #tpu.memory_space<vmem>>, vector<1x256xf32>
    %c106 = arith.constant 106 : index
    %521 = memref.load %arg1[%c106] : memref<294xi32, #tpu.memory_space<smem>>
    %522 = arith.index_cast %521 : i32 to index
    %c0_170 = arith.constant 0 : index
    %523 = vector.load %arg9[%522, %c0_170] : memref<256x256xf32, #tpu.memory_space<vmem>>, vector<1x256xf32>
    %c107 = arith.constant 107 : index
    %524 = memref.load %arg1[%c107] : memref<294xi32, #tpu.memory_space<smem>>
    %525 = arith.index_cast %524 : i32 to index
    %c0_171 = arith.constant 0 : index
    %526 = vector.load %arg9[%525, %c0_171] : memref<256x256xf32, #tpu.memory_space<vmem>>, vector<1x256xf32>
    %c108 = arith.constant 108 : index
    %527 = memref.load %arg1[%c108] : memref<294xi32, #tpu.memory_space<smem>>
    %528 = arith.index_cast %527 : i32 to index
    %c0_172 = arith.constant 0 : index
    %529 = vector.load %arg9[%528, %c0_172] : memref<256x256xf32, #tpu.memory_space<vmem>>, vector<1x256xf32>
    %c109 = arith.constant 109 : index
    %530 = memref.load %arg1[%c109] : memref<294xi32, #tpu.memory_space<smem>>
    %531 = arith.index_cast %530 : i32 to index
    %c0_173 = arith.constant 0 : index
    %532 = vector.load %arg9[%531, %c0_173] : memref<256x256xf32, #tpu.memory_space<vmem>>, vector<1x256xf32>
    %c110 = arith.constant 110 : index
    %533 = memref.load %arg1[%c110] : memref<294xi32, #tpu.memory_space<smem>>
    %534 = arith.index_cast %533 : i32 to index
    %c0_174 = arith.constant 0 : index
    %535 = vector.load %arg9[%534, %c0_174] : memref<256x256xf32, #tpu.memory_space<vmem>>, vector<1x256xf32>
    %c111 = arith.constant 111 : index
    %536 = memref.load %arg1[%c111] : memref<294xi32, #tpu.memory_space<smem>>
    %537 = arith.index_cast %536 : i32 to index
    %c0_175 = arith.constant 0 : index
    %538 = vector.load %arg9[%537, %c0_175] : memref<256x256xf32, #tpu.memory_space<vmem>>, vector<1x256xf32>
    %539 = arith.maximumf %520, %523 : vector<1x256xf32>
    %540 = arith.maximumf %526, %529 : vector<1x256xf32>
    %541 = arith.maximumf %532, %535 : vector<1x256xf32>
    %542 = arith.maximumf %539, %540 : vector<1x256xf32>
    %543 = arith.maximumf %541, %538 : vector<1x256xf32>
    %544 = arith.maximumf %542, %543 : vector<1x256xf32>
    %545 = vector.extract_strided_slice %544 {offsets = [0, 0], sizes = [1, 128], strides = [1, 1]} : vector<1x256xf32> to vector<1x128xf32>
    %546 = vector.extract_strided_slice %544 {offsets = [0, 128], sizes = [1, 128], strides = [1, 1]} : vector<1x256xf32> to vector<1x128xf32>
    %547 = arith.addf %545, %546 : vector<1x128xf32>
    %cst_176 = arith.constant 0.000000e+00 : f32
    %548 = vector.broadcast %cst_176 : f32 to vector<1x128xf32>
    %549 = arith.maximumf %547, %548 : vector<1x128xf32>
    %c15_177 = arith.constant 15 : index
    %c0_178 = arith.constant 0 : index
    %550 = vector.load %arg8[%c15_177, %c0_178] : memref<42x128xf32, #tpu.memory_space<vmem>>, vector<1x128xf32>
    tpu.vector_store %arg8[%c15_177, %c0_178], %549 {strides = array<i32>} : memref<42x128xf32, #tpu.memory_space<vmem>>, vector<1x128xf32>,
    %c112 = arith.constant 112 : index
    %551 = memref.load %arg1[%c112] : memref<294xi32, #tpu.memory_space<smem>>
    %552 = arith.index_cast %551 : i32 to index
    %c0_179 = arith.constant 0 : index
    %553 = vector.load %arg9[%552, %c0_179] : memref<256x256xf32, #tpu.memory_space<vmem>>, vector<1x256xf32>
    %c113 = arith.constant 113 : index
    %554 = memref.load %arg1[%c113] : memref<294xi32, #tpu.memory_space<smem>>
    %555 = arith.index_cast %554 : i32 to index
    %c0_180 = arith.constant 0 : index
    %556 = vector.load %arg9[%555, %c0_180] : memref<256x256xf32, #tpu.memory_space<vmem>>, vector<1x256xf32>
    %c114 = arith.constant 114 : index
    %557 = memref.load %arg1[%c114] : memref<294xi32, #tpu.memory_space<smem>>
    %558 = arith.index_cast %557 : i32 to index
    %c0_181 = arith.constant 0 : index
    %559 = vector.load %arg9[%558, %c0_181] : memref<256x256xf32, #tpu.memory_space<vmem>>, vector<1x256xf32>
    %c115 = arith.constant 115 : index
    %560 = memref.load %arg1[%c115] : memref<294xi32, #tpu.memory_space<smem>>
    %561 = arith.index_cast %560 : i32 to index
    %c0_182 = arith.constant 0 : index
    %562 = vector.load %arg9[%561, %c0_182] : memref<256x256xf32, #tpu.memory_space<vmem>>, vector<1x256xf32>
    %c116 = arith.constant 116 : index
    %563 = memref.load %arg1[%c116] : memref<294xi32, #tpu.memory_space<smem>>
    %564 = arith.index_cast %563 : i32 to index
    %c0_183 = arith.constant 0 : index
    %565 = vector.load %arg9[%564, %c0_183] : memref<256x256xf32, #tpu.memory_space<vmem>>, vector<1x256xf32>
    %c117 = arith.constant 117 : index
    %566 = memref.load %arg1[%c117] : memref<294xi32, #tpu.memory_space<smem>>
    %567 = arith.index_cast %566 : i32 to index
    %c0_184 = arith.constant 0 : index
    %568 = vector.load %arg9[%567, %c0_184] : memref<256x256xf32, #tpu.memory_space<vmem>>, vector<1x256xf32>
    %c118 = arith.constant 118 : index
    %569 = memref.load %arg1[%c118] : memref<294xi32, #tpu.memory_space<smem>>
    %570 = arith.index_cast %569 : i32 to index
    %c0_185 = arith.constant 0 : index
    %571 = vector.load %arg9[%570, %c0_185] : memref<256x256xf32, #tpu.memory_space<vmem>>, vector<1x256xf32>
    %572 = arith.maximumf %553, %556 : vector<1x256xf32>
    %573 = arith.maximumf %559, %562 : vector<1x256xf32>
    %574 = arith.maximumf %565, %568 : vector<1x256xf32>
    %575 = arith.maximumf %572, %573 : vector<1x256xf32>
    %576 = arith.maximumf %574, %571 : vector<1x256xf32>
    %577 = arith.maximumf %575, %576 : vector<1x256xf32>
    %578 = vector.extract_strided_slice %577 {offsets = [0, 0], sizes = [1, 128], strides = [1, 1]} : vector<1x256xf32> to vector<1x128xf32>
    %579 = vector.extract_strided_slice %577 {offsets = [0, 128], sizes = [1, 128], strides = [1, 1]} : vector<1x256xf32> to vector<1x128xf32>
    %580 = arith.addf %578, %579 : vector<1x128xf32>
    %cst_186 = arith.constant 0.000000e+00 : f32
    %581 = vector.broadcast %cst_186 : f32 to vector<1x128xf32>
    %582 = arith.maximumf %580, %581 : vector<1x128xf32>
    %c16_187 = arith.constant 16 : index
    %c0_188 = arith.constant 0 : index
    %583 = vector.load %arg8[%c16_187, %c0_188] : memref<42x128xf32, #tpu.memory_space<vmem>>, vector<1x128xf32>
    tpu.vector_store %arg8[%c16_187, %c0_188], %582 {strides = array<i32>} : memref<42x128xf32, #tpu.memory_space<vmem>>, vector<1x128xf32>,
    %c119 = arith.constant 119 : index
    %584 = memref.load %arg1[%c119] : memref<294xi32, #tpu.memory_space<smem>>
    %585 = arith.index_cast %584 : i32 to index
    %c0_189 = arith.constant 0 : index
    %586 = vector.load %arg9[%585, %c0_189] : memref<256x256xf32, #tpu.memory_space<vmem>>, vector<1x256xf32>
    %c120 = arith.constant 120 : index
    %587 = memref.load %arg1[%c120] : memref<294xi32, #tpu.memory_space<smem>>
    %588 = arith.index_cast %587 : i32 to index
    %c0_190 = arith.constant 0 : index
    %589 = vector.load %arg9[%588, %c0_190] : memref<256x256xf32, #tpu.memory_space<vmem>>, vector<1x256xf32>
    %c121 = arith.constant 121 : index
    %590 = memref.load %arg1[%c121] : memref<294xi32, #tpu.memory_space<smem>>
    %591 = arith.index_cast %590 : i32 to index
    %c0_191 = arith.constant 0 : index
    %592 = vector.load %arg9[%591, %c0_191] : memref<256x256xf32, #tpu.memory_space<vmem>>, vector<1x256xf32>
    %c122 = arith.constant 122 : index
    %593 = memref.load %arg1[%c122] : memref<294xi32, #tpu.memory_space<smem>>
    %594 = arith.index_cast %593 : i32 to index
    %c0_192 = arith.constant 0 : index
    %595 = vector.load %arg9[%594, %c0_192] : memref<256x256xf32, #tpu.memory_space<vmem>>, vector<1x256xf32>
    %c123 = arith.constant 123 : index
    %596 = memref.load %arg1[%c123] : memref<294xi32, #tpu.memory_space<smem>>
    %597 = arith.index_cast %596 : i32 to index
    %c0_193 = arith.constant 0 : index
    %598 = vector.load %arg9[%597, %c0_193] : memref<256x256xf32, #tpu.memory_space<vmem>>, vector<1x256xf32>
    %c124 = arith.constant 124 : index
    %599 = memref.load %arg1[%c124] : memref<294xi32, #tpu.memory_space<smem>>
    %600 = arith.index_cast %599 : i32 to index
    %c0_194 = arith.constant 0 : index
    %601 = vector.load %arg9[%600, %c0_194] : memref<256x256xf32, #tpu.memory_space<vmem>>, vector<1x256xf32>
    %c125 = arith.constant 125 : index
    %602 = memref.load %arg1[%c125] : memref<294xi32, #tpu.memory_space<smem>>
    %603 = arith.index_cast %602 : i32 to index
    %c0_195 = arith.constant 0 : index
    %604 = vector.load %arg9[%603, %c0_195] : memref<256x256xf32, #tpu.memory_space<vmem>>, vector<1x256xf32>
    %605 = arith.maximumf %586, %589 : vector<1x256xf32>
    %606 = arith.maximumf %592, %595 : vector<1x256xf32>
    %607 = arith.maximumf %598, %601 : vector<1x256xf32>
    %608 = arith.maximumf %605, %606 : vector<1x256xf32>
    %609 = arith.maximumf %607, %604 : vector<1x256xf32>
    %610 = arith.maximumf %608, %609 : vector<1x256xf32>
    %611 = vector.extract_strided_slice %610 {offsets = [0, 0], sizes = [1, 128], strides = [1, 1]} : vector<1x256xf32> to vector<1x128xf32>
    %612 = vector.extract_strided_slice %610 {offsets = [0, 128], sizes = [1, 128], strides = [1, 1]} : vector<1x256xf32> to vector<1x128xf32>
    %613 = arith.addf %611, %612 : vector<1x128xf32>
    %cst_196 = arith.constant 0.000000e+00 : f32
    %614 = vector.broadcast %cst_196 : f32 to vector<1x128xf32>
    %615 = arith.maximumf %613, %614 : vector<1x128xf32>
    %c17_197 = arith.constant 17 : index
    %c0_198 = arith.constant 0 : index
    %616 = vector.load %arg8[%c17_197, %c0_198] : memref<42x128xf32, #tpu.memory_space<vmem>>, vector<1x128xf32>
    tpu.vector_store %arg8[%c17_197, %c0_198], %615 {strides = array<i32>} : memref<42x128xf32, #tpu.memory_space<vmem>>, vector<1x128xf32>,
    %c126 = arith.constant 126 : index
    %617 = memref.load %arg1[%c126] : memref<294xi32, #tpu.memory_space<smem>>
    %618 = arith.index_cast %617 : i32 to index
    %c0_199 = arith.constant 0 : index
    %619 = vector.load %arg9[%618, %c0_199] : memref<256x256xf32, #tpu.memory_space<vmem>>, vector<1x256xf32>
    %c127 = arith.constant 127 : index
    %620 = memref.load %arg1[%c127] : memref<294xi32, #tpu.memory_space<smem>>
    %621 = arith.index_cast %620 : i32 to index
    %c0_200 = arith.constant 0 : index
    %622 = vector.load %arg9[%621, %c0_200] : memref<256x256xf32, #tpu.memory_space<vmem>>, vector<1x256xf32>
    %c128_201 = arith.constant 128 : index
    %623 = memref.load %arg1[%c128_201] : memref<294xi32, #tpu.memory_space<smem>>
    %624 = arith.index_cast %623 : i32 to index
    %c0_202 = arith.constant 0 : index
    %625 = vector.load %arg9[%624, %c0_202] : memref<256x256xf32, #tpu.memory_space<vmem>>, vector<1x256xf32>
    %c129 = arith.constant 129 : index
    %626 = memref.load %arg1[%c129] : memref<294xi32, #tpu.memory_space<smem>>
    %627 = arith.index_cast %626 : i32 to index
    %c0_203 = arith.constant 0 : index
    %628 = vector.load %arg9[%627, %c0_203] : memref<256x256xf32, #tpu.memory_space<vmem>>, vector<1x256xf32>
    %c130 = arith.constant 130 : index
    %629 = memref.load %arg1[%c130] : memref<294xi32, #tpu.memory_space<smem>>
    %630 = arith.index_cast %629 : i32 to index
    %c0_204 = arith.constant 0 : index
    %631 = vector.load %arg9[%630, %c0_204] : memref<256x256xf32, #tpu.memory_space<vmem>>, vector<1x256xf32>
    %c131 = arith.constant 131 : index
    %632 = memref.load %arg1[%c131] : memref<294xi32, #tpu.memory_space<smem>>
    %633 = arith.index_cast %632 : i32 to index
    %c0_205 = arith.constant 0 : index
    %634 = vector.load %arg9[%633, %c0_205] : memref<256x256xf32, #tpu.memory_space<vmem>>, vector<1x256xf32>
    %c132 = arith.constant 132 : index
    %635 = memref.load %arg1[%c132] : memref<294xi32, #tpu.memory_space<smem>>
    %636 = arith.index_cast %635 : i32 to index
    %c0_206 = arith.constant 0 : index
    %637 = vector.load %arg9[%636, %c0_206] : memref<256x256xf32, #tpu.memory_space<vmem>>, vector<1x256xf32>
    %638 = arith.maximumf %619, %622 : vector<1x256xf32>
    %639 = arith.maximumf %625, %628 : vector<1x256xf32>
    %640 = arith.maximumf %631, %634 : vector<1x256xf32>
    %641 = arith.maximumf %638, %639 : vector<1x256xf32>
    %642 = arith.maximumf %640, %637 : vector<1x256xf32>
    %643 = arith.maximumf %641, %642 : vector<1x256xf32>
    %644 = vector.extract_strided_slice %643 {offsets = [0, 0], sizes = [1, 128], strides = [1, 1]} : vector<1x256xf32> to vector<1x128xf32>
    %645 = vector.extract_strided_slice %643 {offsets = [0, 128], sizes = [1, 128], strides = [1, 1]} : vector<1x256xf32> to vector<1x128xf32>
    %646 = arith.addf %644, %645 : vector<1x128xf32>
    %cst_207 = arith.constant 0.000000e+00 : f32
    %647 = vector.broadcast %cst_207 : f32 to vector<1x128xf32>
    %648 = arith.maximumf %646, %647 : vector<1x128xf32>
    %c18_208 = arith.constant 18 : index
    %c0_209 = arith.constant 0 : index
    %649 = vector.load %arg8[%c18_208, %c0_209] : memref<42x128xf32, #tpu.memory_space<vmem>>, vector<1x128xf32>
    tpu.vector_store %arg8[%c18_208, %c0_209], %648 {strides = array<i32>} : memref<42x128xf32, #tpu.memory_space<vmem>>, vector<1x128xf32>,
    %c133 = arith.constant 133 : index
    %650 = memref.load %arg1[%c133] : memref<294xi32, #tpu.memory_space<smem>>
    %651 = arith.index_cast %650 : i32 to index
    %c0_210 = arith.constant 0 : index
    %652 = vector.load %arg9[%651, %c0_210] : memref<256x256xf32, #tpu.memory_space<vmem>>, vector<1x256xf32>
    %c134 = arith.constant 134 : index
    %653 = memref.load %arg1[%c134] : memref<294xi32, #tpu.memory_space<smem>>
    %654 = arith.index_cast %653 : i32 to index
    %c0_211 = arith.constant 0 : index
    %655 = vector.load %arg9[%654, %c0_211] : memref<256x256xf32, #tpu.memory_space<vmem>>, vector<1x256xf32>
    %c135 = arith.constant 135 : index
    %656 = memref.load %arg1[%c135] : memref<294xi32, #tpu.memory_space<smem>>
    %657 = arith.index_cast %656 : i32 to index
    %c0_212 = arith.constant 0 : index
    %658 = vector.load %arg9[%657, %c0_212] : memref<256x256xf32, #tpu.memory_space<vmem>>, vector<1x256xf32>
    %c136 = arith.constant 136 : index
    %659 = memref.load %arg1[%c136] : memref<294xi32, #tpu.memory_space<smem>>
    %660 = arith.index_cast %659 : i32 to index
    %c0_213 = arith.constant 0 : index
    %661 = vector.load %arg9[%660, %c0_213] : memref<256x256xf32, #tpu.memory_space<vmem>>, vector<1x256xf32>
    %c137 = arith.constant 137 : index
    %662 = memref.load %arg1[%c137] : memref<294xi32, #tpu.memory_space<smem>>
    %663 = arith.index_cast %662 : i32 to index
    %c0_214 = arith.constant 0 : index
    %664 = vector.load %arg9[%663, %c0_214] : memref<256x256xf32, #tpu.memory_space<vmem>>, vector<1x256xf32>
    %c138 = arith.constant 138 : index
    %665 = memref.load %arg1[%c138] : memref<294xi32, #tpu.memory_space<smem>>
    %666 = arith.index_cast %665 : i32 to index
    %c0_215 = arith.constant 0 : index
    %667 = vector.load %arg9[%666, %c0_215] : memref<256x256xf32, #tpu.memory_space<vmem>>, vector<1x256xf32>
    %c139 = arith.constant 139 : index
    %668 = memref.load %arg1[%c139] : memref<294xi32, #tpu.memory_space<smem>>
    %669 = arith.index_cast %668 : i32 to index
    %c0_216 = arith.constant 0 : index
    %670 = vector.load %arg9[%669, %c0_216] : memref<256x256xf32, #tpu.memory_space<vmem>>, vector<1x256xf32>
    %671 = arith.maximumf %652, %655 : vector<1x256xf32>
    %672 = arith.maximumf %658, %661 : vector<1x256xf32>
    %673 = arith.maximumf %664, %667 : vector<1x256xf32>
    %674 = arith.maximumf %671, %672 : vector<1x256xf32>
    %675 = arith.maximumf %673, %670 : vector<1x256xf32>
    %676 = arith.maximumf %674, %675 : vector<1x256xf32>
    %677 = vector.extract_strided_slice %676 {offsets = [0, 0], sizes = [1, 128], strides = [1, 1]} : vector<1x256xf32> to vector<1x128xf32>
    %678 = vector.extract_strided_slice %676 {offsets = [0, 128], sizes = [1, 128], strides = [1, 1]} : vector<1x256xf32> to vector<1x128xf32>
    %679 = arith.addf %677, %678 : vector<1x128xf32>
    %cst_217 = arith.constant 0.000000e+00 : f32
    %680 = vector.broadcast %cst_217 : f32 to vector<1x128xf32>
    %681 = arith.maximumf %679, %680 : vector<1x128xf32>
    %c19_218 = arith.constant 19 : index
    %c0_219 = arith.constant 0 : index
    %682 = vector.load %arg8[%c19_218, %c0_219] : memref<42x128xf32, #tpu.memory_space<vmem>>, vector<1x128xf32>
    tpu.vector_store %arg8[%c19_218, %c0_219], %681 {strides = array<i32>} : memref<42x128xf32, #tpu.memory_space<vmem>>, vector<1x128xf32>,
    %c140 = arith.constant 140 : index
    %683 = memref.load %arg1[%c140] : memref<294xi32, #tpu.memory_space<smem>>
    %684 = arith.index_cast %683 : i32 to index
    %c0_220 = arith.constant 0 : index
    %685 = vector.load %arg9[%684, %c0_220] : memref<256x256xf32, #tpu.memory_space<vmem>>, vector<1x256xf32>
    %c141 = arith.constant 141 : index
    %686 = memref.load %arg1[%c141] : memref<294xi32, #tpu.memory_space<smem>>
    %687 = arith.index_cast %686 : i32 to index
    %c0_221 = arith.constant 0 : index
    %688 = vector.load %arg9[%687, %c0_221] : memref<256x256xf32, #tpu.memory_space<vmem>>, vector<1x256xf32>
    %c142 = arith.constant 142 : index
    %689 = memref.load %arg1[%c142] : memref<294xi32, #tpu.memory_space<smem>>
    %690 = arith.index_cast %689 : i32 to index
    %c0_222 = arith.constant 0 : index
    %691 = vector.load %arg9[%690, %c0_222] : memref<256x256xf32, #tpu.memory_space<vmem>>, vector<1x256xf32>
    %c143 = arith.constant 143 : index
    %692 = memref.load %arg1[%c143] : memref<294xi32, #tpu.memory_space<smem>>
    %693 = arith.index_cast %692 : i32 to index
    %c0_223 = arith.constant 0 : index
    %694 = vector.load %arg9[%693, %c0_223] : memref<256x256xf32, #tpu.memory_space<vmem>>, vector<1x256xf32>
    %c144 = arith.constant 144 : index
    %695 = memref.load %arg1[%c144] : memref<294xi32, #tpu.memory_space<smem>>
    %696 = arith.index_cast %695 : i32 to index
    %c0_224 = arith.constant 0 : index
    %697 = vector.load %arg9[%696, %c0_224] : memref<256x256xf32, #tpu.memory_space<vmem>>, vector<1x256xf32>
    %c145 = arith.constant 145 : index
    %698 = memref.load %arg1[%c145] : memref<294xi32, #tpu.memory_space<smem>>
    %699 = arith.index_cast %698 : i32 to index
    %c0_225 = arith.constant 0 : index
    %700 = vector.load %arg9[%699, %c0_225] : memref<256x256xf32, #tpu.memory_space<vmem>>, vector<1x256xf32>
    %c146 = arith.constant 146 : index
    %701 = memref.load %arg1[%c146] : memref<294xi32, #tpu.memory_space<smem>>
    %702 = arith.index_cast %701 : i32 to index
    %c0_226 = arith.constant 0 : index
    %703 = vector.load %arg9[%702, %c0_226] : memref<256x256xf32, #tpu.memory_space<vmem>>, vector<1x256xf32>
    %704 = arith.maximumf %685, %688 : vector<1x256xf32>
    %705 = arith.maximumf %691, %694 : vector<1x256xf32>
    %706 = arith.maximumf %697, %700 : vector<1x256xf32>
    %707 = arith.maximumf %704, %705 : vector<1x256xf32>
    %708 = arith.maximumf %706, %703 : vector<1x256xf32>
    %709 = arith.maximumf %707, %708 : vector<1x256xf32>
    %710 = vector.extract_strided_slice %709 {offsets = [0, 0], sizes = [1, 128], strides = [1, 1]} : vector<1x256xf32> to vector<1x128xf32>
    %711 = vector.extract_strided_slice %709 {offsets = [0, 128], sizes = [1, 128], strides = [1, 1]} : vector<1x256xf32> to vector<1x128xf32>
    %712 = arith.addf %710, %711 : vector<1x128xf32>
    %cst_227 = arith.constant 0.000000e+00 : f32
    %713 = vector.broadcast %cst_227 : f32 to vector<1x128xf32>
    %714 = arith.maximumf %712, %713 : vector<1x128xf32>
    %c20_228 = arith.constant 20 : index
    %c0_229 = arith.constant 0 : index
    %715 = vector.load %arg8[%c20_228, %c0_229] : memref<42x128xf32, #tpu.memory_space<vmem>>, vector<1x128xf32>
    tpu.vector_store %arg8[%c20_228, %c0_229], %714 {strides = array<i32>} : memref<42x128xf32, #tpu.memory_space<vmem>>, vector<1x128xf32>,
    %c147 = arith.constant 147 : index
    %716 = memref.load %arg1[%c147] : memref<294xi32, #tpu.memory_space<smem>>
    %717 = arith.index_cast %716 : i32 to index
    %c0_230 = arith.constant 0 : index
    %718 = vector.load %arg9[%717, %c0_230] : memref<256x256xf32, #tpu.memory_space<vmem>>, vector<1x256xf32>
    %c148 = arith.constant 148 : index
    %719 = memref.load %arg1[%c148] : memref<294xi32, #tpu.memory_space<smem>>
    %720 = arith.index_cast %719 : i32 to index
    %c0_231 = arith.constant 0 : index
    %721 = vector.load %arg9[%720, %c0_231] : memref<256x256xf32, #tpu.memory_space<vmem>>, vector<1x256xf32>
    %c149 = arith.constant 149 : index
    %722 = memref.load %arg1[%c149] : memref<294xi32, #tpu.memory_space<smem>>
    %723 = arith.index_cast %722 : i32 to index
    %c0_232 = arith.constant 0 : index
    %724 = vector.load %arg9[%723, %c0_232] : memref<256x256xf32, #tpu.memory_space<vmem>>, vector<1x256xf32>
    %c150 = arith.constant 150 : index
    %725 = memref.load %arg1[%c150] : memref<294xi32, #tpu.memory_space<smem>>
    %726 = arith.index_cast %725 : i32 to index
    %c0_233 = arith.constant 0 : index
    %727 = vector.load %arg9[%726, %c0_233] : memref<256x256xf32, #tpu.memory_space<vmem>>, vector<1x256xf32>
    %c151 = arith.constant 151 : index
    %728 = memref.load %arg1[%c151] : memref<294xi32, #tpu.memory_space<smem>>
    %729 = arith.index_cast %728 : i32 to index
    %c0_234 = arith.constant 0 : index
    %730 = vector.load %arg9[%729, %c0_234] : memref<256x256xf32, #tpu.memory_space<vmem>>, vector<1x256xf32>
    %c152 = arith.constant 152 : index
    %731 = memref.load %arg1[%c152] : memref<294xi32, #tpu.memory_space<smem>>
    %732 = arith.index_cast %731 : i32 to index
    %c0_235 = arith.constant 0 : index
    %733 = vector.load %arg9[%732, %c0_235] : memref<256x256xf32, #tpu.memory_space<vmem>>, vector<1x256xf32>
    %c153 = arith.constant 153 : index
    %734 = memref.load %arg1[%c153] : memref<294xi32, #tpu.memory_space<smem>>
    %735 = arith.index_cast %734 : i32 to index
    %c0_236 = arith.constant 0 : index
    %736 = vector.load %arg9[%735, %c0_236] : memref<256x256xf32, #tpu.memory_space<vmem>>, vector<1x256xf32>
    %737 = arith.maximumf %718, %721 : vector<1x256xf32>
    %738 = arith.maximumf %724, %727 : vector<1x256xf32>
    %739 = arith.maximumf %730, %733 : vector<1x256xf32>
    %740 = arith.maximumf %737, %738 : vector<1x256xf32>
    %741 = arith.maximumf %739, %736 : vector<1x256xf32>
    %742 = arith.maximumf %740, %741 : vector<1x256xf32>
    %743 = vector.extract_strided_slice %742 {offsets = [0, 0], sizes = [1, 128], strides = [1, 1]} : vector<1x256xf32> to vector<1x128xf32>
    %744 = vector.extract_strided_slice %742 {offsets = [0, 128], sizes = [1, 128], strides = [1, 1]} : vector<1x256xf32> to vector<1x128xf32>
    %745 = arith.addf %743, %744 : vector<1x128xf32>
    %cst_237 = arith.constant 0.000000e+00 : f32
    %746 = vector.broadcast %cst_237 : f32 to vector<1x128xf32>
    %747 = arith.maximumf %745, %746 : vector<1x128xf32>
    %c21_238 = arith.constant 21 : index
    %c0_239 = arith.constant 0 : index
    %748 = vector.load %arg8[%c21_238, %c0_239] : memref<42x128xf32, #tpu.memory_space<vmem>>, vector<1x128xf32>
    tpu.vector_store %arg8[%c21_238, %c0_239], %747 {strides = array<i32>} : memref<42x128xf32, #tpu.memory_space<vmem>>, vector<1x128xf32>,
    %c154 = arith.constant 154 : index
    %749 = memref.load %arg1[%c154] : memref<294xi32, #tpu.memory_space<smem>>
    %750 = arith.index_cast %749 : i32 to index
    %c0_240 = arith.constant 0 : index
    %751 = vector.load %arg9[%750, %c0_240] : memref<256x256xf32, #tpu.memory_space<vmem>>, vector<1x256xf32>
    %c155 = arith.constant 155 : index
    %752 = memref.load %arg1[%c155] : memref<294xi32, #tpu.memory_space<smem>>
    %753 = arith.index_cast %752 : i32 to index
    %c0_241 = arith.constant 0 : index
    %754 = vector.load %arg9[%753, %c0_241] : memref<256x256xf32, #tpu.memory_space<vmem>>, vector<1x256xf32>
    %c156 = arith.constant 156 : index
    %755 = memref.load %arg1[%c156] : memref<294xi32, #tpu.memory_space<smem>>
    %756 = arith.index_cast %755 : i32 to index
    %c0_242 = arith.constant 0 : index
    %757 = vector.load %arg9[%756, %c0_242] : memref<256x256xf32, #tpu.memory_space<vmem>>, vector<1x256xf32>
    %c157 = arith.constant 157 : index
    %758 = memref.load %arg1[%c157] : memref<294xi32, #tpu.memory_space<smem>>
    %759 = arith.index_cast %758 : i32 to index
    %c0_243 = arith.constant 0 : index
    %760 = vector.load %arg9[%759, %c0_243] : memref<256x256xf32, #tpu.memory_space<vmem>>, vector<1x256xf32>
    %c158 = arith.constant 158 : index
    %761 = memref.load %arg1[%c158] : memref<294xi32, #tpu.memory_space<smem>>
    %762 = arith.index_cast %761 : i32 to index
    %c0_244 = arith.constant 0 : index
    %763 = vector.load %arg9[%762, %c0_244] : memref<256x256xf32, #tpu.memory_space<vmem>>, vector<1x256xf32>
    %c159 = arith.constant 159 : index
    %764 = memref.load %arg1[%c159] : memref<294xi32, #tpu.memory_space<smem>>
    %765 = arith.index_cast %764 : i32 to index
    %c0_245 = arith.constant 0 : index
    %766 = vector.load %arg9[%765, %c0_245] : memref<256x256xf32, #tpu.memory_space<vmem>>, vector<1x256xf32>
    %c160 = arith.constant 160 : index
    %767 = memref.load %arg1[%c160] : memref<294xi32, #tpu.memory_space<smem>>
    %768 = arith.index_cast %767 : i32 to index
    %c0_246 = arith.constant 0 : index
    %769 = vector.load %arg9[%768, %c0_246] : memref<256x256xf32, #tpu.memory_space<vmem>>, vector<1x256xf32>
    %770 = arith.maximumf %751, %754 : vector<1x256xf32>
    %771 = arith.maximumf %757, %760 : vector<1x256xf32>
    %772 = arith.maximumf %763, %766 : vector<1x256xf32>
    %773 = arith.maximumf %770, %771 : vector<1x256xf32>
    %774 = arith.maximumf %772, %769 : vector<1x256xf32>
    %775 = arith.maximumf %773, %774 : vector<1x256xf32>
    %776 = vector.extract_strided_slice %775 {offsets = [0, 0], sizes = [1, 128], strides = [1, 1]} : vector<1x256xf32> to vector<1x128xf32>
    %777 = vector.extract_strided_slice %775 {offsets = [0, 128], sizes = [1, 128], strides = [1, 1]} : vector<1x256xf32> to vector<1x128xf32>
    %778 = arith.addf %776, %777 : vector<1x128xf32>
    %cst_247 = arith.constant 0.000000e+00 : f32
    %779 = vector.broadcast %cst_247 : f32 to vector<1x128xf32>
    %780 = arith.maximumf %778, %779 : vector<1x128xf32>
    %c22_248 = arith.constant 22 : index
    %c0_249 = arith.constant 0 : index
    %781 = vector.load %arg8[%c22_248, %c0_249] : memref<42x128xf32, #tpu.memory_space<vmem>>, vector<1x128xf32>
    tpu.vector_store %arg8[%c22_248, %c0_249], %780 {strides = array<i32>} : memref<42x128xf32, #tpu.memory_space<vmem>>, vector<1x128xf32>,
    %c161 = arith.constant 161 : index
    %782 = memref.load %arg1[%c161] : memref<294xi32, #tpu.memory_space<smem>>
    %783 = arith.index_cast %782 : i32 to index
    %c0_250 = arith.constant 0 : index
    %784 = vector.load %arg9[%783, %c0_250] : memref<256x256xf32, #tpu.memory_space<vmem>>, vector<1x256xf32>
    %c162 = arith.constant 162 : index
    %785 = memref.load %arg1[%c162] : memref<294xi32, #tpu.memory_space<smem>>
    %786 = arith.index_cast %785 : i32 to index
    %c0_251 = arith.constant 0 : index
    %787 = vector.load %arg9[%786, %c0_251] : memref<256x256xf32, #tpu.memory_space<vmem>>, vector<1x256xf32>
    %c163 = arith.constant 163 : index
    %788 = memref.load %arg1[%c163] : memref<294xi32, #tpu.memory_space<smem>>
    %789 = arith.index_cast %788 : i32 to index
    %c0_252 = arith.constant 0 : index
    %790 = vector.load %arg9[%789, %c0_252] : memref<256x256xf32, #tpu.memory_space<vmem>>, vector<1x256xf32>
    %c164 = arith.constant 164 : index
    %791 = memref.load %arg1[%c164] : memref<294xi32, #tpu.memory_space<smem>>
    %792 = arith.index_cast %791 : i32 to index
    %c0_253 = arith.constant 0 : index
    %793 = vector.load %arg9[%792, %c0_253] : memref<256x256xf32, #tpu.memory_space<vmem>>, vector<1x256xf32>
    %c165 = arith.constant 165 : index
    %794 = memref.load %arg1[%c165] : memref<294xi32, #tpu.memory_space<smem>>
    %795 = arith.index_cast %794 : i32 to index
    %c0_254 = arith.constant 0 : index
    %796 = vector.load %arg9[%795, %c0_254] : memref<256x256xf32, #tpu.memory_space<vmem>>, vector<1x256xf32>
    %c166 = arith.constant 166 : index
    %797 = memref.load %arg1[%c166] : memref<294xi32, #tpu.memory_space<smem>>
    %798 = arith.index_cast %797 : i32 to index
    %c0_255 = arith.constant 0 : index
    %799 = vector.load %arg9[%798, %c0_255] : memref<256x256xf32, #tpu.memory_space<vmem>>, vector<1x256xf32>
    %c167 = arith.constant 167 : index
    %800 = memref.load %arg1[%c167] : memref<294xi32, #tpu.memory_space<smem>>
    %801 = arith.index_cast %800 : i32 to index
    %c0_256 = arith.constant 0 : index
    %802 = vector.load %arg9[%801, %c0_256] : memref<256x256xf32, #tpu.memory_space<vmem>>, vector<1x256xf32>
    %803 = arith.maximumf %784, %787 : vector<1x256xf32>
    %804 = arith.maximumf %790, %793 : vector<1x256xf32>
    %805 = arith.maximumf %796, %799 : vector<1x256xf32>
    %806 = arith.maximumf %803, %804 : vector<1x256xf32>
    %807 = arith.maximumf %805, %802 : vector<1x256xf32>
    %808 = arith.maximumf %806, %807 : vector<1x256xf32>
    %809 = vector.extract_strided_slice %808 {offsets = [0, 0], sizes = [1, 128], strides = [1, 1]} : vector<1x256xf32> to vector<1x128xf32>
    %810 = vector.extract_strided_slice %808 {offsets = [0, 128], sizes = [1, 128], strides = [1, 1]} : vector<1x256xf32> to vector<1x128xf32>
    %811 = arith.addf %809, %810 : vector<1x128xf32>
    %cst_257 = arith.constant 0.000000e+00 : f32
    %812 = vector.broadcast %cst_257 : f32 to vector<1x128xf32>
    %813 = arith.maximumf %811, %812 : vector<1x128xf32>
    %c23_258 = arith.constant 23 : index
    %c0_259 = arith.constant 0 : index
    %814 = vector.load %arg8[%c23_258, %c0_259] : memref<42x128xf32, #tpu.memory_space<vmem>>, vector<1x128xf32>
    tpu.vector_store %arg8[%c23_258, %c0_259], %813 {strides = array<i32>} : memref<42x128xf32, #tpu.memory_space<vmem>>, vector<1x128xf32>,
    %c168 = arith.constant 168 : index
    %815 = memref.load %arg1[%c168] : memref<294xi32, #tpu.memory_space<smem>>
    %816 = arith.index_cast %815 : i32 to index
    %c0_260 = arith.constant 0 : index
    %817 = vector.load %arg9[%816, %c0_260] : memref<256x256xf32, #tpu.memory_space<vmem>>, vector<1x256xf32>
    %c169 = arith.constant 169 : index
    %818 = memref.load %arg1[%c169] : memref<294xi32, #tpu.memory_space<smem>>
    %819 = arith.index_cast %818 : i32 to index
    %c0_261 = arith.constant 0 : index
    %820 = vector.load %arg9[%819, %c0_261] : memref<256x256xf32, #tpu.memory_space<vmem>>, vector<1x256xf32>
    %c170 = arith.constant 170 : index
    %821 = memref.load %arg1[%c170] : memref<294xi32, #tpu.memory_space<smem>>
    %822 = arith.index_cast %821 : i32 to index
    %c0_262 = arith.constant 0 : index
    %823 = vector.load %arg9[%822, %c0_262] : memref<256x256xf32, #tpu.memory_space<vmem>>, vector<1x256xf32>
    %c171 = arith.constant 171 : index
    %824 = memref.load %arg1[%c171] : memref<294xi32, #tpu.memory_space<smem>>
    %825 = arith.index_cast %824 : i32 to index
    %c0_263 = arith.constant 0 : index
    %826 = vector.load %arg9[%825, %c0_263] : memref<256x256xf32, #tpu.memory_space<vmem>>, vector<1x256xf32>
    %c172 = arith.constant 172 : index
    %827 = memref.load %arg1[%c172] : memref<294xi32, #tpu.memory_space<smem>>
    %828 = arith.index_cast %827 : i32 to index
    %c0_264 = arith.constant 0 : index
    %829 = vector.load %arg9[%828, %c0_264] : memref<256x256xf32, #tpu.memory_space<vmem>>, vector<1x256xf32>
    %c173 = arith.constant 173 : index
    %830 = memref.load %arg1[%c173] : memref<294xi32, #tpu.memory_space<smem>>
    %831 = arith.index_cast %830 : i32 to index
    %c0_265 = arith.constant 0 : index
    %832 = vector.load %arg9[%831, %c0_265] : memref<256x256xf32, #tpu.memory_space<vmem>>, vector<1x256xf32>
    %c174 = arith.constant 174 : index
    %833 = memref.load %arg1[%c174] : memref<294xi32, #tpu.memory_space<smem>>
    %834 = arith.index_cast %833 : i32 to index
    %c0_266 = arith.constant 0 : index
    %835 = vector.load %arg9[%834, %c0_266] : memref<256x256xf32, #tpu.memory_space<vmem>>, vector<1x256xf32>
    %836 = arith.maximumf %817, %820 : vector<1x256xf32>
    %837 = arith.maximumf %823, %826 : vector<1x256xf32>
    %838 = arith.maximumf %829, %832 : vector<1x256xf32>
    %839 = arith.maximumf %836, %837 : vector<1x256xf32>
    %840 = arith.maximumf %838, %835 : vector<1x256xf32>
    %841 = arith.maximumf %839, %840 : vector<1x256xf32>
    %842 = vector.extract_strided_slice %841 {offsets = [0, 0], sizes = [1, 128], strides = [1, 1]} : vector<1x256xf32> to vector<1x128xf32>
    %843 = vector.extract_strided_slice %841 {offsets = [0, 128], sizes = [1, 128], strides = [1, 1]} : vector<1x256xf32> to vector<1x128xf32>
    %844 = arith.addf %842, %843 : vector<1x128xf32>
    %cst_267 = arith.constant 0.000000e+00 : f32
    %845 = vector.broadcast %cst_267 : f32 to vector<1x128xf32>
    %846 = arith.maximumf %844, %845 : vector<1x128xf32>
    %c24_268 = arith.constant 24 : index
    %c0_269 = arith.constant 0 : index
    %847 = vector.load %arg8[%c24_268, %c0_269] : memref<42x128xf32, #tpu.memory_space<vmem>>, vector<1x128xf32>
    tpu.vector_store %arg8[%c24_268, %c0_269], %846 {strides = array<i32>} : memref<42x128xf32, #tpu.memory_space<vmem>>, vector<1x128xf32>,
    %c175 = arith.constant 175 : index
    %848 = memref.load %arg1[%c175] : memref<294xi32, #tpu.memory_space<smem>>
    %849 = arith.index_cast %848 : i32 to index
    %c0_270 = arith.constant 0 : index
    %850 = vector.load %arg9[%849, %c0_270] : memref<256x256xf32, #tpu.memory_space<vmem>>, vector<1x256xf32>
    %c176 = arith.constant 176 : index
    %851 = memref.load %arg1[%c176] : memref<294xi32, #tpu.memory_space<smem>>
    %852 = arith.index_cast %851 : i32 to index
    %c0_271 = arith.constant 0 : index
    %853 = vector.load %arg9[%852, %c0_271] : memref<256x256xf32, #tpu.memory_space<vmem>>, vector<1x256xf32>
    %c177 = arith.constant 177 : index
    %854 = memref.load %arg1[%c177] : memref<294xi32, #tpu.memory_space<smem>>
    %855 = arith.index_cast %854 : i32 to index
    %c0_272 = arith.constant 0 : index
    %856 = vector.load %arg9[%855, %c0_272] : memref<256x256xf32, #tpu.memory_space<vmem>>, vector<1x256xf32>
    %c178 = arith.constant 178 : index
    %857 = memref.load %arg1[%c178] : memref<294xi32, #tpu.memory_space<smem>>
    %858 = arith.index_cast %857 : i32 to index
    %c0_273 = arith.constant 0 : index
    %859 = vector.load %arg9[%858, %c0_273] : memref<256x256xf32, #tpu.memory_space<vmem>>, vector<1x256xf32>
    %c179 = arith.constant 179 : index
    %860 = memref.load %arg1[%c179] : memref<294xi32, #tpu.memory_space<smem>>
    %861 = arith.index_cast %860 : i32 to index
    %c0_274 = arith.constant 0 : index
    %862 = vector.load %arg9[%861, %c0_274] : memref<256x256xf32, #tpu.memory_space<vmem>>, vector<1x256xf32>
    %c180 = arith.constant 180 : index
    %863 = memref.load %arg1[%c180] : memref<294xi32, #tpu.memory_space<smem>>
    %864 = arith.index_cast %863 : i32 to index
    %c0_275 = arith.constant 0 : index
    %865 = vector.load %arg9[%864, %c0_275] : memref<256x256xf32, #tpu.memory_space<vmem>>, vector<1x256xf32>
    %c181 = arith.constant 181 : index
    %866 = memref.load %arg1[%c181] : memref<294xi32, #tpu.memory_space<smem>>
    %867 = arith.index_cast %866 : i32 to index
    %c0_276 = arith.constant 0 : index
    %868 = vector.load %arg9[%867, %c0_276] : memref<256x256xf32, #tpu.memory_space<vmem>>, vector<1x256xf32>
    %869 = arith.maximumf %850, %853 : vector<1x256xf32>
    %870 = arith.maximumf %856, %859 : vector<1x256xf32>
    %871 = arith.maximumf %862, %865 : vector<1x256xf32>
    %872 = arith.maximumf %869, %870 : vector<1x256xf32>
    %873 = arith.maximumf %871, %868 : vector<1x256xf32>
    %874 = arith.maximumf %872, %873 : vector<1x256xf32>
    %875 = vector.extract_strided_slice %874 {offsets = [0, 0], sizes = [1, 128], strides = [1, 1]} : vector<1x256xf32> to vector<1x128xf32>
    %876 = vector.extract_strided_slice %874 {offsets = [0, 128], sizes = [1, 128], strides = [1, 1]} : vector<1x256xf32> to vector<1x128xf32>
    %877 = arith.addf %875, %876 : vector<1x128xf32>
    %cst_277 = arith.constant 0.000000e+00 : f32
    %878 = vector.broadcast %cst_277 : f32 to vector<1x128xf32>
    %879 = arith.maximumf %877, %878 : vector<1x128xf32>
    %c25_278 = arith.constant 25 : index
    %c0_279 = arith.constant 0 : index
    %880 = vector.load %arg8[%c25_278, %c0_279] : memref<42x128xf32, #tpu.memory_space<vmem>>, vector<1x128xf32>
    tpu.vector_store %arg8[%c25_278, %c0_279], %879 {strides = array<i32>} : memref<42x128xf32, #tpu.memory_space<vmem>>, vector<1x128xf32>,
    %c182 = arith.constant 182 : index
    %881 = memref.load %arg1[%c182] : memref<294xi32, #tpu.memory_space<smem>>
    %882 = arith.index_cast %881 : i32 to index
    %c0_280 = arith.constant 0 : index
    %883 = vector.load %arg9[%882, %c0_280] : memref<256x256xf32, #tpu.memory_space<vmem>>, vector<1x256xf32>
    %c183 = arith.constant 183 : index
    %884 = memref.load %arg1[%c183] : memref<294xi32, #tpu.memory_space<smem>>
    %885 = arith.index_cast %884 : i32 to index
    %c0_281 = arith.constant 0 : index
    %886 = vector.load %arg9[%885, %c0_281] : memref<256x256xf32, #tpu.memory_space<vmem>>, vector<1x256xf32>
    %c184 = arith.constant 184 : index
    %887 = memref.load %arg1[%c184] : memref<294xi32, #tpu.memory_space<smem>>
    %888 = arith.index_cast %887 : i32 to index
    %c0_282 = arith.constant 0 : index
    %889 = vector.load %arg9[%888, %c0_282] : memref<256x256xf32, #tpu.memory_space<vmem>>, vector<1x256xf32>
    %c185 = arith.constant 185 : index
    %890 = memref.load %arg1[%c185] : memref<294xi32, #tpu.memory_space<smem>>
    %891 = arith.index_cast %890 : i32 to index
    %c0_283 = arith.constant 0 : index
    %892 = vector.load %arg9[%891, %c0_283] : memref<256x256xf32, #tpu.memory_space<vmem>>, vector<1x256xf32>
    %c186 = arith.constant 186 : index
    %893 = memref.load %arg1[%c186] : memref<294xi32, #tpu.memory_space<smem>>
    %894 = arith.index_cast %893 : i32 to index
    %c0_284 = arith.constant 0 : index
    %895 = vector.load %arg9[%894, %c0_284] : memref<256x256xf32, #tpu.memory_space<vmem>>, vector<1x256xf32>
    %c187 = arith.constant 187 : index
    %896 = memref.load %arg1[%c187] : memref<294xi32, #tpu.memory_space<smem>>
    %897 = arith.index_cast %896 : i32 to index
    %c0_285 = arith.constant 0 : index
    %898 = vector.load %arg9[%897, %c0_285] : memref<256x256xf32, #tpu.memory_space<vmem>>, vector<1x256xf32>
    %c188 = arith.constant 188 : index
    %899 = memref.load %arg1[%c188] : memref<294xi32, #tpu.memory_space<smem>>
    %900 = arith.index_cast %899 : i32 to index
    %c0_286 = arith.constant 0 : index
    %901 = vector.load %arg9[%900, %c0_286] : memref<256x256xf32, #tpu.memory_space<vmem>>, vector<1x256xf32>
    %902 = arith.maximumf %883, %886 : vector<1x256xf32>
    %903 = arith.maximumf %889, %892 : vector<1x256xf32>
    %904 = arith.maximumf %895, %898 : vector<1x256xf32>
    %905 = arith.maximumf %902, %903 : vector<1x256xf32>
    %906 = arith.maximumf %904, %901 : vector<1x256xf32>
    %907 = arith.maximumf %905, %906 : vector<1x256xf32>
    %908 = vector.extract_strided_slice %907 {offsets = [0, 0], sizes = [1, 128], strides = [1, 1]} : vector<1x256xf32> to vector<1x128xf32>
    %909 = vector.extract_strided_slice %907 {offsets = [0, 128], sizes = [1, 128], strides = [1, 1]} : vector<1x256xf32> to vector<1x128xf32>
    %910 = arith.addf %908, %909 : vector<1x128xf32>
    %cst_287 = arith.constant 0.000000e+00 : f32
    %911 = vector.broadcast %cst_287 : f32 to vector<1x128xf32>
    %912 = arith.maximumf %910, %911 : vector<1x128xf32>
    %c26_288 = arith.constant 26 : index
    %c0_289 = arith.constant 0 : index
    %913 = vector.load %arg8[%c26_288, %c0_289] : memref<42x128xf32, #tpu.memory_space<vmem>>, vector<1x128xf32>
    tpu.vector_store %arg8[%c26_288, %c0_289], %912 {strides = array<i32>} : memref<42x128xf32, #tpu.memory_space<vmem>>, vector<1x128xf32>,
    %c189 = arith.constant 189 : index
    %914 = memref.load %arg1[%c189] : memref<294xi32, #tpu.memory_space<smem>>
    %915 = arith.index_cast %914 : i32 to index
    %c0_290 = arith.constant 0 : index
    %916 = vector.load %arg9[%915, %c0_290] : memref<256x256xf32, #tpu.memory_space<vmem>>, vector<1x256xf32>
    %c190 = arith.constant 190 : index
    %917 = memref.load %arg1[%c190] : memref<294xi32, #tpu.memory_space<smem>>
    %918 = arith.index_cast %917 : i32 to index
    %c0_291 = arith.constant 0 : index
    %919 = vector.load %arg9[%918, %c0_291] : memref<256x256xf32, #tpu.memory_space<vmem>>, vector<1x256xf32>
    %c191 = arith.constant 191 : index
    %920 = memref.load %arg1[%c191] : memref<294xi32, #tpu.memory_space<smem>>
    %921 = arith.index_cast %920 : i32 to index
    %c0_292 = arith.constant 0 : index
    %922 = vector.load %arg9[%921, %c0_292] : memref<256x256xf32, #tpu.memory_space<vmem>>, vector<1x256xf32>
    %c192 = arith.constant 192 : index
    %923 = memref.load %arg1[%c192] : memref<294xi32, #tpu.memory_space<smem>>
    %924 = arith.index_cast %923 : i32 to index
    %c0_293 = arith.constant 0 : index
    %925 = vector.load %arg9[%924, %c0_293] : memref<256x256xf32, #tpu.memory_space<vmem>>, vector<1x256xf32>
    %c193 = arith.constant 193 : index
    %926 = memref.load %arg1[%c193] : memref<294xi32, #tpu.memory_space<smem>>
    %927 = arith.index_cast %926 : i32 to index
    %c0_294 = arith.constant 0 : index
    %928 = vector.load %arg9[%927, %c0_294] : memref<256x256xf32, #tpu.memory_space<vmem>>, vector<1x256xf32>
    %c194 = arith.constant 194 : index
    %929 = memref.load %arg1[%c194] : memref<294xi32, #tpu.memory_space<smem>>
    %930 = arith.index_cast %929 : i32 to index
    %c0_295 = arith.constant 0 : index
    %931 = vector.load %arg9[%930, %c0_295] : memref<256x256xf32, #tpu.memory_space<vmem>>, vector<1x256xf32>
    %c195 = arith.constant 195 : index
    %932 = memref.load %arg1[%c195] : memref<294xi32, #tpu.memory_space<smem>>
    %933 = arith.index_cast %932 : i32 to index
    %c0_296 = arith.constant 0 : index
    %934 = vector.load %arg9[%933, %c0_296] : memref<256x256xf32, #tpu.memory_space<vmem>>, vector<1x256xf32>
    %935 = arith.maximumf %916, %919 : vector<1x256xf32>
    %936 = arith.maximumf %922, %925 : vector<1x256xf32>
    %937 = arith.maximumf %928, %931 : vector<1x256xf32>
    %938 = arith.maximumf %935, %936 : vector<1x256xf32>
    %939 = arith.maximumf %937, %934 : vector<1x256xf32>
    %940 = arith.maximumf %938, %939 : vector<1x256xf32>
    %941 = vector.extract_strided_slice %940 {offsets = [0, 0], sizes = [1, 128], strides = [1, 1]} : vector<1x256xf32> to vector<1x128xf32>
    %942 = vector.extract_strided_slice %940 {offsets = [0, 128], sizes = [1, 128], strides = [1, 1]} : vector<1x256xf32> to vector<1x128xf32>
    %943 = arith.addf %941, %942 : vector<1x128xf32>
    %cst_297 = arith.constant 0.000000e+00 : f32
    %944 = vector.broadcast %cst_297 : f32 to vector<1x128xf32>
    %945 = arith.maximumf %943, %944 : vector<1x128xf32>
    %c27_298 = arith.constant 27 : index
    %c0_299 = arith.constant 0 : index
    %946 = vector.load %arg8[%c27_298, %c0_299] : memref<42x128xf32, #tpu.memory_space<vmem>>, vector<1x128xf32>
    tpu.vector_store %arg8[%c27_298, %c0_299], %945 {strides = array<i32>} : memref<42x128xf32, #tpu.memory_space<vmem>>, vector<1x128xf32>,
    %c196 = arith.constant 196 : index
    %947 = memref.load %arg1[%c196] : memref<294xi32, #tpu.memory_space<smem>>
    %948 = arith.index_cast %947 : i32 to index
    %c0_300 = arith.constant 0 : index
    %949 = vector.load %arg9[%948, %c0_300] : memref<256x256xf32, #tpu.memory_space<vmem>>, vector<1x256xf32>
    %c197 = arith.constant 197 : index
    %950 = memref.load %arg1[%c197] : memref<294xi32, #tpu.memory_space<smem>>
    %951 = arith.index_cast %950 : i32 to index
    %c0_301 = arith.constant 0 : index
    %952 = vector.load %arg9[%951, %c0_301] : memref<256x256xf32, #tpu.memory_space<vmem>>, vector<1x256xf32>
    %c198 = arith.constant 198 : index
    %953 = memref.load %arg1[%c198] : memref<294xi32, #tpu.memory_space<smem>>
    %954 = arith.index_cast %953 : i32 to index
    %c0_302 = arith.constant 0 : index
    %955 = vector.load %arg9[%954, %c0_302] : memref<256x256xf32, #tpu.memory_space<vmem>>, vector<1x256xf32>
    %c199 = arith.constant 199 : index
    %956 = memref.load %arg1[%c199] : memref<294xi32, #tpu.memory_space<smem>>
    %957 = arith.index_cast %956 : i32 to index
    %c0_303 = arith.constant 0 : index
    %958 = vector.load %arg9[%957, %c0_303] : memref<256x256xf32, #tpu.memory_space<vmem>>, vector<1x256xf32>
    %c200 = arith.constant 200 : index
    %959 = memref.load %arg1[%c200] : memref<294xi32, #tpu.memory_space<smem>>
    %960 = arith.index_cast %959 : i32 to index
    %c0_304 = arith.constant 0 : index
    %961 = vector.load %arg9[%960, %c0_304] : memref<256x256xf32, #tpu.memory_space<vmem>>, vector<1x256xf32>
    %c201 = arith.constant 201 : index
    %962 = memref.load %arg1[%c201] : memref<294xi32, #tpu.memory_space<smem>>
    %963 = arith.index_cast %962 : i32 to index
    %c0_305 = arith.constant 0 : index
    %964 = vector.load %arg9[%963, %c0_305] : memref<256x256xf32, #tpu.memory_space<vmem>>, vector<1x256xf32>
    %c202 = arith.constant 202 : index
    %965 = memref.load %arg1[%c202] : memref<294xi32, #tpu.memory_space<smem>>
    %966 = arith.index_cast %965 : i32 to index
    %c0_306 = arith.constant 0 : index
    %967 = vector.load %arg9[%966, %c0_306] : memref<256x256xf32, #tpu.memory_space<vmem>>, vector<1x256xf32>
    %968 = arith.maximumf %949, %952 : vector<1x256xf32>
    %969 = arith.maximumf %955, %958 : vector<1x256xf32>
    %970 = arith.maximumf %961, %964 : vector<1x256xf32>
    %971 = arith.maximumf %968, %969 : vector<1x256xf32>
    %972 = arith.maximumf %970, %967 : vector<1x256xf32>
    %973 = arith.maximumf %971, %972 : vector<1x256xf32>
    %974 = vector.extract_strided_slice %973 {offsets = [0, 0], sizes = [1, 128], strides = [1, 1]} : vector<1x256xf32> to vector<1x128xf32>
    %975 = vector.extract_strided_slice %973 {offsets = [0, 128], sizes = [1, 128], strides = [1, 1]} : vector<1x256xf32> to vector<1x128xf32>
    %976 = arith.addf %974, %975 : vector<1x128xf32>
    %cst_307 = arith.constant 0.000000e+00 : f32
    %977 = vector.broadcast %cst_307 : f32 to vector<1x128xf32>
    %978 = arith.maximumf %976, %977 : vector<1x128xf32>
    %c28_308 = arith.constant 28 : index
    %c0_309 = arith.constant 0 : index
    %979 = vector.load %arg8[%c28_308, %c0_309] : memref<42x128xf32, #tpu.memory_space<vmem>>, vector<1x128xf32>
    tpu.vector_store %arg8[%c28_308, %c0_309], %978 {strides = array<i32>} : memref<42x128xf32, #tpu.memory_space<vmem>>, vector<1x128xf32>,
    %c203 = arith.constant 203 : index
    %980 = memref.load %arg1[%c203] : memref<294xi32, #tpu.memory_space<smem>>
    %981 = arith.index_cast %980 : i32 to index
    %c0_310 = arith.constant 0 : index
    %982 = vector.load %arg9[%981, %c0_310] : memref<256x256xf32, #tpu.memory_space<vmem>>, vector<1x256xf32>
    %c204 = arith.constant 204 : index
    %983 = memref.load %arg1[%c204] : memref<294xi32, #tpu.memory_space<smem>>
    %984 = arith.index_cast %983 : i32 to index
    %c0_311 = arith.constant 0 : index
    %985 = vector.load %arg9[%984, %c0_311] : memref<256x256xf32, #tpu.memory_space<vmem>>, vector<1x256xf32>
    %c205 = arith.constant 205 : index
    %986 = memref.load %arg1[%c205] : memref<294xi32, #tpu.memory_space<smem>>
    %987 = arith.index_cast %986 : i32 to index
    %c0_312 = arith.constant 0 : index
    %988 = vector.load %arg9[%987, %c0_312] : memref<256x256xf32, #tpu.memory_space<vmem>>, vector<1x256xf32>
    %c206 = arith.constant 206 : index
    %989 = memref.load %arg1[%c206] : memref<294xi32, #tpu.memory_space<smem>>
    %990 = arith.index_cast %989 : i32 to index
    %c0_313 = arith.constant 0 : index
    %991 = vector.load %arg9[%990, %c0_313] : memref<256x256xf32, #tpu.memory_space<vmem>>, vector<1x256xf32>
    %c207 = arith.constant 207 : index
    %992 = memref.load %arg1[%c207] : memref<294xi32, #tpu.memory_space<smem>>
    %993 = arith.index_cast %992 : i32 to index
    %c0_314 = arith.constant 0 : index
    %994 = vector.load %arg9[%993, %c0_314] : memref<256x256xf32, #tpu.memory_space<vmem>>, vector<1x256xf32>
    %c208 = arith.constant 208 : index
    %995 = memref.load %arg1[%c208] : memref<294xi32, #tpu.memory_space<smem>>
    %996 = arith.index_cast %995 : i32 to index
    %c0_315 = arith.constant 0 : index
    %997 = vector.load %arg9[%996, %c0_315] : memref<256x256xf32, #tpu.memory_space<vmem>>, vector<1x256xf32>
    %c209 = arith.constant 209 : index
    %998 = memref.load %arg1[%c209] : memref<294xi32, #tpu.memory_space<smem>>
    %999 = arith.index_cast %998 : i32 to index
    %c0_316 = arith.constant 0 : index
    %1000 = vector.load %arg9[%999, %c0_316] : memref<256x256xf32, #tpu.memory_space<vmem>>, vector<1x256xf32>
    %1001 = arith.maximumf %982, %985 : vector<1x256xf32>
    %1002 = arith.maximumf %988, %991 : vector<1x256xf32>
    %1003 = arith.maximumf %994, %997 : vector<1x256xf32>
    %1004 = arith.maximumf %1001, %1002 : vector<1x256xf32>
    %1005 = arith.maximumf %1003, %1000 : vector<1x256xf32>
    %1006 = arith.maximumf %1004, %1005 : vector<1x256xf32>
    %1007 = vector.extract_strided_slice %1006 {offsets = [0, 0], sizes = [1, 128], strides = [1, 1]} : vector<1x256xf32> to vector<1x128xf32>
    %1008 = vector.extract_strided_slice %1006 {offsets = [0, 128], sizes = [1, 128], strides = [1, 1]} : vector<1x256xf32> to vector<1x128xf32>
    %1009 = arith.addf %1007, %1008 : vector<1x128xf32>
    %cst_317 = arith.constant 0.000000e+00 : f32
    %1010 = vector.broadcast %cst_317 : f32 to vector<1x128xf32>
    %1011 = arith.maximumf %1009, %1010 : vector<1x128xf32>
    %c29_318 = arith.constant 29 : index
    %c0_319 = arith.constant 0 : index
    %1012 = vector.load %arg8[%c29_318, %c0_319] : memref<42x128xf32, #tpu.memory_space<vmem>>, vector<1x128xf32>
    tpu.vector_store %arg8[%c29_318, %c0_319], %1011 {strides = array<i32>} : memref<42x128xf32, #tpu.memory_space<vmem>>, vector<1x128xf32>,
    %c210 = arith.constant 210 : index
    %1013 = memref.load %arg1[%c210] : memref<294xi32, #tpu.memory_space<smem>>
    %1014 = arith.index_cast %1013 : i32 to index
    %c0_320 = arith.constant 0 : index
    %1015 = vector.load %arg9[%1014, %c0_320] : memref<256x256xf32, #tpu.memory_space<vmem>>, vector<1x256xf32>
    %c211 = arith.constant 211 : index
    %1016 = memref.load %arg1[%c211] : memref<294xi32, #tpu.memory_space<smem>>
    %1017 = arith.index_cast %1016 : i32 to index
    %c0_321 = arith.constant 0 : index
    %1018 = vector.load %arg9[%1017, %c0_321] : memref<256x256xf32, #tpu.memory_space<vmem>>, vector<1x256xf32>
    %c212 = arith.constant 212 : index
    %1019 = memref.load %arg1[%c212] : memref<294xi32, #tpu.memory_space<smem>>
    %1020 = arith.index_cast %1019 : i32 to index
    %c0_322 = arith.constant 0 : index
    %1021 = vector.load %arg9[%1020, %c0_322] : memref<256x256xf32, #tpu.memory_space<vmem>>, vector<1x256xf32>
    %c213 = arith.constant 213 : index
    %1022 = memref.load %arg1[%c213] : memref<294xi32, #tpu.memory_space<smem>>
    %1023 = arith.index_cast %1022 : i32 to index
    %c0_323 = arith.constant 0 : index
    %1024 = vector.load %arg9[%1023, %c0_323] : memref<256x256xf32, #tpu.memory_space<vmem>>, vector<1x256xf32>
    %c214 = arith.constant 214 : index
    %1025 = memref.load %arg1[%c214] : memref<294xi32, #tpu.memory_space<smem>>
    %1026 = arith.index_cast %1025 : i32 to index
    %c0_324 = arith.constant 0 : index
    %1027 = vector.load %arg9[%1026, %c0_324] : memref<256x256xf32, #tpu.memory_space<vmem>>, vector<1x256xf32>
    %c215 = arith.constant 215 : index
    %1028 = memref.load %arg1[%c215] : memref<294xi32, #tpu.memory_space<smem>>
    %1029 = arith.index_cast %1028 : i32 to index
    %c0_325 = arith.constant 0 : index
    %1030 = vector.load %arg9[%1029, %c0_325] : memref<256x256xf32, #tpu.memory_space<vmem>>, vector<1x256xf32>
    %c216 = arith.constant 216 : index
    %1031 = memref.load %arg1[%c216] : memref<294xi32, #tpu.memory_space<smem>>
    %1032 = arith.index_cast %1031 : i32 to index
    %c0_326 = arith.constant 0 : index
    %1033 = vector.load %arg9[%1032, %c0_326] : memref<256x256xf32, #tpu.memory_space<vmem>>, vector<1x256xf32>
    %1034 = arith.maximumf %1015, %1018 : vector<1x256xf32>
    %1035 = arith.maximumf %1021, %1024 : vector<1x256xf32>
    %1036 = arith.maximumf %1027, %1030 : vector<1x256xf32>
    %1037 = arith.maximumf %1034, %1035 : vector<1x256xf32>
    %1038 = arith.maximumf %1036, %1033 : vector<1x256xf32>
    %1039 = arith.maximumf %1037, %1038 : vector<1x256xf32>
    %1040 = vector.extract_strided_slice %1039 {offsets = [0, 0], sizes = [1, 128], strides = [1, 1]} : vector<1x256xf32> to vector<1x128xf32>
    %1041 = vector.extract_strided_slice %1039 {offsets = [0, 128], sizes = [1, 128], strides = [1, 1]} : vector<1x256xf32> to vector<1x128xf32>
    %1042 = arith.addf %1040, %1041 : vector<1x128xf32>
    %cst_327 = arith.constant 0.000000e+00 : f32
    %1043 = vector.broadcast %cst_327 : f32 to vector<1x128xf32>
    %1044 = arith.maximumf %1042, %1043 : vector<1x128xf32>
    %c30_328 = arith.constant 30 : index
    %c0_329 = arith.constant 0 : index
    %1045 = vector.load %arg8[%c30_328, %c0_329] : memref<42x128xf32, #tpu.memory_space<vmem>>, vector<1x128xf32>
    tpu.vector_store %arg8[%c30_328, %c0_329], %1044 {strides = array<i32>} : memref<42x128xf32, #tpu.memory_space<vmem>>, vector<1x128xf32>,
    %c217 = arith.constant 217 : index
    %1046 = memref.load %arg1[%c217] : memref<294xi32, #tpu.memory_space<smem>>
    %1047 = arith.index_cast %1046 : i32 to index
    %c0_330 = arith.constant 0 : index
    %1048 = vector.load %arg9[%1047, %c0_330] : memref<256x256xf32, #tpu.memory_space<vmem>>, vector<1x256xf32>
    %c218 = arith.constant 218 : index
    %1049 = memref.load %arg1[%c218] : memref<294xi32, #tpu.memory_space<smem>>
    %1050 = arith.index_cast %1049 : i32 to index
    %c0_331 = arith.constant 0 : index
    %1051 = vector.load %arg9[%1050, %c0_331] : memref<256x256xf32, #tpu.memory_space<vmem>>, vector<1x256xf32>
    %c219 = arith.constant 219 : index
    %1052 = memref.load %arg1[%c219] : memref<294xi32, #tpu.memory_space<smem>>
    %1053 = arith.index_cast %1052 : i32 to index
    %c0_332 = arith.constant 0 : index
    %1054 = vector.load %arg9[%1053, %c0_332] : memref<256x256xf32, #tpu.memory_space<vmem>>, vector<1x256xf32>
    %c220 = arith.constant 220 : index
    %1055 = memref.load %arg1[%c220] : memref<294xi32, #tpu.memory_space<smem>>
    %1056 = arith.index_cast %1055 : i32 to index
    %c0_333 = arith.constant 0 : index
    %1057 = vector.load %arg9[%1056, %c0_333] : memref<256x256xf32, #tpu.memory_space<vmem>>, vector<1x256xf32>
    %c221 = arith.constant 221 : index
    %1058 = memref.load %arg1[%c221] : memref<294xi32, #tpu.memory_space<smem>>
    %1059 = arith.index_cast %1058 : i32 to index
    %c0_334 = arith.constant 0 : index
    %1060 = vector.load %arg9[%1059, %c0_334] : memref<256x256xf32, #tpu.memory_space<vmem>>, vector<1x256xf32>
    %c222 = arith.constant 222 : index
    %1061 = memref.load %arg1[%c222] : memref<294xi32, #tpu.memory_space<smem>>
    %1062 = arith.index_cast %1061 : i32 to index
    %c0_335 = arith.constant 0 : index
    %1063 = vector.load %arg9[%1062, %c0_335] : memref<256x256xf32, #tpu.memory_space<vmem>>, vector<1x256xf32>
    %c223 = arith.constant 223 : index
    %1064 = memref.load %arg1[%c223] : memref<294xi32, #tpu.memory_space<smem>>
    %1065 = arith.index_cast %1064 : i32 to index
    %c0_336 = arith.constant 0 : index
    %1066 = vector.load %arg9[%1065, %c0_336] : memref<256x256xf32, #tpu.memory_space<vmem>>, vector<1x256xf32>
    %1067 = arith.maximumf %1048, %1051 : vector<1x256xf32>
    %1068 = arith.maximumf %1054, %1057 : vector<1x256xf32>
    %1069 = arith.maximumf %1060, %1063 : vector<1x256xf32>
    %1070 = arith.maximumf %1067, %1068 : vector<1x256xf32>
    %1071 = arith.maximumf %1069, %1066 : vector<1x256xf32>
    %1072 = arith.maximumf %1070, %1071 : vector<1x256xf32>
    %1073 = vector.extract_strided_slice %1072 {offsets = [0, 0], sizes = [1, 128], strides = [1, 1]} : vector<1x256xf32> to vector<1x128xf32>
    %1074 = vector.extract_strided_slice %1072 {offsets = [0, 128], sizes = [1, 128], strides = [1, 1]} : vector<1x256xf32> to vector<1x128xf32>
    %1075 = arith.addf %1073, %1074 : vector<1x128xf32>
    %cst_337 = arith.constant 0.000000e+00 : f32
    %1076 = vector.broadcast %cst_337 : f32 to vector<1x128xf32>
    %1077 = arith.maximumf %1075, %1076 : vector<1x128xf32>
    %c31_338 = arith.constant 31 : index
    %c0_339 = arith.constant 0 : index
    %1078 = vector.load %arg8[%c31_338, %c0_339] : memref<42x128xf32, #tpu.memory_space<vmem>>, vector<1x128xf32>
    tpu.vector_store %arg8[%c31_338, %c0_339], %1077 {strides = array<i32>} : memref<42x128xf32, #tpu.memory_space<vmem>>, vector<1x128xf32>,
    %c224 = arith.constant 224 : index
    %1079 = memref.load %arg1[%c224] : memref<294xi32, #tpu.memory_space<smem>>
    %1080 = arith.index_cast %1079 : i32 to index
    %c0_340 = arith.constant 0 : index
    %1081 = vector.load %arg9[%1080, %c0_340] : memref<256x256xf32, #tpu.memory_space<vmem>>, vector<1x256xf32>
    %c225 = arith.constant 225 : index
    %1082 = memref.load %arg1[%c225] : memref<294xi32, #tpu.memory_space<smem>>
    %1083 = arith.index_cast %1082 : i32 to index
    %c0_341 = arith.constant 0 : index
    %1084 = vector.load %arg9[%1083, %c0_341] : memref<256x256xf32, #tpu.memory_space<vmem>>, vector<1x256xf32>
    %c226 = arith.constant 226 : index
    %1085 = memref.load %arg1[%c226] : memref<294xi32, #tpu.memory_space<smem>>
    %1086 = arith.index_cast %1085 : i32 to index
    %c0_342 = arith.constant 0 : index
    %1087 = vector.load %arg9[%1086, %c0_342] : memref<256x256xf32, #tpu.memory_space<vmem>>, vector<1x256xf32>
    %c227 = arith.constant 227 : index
    %1088 = memref.load %arg1[%c227] : memref<294xi32, #tpu.memory_space<smem>>
    %1089 = arith.index_cast %1088 : i32 to index
    %c0_343 = arith.constant 0 : index
    %1090 = vector.load %arg9[%1089, %c0_343] : memref<256x256xf32, #tpu.memory_space<vmem>>, vector<1x256xf32>
    %c228 = arith.constant 228 : index
    %1091 = memref.load %arg1[%c228] : memref<294xi32, #tpu.memory_space<smem>>
    %1092 = arith.index_cast %1091 : i32 to index
    %c0_344 = arith.constant 0 : index
    %1093 = vector.load %arg9[%1092, %c0_344] : memref<256x256xf32, #tpu.memory_space<vmem>>, vector<1x256xf32>
    %c229 = arith.constant 229 : index
    %1094 = memref.load %arg1[%c229] : memref<294xi32, #tpu.memory_space<smem>>
    %1095 = arith.index_cast %1094 : i32 to index
    %c0_345 = arith.constant 0 : index
    %1096 = vector.load %arg9[%1095, %c0_345] : memref<256x256xf32, #tpu.memory_space<vmem>>, vector<1x256xf32>
    %c230 = arith.constant 230 : index
    %1097 = memref.load %arg1[%c230] : memref<294xi32, #tpu.memory_space<smem>>
    %1098 = arith.index_cast %1097 : i32 to index
    %c0_346 = arith.constant 0 : index
    %1099 = vector.load %arg9[%1098, %c0_346] : memref<256x256xf32, #tpu.memory_space<vmem>>, vector<1x256xf32>
    %1100 = arith.maximumf %1081, %1084 : vector<1x256xf32>
    %1101 = arith.maximumf %1087, %1090 : vector<1x256xf32>
    %1102 = arith.maximumf %1093, %1096 : vector<1x256xf32>
    %1103 = arith.maximumf %1100, %1101 : vector<1x256xf32>
    %1104 = arith.maximumf %1102, %1099 : vector<1x256xf32>
    %1105 = arith.maximumf %1103, %1104 : vector<1x256xf32>
    %1106 = vector.extract_strided_slice %1105 {offsets = [0, 0], sizes = [1, 128], strides = [1, 1]} : vector<1x256xf32> to vector<1x128xf32>
    %1107 = vector.extract_strided_slice %1105 {offsets = [0, 128], sizes = [1, 128], strides = [1, 1]} : vector<1x256xf32> to vector<1x128xf32>
    %1108 = arith.addf %1106, %1107 : vector<1x128xf32>
    %cst_347 = arith.constant 0.000000e+00 : f32
    %1109 = vector.broadcast %cst_347 : f32 to vector<1x128xf32>
    %1110 = arith.maximumf %1108, %1109 : vector<1x128xf32>
    %c32_348 = arith.constant 32 : index
    %c0_349 = arith.constant 0 : index
    %1111 = vector.load %arg8[%c32_348, %c0_349] : memref<42x128xf32, #tpu.memory_space<vmem>>, vector<1x128xf32>
    tpu.vector_store %arg8[%c32_348, %c0_349], %1110 {strides = array<i32>} : memref<42x128xf32, #tpu.memory_space<vmem>>, vector<1x128xf32>,
    %c231 = arith.constant 231 : index
    %1112 = memref.load %arg1[%c231] : memref<294xi32, #tpu.memory_space<smem>>
    %1113 = arith.index_cast %1112 : i32 to index
    %c0_350 = arith.constant 0 : index
    %1114 = vector.load %arg9[%1113, %c0_350] : memref<256x256xf32, #tpu.memory_space<vmem>>, vector<1x256xf32>
    %c232 = arith.constant 232 : index
    %1115 = memref.load %arg1[%c232] : memref<294xi32, #tpu.memory_space<smem>>
    %1116 = arith.index_cast %1115 : i32 to index
    %c0_351 = arith.constant 0 : index
    %1117 = vector.load %arg9[%1116, %c0_351] : memref<256x256xf32, #tpu.memory_space<vmem>>, vector<1x256xf32>
    %c233 = arith.constant 233 : index
    %1118 = memref.load %arg1[%c233] : memref<294xi32, #tpu.memory_space<smem>>
    %1119 = arith.index_cast %1118 : i32 to index
    %c0_352 = arith.constant 0 : index
    %1120 = vector.load %arg9[%1119, %c0_352] : memref<256x256xf32, #tpu.memory_space<vmem>>, vector<1x256xf32>
    %c234 = arith.constant 234 : index
    %1121 = memref.load %arg1[%c234] : memref<294xi32, #tpu.memory_space<smem>>
    %1122 = arith.index_cast %1121 : i32 to index
    %c0_353 = arith.constant 0 : index
    %1123 = vector.load %arg9[%1122, %c0_353] : memref<256x256xf32, #tpu.memory_space<vmem>>, vector<1x256xf32>
    %c235 = arith.constant 235 : index
    %1124 = memref.load %arg1[%c235] : memref<294xi32, #tpu.memory_space<smem>>
    %1125 = arith.index_cast %1124 : i32 to index
    %c0_354 = arith.constant 0 : index
    %1126 = vector.load %arg9[%1125, %c0_354] : memref<256x256xf32, #tpu.memory_space<vmem>>, vector<1x256xf32>
    %c236 = arith.constant 236 : index
    %1127 = memref.load %arg1[%c236] : memref<294xi32, #tpu.memory_space<smem>>
    %1128 = arith.index_cast %1127 : i32 to index
    %c0_355 = arith.constant 0 : index
    %1129 = vector.load %arg9[%1128, %c0_355] : memref<256x256xf32, #tpu.memory_space<vmem>>, vector<1x256xf32>
    %c237 = arith.constant 237 : index
    %1130 = memref.load %arg1[%c237] : memref<294xi32, #tpu.memory_space<smem>>
    %1131 = arith.index_cast %1130 : i32 to index
    %c0_356 = arith.constant 0 : index
    %1132 = vector.load %arg9[%1131, %c0_356] : memref<256x256xf32, #tpu.memory_space<vmem>>, vector<1x256xf32>
    %1133 = arith.maximumf %1114, %1117 : vector<1x256xf32>
    %1134 = arith.maximumf %1120, %1123 : vector<1x256xf32>
    %1135 = arith.maximumf %1126, %1129 : vector<1x256xf32>
    %1136 = arith.maximumf %1133, %1134 : vector<1x256xf32>
    %1137 = arith.maximumf %1135, %1132 : vector<1x256xf32>
    %1138 = arith.maximumf %1136, %1137 : vector<1x256xf32>
    %1139 = vector.extract_strided_slice %1138 {offsets = [0, 0], sizes = [1, 128], strides = [1, 1]} : vector<1x256xf32> to vector<1x128xf32>
    %1140 = vector.extract_strided_slice %1138 {offsets = [0, 128], sizes = [1, 128], strides = [1, 1]} : vector<1x256xf32> to vector<1x128xf32>
    %1141 = arith.addf %1139, %1140 : vector<1x128xf32>
    %cst_357 = arith.constant 0.000000e+00 : f32
    %1142 = vector.broadcast %cst_357 : f32 to vector<1x128xf32>
    %1143 = arith.maximumf %1141, %1142 : vector<1x128xf32>
    %c33_358 = arith.constant 33 : index
    %c0_359 = arith.constant 0 : index
    %1144 = vector.load %arg8[%c33_358, %c0_359] : memref<42x128xf32, #tpu.memory_space<vmem>>, vector<1x128xf32>
    tpu.vector_store %arg8[%c33_358, %c0_359], %1143 {strides = array<i32>} : memref<42x128xf32, #tpu.memory_space<vmem>>, vector<1x128xf32>,
    %c238 = arith.constant 238 : index
    %1145 = memref.load %arg1[%c238] : memref<294xi32, #tpu.memory_space<smem>>
    %1146 = arith.index_cast %1145 : i32 to index
    %c0_360 = arith.constant 0 : index
    %1147 = vector.load %arg9[%1146, %c0_360] : memref<256x256xf32, #tpu.memory_space<vmem>>, vector<1x256xf32>
    %c239 = arith.constant 239 : index
    %1148 = memref.load %arg1[%c239] : memref<294xi32, #tpu.memory_space<smem>>
    %1149 = arith.index_cast %1148 : i32 to index
    %c0_361 = arith.constant 0 : index
    %1150 = vector.load %arg9[%1149, %c0_361] : memref<256x256xf32, #tpu.memory_space<vmem>>, vector<1x256xf32>
    %c240 = arith.constant 240 : index
    %1151 = memref.load %arg1[%c240] : memref<294xi32, #tpu.memory_space<smem>>
    %1152 = arith.index_cast %1151 : i32 to index
    %c0_362 = arith.constant 0 : index
    %1153 = vector.load %arg9[%1152, %c0_362] : memref<256x256xf32, #tpu.memory_space<vmem>>, vector<1x256xf32>
    %c241 = arith.constant 241 : index
    %1154 = memref.load %arg1[%c241] : memref<294xi32, #tpu.memory_space<smem>>
    %1155 = arith.index_cast %1154 : i32 to index
    %c0_363 = arith.constant 0 : index
    %1156 = vector.load %arg9[%1155, %c0_363] : memref<256x256xf32, #tpu.memory_space<vmem>>, vector<1x256xf32>
    %c242 = arith.constant 242 : index
    %1157 = memref.load %arg1[%c242] : memref<294xi32, #tpu.memory_space<smem>>
    %1158 = arith.index_cast %1157 : i32 to index
    %c0_364 = arith.constant 0 : index
    %1159 = vector.load %arg9[%1158, %c0_364] : memref<256x256xf32, #tpu.memory_space<vmem>>, vector<1x256xf32>
    %c243 = arith.constant 243 : index
    %1160 = memref.load %arg1[%c243] : memref<294xi32, #tpu.memory_space<smem>>
    %1161 = arith.index_cast %1160 : i32 to index
    %c0_365 = arith.constant 0 : index
    %1162 = vector.load %arg9[%1161, %c0_365] : memref<256x256xf32, #tpu.memory_space<vmem>>, vector<1x256xf32>
    %c244 = arith.constant 244 : index
    %1163 = memref.load %arg1[%c244] : memref<294xi32, #tpu.memory_space<smem>>
    %1164 = arith.index_cast %1163 : i32 to index
    %c0_366 = arith.constant 0 : index
    %1165 = vector.load %arg9[%1164, %c0_366] : memref<256x256xf32, #tpu.memory_space<vmem>>, vector<1x256xf32>
    %1166 = arith.maximumf %1147, %1150 : vector<1x256xf32>
    %1167 = arith.maximumf %1153, %1156 : vector<1x256xf32>
    %1168 = arith.maximumf %1159, %1162 : vector<1x256xf32>
    %1169 = arith.maximumf %1166, %1167 : vector<1x256xf32>
    %1170 = arith.maximumf %1168, %1165 : vector<1x256xf32>
    %1171 = arith.maximumf %1169, %1170 : vector<1x256xf32>
    %1172 = vector.extract_strided_slice %1171 {offsets = [0, 0], sizes = [1, 128], strides = [1, 1]} : vector<1x256xf32> to vector<1x128xf32>
    %1173 = vector.extract_strided_slice %1171 {offsets = [0, 128], sizes = [1, 128], strides = [1, 1]} : vector<1x256xf32> to vector<1x128xf32>
    %1174 = arith.addf %1172, %1173 : vector<1x128xf32>
    %cst_367 = arith.constant 0.000000e+00 : f32
    %1175 = vector.broadcast %cst_367 : f32 to vector<1x128xf32>
    %1176 = arith.maximumf %1174, %1175 : vector<1x128xf32>
    %c34_368 = arith.constant 34 : index
    %c0_369 = arith.constant 0 : index
    %1177 = vector.load %arg8[%c34_368, %c0_369] : memref<42x128xf32, #tpu.memory_space<vmem>>, vector<1x128xf32>
    tpu.vector_store %arg8[%c34_368, %c0_369], %1176 {strides = array<i32>} : memref<42x128xf32, #tpu.memory_space<vmem>>, vector<1x128xf32>,
    %c245 = arith.constant 245 : index
    %1178 = memref.load %arg1[%c245] : memref<294xi32, #tpu.memory_space<smem>>
    %1179 = arith.index_cast %1178 : i32 to index
    %c0_370 = arith.constant 0 : index
    %1180 = vector.load %arg9[%1179, %c0_370] : memref<256x256xf32, #tpu.memory_space<vmem>>, vector<1x256xf32>
    %c246 = arith.constant 246 : index
    %1181 = memref.load %arg1[%c246] : memref<294xi32, #tpu.memory_space<smem>>
    %1182 = arith.index_cast %1181 : i32 to index
    %c0_371 = arith.constant 0 : index
    %1183 = vector.load %arg9[%1182, %c0_371] : memref<256x256xf32, #tpu.memory_space<vmem>>, vector<1x256xf32>
    %c247 = arith.constant 247 : index
    %1184 = memref.load %arg1[%c247] : memref<294xi32, #tpu.memory_space<smem>>
    %1185 = arith.index_cast %1184 : i32 to index
    %c0_372 = arith.constant 0 : index
    %1186 = vector.load %arg9[%1185, %c0_372] : memref<256x256xf32, #tpu.memory_space<vmem>>, vector<1x256xf32>
    %c248 = arith.constant 248 : index
    %1187 = memref.load %arg1[%c248] : memref<294xi32, #tpu.memory_space<smem>>
    %1188 = arith.index_cast %1187 : i32 to index
    %c0_373 = arith.constant 0 : index
    %1189 = vector.load %arg9[%1188, %c0_373] : memref<256x256xf32, #tpu.memory_space<vmem>>, vector<1x256xf32>
    %c249 = arith.constant 249 : index
    %1190 = memref.load %arg1[%c249] : memref<294xi32, #tpu.memory_space<smem>>
    %1191 = arith.index_cast %1190 : i32 to index
    %c0_374 = arith.constant 0 : index
    %1192 = vector.load %arg9[%1191, %c0_374] : memref<256x256xf32, #tpu.memory_space<vmem>>, vector<1x256xf32>
    %c250 = arith.constant 250 : index
    %1193 = memref.load %arg1[%c250] : memref<294xi32, #tpu.memory_space<smem>>
    %1194 = arith.index_cast %1193 : i32 to index
    %c0_375 = arith.constant 0 : index
    %1195 = vector.load %arg9[%1194, %c0_375] : memref<256x256xf32, #tpu.memory_space<vmem>>, vector<1x256xf32>
    %c251 = arith.constant 251 : index
    %1196 = memref.load %arg1[%c251] : memref<294xi32, #tpu.memory_space<smem>>
    %1197 = arith.index_cast %1196 : i32 to index
    %c0_376 = arith.constant 0 : index
    %1198 = vector.load %arg9[%1197, %c0_376] : memref<256x256xf32, #tpu.memory_space<vmem>>, vector<1x256xf32>
    %1199 = arith.maximumf %1180, %1183 : vector<1x256xf32>
    %1200 = arith.maximumf %1186, %1189 : vector<1x256xf32>
    %1201 = arith.maximumf %1192, %1195 : vector<1x256xf32>
    %1202 = arith.maximumf %1199, %1200 : vector<1x256xf32>
    %1203 = arith.maximumf %1201, %1198 : vector<1x256xf32>
    %1204 = arith.maximumf %1202, %1203 : vector<1x256xf32>
    %1205 = vector.extract_strided_slice %1204 {offsets = [0, 0], sizes = [1, 128], strides = [1, 1]} : vector<1x256xf32> to vector<1x128xf32>
    %1206 = vector.extract_strided_slice %1204 {offsets = [0, 128], sizes = [1, 128], strides = [1, 1]} : vector<1x256xf32> to vector<1x128xf32>
    %1207 = arith.addf %1205, %1206 : vector<1x128xf32>
    %cst_377 = arith.constant 0.000000e+00 : f32
    %1208 = vector.broadcast %cst_377 : f32 to vector<1x128xf32>
    %1209 = arith.maximumf %1207, %1208 : vector<1x128xf32>
    %c35_378 = arith.constant 35 : index
    %c0_379 = arith.constant 0 : index
    %1210 = vector.load %arg8[%c35_378, %c0_379] : memref<42x128xf32, #tpu.memory_space<vmem>>, vector<1x128xf32>
    tpu.vector_store %arg8[%c35_378, %c0_379], %1209 {strides = array<i32>} : memref<42x128xf32, #tpu.memory_space<vmem>>, vector<1x128xf32>,
    %c252 = arith.constant 252 : index
    %1211 = memref.load %arg1[%c252] : memref<294xi32, #tpu.memory_space<smem>>
    %1212 = arith.index_cast %1211 : i32 to index
    %c0_380 = arith.constant 0 : index
    %1213 = vector.load %arg9[%1212, %c0_380] : memref<256x256xf32, #tpu.memory_space<vmem>>, vector<1x256xf32>
    %c253 = arith.constant 253 : index
    %1214 = memref.load %arg1[%c253] : memref<294xi32, #tpu.memory_space<smem>>
    %1215 = arith.index_cast %1214 : i32 to index
    %c0_381 = arith.constant 0 : index
    %1216 = vector.load %arg9[%1215, %c0_381] : memref<256x256xf32, #tpu.memory_space<vmem>>, vector<1x256xf32>
    %c254 = arith.constant 254 : index
    %1217 = memref.load %arg1[%c254] : memref<294xi32, #tpu.memory_space<smem>>
    %1218 = arith.index_cast %1217 : i32 to index
    %c0_382 = arith.constant 0 : index
    %1219 = vector.load %arg9[%1218, %c0_382] : memref<256x256xf32, #tpu.memory_space<vmem>>, vector<1x256xf32>
    %c255 = arith.constant 255 : index
    %1220 = memref.load %arg1[%c255] : memref<294xi32, #tpu.memory_space<smem>>
    %1221 = arith.index_cast %1220 : i32 to index
    %c0_383 = arith.constant 0 : index
    %1222 = vector.load %arg9[%1221, %c0_383] : memref<256x256xf32, #tpu.memory_space<vmem>>, vector<1x256xf32>
    %c256 = arith.constant 256 : index
    %1223 = memref.load %arg1[%c256] : memref<294xi32, #tpu.memory_space<smem>>
    %1224 = arith.index_cast %1223 : i32 to index
    %c0_384 = arith.constant 0 : index
    %1225 = vector.load %arg9[%1224, %c0_384] : memref<256x256xf32, #tpu.memory_space<vmem>>, vector<1x256xf32>
    %c257 = arith.constant 257 : index
    %1226 = memref.load %arg1[%c257] : memref<294xi32, #tpu.memory_space<smem>>
    %1227 = arith.index_cast %1226 : i32 to index
    %c0_385 = arith.constant 0 : index
    %1228 = vector.load %arg9[%1227, %c0_385] : memref<256x256xf32, #tpu.memory_space<vmem>>, vector<1x256xf32>
    %c258 = arith.constant 258 : index
    %1229 = memref.load %arg1[%c258] : memref<294xi32, #tpu.memory_space<smem>>
    %1230 = arith.index_cast %1229 : i32 to index
    %c0_386 = arith.constant 0 : index
    %1231 = vector.load %arg9[%1230, %c0_386] : memref<256x256xf32, #tpu.memory_space<vmem>>, vector<1x256xf32>
    %1232 = arith.maximumf %1213, %1216 : vector<1x256xf32>
    %1233 = arith.maximumf %1219, %1222 : vector<1x256xf32>
    %1234 = arith.maximumf %1225, %1228 : vector<1x256xf32>
    %1235 = arith.maximumf %1232, %1233 : vector<1x256xf32>
    %1236 = arith.maximumf %1234, %1231 : vector<1x256xf32>
    %1237 = arith.maximumf %1235, %1236 : vector<1x256xf32>
    %1238 = vector.extract_strided_slice %1237 {offsets = [0, 0], sizes = [1, 128], strides = [1, 1]} : vector<1x256xf32> to vector<1x128xf32>
    %1239 = vector.extract_strided_slice %1237 {offsets = [0, 128], sizes = [1, 128], strides = [1, 1]} : vector<1x256xf32> to vector<1x128xf32>
    %1240 = arith.addf %1238, %1239 : vector<1x128xf32>
    %cst_387 = arith.constant 0.000000e+00 : f32
    %1241 = vector.broadcast %cst_387 : f32 to vector<1x128xf32>
    %1242 = arith.maximumf %1240, %1241 : vector<1x128xf32>
    %c36_388 = arith.constant 36 : index
    %c0_389 = arith.constant 0 : index
    %1243 = vector.load %arg8[%c36_388, %c0_389] : memref<42x128xf32, #tpu.memory_space<vmem>>, vector<1x128xf32>
    tpu.vector_store %arg8[%c36_388, %c0_389], %1242 {strides = array<i32>} : memref<42x128xf32, #tpu.memory_space<vmem>>, vector<1x128xf32>,
    %c259 = arith.constant 259 : index
    %1244 = memref.load %arg1[%c259] : memref<294xi32, #tpu.memory_space<smem>>
    %1245 = arith.index_cast %1244 : i32 to index
    %c0_390 = arith.constant 0 : index
    %1246 = vector.load %arg9[%1245, %c0_390] : memref<256x256xf32, #tpu.memory_space<vmem>>, vector<1x256xf32>
    %c260 = arith.constant 260 : index
    %1247 = memref.load %arg1[%c260] : memref<294xi32, #tpu.memory_space<smem>>
    %1248 = arith.index_cast %1247 : i32 to index
    %c0_391 = arith.constant 0 : index
    %1249 = vector.load %arg9[%1248, %c0_391] : memref<256x256xf32, #tpu.memory_space<vmem>>, vector<1x256xf32>
    %c261 = arith.constant 261 : index
    %1250 = memref.load %arg1[%c261] : memref<294xi32, #tpu.memory_space<smem>>
    %1251 = arith.index_cast %1250 : i32 to index
    %c0_392 = arith.constant 0 : index
    %1252 = vector.load %arg9[%1251, %c0_392] : memref<256x256xf32, #tpu.memory_space<vmem>>, vector<1x256xf32>
    %c262 = arith.constant 262 : index
    %1253 = memref.load %arg1[%c262] : memref<294xi32, #tpu.memory_space<smem>>
    %1254 = arith.index_cast %1253 : i32 to index
    %c0_393 = arith.constant 0 : index
    %1255 = vector.load %arg9[%1254, %c0_393] : memref<256x256xf32, #tpu.memory_space<vmem>>, vector<1x256xf32>
    %c263 = arith.constant 263 : index
    %1256 = memref.load %arg1[%c263] : memref<294xi32, #tpu.memory_space<smem>>
    %1257 = arith.index_cast %1256 : i32 to index
    %c0_394 = arith.constant 0 : index
    %1258 = vector.load %arg9[%1257, %c0_394] : memref<256x256xf32, #tpu.memory_space<vmem>>, vector<1x256xf32>
    %c264 = arith.constant 264 : index
    %1259 = memref.load %arg1[%c264] : memref<294xi32, #tpu.memory_space<smem>>
    %1260 = arith.index_cast %1259 : i32 to index
    %c0_395 = arith.constant 0 : index
    %1261 = vector.load %arg9[%1260, %c0_395] : memref<256x256xf32, #tpu.memory_space<vmem>>, vector<1x256xf32>
    %c265 = arith.constant 265 : index
    %1262 = memref.load %arg1[%c265] : memref<294xi32, #tpu.memory_space<smem>>
    %1263 = arith.index_cast %1262 : i32 to index
    %c0_396 = arith.constant 0 : index
    %1264 = vector.load %arg9[%1263, %c0_396] : memref<256x256xf32, #tpu.memory_space<vmem>>, vector<1x256xf32>
    %1265 = arith.maximumf %1246, %1249 : vector<1x256xf32>
    %1266 = arith.maximumf %1252, %1255 : vector<1x256xf32>
    %1267 = arith.maximumf %1258, %1261 : vector<1x256xf32>
    %1268 = arith.maximumf %1265, %1266 : vector<1x256xf32>
    %1269 = arith.maximumf %1267, %1264 : vector<1x256xf32>
    %1270 = arith.maximumf %1268, %1269 : vector<1x256xf32>
    %1271 = vector.extract_strided_slice %1270 {offsets = [0, 0], sizes = [1, 128], strides = [1, 1]} : vector<1x256xf32> to vector<1x128xf32>
    %1272 = vector.extract_strided_slice %1270 {offsets = [0, 128], sizes = [1, 128], strides = [1, 1]} : vector<1x256xf32> to vector<1x128xf32>
    %1273 = arith.addf %1271, %1272 : vector<1x128xf32>
    %cst_397 = arith.constant 0.000000e+00 : f32
    %1274 = vector.broadcast %cst_397 : f32 to vector<1x128xf32>
    %1275 = arith.maximumf %1273, %1274 : vector<1x128xf32>
    %c37_398 = arith.constant 37 : index
    %c0_399 = arith.constant 0 : index
    %1276 = vector.load %arg8[%c37_398, %c0_399] : memref<42x128xf32, #tpu.memory_space<vmem>>, vector<1x128xf32>
    tpu.vector_store %arg8[%c37_398, %c0_399], %1275 {strides = array<i32>} : memref<42x128xf32, #tpu.memory_space<vmem>>, vector<1x128xf32>,
    %c266 = arith.constant 266 : index
    %1277 = memref.load %arg1[%c266] : memref<294xi32, #tpu.memory_space<smem>>
    %1278 = arith.index_cast %1277 : i32 to index
    %c0_400 = arith.constant 0 : index
    %1279 = vector.load %arg9[%1278, %c0_400] : memref<256x256xf32, #tpu.memory_space<vmem>>, vector<1x256xf32>
    %c267 = arith.constant 267 : index
    %1280 = memref.load %arg1[%c267] : memref<294xi32, #tpu.memory_space<smem>>
    %1281 = arith.index_cast %1280 : i32 to index
    %c0_401 = arith.constant 0 : index
    %1282 = vector.load %arg9[%1281, %c0_401] : memref<256x256xf32, #tpu.memory_space<vmem>>, vector<1x256xf32>
    %c268 = arith.constant 268 : index
    %1283 = memref.load %arg1[%c268] : memref<294xi32, #tpu.memory_space<smem>>
    %1284 = arith.index_cast %1283 : i32 to index
    %c0_402 = arith.constant 0 : index
    %1285 = vector.load %arg9[%1284, %c0_402] : memref<256x256xf32, #tpu.memory_space<vmem>>, vector<1x256xf32>
    %c269 = arith.constant 269 : index
    %1286 = memref.load %arg1[%c269] : memref<294xi32, #tpu.memory_space<smem>>
    %1287 = arith.index_cast %1286 : i32 to index
    %c0_403 = arith.constant 0 : index
    %1288 = vector.load %arg9[%1287, %c0_403] : memref<256x256xf32, #tpu.memory_space<vmem>>, vector<1x256xf32>
    %c270 = arith.constant 270 : index
    %1289 = memref.load %arg1[%c270] : memref<294xi32, #tpu.memory_space<smem>>
    %1290 = arith.index_cast %1289 : i32 to index
    %c0_404 = arith.constant 0 : index
    %1291 = vector.load %arg9[%1290, %c0_404] : memref<256x256xf32, #tpu.memory_space<vmem>>, vector<1x256xf32>
    %c271 = arith.constant 271 : index
    %1292 = memref.load %arg1[%c271] : memref<294xi32, #tpu.memory_space<smem>>
    %1293 = arith.index_cast %1292 : i32 to index
    %c0_405 = arith.constant 0 : index
    %1294 = vector.load %arg9[%1293, %c0_405] : memref<256x256xf32, #tpu.memory_space<vmem>>, vector<1x256xf32>
    %c272 = arith.constant 272 : index
    %1295 = memref.load %arg1[%c272] : memref<294xi32, #tpu.memory_space<smem>>
    %1296 = arith.index_cast %1295 : i32 to index
    %c0_406 = arith.constant 0 : index
    %1297 = vector.load %arg9[%1296, %c0_406] : memref<256x256xf32, #tpu.memory_space<vmem>>, vector<1x256xf32>
    %1298 = arith.maximumf %1279, %1282 : vector<1x256xf32>
    %1299 = arith.maximumf %1285, %1288 : vector<1x256xf32>
    %1300 = arith.maximumf %1291, %1294 : vector<1x256xf32>
    %1301 = arith.maximumf %1298, %1299 : vector<1x256xf32>
    %1302 = arith.maximumf %1300, %1297 : vector<1x256xf32>
    %1303 = arith.maximumf %1301, %1302 : vector<1x256xf32>
    %1304 = vector.extract_strided_slice %1303 {offsets = [0, 0], sizes = [1, 128], strides = [1, 1]} : vector<1x256xf32> to vector<1x128xf32>
    %1305 = vector.extract_strided_slice %1303 {offsets = [0, 128], sizes = [1, 128], strides = [1, 1]} : vector<1x256xf32> to vector<1x128xf32>
    %1306 = arith.addf %1304, %1305 : vector<1x128xf32>
    %cst_407 = arith.constant 0.000000e+00 : f32
    %1307 = vector.broadcast %cst_407 : f32 to vector<1x128xf32>
    %1308 = arith.maximumf %1306, %1307 : vector<1x128xf32>
    %c38_408 = arith.constant 38 : index
    %c0_409 = arith.constant 0 : index
    %1309 = vector.load %arg8[%c38_408, %c0_409] : memref<42x128xf32, #tpu.memory_space<vmem>>, vector<1x128xf32>
    tpu.vector_store %arg8[%c38_408, %c0_409], %1308 {strides = array<i32>} : memref<42x128xf32, #tpu.memory_space<vmem>>, vector<1x128xf32>,
    %c273 = arith.constant 273 : index
    %1310 = memref.load %arg1[%c273] : memref<294xi32, #tpu.memory_space<smem>>
    %1311 = arith.index_cast %1310 : i32 to index
    %c0_410 = arith.constant 0 : index
    %1312 = vector.load %arg9[%1311, %c0_410] : memref<256x256xf32, #tpu.memory_space<vmem>>, vector<1x256xf32>
    %c274 = arith.constant 274 : index
    %1313 = memref.load %arg1[%c274] : memref<294xi32, #tpu.memory_space<smem>>
    %1314 = arith.index_cast %1313 : i32 to index
    %c0_411 = arith.constant 0 : index
    %1315 = vector.load %arg9[%1314, %c0_411] : memref<256x256xf32, #tpu.memory_space<vmem>>, vector<1x256xf32>
    %c275 = arith.constant 275 : index
    %1316 = memref.load %arg1[%c275] : memref<294xi32, #tpu.memory_space<smem>>
    %1317 = arith.index_cast %1316 : i32 to index
    %c0_412 = arith.constant 0 : index
    %1318 = vector.load %arg9[%1317, %c0_412] : memref<256x256xf32, #tpu.memory_space<vmem>>, vector<1x256xf32>
    %c276 = arith.constant 276 : index
    %1319 = memref.load %arg1[%c276] : memref<294xi32, #tpu.memory_space<smem>>
    %1320 = arith.index_cast %1319 : i32 to index
    %c0_413 = arith.constant 0 : index
    %1321 = vector.load %arg9[%1320, %c0_413] : memref<256x256xf32, #tpu.memory_space<vmem>>, vector<1x256xf32>
    %c277 = arith.constant 277 : index
    %1322 = memref.load %arg1[%c277] : memref<294xi32, #tpu.memory_space<smem>>
    %1323 = arith.index_cast %1322 : i32 to index
    %c0_414 = arith.constant 0 : index
    %1324 = vector.load %arg9[%1323, %c0_414] : memref<256x256xf32, #tpu.memory_space<vmem>>, vector<1x256xf32>
    %c278 = arith.constant 278 : index
    %1325 = memref.load %arg1[%c278] : memref<294xi32, #tpu.memory_space<smem>>
    %1326 = arith.index_cast %1325 : i32 to index
    %c0_415 = arith.constant 0 : index
    %1327 = vector.load %arg9[%1326, %c0_415] : memref<256x256xf32, #tpu.memory_space<vmem>>, vector<1x256xf32>
    %c279 = arith.constant 279 : index
    %1328 = memref.load %arg1[%c279] : memref<294xi32, #tpu.memory_space<smem>>
    %1329 = arith.index_cast %1328 : i32 to index
    %c0_416 = arith.constant 0 : index
    %1330 = vector.load %arg9[%1329, %c0_416] : memref<256x256xf32, #tpu.memory_space<vmem>>, vector<1x256xf32>
    %1331 = arith.maximumf %1312, %1315 : vector<1x256xf32>
    %1332 = arith.maximumf %1318, %1321 : vector<1x256xf32>
    %1333 = arith.maximumf %1324, %1327 : vector<1x256xf32>
    %1334 = arith.maximumf %1331, %1332 : vector<1x256xf32>
    %1335 = arith.maximumf %1333, %1330 : vector<1x256xf32>
    %1336 = arith.maximumf %1334, %1335 : vector<1x256xf32>
    %1337 = vector.extract_strided_slice %1336 {offsets = [0, 0], sizes = [1, 128], strides = [1, 1]} : vector<1x256xf32> to vector<1x128xf32>
    %1338 = vector.extract_strided_slice %1336 {offsets = [0, 128], sizes = [1, 128], strides = [1, 1]} : vector<1x256xf32> to vector<1x128xf32>
    %1339 = arith.addf %1337, %1338 : vector<1x128xf32>
    %cst_417 = arith.constant 0.000000e+00 : f32
    %1340 = vector.broadcast %cst_417 : f32 to vector<1x128xf32>
    %1341 = arith.maximumf %1339, %1340 : vector<1x128xf32>
    %c39_418 = arith.constant 39 : index
    %c0_419 = arith.constant 0 : index
    %1342 = vector.load %arg8[%c39_418, %c0_419] : memref<42x128xf32, #tpu.memory_space<vmem>>, vector<1x128xf32>
    tpu.vector_store %arg8[%c39_418, %c0_419], %1341 {strides = array<i32>} : memref<42x128xf32, #tpu.memory_space<vmem>>, vector<1x128xf32>,
    %c280 = arith.constant 280 : index
    %1343 = memref.load %arg1[%c280] : memref<294xi32, #tpu.memory_space<smem>>
    %1344 = arith.index_cast %1343 : i32 to index
    %c0_420 = arith.constant 0 : index
    %1345 = vector.load %arg9[%1344, %c0_420] : memref<256x256xf32, #tpu.memory_space<vmem>>, vector<1x256xf32>
    %c281 = arith.constant 281 : index
    %1346 = memref.load %arg1[%c281] : memref<294xi32, #tpu.memory_space<smem>>
    %1347 = arith.index_cast %1346 : i32 to index
    %c0_421 = arith.constant 0 : index
    %1348 = vector.load %arg9[%1347, %c0_421] : memref<256x256xf32, #tpu.memory_space<vmem>>, vector<1x256xf32>
    %c282 = arith.constant 282 : index
    %1349 = memref.load %arg1[%c282] : memref<294xi32, #tpu.memory_space<smem>>
    %1350 = arith.index_cast %1349 : i32 to index
    %c0_422 = arith.constant 0 : index
    %1351 = vector.load %arg9[%1350, %c0_422] : memref<256x256xf32, #tpu.memory_space<vmem>>, vector<1x256xf32>
    %c283 = arith.constant 283 : index
    %1352 = memref.load %arg1[%c283] : memref<294xi32, #tpu.memory_space<smem>>
    %1353 = arith.index_cast %1352 : i32 to index
    %c0_423 = arith.constant 0 : index
    %1354 = vector.load %arg9[%1353, %c0_423] : memref<256x256xf32, #tpu.memory_space<vmem>>, vector<1x256xf32>
    %c284 = arith.constant 284 : index
    %1355 = memref.load %arg1[%c284] : memref<294xi32, #tpu.memory_space<smem>>
    %1356 = arith.index_cast %1355 : i32 to index
    %c0_424 = arith.constant 0 : index
    %1357 = vector.load %arg9[%1356, %c0_424] : memref<256x256xf32, #tpu.memory_space<vmem>>, vector<1x256xf32>
    %c285 = arith.constant 285 : index
    %1358 = memref.load %arg1[%c285] : memref<294xi32, #tpu.memory_space<smem>>
    %1359 = arith.index_cast %1358 : i32 to index
    %c0_425 = arith.constant 0 : index
    %1360 = vector.load %arg9[%1359, %c0_425] : memref<256x256xf32, #tpu.memory_space<vmem>>, vector<1x256xf32>
    %c286 = arith.constant 286 : index
    %1361 = memref.load %arg1[%c286] : memref<294xi32, #tpu.memory_space<smem>>
    %1362 = arith.index_cast %1361 : i32 to index
    %c0_426 = arith.constant 0 : index
    %1363 = vector.load %arg9[%1362, %c0_426] : memref<256x256xf32, #tpu.memory_space<vmem>>, vector<1x256xf32>
    %1364 = arith.maximumf %1345, %1348 : vector<1x256xf32>
    %1365 = arith.maximumf %1351, %1354 : vector<1x256xf32>
    %1366 = arith.maximumf %1357, %1360 : vector<1x256xf32>
    %1367 = arith.maximumf %1364, %1365 : vector<1x256xf32>
    %1368 = arith.maximumf %1366, %1363 : vector<1x256xf32>
    %1369 = arith.maximumf %1367, %1368 : vector<1x256xf32>
    %1370 = vector.extract_strided_slice %1369 {offsets = [0, 0], sizes = [1, 128], strides = [1, 1]} : vector<1x256xf32> to vector<1x128xf32>
    %1371 = vector.extract_strided_slice %1369 {offsets = [0, 128], sizes = [1, 128], strides = [1, 1]} : vector<1x256xf32> to vector<1x128xf32>
    %1372 = arith.addf %1370, %1371 : vector<1x128xf32>
    %cst_427 = arith.constant 0.000000e+00 : f32
    %1373 = vector.broadcast %cst_427 : f32 to vector<1x128xf32>
    %1374 = arith.maximumf %1372, %1373 : vector<1x128xf32>
    %c40_428 = arith.constant 40 : index
    %c0_429 = arith.constant 0 : index
    %1375 = vector.load %arg8[%c40_428, %c0_429] : memref<42x128xf32, #tpu.memory_space<vmem>>, vector<1x128xf32>
    tpu.vector_store %arg8[%c40_428, %c0_429], %1374 {strides = array<i32>} : memref<42x128xf32, #tpu.memory_space<vmem>>, vector<1x128xf32>,
    %c287 = arith.constant 287 : index
    %1376 = memref.load %arg1[%c287] : memref<294xi32, #tpu.memory_space<smem>>
    %1377 = arith.index_cast %1376 : i32 to index
    %c0_430 = arith.constant 0 : index
    %1378 = vector.load %arg9[%1377, %c0_430] : memref<256x256xf32, #tpu.memory_space<vmem>>, vector<1x256xf32>
    %c288 = arith.constant 288 : index
    %1379 = memref.load %arg1[%c288] : memref<294xi32, #tpu.memory_space<smem>>
    %1380 = arith.index_cast %1379 : i32 to index
    %c0_431 = arith.constant 0 : index
    %1381 = vector.load %arg9[%1380, %c0_431] : memref<256x256xf32, #tpu.memory_space<vmem>>, vector<1x256xf32>
    %c289 = arith.constant 289 : index
    %1382 = memref.load %arg1[%c289] : memref<294xi32, #tpu.memory_space<smem>>
    %1383 = arith.index_cast %1382 : i32 to index
    %c0_432 = arith.constant 0 : index
    %1384 = vector.load %arg9[%1383, %c0_432] : memref<256x256xf32, #tpu.memory_space<vmem>>, vector<1x256xf32>
    %c290 = arith.constant 290 : index
    %1385 = memref.load %arg1[%c290] : memref<294xi32, #tpu.memory_space<smem>>
    %1386 = arith.index_cast %1385 : i32 to index
    %c0_433 = arith.constant 0 : index
    %1387 = vector.load %arg9[%1386, %c0_433] : memref<256x256xf32, #tpu.memory_space<vmem>>, vector<1x256xf32>
    %c291 = arith.constant 291 : index
    %1388 = memref.load %arg1[%c291] : memref<294xi32, #tpu.memory_space<smem>>
    %1389 = arith.index_cast %1388 : i32 to index
    %c0_434 = arith.constant 0 : index
    %1390 = vector.load %arg9[%1389, %c0_434] : memref<256x256xf32, #tpu.memory_space<vmem>>, vector<1x256xf32>
    %c292 = arith.constant 292 : index
    %1391 = memref.load %arg1[%c292] : memref<294xi32, #tpu.memory_space<smem>>
    %1392 = arith.index_cast %1391 : i32 to index
    %c0_435 = arith.constant 0 : index
    %1393 = vector.load %arg9[%1392, %c0_435] : memref<256x256xf32, #tpu.memory_space<vmem>>, vector<1x256xf32>
    %c293 = arith.constant 293 : index
    %1394 = memref.load %arg1[%c293] : memref<294xi32, #tpu.memory_space<smem>>
    %1395 = arith.index_cast %1394 : i32 to index
    %c0_436 = arith.constant 0 : index
    %1396 = vector.load %arg9[%1395, %c0_436] : memref<256x256xf32, #tpu.memory_space<vmem>>, vector<1x256xf32>
    %1397 = arith.maximumf %1378, %1381 : vector<1x256xf32>
    %1398 = arith.maximumf %1384, %1387 : vector<1x256xf32>
    %1399 = arith.maximumf %1390, %1393 : vector<1x256xf32>
    %1400 = arith.maximumf %1397, %1398 : vector<1x256xf32>
    %1401 = arith.maximumf %1399, %1396 : vector<1x256xf32>
    %1402 = arith.maximumf %1400, %1401 : vector<1x256xf32>
    %1403 = vector.extract_strided_slice %1402 {offsets = [0, 0], sizes = [1, 128], strides = [1, 1]} : vector<1x256xf32> to vector<1x128xf32>
    %1404 = vector.extract_strided_slice %1402 {offsets = [0, 128], sizes = [1, 128], strides = [1, 1]} : vector<1x256xf32> to vector<1x128xf32>
    %1405 = arith.addf %1403, %1404 : vector<1x128xf32>
    %cst_437 = arith.constant 0.000000e+00 : f32
    %1406 = vector.broadcast %cst_437 : f32 to vector<1x128xf32>
    %1407 = arith.maximumf %1405, %1406 : vector<1x128xf32>
    %c41_438 = arith.constant 41 : index
    %c0_439 = arith.constant 0 : index
    %1408 = vector.load %arg8[%c41_438, %c0_439] : memref<42x128xf32, #tpu.memory_space<vmem>>, vector<1x128xf32>
    tpu.vector_store %arg8[%c41_438, %c0_439], %1407 {strides = array<i32>} : memref<42x128xf32, #tpu.memory_space<vmem>>, vector<1x128xf32>,
    return
  }
  func.func @transform_0(%arg0: i32, %arg1: memref<294xi32, #tpu.memory_space<smem>>) -> (i32, i32) {
    %c0_i32 = arith.constant 0 : i32
    %c0_i32_0 = arith.constant 0 : i32
    %c0_i32_1 = arith.constant 0 : i32
    return %c0_i32, %c0_i32_0 : i32, i32
  }
  func.func @transform_1(%arg0: i32, %arg1: memref<294xi32, #tpu.memory_space<smem>>) -> (i32, i32) {
    %c0_i32 = arith.constant 0 : i32
    %c0_i32_0 = arith.constant 0 : i32
    %c0_i32_1 = arith.constant 0 : i32
    return %c0_i32, %c0_i32_0 : i32, i32
  }
  func.func @transform_2(%arg0: i32, %arg1: memref<294xi32, #tpu.memory_space<smem>>) -> (i32, i32) {
    %c0_i32 = arith.constant 0 : i32
    %c0_i32_0 = arith.constant 0 : i32
    %c0_i32_1 = arith.constant 0 : i32
    return %c0_i32, %c0_i32_0 : i32, i32
  }
  func.func @transform_3(%arg0: i32, %arg1: memref<294xi32, #tpu.memory_space<smem>>) -> (i32, i32) {
    %c0_i32 = arith.constant 0 : i32
    %c0_i32_0 = arith.constant 0 : i32
    %c0_i32_1 = arith.constant 0 : i32
    return %c0_i32, %c0_i32_0 : i32, i32
  }
  func.func @transform_4(%arg0: i32, %arg1: memref<294xi32, #tpu.memory_space<smem>>) -> (i32, i32) {
    %c0_i32 = arith.constant 0 : i32
    %c0_i32_0 = arith.constant 0 : i32
    %c0_i32_1 = arith.constant 0 : i32
    return %c0_i32, %c0_i32_0 : i32, i32
  }
  func.func @transform_5(%arg0: i32, %arg1: memref<294xi32, #tpu.memory_space<smem>>) -> (i32, i32) {
    %c0_i32 = arith.constant 0 : i32
    %c0_i32_0 = arith.constant 0 : i32
    %c0_i32_1 = arith.constant 0 : i32
    return %c0_i32, %c0_i32_0 : i32, i32
  }
  func.func @transform_6(%arg0: i32, %arg1: memref<294xi32, #tpu.memory_space<smem>>) -> (i32, i32) {
    %c0_i32 = arith.constant 0 : i32
    %c0_i32_0 = arith.constant 0 : i32
    %c0_i32_1 = arith.constant 0 : i32
    return %c0_i32, %c0_i32_0 : i32, i32
  }
}

</mosaic_0001>

<bundles_post_ra>
// kernel: tpu_custom_call.1
= control target key start
LH: loop header
LB: loop body
LE: loop exit
PB: predicated region body
PF: predicated region fallthrough
CT: control target
= control target key end

     0   :  { %s7541_s24 = smov [#allocation4]   ;;  %s8710_s0 = inlined_call_operand.hbm [shape: s32[294], index: 0, kind: input, shape index: {}]   ;;  %s8711_s1 = inlined_call_operand.hbm [shape: bf16[256,128], index: 1, kind: input, shape index: {}]   ;;  %s8712_s2 = inlined_call_operand.hbm [shape: bf16[256,256], index: 2, kind: input, shape index: {}]   ;;  %s8713_s3 = inlined_call_operand.hbm [shape: bf16[128,256], index: 3, kind: input, shape index: {}]   ;;  %s8714_s4 = inlined_call_operand.vmem [shape: f32[1,256], index: 4, kind: input, shape index: {}]   ;;  %s8715_s5 = inlined_call_operand.hbm [shape: bf16[128,128], index: 5, kind: input, shape index: {}]   ;;  %s8716_s6 = inlined_call_operand.vmem [shape: f32[1,128], index: 6, kind: input, shape index: {}]   ;;  %s8717_s7 = inlined_call_operand.hbm [shape: f32[42,128], index: 7, kind: output, shape index: {}]  }
   0x1   :  { %8720 = sst [smem:[#allocation44_spill]] %s8717_s7 }
   0x2   :  { %13 = dma.hbm_to_smem %s8710_s0, 48, %s7541_s24, [#allocation3] }
   0x3   :  { %7531 = dma.done.wait [#allocation3], 48 }
   0x4   :  { %7532 = vsyncadd [#allocation3], 4294967248 }
   0x5   :  { %15 = sfence }
   0x6   :  { %16 = vsyncpa [#allocation6], 0 }
   0x7   :  { %17 = vsyncpa [#allocation9], 0 }
   0x8   :  { %18 = vsyncpa [#allocation12], 0 }
   0x9   :  { %19 = vsyncpa [#allocation7], 0  ;;  %s7542_s27 = smov [#allocation8]  }
   0xa   :  { %s37_s28 = sshll.u32 %s7542_s27, 4  ;;  %s38_s28 = int_to_ptr.vmem [resolvable:$true] %s37_s28 }
   0xb   :  { %s7439_s29 = scalar_lea.vmem %s38_s28, 4096  ;;  %p7444_p1 = scmp.lt.s32.totalorder %s38_s28, %s38_s28 }
   0xc   :  { %p7440_p0 = scmp.ne.s32.totalorder %s38_s28, %s7439_s29  ;;  %p7445_p2 = scmp.lt.s32.totalorder %s7439_s29, %s7439_s29 }
   0xe   :  { %p7446_p3 = por %p7445_p2, %p7444_p1 }
  0x10   :  { %p7447_p4 = pnand %p7446_p3, %p7440_p0 }
  0x12   :  { %7450 = shalt.err (!%p7447_p4)
}
  0x13   :  { %s8718_s30 = smov 128   ;;  %s8719_s8 = smov 8  }
  0x14   :  { %43 = dma.hbm_to_vmem [thread:$0]  %s8712_s2, 4096, %s38_s28, [#allocation9], %s8718_s30, %s8718_s30, %s8719_s8  }
  0x15   :  { %s7545_s10 = smov [#allocation5]  }
  0x16   :  { %s25_s11 = sshll.u32 %s7545_s10, 4  ;;  %s26_s11 = int_to_ptr.vmem [resolvable:$true] %s25_s11 }
  0x17   :  { %s7459_s12 = scalar_lea.vmem %s26_s11, 2048  ;;  %p7464_p6 = scmp.lt.s32.totalorder %s26_s11, %s26_s11 }
  0x18   :  { %p7460_p5 = scmp.ne.s32.totalorder %s26_s11, %s7459_s12  ;;  %p7465_p7 = scmp.lt.s32.totalorder %s7459_s12, %s7459_s12 }
  0x1a   :  { %p7466_p8 = por %p7465_p7, %p7464_p6 }
  0x1c   :  { %p7467_p9 = pnand %p7466_p8, %p7460_p5 }
  0x1e   :  { %7470 = shalt.err (!%p7467_p9)
}
  0x1f   :  { %s7546_s13 = smov 64   ;;  %s7547_s14 = smov 4  }
  0x20   :  { %31 = dma.hbm_to_vmem [thread:$0]  %s8711_s1, 2048, %s26_s11, [#allocation6], %s7546_s13, %s7546_s13, %s7547_s14  }
  0x21   :  { %s7548_s17 = smov [#allocation10]   ;;  %s7549_s19 = smov [#allocation11]  }
  0x22   :  { %s49_s18 = sshll.u32 %s7548_s17, 4  ;;  %s63_s2 = sshll.u32 %s7549_s19, 4  ;;  %s50_s18 = int_to_ptr.vmem [resolvable:$true] %s49_s18  ;;  %s64_s2 = int_to_ptr.vmem [resolvable:$true] %s63_s2 }
  0x23   :  { %s7479_s20 = scalar_lea.vmem %s50_s18, 2048  ;;  %p7484_p11 = scmp.lt.s32.totalorder %s50_s18, %s50_s18 }
  0x24   :  { %p7480_p10 = scmp.ne.s32.totalorder %s50_s18, %s7479_s20  ;;  %p7485_p12 = scmp.lt.s32.totalorder %s7479_s20, %s7479_s20 }
  0x26   :  { %p7486_p13 = por %p7485_p12, %p7484_p11 }
  0x28   :  { %p7487_p0 = pnand %p7486_p13, %p7480_p10 }
  0x2a   :  { %7490 = shalt.err (!%p7487_p0)
}
  0x2b   :  { %55 = dma.hbm_to_vmem [thread:$0]  %s8713_s3, 2048, %s50_s18, [#allocation9], %s8718_s30, %s8718_s30, %s8719_s8  }
  0x2c   :  { %s7499_s1 = scalar_lea.vmem %s64_s2, 1024  ;;  %p7504_p2 = scmp.lt.s32.totalorder %s64_s2, %s64_s2 }
  0x2d   :  { %p7500_p1 = scmp.ne.s32.totalorder %s64_s2, %s7499_s1  ;;  %p7505_p3 = scmp.lt.s32.totalorder %s7499_s1, %s7499_s1 }
  0x2f   :  { %p7506_p4 = por %p7505_p3, %p7504_p2 }
  0x31   :  { %p7507_p5 = pnand %p7506_p4, %p7500_p1 }
  0x33   :  { %7510 = shalt.err (!%p7507_p5)
}
  0x34   :  { %69 = dma.hbm_to_vmem [thread:$0]  %s8715_s5, 1024, %s64_s2, [#allocation12], %s7546_s13, %s7546_s13, %s7547_s14  }
  0x35   :  { %7533 = dma.done.wait [#allocation6], 2048  }
  0x36   :  { %7534 = vsyncadd [#allocation6], 4294965248 }
  0x37   :  { %7535 = dma.done.wait [#allocation9], 6144  }
  0x38   :  { %7536 = vsyncadd [#allocation9], 4294961152 }
  0x39   :  { %7537 = dma.done.wait [#allocation12], 1024  }
  0x3a   :  { %7538 = vsyncadd [#allocation12], 4294966272  ;;  %v7320_v0 = vld [vmem:[#allocation5 + $0x78] sm:$0xff]   ;;  %v7322_v2 = vld [vmem:[#allocation5 + $0x70] sm:$0xff]   ;;  %v7550_v61 = vmov 0   ;;  %s7845_s27 = sld [smem:[#allocation4 + $0x1]] }
  0x3b   :  { %v7321_v1 = vld [vmem:[#allocation5 + $0x38] sm:$0xff]   ;;  %6997 = vmatprep.subr.bf16.mxu0 %v7320_v0  ;;  %7293 = vmatprep.subr.bf16.mxu1 %v7320_v0  ;;  %v7323_v3 = vld [vmem:[#allocation5 + $0x30] sm:$0xff]   ;;  %v7324_v4 = vld [vmem:[#allocation5 + $0x68] sm:$0xff]   ;;  %s7847_s28 = sld [smem:[#allocation4 + $0x2]] }
  0x3c   :  { %6998 = vmatpush3.bf16.msra.mxu0 %v7321_v1  ;;  %7301 = vmatpush3.bf16.msra.mxu1 %v7321_v1  ;;  %v7325_v5 = vld [vmem:[#allocation5 + $0x28] sm:$0xff]   ;;  %v7326_v6 = vld [vmem:[#allocation5 + $0x60] sm:$0xff]   ;;  %v7328_v8 = vld [vmem:[#allocation5 + $0x58] sm:$0xff]   ;;  %s7850_s29 = sld [smem:[#allocation4 + $0x3]] }
  0x3d   :  { %6999 = vmatprep.subr.bf16.mxu0 %v7322_v2  ;;  %7294 = vmatprep.subr.bf16.mxu1 %v7322_v2  ;;  %v7327_v7 = vld [vmem:[#allocation5 + $0x20] sm:$0xff]   ;;  %v7329_v9 = vld [vmem:[#allocation5 + $0x18] sm:$0xff]   ;;  %v7330_v10 = vld [vmem:[#allocation5 + $0x50] sm:$0xff]   ;;  %s7854_s0 = sld [smem:[#allocation4 + $0x4]] }
  0x3e   :  { %v7613_v11 = vld [vmem:[#allocation8 + $0x4] ss:$8 sps:$4 sm:$0xff]   ;;  %v7331_v12 = vld [vmem:[#allocation5 + $0x10] sm:$0xff]   ;;  %v7336_v17 = vld [vmem:[#allocation8] ss:$8 sps:$4 sm:$0xff]   ;;  %s7858_s13 = sld [smem:[#allocation4 + $0x5]] }
  0x3f   :  { %437 = vmatprep.mubr.bf16.mxu0 %v7613_v11  ;;  %v7332_v13 = vld [vmem:[#allocation5 + $0x48] sm:$0xff]   ;;  %v7334_v15 = vld [vmem:[#allocation5 + $0x40] sm:$0xff]   ;;  %v7339_v18 = vld [vmem:[#allocation8 + $0x14] ss:$8 sps:$4 sm:$0xff]   ;;  %s7866_s21 = sld [smem:[#allocation4 + $0x6]] }
  0x40   :  { %7000 = vmatpush3.bf16.msra.mxu0 %v7323_v3  ;;  %7302 = vmatpush3.bf16.msra.mxu1 %v7323_v3  ;;  %v7333_v14 = vld [vmem:[#allocation5 + $0x8] sm:$0xff]   ;;  %v7335_v16 = vld [vmem:[#allocation5] sm:$0xff]   ;;  %v7375_v21 = vld [vmem:[#allocation8 + $0xd4] ss:$8 sps:$4 sm:$0xff]   ;;  %s1415_s11 = sshra.s32 %s7845_s27, 3  ;;  %s1418_s16 = sand.u32 7, %s7845_s27 }
  0x41   :  { %7001 = vmatprep.subr.bf16.mxu0 %v7324_v4  ;;  %7295 = vmatprep.subr.bf16.mxu1 %v7324_v4  ;;  %v7372_v19 = vld [vmem:[#allocation8 + $0xc0] ss:$8 sps:$4 sm:$0xff]   ;;  %v7374_v20 = vld [vmem:[#allocation8 + $0xc4] ss:$8 sps:$4 sm:$0xff]   ;;  %v7616_v22 = vld [vmem:[#allocation8 + $0x10] ss:$8 sps:$4 sm:$0xff]  }
  0x42   :  { %533 = vmatprep.mubr.bf16.mxu1 %v7374_v20  ;;  %v7618_v23 = vld [vmem:[#allocation8 + $0x24] ss:$8 sps:$4 sm:$0xff]   ;;  %v7384_v24 = vld [vmem:[#allocation10 + $0x70] ss:$8 sps:$4 sm:$0xff]   ;;  %v7386_v25 = vld [vmem:[#allocation10 + $0x74] ss:$8 sps:$4 sm:$0xff]  }
  0x43   :  { %v7377_v26 = vld [vmem:[#allocation8 + $0xd0] ss:$8 sps:$4 sm:$0xff]   ;;  %v7389_v27 = vld [vmem:[#allocation10 + $0x64] ss:$8 sps:$4 sm:$0xff]   ;;  %v7387_v29 = vld [vmem:[#allocation10 + $0x60] ss:$8 sps:$4 sm:$0xff]  }
  0x44   :  { %7002 = vmatpush3.bf16.msra.mxu0 %v7325_v5  ;;  %7303 = vmatpush3.bf16.msra.mxu1 %v7325_v5  ;;  %v7378_v28 = vld [vmem:[#allocation8 + $0xe4] ss:$8 sps:$4 sm:$0xff]   ;;  %v7392_v30 = vld [vmem:[#allocation10 + $0x54] ss:$8 sps:$4 sm:$0xff]   ;;  %v7622_v31 = vld [vmem:[#allocation8 + $0x20] ss:$8 sps:$4 sm:$0xff]  }
  0x45   :  { %7003 = vmatprep.subr.bf16.mxu0 %v7326_v6  ;;  %7296 = vmatprep.subr.bf16.mxu1 %v7326_v6  ;;  %v7390_v32 = vld [vmem:[#allocation10 + $0x50] ss:$8 sps:$4 sm:$0xff]   ;;  %v7624_v33 = vld [vmem:[#allocation8 + $0x34] ss:$8 sps:$4 sm:$0xff]   ;;  %v7395_v34 = vld [vmem:[#allocation10 + $0x44] ss:$8 sps:$4 sm:$0xff]  }
  0x46   :  { %v7626_v35 = vld [vmem:[#allocation8 + $0xe0] ss:$8 sps:$4 sm:$0xff]   ;;  %v7628_v36 = vld [vmem:[#allocation8 + $0xf4] ss:$8 sps:$4 sm:$0xff]   ;;  %v7396_v39 = vld [vmem:[#allocation10 + $0x30] ss:$8 sps:$4 sm:$0xff]  }
  0x47   :  { %v7393_v37 = vld [vmem:[#allocation10 + $0x40] ss:$8 sps:$4 sm:$0xff]   ;;  %v7398_v38 = vld [vmem:[#allocation10 + $0x34] ss:$8 sps:$4 sm:$0xff]   ;;  %v7634_v40 = vld [vmem:[#allocation8 + $0x30] ss:$8 sps:$4 sm:$0xff]  }
  0x48   :  { %7004 = vmatpush3.bf16.msra.mxu0 %v7327_v7  ;;  %7304 = vmatpush3.bf16.msra.mxu1 %v7327_v7  ;;  %v7401_v41 = vld [vmem:[#allocation10 + $0x24] ss:$8 sps:$4 sm:$0xff]   ;;  %v7638_v43 = vld [vmem:[#allocation8 + $0xf0] ss:$8 sps:$4 sm:$0xff]   ;;  %v7399_v44 = vld [vmem:[#allocation10 + $0x20] ss:$8 sps:$4 sm:$0xff]  }
  0x49   :  { %7005 = vmatprep.subr.bf16.mxu0 %v7328_v8  ;;  %7297 = vmatprep.subr.bf16.mxu1 %v7328_v8  ;;  %v7636_v42 = vld [vmem:[#allocation8 + $0x44] ss:$8 sps:$4 sm:$0xff]   ;;  %v7643_v45 = vld [vmem:[#allocation8 + $0x40] ss:$8 sps:$4 sm:$0xff]   ;;  %v7645_v46 = vld [vmem:[#allocation8 + $0x54] ss:$8 sps:$4 sm:$0xff]  }
  0x4a   :  { %v7649_v47 = vld [vmem:[#allocation8 + $0x50] ss:$8 sps:$4 sm:$0xff]   ;;  %v7651_v48 = vld [vmem:[#allocation8 + $0x64] ss:$8 sps:$4 sm:$0xff]   ;;  %v7655_v49 = vld [vmem:[#allocation8 + $0x60] ss:$8 sps:$4 sm:$0xff]  }
  0x4b   :  { %v7657_v50 = vld [vmem:[#allocation8 + $0x74] ss:$8 sps:$4 sm:$0xff]   ;;  %v7661_v51 = vld [vmem:[#allocation8 + $0x70] ss:$8 sps:$4 sm:$0xff]   ;;  %v7663_v52 = vld [vmem:[#allocation8 + $0x84] ss:$8 sps:$4 sm:$0xff]  }
  0x4c   :  { %7006 = vmatpush3.bf16.msra.mxu0 %v7329_v9  ;;  %7305 = vmatpush3.bf16.msra.mxu1 %v7329_v9  ;;  %v7667_v53 = vld [vmem:[#allocation8 + $0x80] ss:$8 sps:$4 sm:$0xff]   ;;  %v7669_v54 = vld [vmem:[#allocation8 + $0x94] ss:$8 sps:$4 sm:$0xff]   ;;  %v7402_v56 = vld [vmem:[#allocation10 + $0x10] ss:$8 sps:$4 sm:$0xff]  }
  0x4d   :  { %7007 = vmatprep.subr.bf16.mxu0 %v7330_v10  ;;  %7298 = vmatprep.subr.bf16.mxu1 %v7330_v10  ;;  %v7404_v55 = vld [vmem:[#allocation10 + $0x14] ss:$8 sps:$4 sm:$0xff]   ;;  %v7673_v57 = vld [vmem:[#allocation8 + $0x90] ss:$8 sps:$4 sm:$0xff]   ;;  %v7675_v58 = vld [vmem:[#allocation8 + $0xa4] ss:$8 sps:$4 sm:$0xff]  }
  0x4e   :  { %v7407_v59 = vld [vmem:[#allocation10 + $0x4] ss:$8 sps:$4 sm:$0xff]   ;;  %v7405_v60 = vld [vmem:[#allocation10] ss:$8 sps:$4 sm:$0xff]   ;;  %v7682_v63 = vld [vmem:[#allocation8 + $0xb4] ss:$8 sps:$4 sm:$0xff]  }
  0x4f   :  { %v7680_v62 = vld [vmem:[#allocation8 + $0xa0] ss:$8 sps:$4 sm:$0xff]   ;;  %v7686_v0 = vld [vmem:[#allocation8 + $0xb0] ss:$8 sps:$4 sm:$0xff]   ;;  %s1425_s12 = sshra.s32 %s7847_s28, 3  ;;  %s1435_s15 = sshra.s32 %s7850_s29, 3 }
  0x50   :  { %7008 = vmatpush3.bf16.msra.mxu0 %v7331_v12  ;;  %7306 = vmatpush3.bf16.msra.mxu1 %v7331_v12  ;;  %s6704_s17 = sshll.u32 %s1415_s11, 4  ;;  %s1428_s18 = sand.u32 7, %s7847_s28 }
  0x51   :  { %7009 = vmatprep.subr.bf16.mxu0 %v7332_v13  ;;  %7299 = vmatprep.subr.bf16.mxu1 %v7332_v13  ;;  %s6705_s19 = sshll.u32 %s1425_s12, 4  ;;  %s1438_s2 = sand.u32 7, %s7850_s29 }
  0x52   :  { %s6706_s20 = sshll.u32 %s1435_s15, 4  ;;  %s7868_s22 = sadd.s32 %s6704_s17, %s1418_s16 }
  0x53   :  { %s1445_s1 = sshra.s32 %s7854_s0, 3  ;;  %s7872_s23 = sadd.s32 %s6705_s19, %s1428_s18 }
  0x54   :  { %7010 = vmatpush3.bf16.msra.mxu0 %v7333_v14  ;;  %7307 = vmatpush3.bf16.msra.mxu1 %v7333_v14  ;;  %s7874_s24 = sadd.s32 %s6706_s20, %s1438_s2  ;;  %s1448_s3 = sand.u32 7, %s7854_s0 }
  0x55   :  { %7011 = vmatprep.subr.bf16.mxu0 %v7334_v15  ;;  %7300 = vmatprep.subr.bf16.mxu1 %v7334_v15  ;;  %s1455_s5 = sshra.s32 %s7858_s13, 3  ;;  %s7879_s25 = sld [smem:[#allocation4 + $0x7]] }
  0x56   :  { %s1458_s26 = sand.u32 7, %s7858_s13  ;;  %s7882_s27 = sld [smem:[#allocation4 + $0x8]] }
  0x57   :  { %s6708_s28 = sshll.u32 %s1455_s5, 4  ;;  %s7885_s29 = sld [smem:[#allocation4 + $0x9]] }
  0x58   :  { %7012 = vmatpush3.bf16.msra.mxu0 %v7335_v16  ;;  %7308 = vmatpush3.bf16.msra.mxu1 %v7335_v16  ;;  %s1465_s0 = sshra.s32 %s7866_s21, 3  ;;  %s1468_s11 = sand.u32 7, %s7866_s21 }
  0x59   :  { %690 = vmatprep.subr.bf16.mxu1 %v7386_v25  ;;  %s6709_s12 = sshll.u32 %s1465_s0, 4  ;;  %s7898_s16 = sld [smem:[#allocation4 + $0xb]] }
  0x5a   :  { %s7900_s17 = sadd.s32 %s6709_s12, %s1468_s11  ;;  %s7907_s21 = sld [smem:[#allocation4 + $0xc]] }
  0x5b   :  { %438 = vmatmul.mubr.bf16.vlgmr.msra.gmra.mxu0 %v7336_v17  ;;  %534 = vmatmul.mubr.bf16.vlgmr.msra.gmra.mxu1 %v7372_v19  ;;  %s1487_s13 = sshra.s32 %s7879_s25, 3  ;;  %s1490_s19 = sand.u32 7, %s7879_s25 }
  0x5c   :  { %445 = vmatprep.mubr.bf16.mxu0 %v7339_v18  ;;  %541 = vmatprep.mubr.bf16.mxu1 %v7375_v21  ;;  %s1497_s15 = sshra.s32 %s7882_s27, 3  ;;  %s6710_s2 = sshll.u32 %s1487_s13, 4 }
  0x5d   :  { %691 = vmatpush1.bf16.msra.mxu1 %v7384_v24  ;;  %s1507_s18 = sshra.s32 %s7885_s29, 3  ;;  %s1500_s20 = sand.u32 7, %s7882_s27 }
  0x5e   :  { %692 = vmatprep.subr.bf16.mxu1 %v7389_v27  ;;  %s6712_s5 = sshll.u32 %s1507_s18, 4  ;;  %s7920_s11 = sld [smem:[#allocation4 + $0xd]] }
  0x5f   :  { %s1530_s12 = sand.u32 7, %s7898_s16  ;;  %s7923_s13 = sld [smem:[#allocation4 + $0xe]] }
  0x60   :  { %s7961_s8 = sld [smem:[#allocation4 + $0x13]] }
  0x61   :  { %693 = vmatpush1.bf16.msra.mxu1 %v7387_v29 }
  0x62   :  { %694 = vmatprep.subr.bf16.mxu1 %v7392_v30 }
  0x63   :  { %446 = vmatmul.mubr.bf16.gmra.mxu0 %v7616_v22  ;;  %542 = vmatmul.mubr.bf16.gmra.mxu1 %v7377_v26 }
  0x64   :  { %453 = vmatprep.mubr.bf16.mxu0 %v7618_v23  ;;  %549 = vmatprep.mubr.bf16.mxu1 %v7378_v28 }
  0x65   :  { %695 = vmatpush1.bf16.msra.mxu1 %v7390_v32 }
  0x66   :  { %696 = vmatprep.subr.bf16.mxu1 %v7395_v34 }
  0x69   :  { %697 = vmatpush1.bf16.msra.mxu1 %v7393_v37 }
  0x6a   :  { %698 = vmatprep.subr.bf16.mxu1 %v7398_v38 }
  0x6b   :  { %454 = vmatmul.mubr.bf16.gmra.mxu0 %v7622_v31  ;;  %550 = vmatmul.mubr.bf16.gmra.mxu1 %v7626_v35 }
  0x6c   :  { %461 = vmatprep.mubr.bf16.mxu0 %v7624_v33  ;;  %557 = vmatprep.mubr.bf16.mxu1 %v7628_v36 }
  0x6d   :  { %699 = vmatpush1.bf16.msra.mxu1 %v7396_v39 }
  0x6e   :  { %700 = vmatprep.subr.bf16.mxu1 %v7401_v41 }
  0x71   :  { %701 = vmatpush1.bf16.msra.mxu1 %v7399_v44 }
  0x72   :  { %702 = vmatprep.subr.bf16.mxu1 %v7404_v55 }
  0x73   :  { %462 = vmatmul.mubr.bf16.gmra.mxu0 %v7634_v40  ;;  %558 = vmatmul.mubr.bf16.gmra.mxu1 %v7638_v43 }
  0x74   :  { %469 = vmatprep.mubr.bf16.mxu0 %v7636_v42  ;;  %722 = vmatprep.mubr.bf16.mxu1 %v7550_v61 }
  0x75   :  { %703 = vmatpush1.bf16.msra.mxu1 %v7402_v56 }
  0x76   :  { %704 = vmatprep.subr.bf16.mxu1 %v7407_v59 }
  0x79   :  { %705 = vmatpush1.bf16.msra.mxu1 %v7405_v60 }
  0x7b   :  { %470 = vmatmul.mubr.bf16.gmra.mxu0 %v7643_v45 }
  0x7c   :  { %477 = vmatprep.mubr.bf16.mxu0 %v7645_v46 }
  0x83   :  { %478 = vmatmul.mubr.bf16.gmra.mxu0 %v7649_v47 }
  0x84   :  { %485 = vmatprep.mubr.bf16.mxu0 %v7651_v48 }
  0x8b   :  { %486 = vmatmul.mubr.bf16.gmra.mxu0 %v7655_v49 }
  0x8c   :  { %493 = vmatprep.mubr.bf16.mxu0 %v7657_v50 }
  0x93   :  { %494 = vmatmul.mubr.bf16.gmra.mxu0 %v7661_v51 }
  0x94   :  { %501 = vmatprep.mubr.bf16.mxu0 %v7663_v52 }
  0x9b   :  { %502 = vmatmul.mubr.bf16.gmra.mxu0 %v7667_v53 }
  0x9c   :  { %509 = vmatprep.mubr.bf16.mxu0 %v7669_v54 }
  0xa3   :  { %510 = vmatmul.mubr.bf16.gmra.mxu0 %v7673_v57 }
  0xa4   :  { %517 = vmatprep.mubr.bf16.mxu0 %v7675_v58 }
  0xab   :  { %518 = vmatmul.mubr.bf16.gmra.mxu0 %v7680_v62 }
  0xac   :  { %525 = vmatprep.mubr.bf16.mxu0 %v7682_v63 }
  0xb3   :  { %526 = vmatmul.mubr.bf16.gmra.mxu0 %v7686_v0 }
  0xb4   :  { %963 = vmatprep.mubr.bf16.mxu0 %v7613_v11 }
 0x11b   :  { %v7013_v1 = vpop.f32.mrf.mxu0 }
 0x11d   :  { %v7014_v2 = vpop.f32.mrf.mxu0 }
 0x11e   :  { %v7015_v5 = vadd.f32 %v7014_v2, %v7013_v1 }
 0x11f   :  { %v7016_v3 = vpop.f32.mrf.mxu0 }
 0x121   :  { %v7017_v4 = vpop.f32.mrf.mxu0 }
 0x122   :  { %v7018_v6 = vadd.f32 %v7017_v4, %v7016_v3 }
 0x123   :  { %v7019_v7 = vpop.f32.mrf.mxu0 }
 0x124   :  { %v566_v8 = vpack.c.bf16 %v7018_v6, %v7015_v5 }
 0x125   :  { %v7020_v9 = vpop.f32.mrf.mxu0 }
 0x126   :  { %723 = vmatmul.mubr.bf16.vlgmr.msra.gmra.mxu1 %v566_v8  ;;  %v7021_v13 = vadd.f32 %v7020_v9, %v7019_v7 }
 0x127   :  { %v7022_v10 = vpop.f32.mrf.mxu0  ;;  %732 = vmatprep.mubr.bf16.mxu1 %v7550_v61 }
 0x129   :  { %v7023_v12 = vpop.f32.mrf.mxu0 }
 0x12a   :  { %v7024_v14 = vadd.f32 %v7023_v12, %v7022_v10 }
 0x12b   :  { %v7025_v15 = vpop.f32.mrf.mxu0 }
 0x12c   :  { %v567_v16 = vpack.c.bf16 %v7024_v14, %v7021_v13 }
 0x12d   :  { %v7026_v17 = vpop.f32.mrf.mxu0 }
 0x12e   :  { %733 = vmatmul.mubr.bf16.gmra.mxu1 %v567_v16  ;;  %v7027_v19 = vadd.f32 %v7026_v17, %v7025_v15  ;;  %v7085_v16 = vpop.f32.mrf.mxu1 }
 0x12f   :  { %v7028_v11 = vpop.f32.mrf.mxu0  ;;  %742 = vmatprep.mubr.bf16.mxu1 %v7550_v61 }
 0x131   :  { %v7029_v18 = vpop.f32.mrf.mxu0 }
 0x132   :  { %v7030_v20 = vadd.f32 %v7029_v18, %v7028_v11 }
 0x133   :  { %v7031_v21 = vpop.f32.mrf.mxu0 }
 0x134   :  { %v568_v24 = vpack.c.bf16 %v7030_v20, %v7027_v19 }
 0x135   :  { %v7032_v25 = vpop.f32.mrf.mxu0 }
 0x136   :  { %743 = vmatmul.mubr.bf16.gmra.mxu1 %v568_v24  ;;  %v7033_v28 = vadd.f32 %v7032_v25, %v7031_v21  ;;  %v7086_v21 = vpop.f32.mrf.mxu1 }
 0x137   :  { %v7034_v26 = vpop.f32.mrf.mxu0  ;;  %752 = vmatprep.mubr.bf16.mxu1 %v7550_v61 }
 0x139   :  { %v7035_v27 = vpop.f32.mrf.mxu0 }
 0x13a   :  { %v7036_v29 = vadd.f32 %v7035_v27, %v7034_v26  ;;  %v7088_v26 = vpop.f32.mrf.mxu1 }
 0x13b   :  { %v7037_v30 = vpop.f32.mrf.mxu0 }
 0x13c   :  { %v569_v32 = vpack.c.bf16 %v7036_v29, %v7033_v28 }
 0x13d   :  { %v7038_v34 = vpop.f32.mrf.mxu0 }
 0x13e   :  { %753 = vmatmul.mubr.bf16.gmra.mxu1 %v569_v32  ;;  %v7039_v39 = vadd.f32 %v7038_v34, %v7037_v30  ;;  %v7089_v34 = vpop.f32.mrf.mxu1 }
 0x13f   :  { %v7040_v37 = vpop.f32.mrf.mxu0  ;;  %762 = vmatprep.mubr.bf16.mxu1 %v7550_v61 }
 0x141   :  { %v7041_v38 = vpop.f32.mrf.mxu0 }
 0x142   :  { %v7042_v41 = vadd.f32 %v7041_v38, %v7040_v37 }
 0x143   :  { %v7043_v44 = vpop.f32.mrf.mxu0 }
 0x144   :  { %v570_v55 = vpack.c.bf16 %v7042_v41, %v7039_v39  ;;  %v7091_v39 = vpop.f32.mrf.mxu1 }
 0x145   :  { %v7044_v56 = vpop.f32.mrf.mxu0 }
 0x146   :  { %763 = vmatmul.mubr.bf16.gmra.mxu1 %v570_v55  ;;  %v7045_v1 = vadd.f32 %v7044_v56, %v7043_v44 }
 0x147   :  { %v7046_v59 = vpop.f32.mrf.mxu0  ;;  %772 = vmatprep.mubr.bf16.mxu1 %v7550_v61 }
 0x149   :  { %v7047_v60 = vpop.f32.mrf.mxu0 }
 0x14a   :  { %v7048_v2 = vadd.f32 %v7047_v60, %v7046_v59  ;;  %v7092_v60 = vpop.f32.mrf.mxu1 }
 0x14b   :  { %v7049_v3 = vpop.f32.mrf.mxu0 }
 0x14c   :  { %v571_v4 = vpack.c.bf16 %v7048_v2, %v7045_v1 }
 0x14d   :  { %v7050_v5 = vpop.f32.mrf.mxu0 }
 0x14e   :  { %773 = vmatmul.mubr.bf16.gmra.mxu1 %v571_v4  ;;  %v7051_v8 = vadd.f32 %v7050_v5, %v7049_v3  ;;  %v7094_v3 = vpop.f32.mrf.mxu1 }
 0x14f   :  { %v7052_v6 = vpop.f32.mrf.mxu0  ;;  %782 = vmatprep.mubr.bf16.mxu1 %v7550_v61 }
 0x151   :  { %v7053_v7 = vpop.f32.mrf.mxu0 }
 0x152   :  { %v7054_v9 = vadd.f32 %v7053_v7, %v7052_v6 }
 0x153   :  { %v7055_v10 = vpop.f32.mrf.mxu0 }
 0x154   :  { %v572_v12 = vpack.c.bf16 %v7054_v9, %v7051_v8  ;;  %v7095_v9 = vpop.f32.mrf.mxu1 }
 0x155   :  { %v7056_v13 = vpop.f32.mrf.mxu0 }
 0x156   :  { %783 = vmatmul.mubr.bf16.gmra.mxu1 %v572_v12  ;;  %v7057_v17 = vadd.f32 %v7056_v13, %v7055_v10  ;;  %v7097_v13 = vpop.f32.mrf.mxu1 }
 0x157   :  { %v7058_v14 = vpop.f32.mrf.mxu0  ;;  %792 = vmatprep.mubr.bf16.mxu1 %v7550_v61 }
 0x159   :  { %v7059_v15 = vpop.f32.mrf.mxu0 }
 0x15a   :  { %v7060_v11 = vadd.f32 %v7059_v15, %v7058_v14 }
 0x15b   :  { %v7061_v18 = vpop.f32.mrf.mxu0 }
 0x15c   :  { %v573_v19 = vpack.c.bf16 %v7060_v11, %v7057_v17  ;;  %v7098_v11 = vpop.f32.mrf.mxu1 }
 0x15d   :  { %v7062_v20 = vpop.f32.mrf.mxu0 }
 0x15e   :  { %793 = vmatmul.mubr.bf16.gmra.mxu1 %v573_v19  ;;  %v7063_v27 = vadd.f32 %v7062_v20, %v7061_v18  ;;  %v7087_v18 = vadd.f32 %v7086_v21, %v7085_v16  ;;  %v7090_v19 = vadd.f32 %v7089_v34, %v7088_v26  ;;  %v7100_v20 = vpop.f32.mrf.mxu1 }
 0x15f   :  { %v7064_v24 = vpop.f32.mrf.mxu0  ;;  %802 = vmatprep.mubr.bf16.mxu1 %v7550_v61 }
 0x161   :  { %v7065_v25 = vpop.f32.mrf.mxu0 }
 0x162   :  { %v7066_v28 = vadd.f32 %v7065_v25, %v7064_v24  ;;  %v578_v24 = vpack.c.bf16 %v7090_v19, %v7087_v18  ;;  %v7101_v25 = vpop.f32.mrf.mxu1 }
 0x163   :  { %v7067_v29 = vpop.f32.mrf.mxu0 }
 0x164   :  { %v574_v30 = vpack.c.bf16 %v7066_v28, %v7063_v27  ;;  %v7093_v27 = vadd.f32 %v7092_v60, %v7091_v39  ;;  %v7096_v28 = vadd.f32 %v7095_v9, %v7094_v3  ;;  %v600_v39 = vlaneseq  ;;  %v598_v60 = vld [vmem:[%s8714_s4] sm:$0x3]  ;;  %s1404_s4 = sld [smem:[#allocation4]] }
 0x165   :  { %v7068_v32 = vpop.f32.mrf.mxu0 }
 0x166   :  { %803 = vmatmul.mubr.bf16.gmra.mxu1 %v574_v30  ;;  %v7069_v41 = vadd.f32 %v7068_v32, %v7067_v29  ;;  %v7103_v29 = vpop.f32.mrf.mxu1  ;;  %v579_v30 = vpack.c.bf16 %v7096_v28, %v7093_v27 }
 0x167   :  { %v7070_v37 = vpop.f32.mrf.mxu0  ;;  %812 = vmatprep.mubr.bf16.mxu1 %v7550_v61 }
 0x168   :  { %v7104_v32 = vpop.f32.mrf.mxu1 }
 0x169   :  { %v7071_v38 = vpop.f32.mrf.mxu0  ;;  %v7105_v21 = vadd.f32 %v7104_v32, %v7103_v29 }
 0x16a   :  { %v7072_v44 = vadd.f32 %v7071_v38, %v7070_v37  ;;  %v7099_v37 = vadd.f32 %v7098_v11, %v7097_v13  ;;  %v7102_v38 = vadd.f32 %v7101_v25, %v7100_v20  ;;  %s1408_s9 = sand.u32 7, %s1404_s4 }
 0x16b   :  { %v7073_v55 = vpop.f32.mrf.mxu0 }
 0x16c   :  { %v575_v56 = vpack.c.bf16 %v7072_v44, %v7069_v41  ;;  %v7106_v41 = vpop.f32.mrf.mxu1  ;;  %v580_v44 = vpack.c.bf16 %v7102_v38, %v7099_v37 }
 0x16d   :  { %v7074_v59 = vpop.f32.mrf.mxu0 }
 0x16e   :  { %813 = vmatmul.mubr.bf16.gmra.mxu1 %v575_v56  ;;  %v7075_v4 = vadd.f32 %v7074_v59, %v7073_v55  ;;  %v7107_v16 = vpop.f32.mrf.mxu1  ;;  %v601_v55 = vshrl.u32 %v600_v39, 7 }
 0x16f   :  { %v7076_v1 = vpop.f32.mrf.mxu0  ;;  %822 = vmatprep.mubr.bf16.mxu1 %v7550_v61  ;;  %v7108_v26 = vadd.f32 %v7107_v16, %v7106_v41 }
 0x170   :  { %v602_v56 = vsub.s32 0, %v601_v55  ;;  %v606_v59 = vsub.s32 1, %v601_v55 }
 0x171   :  { %v7077_v2 = vpop.f32.mrf.mxu0  ;;  %v581_v34 = vpack.c.bf16 %v7108_v26, %v7105_v21 }
 0x172   :  { %v7078_v5 = vadd.f32 %v7077_v2, %v7076_v1  ;;  %v7708_v1 = vrot.slane %v598_v60, %v602_v56  ;;  %v7710_v2 = vrot.slane %v598_v60, %v606_v59 }
 0x173   :  { %v7079_v6 = vpop.f32.mrf.mxu0 }
 0x174   :  { %v576_v7 = vpack.c.bf16 %v7078_v5, %v7075_v4 }
 0x175   :  { %v7080_v8 = vpop.f32.mrf.mxu0 }
 0x176   :  { %823 = vmatmul.mubr.bf16.gmra.mxu1 %v576_v7  ;;  %v7081_v14 = vadd.f32 %v7080_v8, %v7079_v6 }
 0x177   :  { %v7082_v10 = vpop.f32.mrf.mxu0  ;;  %832 = vmatprep.mubr.bf16.mxu1 %v7550_v61 }
 0x179   :  { %v7083_v12 = vpop.f32.mrf.mxu0 }
 0x17a   :  { %v7084_v15 = vadd.f32 %v7083_v12, %v7082_v10 }
 0x17c   :  { %v577_v17 = vpack.c.bf16 %v7084_v15, %v7081_v14 }
 0x17e   :  { %833 = vmatmul.mubr.bf16.gmra.mxu1 %v577_v17 }
 0x17f   :  { %842 = vmatprep.mubr.bf16.mxu1 %v7550_v61 }
 0x186   :  { %843 = vmatmul.mubr.bf16.gmra.mxu1 %v578_v24 }
 0x187   :  { %852 = vmatprep.mubr.bf16.mxu1 %v7550_v61 }
 0x18e   :  { %853 = vmatmul.mubr.bf16.gmra.mxu1 %v579_v30 }
 0x18f   :  { %862 = vmatprep.mubr.bf16.mxu1 %v7550_v61 }
 0x196   :  { %863 = vmatmul.mubr.bf16.gmra.mxu1 %v580_v44 }
 0x197   :  { %872 = vmatprep.mubr.bf16.mxu1 %v7550_v61 }
 0x19e   :  { %873 = vmatmul.mubr.bf16.gmra.mxu1 %v581_v34 }
 0x1e6   :  { %v724_v3 = vpop.f32.mrf.mxu1 }
 0x1e7   :  { %v725_v61 = vadd.f32 %v724_v3, %v7708_v1 }
 0x1e8   :  { %v726_v4 = vpop.f32.mrf.mxu1 }
 0x1e9   :  { %v727_v5 = vadd.f32 %v726_v4, %v7710_v2  ;;  %v883_v9 = vmax.f32 %v725_v61, 0.0 }
 0x1ea   :  { %v728_v6 = vpop.f32.mrf.mxu1 }
 0x1eb   :  { %1372 = vst [vmem:[#allocation2 + $0x8] sm:$0xff] %v727_v5  ;;  %v729_v7 = vadd.f32 %v728_v6, %v7708_v1 }
 0x1ec   :  { %v730_v8 = vpop.f32.mrf.mxu1 }
 0x1ed   :  { %v884_v10 = vmax.f32 %v729_v7, 0.0  ;;  %v731_v12 = vadd.f32 %v730_v8, %v7710_v2 }
 0x1ee   :  { %v734_v13 = vpop.f32.mrf.mxu1 }
 0x1ef   :  { %v7716_v14 = vpack.c.bf16 %v884_v10, %v883_v9  ;;  %1373 = vst [vmem:[#allocation2 + $0x18] sm:$0xff] %v731_v12  ;;  %v735_v17 = vadd.f32 %v734_v13, %v7708_v1 }
 0x1f0   :  { %v736_v15 = vpop.f32.mrf.mxu1 }
 0x1f1   :  { %v737_v11 = vadd.f32 %v736_v15, %v7710_v2  ;;  %v885_v24 = vmax.f32 %v735_v17, 0.0 }
 0x1f2   :  { %v738_v18 = vpop.f32.mrf.mxu1 }
 0x1f3   :  { %1374 = vst [vmem:[#allocation2 + $0x28] sm:$0xff] %v737_v11  ;;  %v739_v19 = vadd.f32 %v738_v18, %v7708_v1 }
 0x1f4   :  { %v740_v20 = vpop.f32.mrf.mxu1 }
 0x1f5   :  { %v886_v25 = vmax.f32 %v739_v19, 0.0  ;;  %v741_v27 = vadd.f32 %v740_v20, %v7710_v2 }
 0x1f6   :  { %v744_v28 = vpop.f32.mrf.mxu1 }
 0x1f7   :  { %v7722_v29 = vpack.c.bf16 %v886_v25, %v885_v24  ;;  %1375 = vst [vmem:[#allocation2 + $0x38] sm:$0xff] %v741_v27  ;;  %v745_v32 = vadd.f32 %v744_v28, %v7708_v1 }
 0x1f8   :  { %v746_v30 = vpop.f32.mrf.mxu1 }
 0x1f9   :  { %v747_v37 = vadd.f32 %v746_v30, %v7710_v2  ;;  %v887_v16 = vmax.f32 %v745_v32, 0.0 }
 0x1fa   :  { %v748_v38 = vpop.f32.mrf.mxu1 }
 0x1fb   :  { %1376 = vst [vmem:[#allocation2 + $0x48] sm:$0xff] %v747_v37  ;;  %v749_v41 = vadd.f32 %v748_v38, %v7708_v1 }
 0x1fc   :  { %v750_v44 = vpop.f32.mrf.mxu1 }
 0x1fd   :  { %v888_v21 = vmax.f32 %v749_v41, 0.0  ;;  %v751_v26 = vadd.f32 %v750_v44, %v7710_v2 }
 0x1fe   :  { %v754_v34 = vpop.f32.mrf.mxu1 }
 0x1ff   :  { %v7728_v39 = vpack.c.bf16 %v888_v21, %v887_v16  ;;  %1377 = vst [vmem:[#allocation2 + $0x58] sm:$0xff] %v751_v26  ;;  %v755_v56 = vadd.f32 %v754_v34, %v7708_v1 }
 0x200   :  { %v756_v55 = vpop.f32.mrf.mxu1 }
 0x201   :  { %v757_v59 = vadd.f32 %v756_v55, %v7710_v2  ;;  %v889_v61 = vmax.f32 %v755_v56, 0.0 }
 0x202   :  { %v758_v60 = vpop.f32.mrf.mxu1 }
 0x203   :  { %1378 = vst [vmem:[#allocation2 + $0x68] sm:$0xff] %v757_v59  ;;  %v759_v3 = vadd.f32 %v758_v60, %v7708_v1 }
 0x204   :  { %v760_v4 = vpop.f32.mrf.mxu1 }
 0x205   :  { %v890_v5 = vmax.f32 %v759_v3, 0.0  ;;  %v761_v6 = vadd.f32 %v760_v4, %v7710_v2 }
 0x206   :  { %v764_v7 = vpop.f32.mrf.mxu1 }
 0x207   :  { %v7734_v8 = vpack.c.bf16 %v890_v5, %v889_v61  ;;  %1379 = vst [vmem:[#allocation2 + $0x78] sm:$0xff] %v761_v6  ;;  %v765_v10 = vadd.f32 %v764_v7, %v7708_v1 }
 0x208   :  { %v766_v9 = vpop.f32.mrf.mxu1 }
 0x209   :  { %v767_v12 = vadd.f32 %v766_v9, %v7710_v2  ;;  %v891_v11 = vmax.f32 %v765_v10, 0.0 }
 0x20a   :  { %v768_v13 = vpop.f32.mrf.mxu1 }
 0x20b   :  { %1380 = vst [vmem:[#allocation2 + $0x88] sm:$0xff] %v767_v12  ;;  %v769_v15 = vadd.f32 %v768_v13, %v7708_v1 }
 0x20c   :  { %v770_v17 = vpop.f32.mrf.mxu1 }
 0x20d   :  { %v892_v18 = vmax.f32 %v769_v15, 0.0  ;;  %v771_v19 = vadd.f32 %v770_v17, %v7710_v2 }
 0x20e   :  { %v774_v20 = vpop.f32.mrf.mxu1 }
 0x20f   :  { %v7740_v24 = vpack.c.bf16 %v892_v18, %v891_v11  ;;  %1381 = vst [vmem:[#allocation2 + $0x98] sm:$0xff] %v771_v19  ;;  %v775_v27 = vadd.f32 %v774_v20, %v7708_v1 }
 0x210   :  { %v776_v25 = vpop.f32.mrf.mxu1 }
 0x211   :  { %v777_v28 = vadd.f32 %v776_v25, %v7710_v2  ;;  %v893_v38 = vmax.f32 %v775_v27, 0.0 }
 0x212   :  { %v778_v30 = vpop.f32.mrf.mxu1 }
 0x213   :  { %1382 = vst [vmem:[#allocation2 + $0xa8] sm:$0xff] %v777_v28  ;;  %v779_v32 = vadd.f32 %v778_v30, %v7708_v1 }
 0x214   :  { %v780_v37 = vpop.f32.mrf.mxu1 }
 0x215   :  { %v894_v41 = vmax.f32 %v779_v32, 0.0  ;;  %v781_v44 = vadd.f32 %v780_v37, %v7710_v2 }
 0x216   :  { %v784_v16 = vpop.f32.mrf.mxu1 }
 0x217   :  { %v7746_v21 = vpack.c.bf16 %v894_v41, %v893_v38  ;;  %1383 = vst [vmem:[#allocation2 + $0xb8] sm:$0xff] %v781_v44  ;;  %v785_v34 = vadd.f32 %v784_v16, %v7708_v1 }
 0x218   :  { %v786_v26 = vpop.f32.mrf.mxu1 }
 0x219   :  { %v787_v55 = vadd.f32 %v786_v26, %v7710_v2  ;;  %v895_v3 = vmax.f32 %v785_v34, 0.0 }
 0x21a   :  { %v788_v56 = vpop.f32.mrf.mxu1 }
 0x21b   :  { %1384 = vst [vmem:[#allocation2 + $0xc8] sm:$0xff] %v787_v55  ;;  %v789_v59 = vadd.f32 %v788_v56, %v7708_v1 }
 0x21c   :  { %v790_v60 = vpop.f32.mrf.mxu1 }
 0x21d   :  { %v896_v4 = vmax.f32 %v789_v59, 0.0  ;;  %v791_v61 = vadd.f32 %v790_v60, %v7710_v2 }
 0x21e   :  { %v794_v5 = vpop.f32.mrf.mxu1 }
 0x21f   :  { %v7752_v6 = vpack.c.bf16 %v896_v4, %v895_v3  ;;  %1385 = vst [vmem:[#allocation2 + $0xd8] sm:$0xff] %v791_v61  ;;  %v795_v9 = vadd.f32 %v794_v5, %v7708_v1 }
 0x220   :  { %v796_v7 = vpop.f32.mrf.mxu1 }
 0x221   :  { %v797_v10 = vadd.f32 %v796_v7, %v7710_v2  ;;  %v897_v17 = vmax.f32 %v795_v9, 0.0 }
 0x222   :  { %v798_v12 = vpop.f32.mrf.mxu1 }
 0x223   :  { %1386 = vst [vmem:[#allocation2 + $0xe8] sm:$0xff] %v797_v10  ;;  %v799_v13 = vadd.f32 %v798_v12, %v7708_v1 }
 0x224   :  { %v800_v15 = vpop.f32.mrf.mxu1 }
 0x225   :  { %v898_v11 = vmax.f32 %v799_v13, 0.0  ;;  %v801_v18 = vadd.f32 %v800_v15, %v7710_v2 }
 0x226   :  { %v804_v19 = vpop.f32.mrf.mxu1 }
 0x227   :  { %v7758_v20 = vpack.c.bf16 %v898_v11, %v897_v17  ;;  %1387 = vst [vmem:[#allocation2 + $0xf8] sm:$0xff] %v801_v18  ;;  %v805_v27 = vadd.f32 %v804_v19, %v7708_v1 }
 0x228   :  { %v806_v25 = vpop.f32.mrf.mxu1 }
 0x229   :  { %v807_v28 = vadd.f32 %v806_v25, %v7710_v2  ;;  %v899_v38 = vmax.f32 %v805_v27, 0.0 }
 0x22a   :  { %v808_v30 = vpop.f32.mrf.mxu1 }
 0x22b   :  { %1388 = vst [vmem:[#allocation2 + $0x108] sm:$0xff] %v807_v28  ;;  %v809_v32 = vadd.f32 %v808_v30, %v7708_v1 }
 0x22c   :  { %v810_v37 = vpop.f32.mrf.mxu1 }
 0x22d   :  { %v900_v41 = vmax.f32 %v809_v32, 0.0  ;;  %v811_v44 = vadd.f32 %v810_v37, %v7710_v2 }
 0x22e   :  { %v814_v16 = vpop.f32.mrf.mxu1 }
 0x22f   :  { %v7764_v26 = vpack.c.bf16 %v900_v41, %v899_v38  ;;  %1389 = vst [vmem:[#allocation2 + $0x118] sm:$0xff] %v811_v44  ;;  %v815_v55 = vadd.f32 %v814_v16, %v7708_v1 }
 0x230   :  { %v816_v34 = vpop.f32.mrf.mxu1 }
 0x231   :  { %v817_v56 = vadd.f32 %v816_v34, %v7710_v2  ;;  %v901_v4 = vmax.f32 %v815_v55, 0.0 }
 0x232   :  { %v818_v59 = vpop.f32.mrf.mxu1 }
 0x233   :  { %1390 = vst [vmem:[#allocation2 + $0x128] sm:$0xff] %v817_v56  ;;  %v819_v60 = vadd.f32 %v818_v59, %v7708_v1 }
 0x234   :  { %v820_v3 = vpop.f32.mrf.mxu1 }
 0x235   :  { %v902_v61 = vmax.f32 %v819_v60, 0.0  ;;  %v821_v5 = vadd.f32 %v820_v3, %v7710_v2 }
 0x236   :  { %v7770_v7 = vpop.f32.mrf.mxu1 }
 0x237   :  { %v7772_v9 = vpack.c.bf16 %v902_v61, %v901_v4  ;;  %1391 = vst [vmem:[#allocation2 + $0x138] sm:$0xff] %v821_v5 }
 0x238   :  { %v826_v10 = vpop.f32.mrf.mxu1 }
 0x239   :  { %v827_v12 = vadd.f32 %v826_v10, %v7710_v2 }
 0x23a   :  { %v7775_v13 = vpop.f32.mrf.mxu1 }
 0x23b   :  { %1392 = vst [vmem:[#allocation2 + $0x148] sm:$0xff] %v827_v12 }
 0x23c   :  { %v830_v15 = vpop.f32.mrf.mxu1 }
 0x23d   :  { %v831_v17 = vadd.f32 %v830_v15, %v7710_v2 }
 0x23e   :  { %v7778_v11 = vpop.f32.mrf.mxu1 }
 0x23f   :  { %1393 = vst [vmem:[#allocation2 + $0x158] sm:$0xff] %v831_v17 }
 0x240   :  { %v836_v18 = vpop.f32.mrf.mxu1 }
 0x241   :  { %v837_v19 = vadd.f32 %v836_v18, %v7710_v2 }
 0x242   :  { %v838_v25 = vpop.f32.mrf.mxu1 }
 0x243   :  { %1394 = vst [vmem:[#allocation2 + $0x168] sm:$0xff] %v837_v19 }
 0x244   :  { %v840_v27 = vpop.f32.mrf.mxu1 }
 0x245   :  { %v841_v28 = vadd.f32 %v840_v27, %v7710_v2 }
 0x246   :  { %v844_v30 = vpop.f32.mrf.mxu1 }
 0x247   :  { %1395 = vst [vmem:[#allocation2 + $0x178] sm:$0xff] %v841_v28 }
 0x248   :  { %v846_v32 = vpop.f32.mrf.mxu1 }
 0x249   :  { %v847_v37 = vadd.f32 %v846_v32, %v7710_v2 }
 0x24a   :  { %v848_v38 = vpop.f32.mrf.mxu1 }
 0x24b   :  { %1396 = vst [vmem:[#allocation2 + $0x188] sm:$0xff] %v847_v37 }
 0x24c   :  { %v850_v41 = vpop.f32.mrf.mxu1 }
 0x24d   :  { %v851_v44 = vadd.f32 %v850_v41, %v7710_v2 }
 0x24e   :  { %v854_v16 = vpop.f32.mrf.mxu1 }
 0x24f   :  { %1397 = vst [vmem:[#allocation2 + $0x198] sm:$0xff] %v851_v44 }
 0x250   :  { %v856_v34 = vpop.f32.mrf.mxu1 }
 0x251   :  { %v857_v55 = vadd.f32 %v856_v34, %v7710_v2 }
 0x252   :  { %v858_v56 = vpop.f32.mrf.mxu1 }
 0x253   :  { %1398 = vst [vmem:[#allocation2 + $0x1a8] sm:$0xff] %v857_v55  ;;  %v859_v41 = vadd.f32 %v858_v56, %v7708_v1  ;;  %v845_v56 = vadd.f32 %v844_v30, %v7708_v1  ;;  %v825_v30 = vadd.f32 %v7770_v7, %v7708_v1 }
 0x254   :  { %v860_v59 = vpop.f32.mrf.mxu1 }
 0x255   :  { %v861_v60 = vadd.f32 %v860_v59, %v7710_v2 }
 0x256   :  { %v864_v3 = vpop.f32.mrf.mxu1 }
 0x257   :  { %1399 = vst [vmem:[#allocation2 + $0x1b8] sm:$0xff] %v861_v60  ;;  %v865_v32 = vadd.f32 %v864_v3, %v7708_v1 }
 0x258   :  { %v866_v4 = vpop.f32.mrf.mxu1 }
 0x259   :  { %v867_v61 = vadd.f32 %v866_v4, %v7710_v2  ;;  %v855_v4 = vadd.f32 %v854_v16, %v7708_v1  ;;  %v835_v16 = vadd.f32 %v7778_v11, %v7708_v1 }
 0x25a   :  { %v868_v5 = vpop.f32.mrf.mxu1 }
 0x25b   :  { %1400 = vst [vmem:[#allocation2 + $0x1c8] sm:$0xff] %v867_v61  ;;  %v869_v18 = vadd.f32 %v868_v5, %v7708_v1  ;;  %v911_v61 = vmax.f32 %v865_v32, 0.0 }
 0x25c   :  { %v870_v10 = vpop.f32.mrf.mxu1 }
 0x25d   :  { %v871_v12 = vadd.f32 %v870_v10, %v7710_v2  ;;  %v912_v34 = vmax.f32 %v869_v18, 0.0  ;;  %v849_v10 = vadd.f32 %v848_v38, %v7708_v1  ;;  %v829_v38 = vadd.f32 %v7775_v13, %v7708_v1 }
 0x25e   :  { %v874_v15 = vpop.f32.mrf.mxu1 }
 0x25f   :  { %1401 = vst [vmem:[#allocation2 + $0x1d8] sm:$0xff] %v871_v12  ;;  %v875_v19 = vadd.f32 %v874_v15, %v7708_v1  ;;  %v910_v12 = vmax.f32 %v859_v41, 0.0  ;;  %v929_v3 = vpack.c.bf16 %v912_v34, %v911_v61  ;;  %v909_v15 = vmax.f32 %v855_v4, 0.0 }
 0x260   :  { %v876_v17 = vpop.f32.mrf.mxu1  ;;  %v908_v18 = vmax.f32 %v849_v10, 0.0 }
 0x261   :  { %v877_v27 = vadd.f32 %v876_v17, %v7710_v2  ;;  %v913_v55 = vmax.f32 %v875_v19, 0.0  ;;  %v839_v17 = vadd.f32 %v838_v25, %v7708_v1  ;;  %v907_v19 = vmax.f32 %v845_v56, 0.0 }
 0x262   :  { %v878_v28 = vpop.f32.mrf.mxu1  ;;  %v905_v25 = vmax.f32 %v835_v16, 0.0 }
 0x263   :  { %1402 = vst [vmem:[#allocation2 + $0x1e8] sm:$0xff] %v877_v27  ;;  %v879_v37 = vadd.f32 %v878_v28, %v7708_v1  ;;  %v906_v27 = vmax.f32 %v839_v17, 0.0  ;;  %v904_v28 = vmax.f32 %v829_v38, 0.0  ;;  %v7416_v1 = vld [vmem:[#allocation8] ss:$8 sps:$4 sm:$0xff]  }
 0x264   :  { %v880_v44 = vpop.f32.mrf.mxu1 }
 0x265   :  { %v914_v59 = vmax.f32 %v879_v37, 0.0  ;;  %v881_v60 = vadd.f32 %v880_v44, %v7710_v2  ;;  %v928_v2 = vpack.c.bf16 %v910_v12, %v909_v15  ;;  %v926_v32 = vpack.c.bf16 %v906_v27, %v905_v25 }
 0x267   :  { %v930_v5 = vpack.c.bf16 %v914_v59, %v913_v55  ;;  %1403 = vst [vmem:[#allocation2 + $0x1f8] sm:$0xff] %v881_v60 }
 0x269   :  { %7109 = vmatprep.subr.bf16.mxu0 %v930_v5 }
 0x26a   :  { %7110 = vmatpush3.bf16.msra.mxu0 %v7758_v20  ;;  %v927_v20 = vpack.c.bf16 %v908_v18, %v907_v19 }
 0x26b   :  { %7111 = vmatprep.subr.bf16.mxu0 %v929_v3 }
 0x26e   :  { %7112 = vmatpush3.bf16.msra.mxu0 %v7752_v6  ;;  %v903_v6 = vmax.f32 %v825_v30, 0.0 }
 0x26f   :  { %7113 = vmatprep.subr.bf16.mxu0 %v928_v2 }
 0x270   :  { %v925_v11 = vpack.c.bf16 %v904_v28, %v903_v6 }
 0x272   :  { %7114 = vmatpush3.bf16.msra.mxu0 %v7746_v21  ;;  %v7417_v21 = vld [vmem:[#allocation8 + $0x14] ss:$8 sps:$4 sm:$0xff]  }
 0x273   :  { %7115 = vmatprep.subr.bf16.mxu0 %v927_v20 }
 0x276   :  { %7116 = vmatpush3.bf16.msra.mxu0 %v7740_v24 }
 0x277   :  { %7117 = vmatprep.subr.bf16.mxu0 %v926_v32 }
 0x27a   :  { %7118 = vmatpush3.bf16.msra.mxu0 %v7734_v8 }
 0x27b   :  { %7119 = vmatprep.subr.bf16.mxu0 %v925_v11 }
 0x27e   :  { %7120 = vmatpush3.bf16.msra.mxu0 %v7728_v39 }
 0x27f   :  { %7121 = vmatprep.subr.bf16.mxu0 %v7772_v9 }
 0x282   :  { %7122 = vmatpush3.bf16.msra.mxu0 %v7722_v29 }
 0x283   :  { %7123 = vmatprep.subr.bf16.mxu0 %v7764_v26 }
 0x286   :  { %7124 = vmatpush3.bf16.msra.mxu0 %v7716_v14 }
 0x289   :  { %964 = vmatmul.mubr.bf16.vlgmr.msra.gmra.mxu0 %v7416_v1 }
 0x28a   :  { %971 = vmatprep.mubr.bf16.mxu0 %v7417_v21 }
 0x291   :  { %972 = vmatmul.mubr.bf16.gmra.mxu0 %v7616_v22  ;;  %v7408_v22 = vld [vmem:[#allocation11 + $0x38] sm:$0xff]  }
 0x292   :  { %979 = vmatprep.mubr.bf16.mxu0 %v7618_v23  ;;  %7245 = vmatprep.subr.bf16.mxu1 %v7408_v22  ;;  %v7409_v23 = vld [vmem:[#allocation11 + $0x30] sm:$0xff]  }
 0x293   :  { %7246 = vmatpush3.bf16.msra.mxu1 %v7408_v22 }
 0x294   :  { %7247 = vmatprep.subr.bf16.mxu1 %v7409_v23 }
 0x297   :  { %7248 = vmatpush3.bf16.msra.mxu1 %v7409_v23 }
 0x299   :  { %980 = vmatmul.mubr.bf16.gmra.mxu0 %v7622_v31  ;;  %v7410_v31 = vld [vmem:[#allocation11 + $0x28] sm:$0xff]  }
 0x29a   :  { %987 = vmatprep.mubr.bf16.mxu0 %v7624_v33  ;;  %7249 = vmatprep.subr.bf16.mxu1 %v7410_v31  ;;  %v7411_v33 = vld [vmem:[#allocation11 + $0x20] sm:$0xff]  }
 0x29b   :  { %7250 = vmatpush3.bf16.msra.mxu1 %v7410_v31 }
 0x29c   :  { %7251 = vmatprep.subr.bf16.mxu1 %v7411_v33 }
 0x29f   :  { %7252 = vmatpush3.bf16.msra.mxu1 %v7411_v33 }
 0x2a1   :  { %988 = vmatmul.mubr.bf16.gmra.mxu0 %v7634_v40  ;;  %v7412_v40 = vld [vmem:[#allocation11 + $0x18] sm:$0xff]  }
 0x2a2   :  { %995 = vmatprep.mubr.bf16.mxu0 %v7636_v42  ;;  %7253 = vmatprep.subr.bf16.mxu1 %v7412_v40  ;;  %v7413_v42 = vld [vmem:[#allocation11 + $0x10] sm:$0xff]  }
 0x2a3   :  { %7254 = vmatpush3.bf16.msra.mxu1 %v7412_v40 }
 0x2a4   :  { %7255 = vmatprep.subr.bf16.mxu1 %v7413_v42 }
 0x2a7   :  { %7256 = vmatpush3.bf16.msra.mxu1 %v7413_v42 }
 0x2a9   :  { %996 = vmatmul.mubr.bf16.gmra.mxu0 %v7643_v45  ;;  %v7414_v45 = vld [vmem:[#allocation11 + $0x8] sm:$0xff]  }
 0x2aa   :  { %1003 = vmatprep.mubr.bf16.mxu0 %v7645_v46  ;;  %7257 = vmatprep.subr.bf16.mxu1 %v7414_v45  ;;  %v7415_v46 = vld [vmem:[#allocation11] sm:$0xff]  }
 0x2ab   :  { %7258 = vmatpush3.bf16.msra.mxu1 %v7414_v45 }
 0x2ac   :  { %7259 = vmatprep.subr.bf16.mxu1 %v7415_v46 }
 0x2af   :  { %7260 = vmatpush3.bf16.msra.mxu1 %v7415_v46 }
 0x2b1   :  { %1004 = vmatmul.mubr.bf16.gmra.mxu0 %v7649_v47  ;;  %v7418_v47 = vld [vmem:[#allocation8 + $0xc4] ss:$8 sps:$4 sm:$0xff]  }
 0x2b2   :  { %1011 = vmatprep.mubr.bf16.mxu0 %v7651_v48  ;;  %v7419_v48 = vld [vmem:[#allocation8 + $0xc0] ss:$8 sps:$4 sm:$0xff]  }
 0x2b9   :  { %1012 = vmatmul.mubr.bf16.gmra.mxu0 %v7655_v49  ;;  %v7420_v49 = vld [vmem:[#allocation8 + $0xd4] ss:$8 sps:$4 sm:$0xff]  }
 0x2ba   :  { %1019 = vmatprep.mubr.bf16.mxu0 %v7657_v50  ;;  %v7421_v50 = vld [vmem:[#allocation8 + $0xd0] ss:$8 sps:$4 sm:$0xff]  }
 0x2c1   :  { %1020 = vmatmul.mubr.bf16.gmra.mxu0 %v7661_v51  ;;  %v7422_v51 = vld [vmem:[#allocation8 + $0xe4] ss:$8 sps:$4 sm:$0xff]  }
 0x2c2   :  { %1027 = vmatprep.mubr.bf16.mxu0 %v7663_v52 }
 0x2c9   :  { %1028 = vmatmul.mubr.bf16.gmra.mxu0 %v7667_v53 }
 0x2ca   :  { %1035 = vmatprep.mubr.bf16.mxu0 %v7669_v54 }
 0x2d1   :  { %1036 = vmatmul.mubr.bf16.gmra.mxu0 %v7673_v57 }
 0x2d2   :  { %1043 = vmatprep.mubr.bf16.mxu0 %v7675_v58 }
 0x2d9   :  { %1044 = vmatmul.mubr.bf16.gmra.mxu0 %v7680_v62 }
 0x2da   :  { %1051 = vmatprep.mubr.bf16.mxu0 %v7682_v63 }
 0x2e1   :  { %1052 = vmatmul.mubr.bf16.gmra.mxu0 %v7686_v0 }
 0x2e2   :  { %1059 = vmatprep.mubr.bf16.mxu0 %v7418_v47 }
 0x2e9   :  { %1060 = vmatmul.mubr.bf16.gmra.mxu0 %v7419_v48 }
 0x2ea   :  { %1067 = vmatprep.mubr.bf16.mxu0 %v7420_v49 }
 0x2f1   :  { %1068 = vmatmul.mubr.bf16.gmra.mxu0 %v7421_v50 }
 0x2f2   :  { %1075 = vmatprep.mubr.bf16.mxu0 %v7422_v51 }
 0x2f9   :  { %1076 = vmatmul.mubr.bf16.gmra.mxu0 %v7626_v35 }
 0x2fa   :  { %1083 = vmatprep.mubr.bf16.mxu0 %v7628_v36 }
 0x301   :  { %1084 = vmatmul.mubr.bf16.gmra.mxu0 %v7638_v43 }
 0x349   :  { %v7125_v52 = vpop.f32.mrf.mxu0 }
 0x34b   :  { %v7126_v53 = vpop.f32.mrf.mxu0 }
 0x34c   :  { %v7127_v58 = vadd.f32 %v7126_v53, %v7125_v52 }
 0x34d   :  { %v7128_v54 = vpop.f32.mrf.mxu0 }
 0x34f   :  { %v7129_v57 = vpop.f32.mrf.mxu0 }
 0x350   :  { %v7130_v62 = vadd.f32 %v7129_v57, %v7128_v54 }
 0x351   :  { %v7131_v63 = vpop.f32.mrf.mxu0 }
 0x352   :  { %v1092_v0 = vpack.c.bf16 %v7130_v62, %v7127_v58 }
 0x353   :  { %v7132_v14 = vpop.f32.mrf.mxu0 }
 0x354   :  { %7261 = vmatprep.mubr.bf16.mxu1 %v1092_v0  ;;  %v7133_v8 = vadd.f32 %v7132_v14, %v7131_v63 }
 0x355   :  { %v7134_v29 = vpop.f32.mrf.mxu0 }
 0x357   :  { %v7135_v39 = vpop.f32.mrf.mxu0 }
 0x358   :  { %v7136_v24 = vadd.f32 %v7135_v39, %v7134_v29 }
 0x359   :  { %v7137_v26 = vpop.f32.mrf.mxu0 }
 0x35a   :  { %v1093_v35 = vpack.c.bf16 %v7136_v24, %v7133_v8 }
 0x35b   :  { %v7138_v7 = vpop.f32.mrf.mxu0 }
 0x35c   :  { %7262 = vmatmul.mubr.bf16.vlgmr.msra.gmra.mxu1 %v1093_v35  ;;  %v7139_v9 = vadd.f32 %v7138_v7, %v7137_v26 }
 0x35d   :  { %v7140_v36 = vpop.f32.mrf.mxu0 }
 0x35f   :  { %v7141_v43 = vpop.f32.mrf.mxu0 }
 0x360   :  { %v7142_v13 = vadd.f32 %v7141_v43, %v7140_v36 }
 0x361   :  { %v7143_v37 = vpop.f32.mrf.mxu0 }
 0x362   :  { %v1094_v41 = vpack.c.bf16 %v7142_v13, %v7139_v9 }
 0x363   :  { %v7144_v44 = vpop.f32.mrf.mxu0 }
 0x364   :  { %7265 = vmatprep.mubr.bf16.mxu1 %v1094_v41  ;;  %v7145_v59 = vadd.f32 %v7144_v44, %v7143_v37 }
 0x365   :  { %v7146_v34 = vpop.f32.mrf.mxu0 }
 0x367   :  { %v7147_v55 = vpop.f32.mrf.mxu0 }
 0x368   :  { %v7148_v60 = vadd.f32 %v7147_v55, %v7146_v34 }
 0x369   :  { %v7149_v4 = vpop.f32.mrf.mxu0 }
 0x36a   :  { %v1095_v61 = vpack.c.bf16 %v7148_v60, %v7145_v59 }
 0x36b   :  { %v7150_v5 = vpop.f32.mrf.mxu0 }
 0x36c   :  { %7266 = vmatmul.mubr.bf16.gmra.mxu1 %v1095_v61  ;;  %v7151_v3 = vadd.f32 %v7150_v5, %v7149_v4 }
 0x36d   :  { %v7152_v10 = vpop.f32.mrf.mxu0 }
 0x36f   :  { %v7153_v12 = vpop.f32.mrf.mxu0 }
 0x370   :  { %v7154_v56 = vadd.f32 %v7153_v12, %v7152_v10 }
 0x371   :  { %v7155_v15 = vpop.f32.mrf.mxu0 }
 0x372   :  { %v1096_v17 = vpack.c.bf16 %v7154_v56, %v7151_v3 }
 0x373   :  { %v7156_v18 = vpop.f32.mrf.mxu0 }
 0x374   :  { %7269 = vmatprep.mubr.bf16.mxu1 %v1096_v17  ;;  %v7157_v19 = vadd.f32 %v7156_v18, %v7155_v15 }
 0x375   :  { %v7158_v2 = vpop.f32.mrf.mxu0 }
 0x377   :  { %v7159_v16 = vpop.f32.mrf.mxu0 }
 0x378   :  { %v7160_v38 = vadd.f32 %v7159_v16, %v7158_v2 }
 0x379   :  { %v7161_v27 = vpop.f32.mrf.mxu0 }
 0x37a   :  { %v1097_v20 = vpack.c.bf16 %v7160_v38, %v7157_v19 }
 0x37b   :  { %v7162_v30 = vpop.f32.mrf.mxu0 }
 0x37c   :  { %7270 = vmatmul.mubr.bf16.gmra.mxu1 %v1097_v20  ;;  %v7163_v32 = vadd.f32 %v7162_v30, %v7161_v27 }
 0x37d   :  { %v7164_v25 = vpop.f32.mrf.mxu0 }
 0x37f   :  { %v7165_v28 = vpop.f32.mrf.mxu0 }
 0x380   :  { %v7166_v6 = vadd.f32 %v7165_v28, %v7164_v25 }
 0x381   :  { %v7167_v11 = vpop.f32.mrf.mxu0 }
 0x382   :  { %v1098_v1 = vpack.c.bf16 %v7166_v6, %v7163_v32 }
 0x383   :  { %v7168_v21 = vpop.f32.mrf.mxu0 }
 0x384   :  { %7273 = vmatprep.mubr.bf16.mxu1 %v1098_v1  ;;  %v7169_v31 = vadd.f32 %v7168_v21, %v7167_v11  ;;  %v7842_v11 = vld [vmem:[%s8716_s6] ss:$0 sm:$0xff]  ;;  %s1405_s6 = sshra.s32 %s1404_s4, 3  ;;  %s6707_s4 = sshll.u32 %s1445_s1, 4 }
 0x385   :  { %v7170_v22 = vpop.f32.mrf.mxu0  ;;  %s6703_s10 = sshll.u32 %s1405_s6, 4  ;;  %s7887_s6 = sadd.s32 %s6707_s4, %s1448_s3 }
 0x386   :  { %s7860_s14 = sadd.s32 %s6703_s10, %s1408_s9  ;;  %s7891_s9 = sadd.s32 %s6708_s28, %s1458_s26 }
 0x387   :  { %v7171_v23 = vpop.f32.mrf.mxu0  ;;  %s7893_s10 = sld [smem:[#allocation4 + $0xa]]  ;;  %s6711_s1 = sshll.u32 %s1497_s15, 4 }
 0x388   :  { %v7172_v33 = vadd.f32 %v7171_v23, %v7170_v22  ;;  %s1510_s3 = sand.u32 7, %s7885_s29  ;;  %s7909_s4 = sadd.s32 %s6710_s2, %s1490_s19 }
 0x389   :  { %v7173_v40 = vpop.f32.mrf.mxu0  ;;  %s7913_s25 = sadd.s32 %s6711_s1, %s1500_s20  ;;  %s7915_s27 = sadd.s32 %s6712_s5, %s1510_s3 }
 0x38a   :  { %v1099_v42 = vpack.c.bf16 %v7172_v33, %v7169_v31  ;;  %s1527_s29 = sshra.s32 %s7898_s16, 3  ;;  %s1537_s19 = sshra.s32 %s7907_s21, 3 }
 0x38b   :  { %v7174_v45 = vpop.f32.mrf.mxu0  ;;  %s6714_s15 = sshll.u32 %s1527_s29, 4  ;;  %s7933_s16 = sld [smem:[#allocation4 + $0x10]] }
 0x38c   :  { %7274 = vmatmul.mubr.bf16.gmra.mxu1 %v1099_v42  ;;  %v7175_v48 = vadd.f32 %v7174_v45, %v7173_v40  ;;  %s7931_s2 = sadd.s32 %s6714_s15, %s1530_s12  ;;  %s1540_s20 = sand.u32 7, %s7907_s21 }
 0x38d   :  { %v7176_v46 = vpop.f32.mrf.mxu0  ;;  %s1517_s26 = sshra.s32 %s7893_s10, 3  ;;  %s1520_s28 = sand.u32 7, %s7893_s10 }
 0x38e   :  { %s6713_s0 = sshll.u32 %s1517_s26, 4  ;;  %s7926_s10 = sld [smem:[#allocation4 + $0xf]] }
 0x38f   :  { %v7177_v47 = vpop.f32.mrf.mxu0  ;;  %s7928_s18 = sadd.s32 %s6713_s0, %s1520_s28  ;;  %8722 = sst [smem:[#allocation20_spill]] %s7931_s2 }
 0x390   :  { %v7178_v49 = vadd.f32 %v7177_v47, %v7176_v46  ;;  %8721 = sst [smem:[#allocation19_spill]] %s7928_s18  ;;  %s6715_s1 = sshll.u32 %s1537_s19, 4 }
 0x391   :  { %v7179_v50 = vpop.f32.mrf.mxu0  ;;  %s1547_s3 = sshra.s32 %s7920_s11, 3  ;;  %s1569_s5 = sshra.s32 %s7923_s13, 3 }
 0x392   :  { %v1100_v51 = vpack.c.bf16 %v7178_v49, %v7175_v48  ;;  %s7938_s26 = sld [smem:[#allocation4 + $0x11]]  ;;  %s7940_s29 = sadd.s32 %s6715_s1, %s1540_s20 }
 0x393   :  { %v7180_v52 = vpop.f32.mrf.mxu0  ;;  %8723 = sst [smem:[#allocation21_spill]] %s7940_s29  ;;  %s1550_s28 = sand.u32 7, %s7920_s11 }
 0x394   :  { %7277 = vmatprep.mubr.bf16.mxu1 %v1100_v51  ;;  %v7181_v57 = vadd.f32 %v7180_v52, %v7179_v50  ;;  %s1579_s30 = sshra.s32 %s7926_s10, 3  ;;  %s6716_s0 = sshll.u32 %s1547_s3, 4 }
 0x395   :  { %v7182_v53 = vpop.f32.mrf.mxu0  ;;  %s1572_s12 = sand.u32 7, %s7923_s13  ;;  %s6717_s15 = sshll.u32 %s1569_s5, 4 }
 0x396   :  { %s1582_s21 = sand.u32 7, %s7926_s10  ;;  %s6718_s19 = sshll.u32 %s1579_s30, 4 }
 0x397   :  { %v7183_v54 = vpop.f32.mrf.mxu0  ;;  %s7948_s20 = sld [smem:[#allocation4 + $0x12]]  ;;  %s7950_s1 = sadd.s32 %s6716_s0, %s1550_s28 }
 0x398   :  { %v7184_v58 = vadd.f32 %v7183_v54, %v7182_v53  ;;  %8724 = sst [smem:[#allocation22_spill]] %s7950_s1  ;;  %s1589_s11 = sshra.s32 %s7933_s16, 3 }
 0x399   :  { %v7185_v62 = vpop.f32.mrf.mxu0  ;;  %s7954_s13 = sadd.s32 %s6717_s15, %s1572_s12  ;;  %s7956_s3 = sadd.s32 %s6718_s19, %s1582_s21 }
 0x39a   :  { %v1101_v63 = vpack.c.bf16 %v7184_v58, %v7181_v57  ;;  %8725 = sst [smem:[#allocation23_spill]] %s7954_s13  ;;  %s1592_s30 = sand.u32 7, %s7933_s16 }
 0x39b   :  { %v7186_v0 = vpop.f32.mrf.mxu0  ;;  %8726 = sst [smem:[#allocation24_spill]] %s7956_s3  ;;  %s1599_s10 = sshra.s32 %s7938_s26, 3 }
 0x39c   :  { %7278 = vmatmul.mubr.bf16.gmra.mxu1 %v1101_v63  ;;  %v7187_v39 = vadd.f32 %v7186_v0, %v7185_v62  ;;  %s6719_s5 = sshll.u32 %s1589_s11, 4  ;;  %s1602_s28 = sand.u32 7, %s7938_s26 }
 0x39d   :  { %v7188_v14 = vpop.f32.mrf.mxu0  ;;  %s7964_s0 = sld [smem:[#allocation4 + $0x14]]  ;;  %s6720_s12 = sshll.u32 %s1599_s10, 4 }
 0x39e   :  { %s7966_s15 = sld [smem:[#allocation4 + $0x15]]  ;;  %s7968_s21 = sadd.s32 %s6719_s5, %s1592_s30 }
 0x39f   :  { %v7189_v29 = vpop.f32.mrf.mxu0  ;;  %8727 = sst [smem:[#allocation25_spill]] %s7968_s21  ;;  %s1609_s16 = sshra.s32 %s7948_s20, 3 }
 0x3a0   :  { %v7190_v8 = vadd.f32 %v7189_v29, %v7188_v14  ;;  %s7971_s19 = sadd.s32 %s6720_s12, %s1602_s28  ;;  %s7973_s11 = sld [smem:[#allocation4 + $0x16]] }
 0x3a1   :  { %v7191_v24 = vpop.f32.mrf.mxu0  ;;  %8728 = sst [smem:[#allocation26_spill]] %s7971_s19  ;;  %s1612_s7 = sand.u32 7, %s7948_s20 }
 0x3a2   :  { %v1102_v26 = vpack.c.bf16 %v7190_v8, %v7187_v39  ;;  %s6721_s3 = sshll.u32 %s1609_s16, 4  ;;  %s1619_s26 = sshra.s32 %s7961_s8, 3 }
 0x3a3   :  { %v7192_v35 = vpop.f32.mrf.mxu0  ;;  %s1629_s13 = sshra.s32 %s7964_s0, 3  ;;  %s7978_s1 = sld [smem:[#allocation4 + $0x17]] }
 0x3a4   :  { %7281 = vmatprep.mubr.bf16.mxu1 %v1102_v26  ;;  %v7193_v43 = vadd.f32 %v7192_v35, %v7191_v24  ;;  %s7981_s10 = sadd.s32 %s6721_s3, %s1612_s7  ;;  %s1651_s30 = sshra.s32 %s7966_s15, 3 }
 0x3a5   :  { %v7194_v7 = vpop.f32.mrf.mxu0  ;;  %8729 = sst [smem:[#allocation27_spill]] %s7981_s10  ;;  %s1622_s5 = sand.u32 7, %s7961_s8 }
 0x3a6   :  { %s6722_s28 = sshll.u32 %s1619_s26, 4  ;;  %s1632_s20 = sand.u32 7, %s7964_s0 }
 0x3a7   :  { %v7195_v36 = vpop.f32.mrf.mxu0  ;;  %s6723_s12 = sshll.u32 %s1629_s13, 4  ;;  %s1654_s16 = sand.u32 7, %s7966_s15 }
 0x3a8   :  { %v7196_v9 = vadd.f32 %v7195_v36, %v7194_v7  ;;  %s6724_s19 = sshll.u32 %s1651_s30, 4  ;;  %s7989_s7 = sadd.s32 %s6722_s28, %s1622_s5 }
 0x3a9   :  { %v7197_v13 = vpop.f32.mrf.mxu0  ;;  %8730 = sst [smem:[#allocation28_spill]] %s7989_s7  ;;  %s1661_s3 = sshra.s32 %s7973_s11, 3 }
 0x3aa   :  { %v1103_v37 = vpack.c.bf16 %v7196_v9, %v7193_v43  ;;  %s5893_s8 = sld [smem:[#allocation4 + $0x18]]  ;;  %s7993_s26 = sadd.s32 %s6723_s12, %s1632_s20 }
 0x3ab   :  { %v7198_v41 = vpop.f32.mrf.mxu0  ;;  %8731 = sst [smem:[#allocation29_spill]] %s7993_s26  ;;  %s7995_s0 = sadd.s32 %s6724_s19, %s1654_s16 }
 0x3ac   :  { %7282 = vmatmul.mubr.bf16.gmra.mxu1 %v1103_v37  ;;  %v7199_v55 = vadd.f32 %v7198_v41, %v7197_v13  ;;  %8732 = sst [smem:[#allocation30_spill]] %s7995_s0  ;;  %s1664_s13 = sand.u32 7, %s7973_s11 }
 0x3ad   :  { %v7200_v44 = vpop.f32.mrf.mxu0  ;;  %s7998_s15 = sld [smem:[#allocation4 + $0x19]]  ;;  %s6725_s30 = sshll.u32 %s1661_s3, 4 }
 0x3ae   :  { %s8000_s10 = sld [smem:[#allocation4 + $0x1a]]  ;;  %s1671_s5 = sshra.s32 %s7978_s1, 3 }
 0x3af   :  { %v7201_v34 = vpop.f32.mrf.mxu0  ;;  %s8003_s28 = sadd.s32 %s6725_s30, %s1664_s13  ;;  %s1674_s21 = sand.u32 7, %s7978_s1 }
 0x3b0   :  { %v7202_v59 = vadd.f32 %v7201_v34, %v7200_v44  ;;  %8733 = sst [smem:[#allocation31_spill]] %s8003_s28  ;;  %s1681_s7 = sshra.s32 %s5893_s8, 3 }
 0x3b1   :  { %v7203_v60 = vpop.f32.mrf.mxu0  ;;  %s8006_s29 = sld [smem:[#allocation4 + $0x1b]]  ;;  %s6726_s20 = sshll.u32 %s1671_s5, 4 }
 0x3b2   :  { %v1104_v4 = vpack.c.bf16 %v7202_v59, %v7199_v55  ;;  %s8008_s19 = sld [smem:[#allocation4 + $0x1c]]  ;;  %s1684_s11 = sand.u32 7, %s5893_s8 }
 0x3b3   :  { %v7204_v61 = vpop.f32.mrf.mxu0  ;;  %s6727_s12 = sshll.u32 %s1681_s7, 4  ;;  %s1691_s16 = sshra.s32 %s7998_s15, 3 }
 0x3b4   :  { %7285 = vmatprep.mubr.bf16.mxu1 %v1104_v4  ;;  %v7205_v12 = vadd.f32 %v7204_v61, %v7203_v60  ;;  %s1701_s3 = sshra.s32 %s8000_s10, 3  ;;  %s8013_s0 = sld [smem:[#allocation4 + $0x1d]] }
 0x3b5   :  { %v7206_v5 = vpop.f32.mrf.mxu0  ;;  %s8015_s13 = sadd.s32 %s6726_s20, %s1674_s21  ;;  %s8017_s1 = sadd.s32 %s6727_s12, %s1684_s11 }
 0x3b6   :  { %8734 = sst [smem:[#allocation32_spill]] %s8015_s13  ;;  %s1694_s8 = sand.u32 7, %s7998_s15 }
 0x3b7   :  { %v7207_v10 = vpop.f32.mrf.mxu0  ;;  %8735 = sst [smem:[#allocation33_spill]] %s8017_s1  ;;  %s6728_s7 = sshll.u32 %s1691_s16, 4 }
 0x3b8   :  { %v7208_v3 = vadd.f32 %v7207_v10, %v7206_v5  ;;  %s1704_s30 = sand.u32 7, %s8000_s10  ;;  %s6729_s5 = sshll.u32 %s1701_s3, 4 }
 0x3b9   :  { %v7209_v56 = vpop.f32.mrf.mxu0  ;;  %s1711_s21 = sshra.s32 %s8006_s29, 3  ;;  %s8024_s20 = sadd.s32 %s6728_s7, %s1694_s8 }
 0x3ba   :  { %v1105_v15 = vpack.c.bf16 %v7208_v3, %v7205_v12  ;;  %8736 = sst [smem:[#allocation34_spill]] %s8024_s20  ;;  %s8027_s11 = sadd.s32 %s6729_s5, %s1704_s30 }
 0x3bb   :  { %v7210_v17 = vpop.f32.mrf.mxu0  ;;  %8737 = sst [smem:[#allocation35_spill]] %s8027_s11  ;;  %s1733_s15 = sshra.s32 %s8008_s19, 3 }
 0x3bc   :  { %7286 = vmatmul.mubr.bf16.gmra.mxu1 %v1105_v15  ;;  %v7211_v16 = vadd.f32 %v7210_v17, %v7209_v56  ;;  %s1714_s12 = sand.u32 7, %s8006_s29  ;;  %s6730_s16 = sshll.u32 %s1711_s21, 4 }
 0x3bd   :  { %v7212_v18 = vpop.f32.mrf.mxu0  ;;  %s1736_s1 = sand.u32 7, %s8008_s19  ;;  %s1743_s10 = sshra.s32 %s8013_s0, 3 }
 0x3be   :  { %s6731_s3 = sshll.u32 %s1733_s15, 4  ;;  %s5911_s13 = sld [smem:[#allocation4 + $0x1e]] }
 0x3bf   :  { %v7213_v2 = vpop.f32.mrf.mxu0  ;;  %s1746_s28 = sand.u32 7, %s8013_s0  ;;  %s5914_s26 = sld [smem:[#allocation4 + $0x1f]] }
 0x3c0   :  { %v7214_v19 = vadd.f32 %v7213_v2, %v7212_v18  ;;  %s6732_s2 = sshll.u32 %s1743_s10, 4  ;;  %s8034_s18 = sld [smem:[#allocation4 + $0x20]] }
 0x3c1   :  { %v7215_v38 = vpop.f32.mrf.mxu0  ;;  %s8036_s8 = sadd.s32 %s6730_s16, %s1714_s12  ;;  %s8038_s7 = sadd.s32 %s6731_s3, %s1736_s1 }
 0x3c2   :  { %v1106_v27 = vpack.c.bf16 %v7214_v19, %v7211_v16  ;;  %8738 = sst [smem:[#allocation36_spill]] %s8036_s8  ;;  %s8040_s20 = sadd.s32 %s6732_s2, %s1746_s28 }
 0x3c3   :  { %v7216_v20 = vpop.f32.mrf.mxu0  ;;  %8739 = sst [smem:[#allocation37_spill]] %s8038_s7 }
 0x3c4   :  { %7289 = vmatprep.mubr.bf16.mxu1 %v1106_v27  ;;  %v7217_v28 = vadd.f32 %v7216_v20, %v7215_v38  ;;  %8740 = sst [smem:[#allocation38_spill]] %s8040_s20  ;;  %s1753_s29 = sshra.s32 %s5911_s13, 3 }
 0x3c5   :  { %v7218_v30 = vpop.f32.mrf.mxu0  ;;  %s8042_s30 = sld [smem:[#allocation4 + $0x21]]  ;;  %s1763_s0 = sshra.s32 %s5914_s26, 3 }
 0x3c6   :  { %s8044_s19 = sld [smem:[#allocation4 + $0x22]]  ;;  %s1756_s21 = sand.u32 7, %s5911_s13 }
 0x3c7   :  { %v7219_v25 = vpop.f32.mrf.mxu0  ;;  %s8047_s5 = sld [smem:[#allocation4 + $0x23]]  ;;  %s6733_s15 = sshll.u32 %s1753_s29, 4 }
 0x3c8   :  { %v7220_v32 = vadd.f32 %v7219_v25, %v7218_v30  ;;  %s1766_s2 = sand.u32 7, %s5914_s26  ;;  %s6734_s28 = sshll.u32 %s1763_s0, 4 }
 0x3c9   :  { %s1773_s1 = sshra.s32 %s8034_s18, 3  ;;  %s8052_s12 = sadd.s32 %s6733_s15, %s1756_s21 }
 0x3ca   :  { %v1107_v6 = vpack.c.bf16 %v7220_v32, %v7217_v28  ;;  %8741 = sst [smem:[#allocation39_spill]] %s8052_s12  ;;  %s8054_s13 = sadd.s32 %s6734_s28, %s1766_s2 }
 0x3cb   :  { %8742 = sst [smem:[#allocation40_spill]] %s8054_s13  ;;  %s1776_s16 = sand.u32 7, %s8034_s18 }
 0x3cc   :  { %7290 = vmatmul.mubr.bf16.gmra.mxu1 %v1107_v6  ;;  %s6735_s26 = sshll.u32 %s1773_s1, 4  ;;  %s1783_s10 = sshra.s32 %s8042_s30, 3 }
 0x3cd   :  { %s1793_s3 = sshra.s32 %s8044_s19, 3  ;;  %s8060_s29 = sadd.s32 %s6735_s26, %s1776_s16 }
 0x3ce   :  { %s1786_s0 = sand.u32 7, %s8042_s30  ;;  %s6736_s20 = sshll.u32 %s1783_s10, 4 }
 0x3cf   :  { %s1815_s7 = sshra.s32 %s8047_s5, 3  ;;  %s1796_s8 = sand.u32 7, %s8044_s19 }
 0x3d0   :  { %s6737_s21 = sshll.u32 %s1793_s3, 4  ;;  %s1818_s15 = sand.u32 7, %s8047_s5 }
 0x3d1   :  { %s6738_s12 = sshll.u32 %s1815_s7, 4  ;;  %s8066_s11 = sadd.s32 %s6736_s20, %s1786_s0 }
 0x3d2   :  { %s5929_s2 = sld [smem:[#allocation4 + $0x24]]  ;;  %s8068_s28 = sadd.s32 %s6737_s21, %s1796_s8 }
 0x3d3   :  { %8743 = sst [smem:[#allocation41_spill]] %s8068_s28  ;;  %s8070_s18 = sadd.s32 %s6738_s12, %s1818_s15 }
 0x3d4   :  { %s5932_s13 = sld [smem:[#allocation4 + $0x25]]  ;;  %s1412_s28 = scalar_lea.vmem [#allocation2], %s7860_s14 }
 0x3d5   :  { %8744 = sst [smem:[#allocation42_spill]] %s8070_s18 }
 0x3d6   :  { %s5935_s1 = sld [smem:[#allocation4 + $0x26]] }
 0x3d7   :  { %s5938_s30 = sld [smem:[#allocation4 + $0x27]] }
 0x3d8   :  { %s8074_s19 = sld [smem:[#allocation4 + $0x28]]  ;;  %s1825_s20 = sshra.s32 %s5929_s2, 3 }
 0x3d9   :  { %s1828_s7 = sand.u32 7, %s5929_s2  ;;  %s6739_s8 = sshll.u32 %s1825_s20, 4 }
 0x3da   :  { %s1835_s5 = sshra.s32 %s5932_s13, 3  ;;  %s8077_s12 = sadd.s32 %s6739_s8, %s1828_s7 }
 0x3db   :  { %8745 = sst [smem:[#allocation43_spill]] %s8077_s12  ;;  %s1838_s16 = sand.u32 7, %s5932_s13 }
 0x3dc   :  { %s6740_s26 = sshll.u32 %s1835_s5, 4  ;;  %s8080_s10 = sld [smem:[#allocation4 + $0x29]] }
 0x3dd   :  { %s1845_s3 = sshra.s32 %s5935_s1, 3  ;;  %s8082_s0 = sadd.s32 %s6740_s26, %s1838_s16 }
 0x3de   :  { %s1848_s21 = sand.u32 7, %s5935_s1  ;;  %s6741_s15 = sshll.u32 %s1845_s3, 4 }
 0x3df   :  { %s1855_s2 = sshra.s32 %s5938_s30, 3  ;;  %s8084_s20 = sadd.s32 %s6741_s15, %s1848_s21 }
 0x3e0   :  { %s1858_s13 = sand.u32 7, %s5938_s30  ;;  %s6742_s7 = sshll.u32 %s1855_s2, 4 }
 0x3e1   :  { %s8086_s8 = sadd.s32 %s6742_s7, %s1858_s13  ;;  %s1865_s5 = sshra.s32 %s8074_s19, 3 }
 0x3e2   :  { %s1868_s12 = sand.u32 7, %s8074_s19  ;;  %s8090_s18 = sshll.u32 %s1865_s5, 4 }
 0x3e3   :  { %s1422_s1 = scalar_lea.vmem [#allocation2], %s7868_s22  ;;  %s1432_s16 = scalar_lea.vmem [#allocation2], %s7872_s23 }
 0x3e4   :  { %s1442_s26 = scalar_lea.vmem [#allocation2], %s7874_s24  ;;  %s1452_s30 = scalar_lea.vmem [#allocation2], %s7887_s6 }
 0x3e5   :  { %s8746_s3 = sld [smem:[#allocation19_spill]]  ;;  %s1462_s21 = scalar_lea.vmem [#allocation2], %s7891_s9 }
 0x3e6   :  { %s8747_s15 = sld [smem:[#allocation20_spill]]  ;;  %s1472_s2 = scalar_lea.vmem [#allocation2], %s7900_s17 }
 0x3e7   :  { %s8748_s14 = sld [smem:[#allocation21_spill]]  ;;  %s1504_s23 = scalar_lea.vmem [#allocation2], %s7913_s25 }
 0x3e8   :  { %s8749_s22 = sld [smem:[#allocation22_spill]]  ;;  %s1514_s13 = scalar_lea.vmem [#allocation2], %s7915_s27 }
 0x3e9   :  { %s8750_s24 = sld [smem:[#allocation23_spill]] }
 0x3ea   :  { %s8751_s6 = sld [smem:[#allocation24_spill]] }
 0x3eb   :  { %s1524_s7 = scalar_lea.vmem [#allocation2], %s8746_s3  ;;  %s8752_s9 = sld [smem:[#allocation25_spill]] }
 0x3ec   :  { %s1534_s5 = scalar_lea.vmem [#allocation2], %s8747_s15  ;;  %s8753_s17 = sld [smem:[#allocation26_spill]] }
 0x3ed   :  { %s8755_s27 = sld [smem:[#allocation28_spill]] }
 0x3ee   :  { %s8757_s15 = sld [smem:[#allocation30_spill]] }
 0x3ef   :  { %s1576_s25 = scalar_lea.vmem [#allocation2], %s8750_s24  ;;  %s1878_s24 = sand.u32 7, %s8080_s10 }
 0x3f0   :  { %s8770_s19 = sld [smem:[#allocation43_spill]] }
 0x3f1   :  { %s1596_s3 = scalar_lea.vmem [#allocation2], %s8752_s9 }
 0x3f4   :  { %s1658_s9 = scalar_lea.vmem [#allocation2], %s8757_s15  ;;  %s8767_s15 = sld [smem:[#allocation40_spill]] }
 0x41c   :  { %v7263_v1 = vpop.f32.mrf.mxu1 }
 0x41d   :  { %v1222_v21 = vadd.f32 %v7263_v1, %v7842_v11 }
 0x41e   :  { %v1213_v22 = vpop.f32.mrf.mxu1 }
 0x41f   :  { %1342 = vst [vmem:[#allocation2 + $0x20] sm:$0xff] %v1222_v21  ;;  %v1214_v23 = vadd.f32 %v7842_v11, %v1213_v22 }
 0x420   :  { %v7264_v31 = vpop.f32.mrf.mxu1 }
 0x421   :  { %1340 = vst [vmem:[#allocation2] sm:$0xff] %v1214_v23  ;;  %v1225_v33 = vadd.f32 %v7264_v31, %v7842_v11 }
 0x422   :  { %v1216_v40 = vpop.f32.mrf.mxu1 }
 0x423   :  { %1343 = vst [vmem:[#allocation2 + $0x30] sm:$0xff] %v1225_v33  ;;  %v1217_v42 = vadd.f32 %v7842_v11, %v1216_v40 }
 0x425   :  { %1341 = vst [vmem:[#allocation2 + $0x10] sm:$0xff] %v1217_v42 }
 0x42c   :  { %v7267_v45 = vpop.f32.mrf.mxu1 }
 0x42d   :  { %v1238_v46 = vadd.f32 %v7267_v45, %v7842_v11 }
 0x42e   :  { %v1229_v47 = vpop.f32.mrf.mxu1 }
 0x42f   :  { %1346 = vst [vmem:[#allocation2 + $0x60] sm:$0xff] %v1238_v46  ;;  %v1230_v48 = vadd.f32 %v7842_v11, %v1229_v47 }
 0x430   :  { %v7268_v49 = vpop.f32.mrf.mxu1 }
 0x431   :  { %1344 = vst [vmem:[#allocation2 + $0x40] sm:$0xff] %v1230_v48  ;;  %v1241_v50 = vadd.f32 %v7268_v49, %v7842_v11 }
 0x432   :  { %v1232_v51 = vpop.f32.mrf.mxu1 }
 0x433   :  { %1347 = vst [vmem:[#allocation2 + $0x70] sm:$0xff] %v1241_v50  ;;  %v1233_v52 = vadd.f32 %v7842_v11, %v1232_v51 }
 0x435   :  { %1345 = vst [vmem:[#allocation2 + $0x50] sm:$0xff] %v1233_v52 }
 0x43c   :  { %v7271_v53 = vpop.f32.mrf.mxu1 }
 0x43d   :  { %v1254_v54 = vadd.f32 %v7271_v53, %v7842_v11 }
 0x43e   :  { %v1245_v57 = vpop.f32.mrf.mxu1 }
 0x43f   :  { %1350 = vst [vmem:[#allocation2 + $0xa0] sm:$0xff] %v1254_v54  ;;  %v1246_v58 = vadd.f32 %v7842_v11, %v1245_v57 }
 0x440   :  { %v7272_v62 = vpop.f32.mrf.mxu1 }
 0x441   :  { %1348 = vst [vmem:[#allocation2 + $0x80] sm:$0xff] %v1246_v58  ;;  %v1257_v63 = vadd.f32 %v7272_v62, %v7842_v11 }
 0x442   :  { %v1248_v0 = vpop.f32.mrf.mxu1 }
 0x443   :  { %1351 = vst [vmem:[#allocation2 + $0xb0] sm:$0xff] %v1257_v63  ;;  %v1249_v14 = vadd.f32 %v7842_v11, %v1248_v0 }
 0x445   :  { %1349 = vst [vmem:[#allocation2 + $0x90] sm:$0xff] %v1249_v14 }
 0x44c   :  { %v7275_v29 = vpop.f32.mrf.mxu1 }
 0x44d   :  { %v1270_v39 = vadd.f32 %v7275_v29, %v7842_v11 }
 0x44e   :  { %v1261_v8 = vpop.f32.mrf.mxu1 }
 0x44f   :  { %1354 = vst [vmem:[#allocation2 + $0xe0] sm:$0xff] %v1270_v39  ;;  %v1262_v24 = vadd.f32 %v7842_v11, %v1261_v8 }
 0x450   :  { %v7276_v26 = vpop.f32.mrf.mxu1 }
 0x451   :  { %1352 = vst [vmem:[#allocation2 + $0xc0] sm:$0xff] %v1262_v24  ;;  %v1273_v35 = vadd.f32 %v7276_v26, %v7842_v11 }
 0x452   :  { %v1264_v7 = vpop.f32.mrf.mxu1 }
 0x453   :  { %1355 = vst [vmem:[#allocation2 + $0xf0] sm:$0xff] %v1273_v35  ;;  %v1265_v36 = vadd.f32 %v7842_v11, %v1264_v7 }
 0x455   :  { %1353 = vst [vmem:[#allocation2 + $0xd0] sm:$0xff] %v1265_v36 }
 0x45c   :  { %v7279_v43 = vpop.f32.mrf.mxu1 }
 0x45d   :  { %v1286_v9 = vadd.f32 %v7279_v43, %v7842_v11 }
 0x45e   :  { %v1277_v13 = vpop.f32.mrf.mxu1 }
 0x45f   :  { %1358 = vst [vmem:[#allocation2 + $0x120] sm:$0xff] %v1286_v9  ;;  %v1278_v37 = vadd.f32 %v7842_v11, %v1277_v13 }
 0x460   :  { %v7280_v41 = vpop.f32.mrf.mxu1 }
 0x461   :  { %1356 = vst [vmem:[#allocation2 + $0x100] sm:$0xff] %v1278_v37  ;;  %v1289_v44 = vadd.f32 %v7280_v41, %v7842_v11 }
 0x462   :  { %v1280_v34 = vpop.f32.mrf.mxu1 }
 0x463   :  { %1359 = vst [vmem:[#allocation2 + $0x130] sm:$0xff] %v1289_v44  ;;  %v1281_v55 = vadd.f32 %v7842_v11, %v1280_v34 }
 0x465   :  { %1357 = vst [vmem:[#allocation2 + $0x110] sm:$0xff] %v1281_v55 }
 0x46c   :  { %v7283_v59 = vpop.f32.mrf.mxu1 }
 0x46d   :  { %v1302_v60 = vadd.f32 %v7283_v59, %v7842_v11 }
 0x46e   :  { %v1293_v4 = vpop.f32.mrf.mxu1 }
 0x46f   :  { %1362 = vst [vmem:[#allocation2 + $0x160] sm:$0xff] %v1302_v60  ;;  %v1294_v61 = vadd.f32 %v7842_v11, %v1293_v4 }
 0x470   :  { %v7284_v5 = vpop.f32.mrf.mxu1 }
 0x471   :  { %1360 = vst [vmem:[#allocation2 + $0x140] sm:$0xff] %v1294_v61  ;;  %v1305_v10 = vadd.f32 %v7284_v5, %v7842_v11 }
 0x472   :  { %v1296_v12 = vpop.f32.mrf.mxu1 }
 0x473   :  { %1363 = vst [vmem:[#allocation2 + $0x170] sm:$0xff] %v1305_v10  ;;  %v1297_v3 = vadd.f32 %v7842_v11, %v1296_v12 }
 0x475   :  { %1361 = vst [vmem:[#allocation2 + $0x150] sm:$0xff] %v1297_v3 }
 0x47c   :  { %v7287_v56 = vpop.f32.mrf.mxu1 }
 0x47d   :  { %v1318_v15 = vadd.f32 %v7287_v56, %v7842_v11 }
 0x47e   :  { %v1309_v17 = vpop.f32.mrf.mxu1 }
 0x47f   :  { %1366 = vst [vmem:[#allocation2 + $0x1a0] sm:$0xff] %v1318_v15  ;;  %v1310_v18 = vadd.f32 %v7842_v11, %v1309_v17 }
 0x480   :  { %v7288_v2 = vpop.f32.mrf.mxu1 }
 0x481   :  { %1364 = vst [vmem:[#allocation2 + $0x180] sm:$0xff] %v1310_v18  ;;  %v1321_v16 = vadd.f32 %v7288_v2, %v7842_v11 }
 0x482   :  { %v1312_v19 = vpop.f32.mrf.mxu1 }
 0x483   :  { %1367 = vst [vmem:[#allocation2 + $0x1b0] sm:$0xff] %v1321_v16  ;;  %v1313_v38 = vadd.f32 %v7842_v11, %v1312_v19 }
 0x485   :  { %1365 = vst [vmem:[#allocation2 + $0x190] sm:$0xff] %v1313_v38 }
 0x48c   :  { %v7291_v27 = vpop.f32.mrf.mxu1 }
 0x48d   :  { %v1334_v20 = vadd.f32 %v7291_v27, %v7842_v11 }
 0x48e   :  { %v1325_v30 = vpop.f32.mrf.mxu1 }
 0x48f   :  { %1370 = vst [vmem:[#allocation2 + $0x1e0] sm:$0xff] %v1334_v20  ;;  %v1326_v25 = vadd.f32 %v7842_v11, %v1325_v30 }
 0x490   :  { %v7292_v28 = vpop.f32.mrf.mxu1 }
 0x491   :  { %1368 = vst [vmem:[#allocation2 + $0x1c0] sm:$0xff] %v1326_v25  ;;  %v1337_v32 = vadd.f32 %v7292_v28, %v7842_v11 }
 0x492   :  { %v1328_v6 = vpop.f32.mrf.mxu1 }
 0x493   :  { %1371 = vst [vmem:[#allocation2 + $0x1f0] sm:$0xff] %v1337_v32  ;;  %v1329_v1 = vadd.f32 %v7842_v11, %v1328_v6 }
 0x495   :  { %1369 = vst [vmem:[#allocation2 + $0x1d0] sm:$0xff] %v1329_v1 }
 0x49c   :  { %v1413_v11 = vld [vmem:[%s1412_s28] ss:$8 sm:$0x3]  ;;  %s1494_s28 = scalar_lea.vmem [#allocation2], %s7909_s4  ;;  %s8754_s4 = sld [smem:[#allocation27_spill]] }
 0x49d   :  { %v1423_v21 = vld [vmem:[%s1422_s1] ss:$8 sm:$0x3]  ;;  %s1544_s1 = scalar_lea.vmem [#allocation2], %s8748_s14 }
 0x49e   :  { %v1433_v22 = vld [vmem:[%s1432_s16] ss:$8 sm:$0x3]  ;;  %v1474_v31 = vmax.f32 %v1413_v11, %v1423_v21  ;;  %s1554_s16 = scalar_lea.vmem [#allocation2], %s8749_s22  ;;  %s8759_s22 = sld [smem:[#allocation32_spill]] }
 0x49f   :  { %v1443_v23 = vld [vmem:[%s1442_s26] ss:$8 sm:$0x3]  ;;  %s1586_s26 = scalar_lea.vmem [#allocation2], %s8751_s6 }
 0x4a0   :  { %v1453_v33 = vld [vmem:[%s1452_s30] ss:$8 sm:$0x3]  ;;  %v1475_v42 = vmax.f32 %v1433_v22, %v1443_v23  ;;  %s8756_s30 = sld [smem:[#allocation29_spill]] }
 0x4a1   :  { %v1463_v40 = vld [vmem:[%s1462_s21] ss:$8 sm:$0x3]  ;;  %s1606_s21 = scalar_lea.vmem [#allocation2], %s8753_s17 }
 0x4a2   :  { %v1473_v45 = vld [vmem:[%s1472_s2] ss:$8 sm:$0x3]  ;;  %v1476_v46 = vmax.f32 %v1453_v33, %v1463_v40  ;;  %v1477_v48 = vmax.f32 %v1474_v31, %v1475_v42  ;;  %s8758_s2 = sld [smem:[#allocation31_spill]]  ;;  %s1616_s14 = scalar_lea.vmem [#allocation2], %s8754_s4 }
 0x4a3   :  { %v1495_v47 = vld [vmem:[%s1494_s28] ss:$8 sm:$0x3]  ;;  %s1875_s28 = sshra.s32 %s8080_s10, 3  ;;  %s1862_s10 = scalar_lea.vmem [#allocation2], %s8086_s8 }
 0x4a4   :  { %v1505_v49 = vld [vmem:[%s1504_s23] ss:$8 sm:$0x3]  ;;  %v1478_v51 = vmax.f32 %v1476_v46, %v1473_v45  ;;  %s8760_s23 = sld [smem:[#allocation33_spill]] }
 0x4a5   :  { %v1515_v50 = vld [vmem:[%s1514_s13] ss:$8 sm:$0x3]  ;;  %v1556_v54 = vmax.f32 %v1495_v47, %v1505_v49  ;;  %s1626_s13 = scalar_lea.vmem [#allocation2], %s8755_s27  ;;  %s8148_s8 = sld [smem:[#allocation4 + $0x2e]] }
 0x4a6   :  { %v1525_v52 = vld [vmem:[%s1524_s7] ss:$8 sm:$0x3]  ;;  %v1479_v63 = vmax.f32 %v1477_v48, %v1478_v51  ;;  %s1636_s6 = scalar_lea.vmem [#allocation2], %s8756_s30  ;;  %s8761_s7 = sld [smem:[#allocation34_spill]] }
 0x4a7   :  { %v1535_v53 = vld [vmem:[%s1534_s5] ss:$8 sm:$0x3]  ;;  %v1557_v62 = vmax.f32 %v1515_v50, %v1525_v52  ;;  %s8762_s5 = sld [smem:[#allocation35_spill]] }
 0x4a8   :  { %v1545_v57 = vld [vmem:[%s1544_s1] ss:$8 sm:$0x3]  ;;  %v1481_v35 = vrot.slane %v1479_v63, 1  ;;  %s1668_s17 = scalar_lea.vmem [#allocation2], %s8758_s2  ;;  %s8763_s1 = sld [smem:[#allocation36_spill]] }
 0x4a9   :  { %v1555_v58 = vld [vmem:[%s1554_s16] ss:$8 sm:$0x3]  ;;  %v1558_v0 = vmax.f32 %v1535_v53, %v1545_v57  ;;  %v1559_v39 = vmax.f32 %v1556_v54, %v1557_v62  ;;  %s1678_s16 = scalar_lea.vmem [#allocation2], %s8759_s22  ;;  %s8766_s30 = sld [smem:[#allocation39_spill]] }
 0x4aa   :  { %v1577_v14 = vld [vmem:[%s1576_s25] ss:$8 sm:$0x3]  ;;  %v1483_v37 = vadd.f32 %v1481_v35, %v1479_v63  ;;  %s1688_s4 = scalar_lea.vmem [#allocation2], %s8760_s23  ;;  %s8764_s25 = sld [smem:[#allocation37_spill]] }
 0x4ab   :  { %v1587_v29 = vld [vmem:[%s1586_s26] ss:$8 sm:$0x3]  ;;  %v1560_v7 = vmax.f32 %v1558_v0, %v1555_v58  ;;  %s8765_s26 = sld [smem:[#allocation38_spill]] }
 0x4ac   :  { %v1597_v8 = vld [vmem:[%s1596_s3] ss:$8 sm:$0x3]  ;;  %v1638_v26 = vmax.f32 %v1577_v14, %v1587_v29  ;;  %v1484_v5 = vmax.f32 %v1483_v37, 0.0  ;;  %s1698_s27 = scalar_lea.vmem [#allocation2], %s8761_s7  ;;  %s8120_s3 = sshll.u32 %s1875_s28, 4 }
 0x4ad   :  { %v1607_v24 = vld [vmem:[%s1606_s21] ss:$8 sm:$0x3]  ;;  %v1561_v41 = vmax.f32 %v1559_v39, %v1560_v7  ;;  %s1708_s21 = scalar_lea.vmem [#allocation2], %s8762_s5  ;;  %s8768_s23 = sld [smem:[#allocation41_spill]] }
 0x4ae   :  { %v1617_v36 = vld [vmem:[%s1616_s14] ss:$8 sm:$0x3]  ;;  %v1639_v43 = vmax.f32 %v1597_v8, %v1607_v24  ;;  %s1718_s2 = scalar_lea.vmem [#allocation2], %s8763_s1  ;;  %s8127_s14 = sadd.s32 %s8090_s18, %s1868_s12  ;;  %1485 = vst [vmem:[#allocation13] sm:$0x1] %v1484_v5 }
 0x4af   :  { %v1627_v9 = vld [vmem:[%s1626_s13] ss:$8 sm:$0x3]  ;;  %v1563_v10 = vrot.slane %v1561_v41, 1  ;;  %s1760_s13 = scalar_lea.vmem [#allocation2], %s8766_s30  ;;  %s8769_s18 = sld [smem:[#allocation42_spill]] }
 0x4b0   :  { %v1637_v13 = vld [vmem:[%s1636_s6] ss:$8 sm:$0x3]  ;;  %v1640_v44 = vmax.f32 %v1617_v36, %v1627_v9  ;;  %v1641_v34 = vmax.f32 %v1638_v26, %v1639_v43  ;;  %s1740_s22 = scalar_lea.vmem [#allocation2], %s8764_s25  ;;  %s1770_s6 = scalar_lea.vmem [#allocation2], %s8767_s15 }
 0x4b1   :  { %v1659_v55 = vld [vmem:[%s1658_s9] ss:$8 sm:$0x3]  ;;  %v1565_v18 = vadd.f32 %v1563_v10, %v1561_v41  ;;  %s1750_s28 = scalar_lea.vmem [#allocation2], %s8765_s26  ;;  %s1780_s12 = scalar_lea.vmem [#allocation2], %s8060_s29 }
 0x4b2   :  { %v1669_v59 = vld [vmem:[%s1668_s17] ss:$8 sm:$0x3]  ;;  %v1642_v12 = vmax.f32 %v1640_v44, %v1637_v13  ;;  %s1790_s7 = scalar_lea.vmem [#allocation2], %s8066_s11  ;;  %s8139_s5 = sadd.s32 %s8120_s3, %s1878_s24 }
 0x4b3   :  { %v1679_v60 = vld [vmem:[%s1678_s16] ss:$8 sm:$0x3]  ;;  %v1720_v61 = vmax.f32 %v1659_v55, %v1669_v59  ;;  %v1566_v28 = vmax.f32 %v1565_v18, 0.0  ;;  %s1800_s9 = scalar_lea.vmem [#allocation2], %s8768_s23  ;;  %s1832_s29 = scalar_lea.vmem [#allocation2], %s8770_s19 }
 0x4b4   :  { %v1689_v4 = vld [vmem:[%s1688_s4] ss:$8 sm:$0x3]  ;;  %v1643_v2 = vmax.f32 %v1641_v34, %v1642_v12  ;;  %s1842_s1 = scalar_lea.vmem [#allocation2], %s8082_s0  ;;  %s1852_s11 = scalar_lea.vmem [#allocation2], %s8084_s20 }
 0x4b5   :  { %v1699_v3 = vld [vmem:[%s1698_s27] ss:$8 sm:$0x3]  ;;  %v1721_v56 = vmax.f32 %v1679_v60, %v1689_v4  ;;  %1567 = vst [vmem:[#allocation13 + $0x1] sm:$0x1] %v1566_v28  ;;  %s1822_s17 = scalar_lea.vmem [#allocation2], %s8769_s18 }
 0x4b6   :  { %v1709_v15 = vld [vmem:[%s1708_s21] ss:$8 sm:$0x3]  ;;  %v1645_v32 = vrot.slane %v1643_v2, 1  ;;  %s1872_s24 = scalar_lea.vmem [#allocation2], %s8127_s14  ;;  %s5947_s16 = sld [smem:[#allocation4 + $0x2a]] }
 0x4b7   :  { %v1719_v17 = vld [vmem:[%s1718_s2] ss:$8 sm:$0x3]  ;;  %v1722_v16 = vmax.f32 %v1699_v3, %v1709_v15  ;;  %v1723_v19 = vmax.f32 %v1720_v61, %v1721_v56  ;;  %s1882_s0 = scalar_lea.vmem [#allocation2], %s8139_s5  ;;  %s5950_s20 = sld [smem:[#allocation4 + $0x2b]] }
 0x4b8   :  { %v1741_v38 = vld [vmem:[%s1740_s22] ss:$8 sm:$0x3]  ;;  %v1647_v23 = vadd.f32 %v1645_v32, %v1643_v2  ;;  %s5953_s4 = sld [smem:[#allocation4 + $0x2c]]  ;;  %s1940_s5 = sand.u32 7, %s8148_s8 }
 0x4b9   :  { %v1751_v27 = vld [vmem:[%s1750_s28] ss:$8 sm:$0x3]  ;;  %v1724_v6 = vmax.f32 %v1722_v16, %v1719_v17  ;;  %s5956_s25 = sld [smem:[#allocation4 + $0x2d]] }
 0x4ba   :  { %v1761_v20 = vld [vmem:[%s1760_s13] ss:$8 sm:$0x3]  ;;  %v1802_v25 = vmax.f32 %v1741_v38, %v1751_v27  ;;  %v1648_v49 = vmax.f32 %v1647_v23, 0.0  ;;  %s8150_s27 = sld [smem:[#allocation4 + $0x2f]] }
 0x4bb   :  { %v1771_v30 = vld [vmem:[%s1770_s6] ss:$8 sm:$0x3]  ;;  %v1725_v31 = vmax.f32 %v1723_v19, %v1724_v6 }
 0x4bc   :  { %v1781_v1 = vld [vmem:[%s1780_s12] ss:$8 sm:$0x3]  ;;  %v1803_v11 = vmax.f32 %v1761_v20, %v1771_v30  ;;  %1649 = vst [vmem:[#allocation13 + $0x2] sm:$0x1] %v1648_v49  ;;  %s1897_s26 = sshra.s32 %s5947_s16, 3 }
 0x4bd   :  { %v1791_v21 = vld [vmem:[%s1790_s7] ss:$8 sm:$0x3]  ;;  %v1727_v50 = vrot.slane %v1725_v31, 1  ;;  %s1900_s30 = sand.u32 7, %s5947_s16  ;;  %s6745_s3 = sshll.u32 %s1897_s26, 4 }
 0x4be   :  { %v1801_v22 = vld [vmem:[%s1800_s9] ss:$8 sm:$0x3]  ;;  %v1804_v33 = vmax.f32 %v1781_v1, %v1791_v21  ;;  %v1805_v40 = vmax.f32 %v1802_v25, %v1803_v11  ;;  %s1907_s21 = sshra.s32 %s5950_s20, 3  ;;  %s1903_s15 = sadd.s32 %s6745_s3, %s1900_s30 }
 0x4bf   :  { %v1823_v42 = vld [vmem:[%s1822_s17] ss:$8 sm:$0x3]  ;;  %v1729_v57 = vadd.f32 %v1727_v50, %v1725_v31  ;;  %s1910_s2 = sand.u32 7, %s5950_s20  ;;  %s6746_s14 = sshll.u32 %s1907_s21, 4 }
 0x4c0   :  { %v1833_v45 = vld [vmem:[%s1832_s29] ss:$8 sm:$0x3]  ;;  %v1806_v51 = vmax.f32 %v1804_v33, %v1801_v22  ;;  %s1913_s22 = sadd.s32 %s6746_s14, %s1910_s2  ;;  %s1917_s23 = sshra.s32 %s5953_s4, 3 }
 0x4c1   :  { %v1843_v46 = vld [vmem:[%s1842_s1] ss:$8 sm:$0x3]  ;;  %v1884_v48 = vmax.f32 %v1823_v42, %v1833_v45  ;;  %v1730_v14 = vmax.f32 %v1729_v57, 0.0  ;;  %s1920_s28 = sand.u32 7, %s5953_s4  ;;  %s6747_s13 = sshll.u32 %s1917_s23, 4 }
 0x4c2   :  { %v1853_v47 = vld [vmem:[%s1852_s11] ss:$8 sm:$0x3]  ;;  %v1807_v58 = vmax.f32 %v1805_v40, %v1806_v51  ;;  %s1927_s6 = sshra.s32 %s5956_s25, 3  ;;  %s1923_s18 = sadd.s32 %s6747_s13, %s1920_s28 }
 0x4c3   :  { %v1863_v52 = vld [vmem:[%s1862_s10] ss:$8 sm:$0x3]  ;;  %v1885_v53 = vmax.f32 %v1843_v46, %v1853_v47  ;;  %1731 = vst [vmem:[#allocation13 + $0x3] sm:$0x1] %v1730_v14  ;;  %s1930_s19 = sand.u32 7, %s5956_s25 }
 0x4c4   :  { %v1873_v54 = vld [vmem:[%s1872_s24] ss:$8 sm:$0x3]  ;;  %v1809_v29 = vrot.slane %v1807_v58, 1  ;;  %s6748_s12 = sshll.u32 %s1927_s6, 4  ;;  %s1937_s9 = sshra.s32 %s8148_s8, 3 }
 0x4c5   :  { %v1886_v62 = vmax.f32 %v1863_v52, %v1873_v54  ;;  %v1887_v63 = vmax.f32 %v1884_v48, %v1885_v53  ;;  %v1883_v0 = vld [vmem:[%s1882_s0] ss:$8 sm:$0x3]  ;;  %s1933_s7 = sadd.s32 %s6748_s12, %s1930_s19  ;;  %s6749_s17 = sshll.u32 %s1937_s9, 4 }
 0x4c6   :  { %v1811_v8 = vadd.f32 %v1809_v29, %v1807_v58  ;;  %s1947_s29 = sshra.s32 %s8150_s27, 3  ;;  %s1943_s1 = sadd.s32 %s6749_s17, %s1940_s5 }
 0x4c7   :  { %v1888_v39 = vmax.f32 %v1886_v62, %v1883_v0  ;;  %s1950_s11 = sand.u32 7, %s8150_s27  ;;  %s6750_s10 = sshll.u32 %s1947_s29, 4 }
 0x4c8   :  { %v1812_v26 = vmax.f32 %v1811_v8, 0.0  ;;  %s1904_s24 = scalar_lea.vmem [#allocation2], %s1903_s15  ;;  %s1914_s16 = scalar_lea.vmem [#allocation2], %s1913_s22 }
 0x4c9   :  { %v1889_v24 = vmax.f32 %v1887_v63, %v1888_v39  ;;  %v1905_v43 = vld [vmem:[%s1904_s24] ss:$8 sm:$0x3]  ;;  %s1953_s0 = sadd.s32 %s6750_s10, %s1950_s11  ;;  %s5965_s20 = sld [smem:[#allocation4 + $0x30]] }
 0x4ca   :  { %1813 = vst [vmem:[#allocation13 + $0x4] sm:$0x1] %v1812_v26  ;;  %v1915_v9 = vld [vmem:[%s1914_s16] ss:$8 sm:$0x3]  ;;  %s1924_s4 = scalar_lea.vmem [#allocation2], %s1923_s18 }
 0x4cb   :  { %v1891_v35 = vrot.slane %v1889_v24, 1  ;;  %v1925_v13 = vld [vmem:[%s1924_s4] ss:$8 sm:$0x3]  ;;  %s5968_s26 = sld [smem:[#allocation4 + $0x31]]  ;;  %s1934_s30 = scalar_lea.vmem [#allocation2], %s1933_s7  ;;  %v1966_v34 = vmax.f32 %v1905_v43, %v1915_v9 }
 0x4cc   :  { %v1935_v37 = vld [vmem:[%s1934_s30] ss:$8 sm:$0x3]  ;;  %s8156_s25 = sld [smem:[#allocation4 + $0x32]]  ;;  %s1944_s3 = scalar_lea.vmem [#allocation2], %s1943_s1 }
 0x4cd   :  { %v1893_v7 = vadd.f32 %v1891_v35, %v1889_v24  ;;  %v1945_v41 = vld [vmem:[%s1944_s3] ss:$8 sm:$0x3]  ;;  %s8158_s8 = sld [smem:[#allocation4 + $0x33]]  ;;  %s1954_s21 = scalar_lea.vmem [#allocation2], %s1953_s0  ;;  %v1967_v55 = vmax.f32 %v1925_v13, %v1935_v37 }
 0x4ce   :  { %v1955_v44 = vld [vmem:[%s1954_s21] ss:$8 sm:$0x3]  ;;  %s8160_s27 = sld [smem:[#allocation4 + $0x34]] }
 0x4cf   :  { %v1894_v36 = vmax.f32 %v1893_v7, 0.0  ;;  %s8162_s15 = sld [smem:[#allocation4 + $0x35]]  ;;  %s1957_s2 = sshra.s32 %s5965_s20, 3  ;;  %v1968_v59 = vmax.f32 %v1945_v41, %v1955_v44  ;;  %v1969_v60 = vmax.f32 %v1966_v34, %v1967_v55 }
 0x4d0   :  { %s1960_s14 = sand.u32 7, %s5965_s20  ;;  %s6751_s22 = sshll.u32 %s1957_s2, 4 }
 0x4d1   :  { %1895 = vst [vmem:[#allocation13 + $0x5] sm:$0x1] %v1894_v36  ;;  %s1979_s23 = sshra.s32 %s5968_s26, 3  ;;  %s1963_s28 = sadd.s32 %s6751_s22, %s1960_s14 }
 0x4d2   :  { %s1982_s13 = sand.u32 7, %s5968_s26  ;;  %s6752_s6 = sshll.u32 %s1979_s23, 4 }
 0x4d3   :  { %s1964_s18 = scalar_lea.vmem [#allocation2], %s1963_s28  ;;  %s1989_s19 = sshra.s32 %s8156_s25, 3 }
 0x4d4   :  { %v1965_v4 = vld [vmem:[%s1964_s18] ss:$8 sm:$0x3]  ;;  %s1985_s12 = sadd.s32 %s6752_s6, %s1982_s13  ;;  %s1992_s7 = sand.u32 7, %s8156_s25 }
 0x4d5   :  { %v1970_v61 = vmax.f32 %v1968_v59, %v1965_v4  ;;  %s6753_s9 = sshll.u32 %s1989_s19, 4  ;;  %s1999_s5 = sshra.s32 %s8158_s8, 3 }
 0x4d6   :  { %s2002_s17 = sand.u32 7, %s8158_s8  ;;  %s6754_s29 = sshll.u32 %s1999_s5, 4 }
 0x4d7   :  { %v1971_v5 = vmax.f32 %v1969_v60, %v1970_v61  ;;  %s1995_s1 = sadd.s32 %s6753_s9, %s1992_s7  ;;  %s2009_s11 = sshra.s32 %s8160_s27, 3 }
 0x4d8   :  { %s2005_s10 = sadd.s32 %s6754_s29, %s2002_s17  ;;  %s2012_s24 = sand.u32 7, %s8160_s27 }
 0x4d9   :  { %v1973_v10 = vrot.slane %v1971_v5, 1  ;;  %s6755_s16 = sshll.u32 %s2009_s11, 4  ;;  %s2019_s0 = sshra.s32 %s8162_s15, 3 }
 0x4da   :  { %s2015_s20 = sadd.s32 %s6755_s16, %s2012_s24  ;;  %s2022_s4 = sand.u32 7, %s8162_s15 }
 0x4db   :  { %v1975_v12 = vadd.f32 %v1973_v10, %v1971_v5  ;;  %s6756_s26 = sshll.u32 %s2019_s0, 4  ;;  %s5983_s30 = sld [smem:[#allocation4 + $0x36]] }
 0x4dc   :  { %s5986_s25 = sld [smem:[#allocation4 + $0x37]]  ;;  %s1986_s3 = scalar_lea.vmem [#allocation2], %s1985_s12 }
 0x4dd   :  { %v1976_v3 = vmax.f32 %v1975_v12, 0.0  ;;  %v1987_v56 = vld [vmem:[%s1986_s3] ss:$8 sm:$0x3]  ;;  %s1996_s21 = scalar_lea.vmem [#allocation2], %s1995_s1  ;;  %s2025_s8 = sadd.s32 %s6756_s26, %s2022_s4 }
 0x4de   :  { %v1997_v15 = vld [vmem:[%s1996_s21] ss:$8 sm:$0x3]  ;;  %s8172_s2 = sld [smem:[#allocation4 + $0x38]]  ;;  %s2006_s14 = scalar_lea.vmem [#allocation2], %s2005_s10 }
 0x4df   :  { %1977 = vst [vmem:[#allocation13 + $0x6] sm:$0x1] %v1976_v3  ;;  %v2007_v17 = vld [vmem:[%s2006_s14] ss:$8 sm:$0x3]  ;;  %s8174_s27 = sld [smem:[#allocation4 + $0x39]]  ;;  %v2048_v2 = vmax.f32 %v1987_v56, %v1997_v15 }
 0x4e0   :  { %s2016_s22 = scalar_lea.vmem [#allocation2], %s2015_s20  ;;  %s8176_s23 = sld [smem:[#allocation4 + $0x3a]] }
 0x4e1   :  { %v2017_v18 = vld [vmem:[%s2016_s22] ss:$8 sm:$0x3]  ;;  %s8178_s15 = sld [smem:[#allocation4 + $0x3b]]  ;;  %s2029_s28 = sshra.s32 %s5983_s30, 3 }
 0x4e2   :  { %s2032_s13 = sand.u32 7, %s5983_s30  ;;  %s6757_s6 = sshll.u32 %s2029_s28, 4  ;;  %v2049_v16 = vmax.f32 %v2007_v17, %v2017_v18 }
 0x4e3   :  { %s2039_s18 = sshra.s32 %s5986_s25, 3  ;;  %s2026_s19 = scalar_lea.vmem [#allocation2], %s2025_s8 }
 0x4e4   :  { %v2027_v19 = vld [vmem:[%s2026_s19] ss:$8 sm:$0x3]  ;;  %s2035_s12 = sadd.s32 %s6757_s6, %s2032_s13  ;;  %s2042_s7 = sand.u32 7, %s5986_s25  ;;  %v2051_v20 = vmax.f32 %v2048_v2, %v2049_v16 }
 0x4e5   :  { %s6758_s9 = sshll.u32 %s2039_s18, 4  ;;  %s2036_s5 = scalar_lea.vmem [#allocation2], %s2035_s12 }
 0x4e6   :  { %v2037_v38 = vld [vmem:[%s2036_s5] ss:$8 sm:$0x3]  ;;  %s2045_s17 = sadd.s32 %s6758_s9, %s2042_s7  ;;  %s2061_s29 = sshra.s32 %s8172_s2, 3 }
 0x4e7   :  { %v2050_v27 = vmax.f32 %v2027_v19, %v2037_v38  ;;  %s2064_s1 = sand.u32 7, %s8172_s2  ;;  %s2046_s11 = scalar_lea.vmem [#allocation2], %s2045_s17 }
 0x4e8   :  { %v2047_v30 = vld [vmem:[%s2046_s11] ss:$8 sm:$0x3]  ;;  %s6759_s10 = sshll.u32 %s2061_s29, 4  ;;  %s2071_s24 = sshra.s32 %s8174_s27, 3 }
 0x4e9   :  { %v2052_v25 = vmax.f32 %v2050_v27, %v2047_v30  ;;  %s2067_s16 = sadd.s32 %s6759_s10, %s2064_s1  ;;  %s2074_s0 = sand.u32 7, %s8174_s27 }
 0x4ea   :  { %s2081_s20 = sshra.s32 %s8176_s23, 3  ;;  %s6760_s4 = sshll.u32 %s2071_s24, 4 }
 0x4eb   :  { %v2053_v28 = vmax.f32 %v2051_v20, %v2052_v25  ;;  %s2084_s26 = sand.u32 7, %s8176_s23  ;;  %s6761_s30 = sshll.u32 %s2081_s20, 4 }
 0x4ec   :  { %s2091_s25 = sshra.s32 %s8178_s15, 3  ;;  %s2094_s3 = sand.u32 7, %s8178_s15 }
 0x4ed   :  { %v2055_v32 = vrot.slane %v2053_v28, 1  ;;  %s2077_s21 = sadd.s32 %s6760_s4, %s2074_s0  ;;  %s6762_s8 = sshll.u32 %s2091_s25, 4 }
 0x4ee   :  { %s2087_s14 = sadd.s32 %s6761_s30, %s2084_s26  ;;  %s6001_s2 = sld [smem:[#allocation4 + $0x3c]] }
 0x4ef   :  { %v2057_v6 = vadd.f32 %v2055_v32, %v2053_v28  ;;  %s2097_s22 = sadd.s32 %s6762_s8, %s2094_s3  ;;  %s6004_s28 = sld [smem:[#allocation4 + $0x3d]] }
 0x4f0   :  { %s8188_s13 = sld [smem:[#allocation4 + $0x3e]]  ;;  %s2068_s23 = scalar_lea.vmem [#allocation2], %s2067_s16 }
 0x4f1   :  { %v2058_v1 = vmax.f32 %v2057_v6, 0.0  ;;  %s8190_s6 = sld [smem:[#allocation4 + $0x3f]]  ;;  %v2069_v11 = vld [vmem:[%s2068_s23] ss:$8 sm:$0x3]  ;;  %s2078_s18 = scalar_lea.vmem [#allocation2], %s2077_s21 }
 0x4f2   :  { %s8192_s27 = sld [smem:[#allocation4 + $0x40]]  ;;  %v2079_v21 = vld [vmem:[%s2078_s18] ss:$8 sm:$0x3]  ;;  %s2088_s19 = scalar_lea.vmem [#allocation2], %s2087_s14 }
 0x4f3   :  { %2059 = vst [vmem:[#allocation13 + $0x7] sm:$0x1] %v2058_v1  ;;  %s8194_s15 = sld [smem:[#allocation4 + $0x41]]  ;;  %v2089_v22 = vld [vmem:[%s2088_s19] ss:$8 sm:$0x3]  ;;  %v2130_v33 = vmax.f32 %v2069_v11, %v2079_v21 }
 0x4f4   :  { %s2101_s12 = sshra.s32 %s6001_s2, 3  ;;  %s2104_s7 = sand.u32 7, %s6001_s2 }
 0x4f5   :  { %s2098_s9 = scalar_lea.vmem [#allocation2], %s2097_s22  ;;  %s6763_s5 = sshll.u32 %s2101_s12, 4 }
 0x4f6   :  { %v2099_v23 = vld [vmem:[%s2098_s9] ss:$8 sm:$0x3]  ;;  %s2111_s17 = sshra.s32 %s6004_s28, 3  ;;  %s2107_s29 = sadd.s32 %s6763_s5, %s2104_s7 }
 0x4f7   :  { %s2114_s1 = sand.u32 7, %s6004_s28  ;;  %s6764_s11 = sshll.u32 %s2111_s17, 4  ;;  %v2131_v40 = vmax.f32 %v2089_v22, %v2099_v23 }
 0x4f8   :  { %s2108_s10 = scalar_lea.vmem [#allocation2], %s2107_s29  ;;  %s2117_s24 = sadd.s32 %s6764_s11, %s2114_s1 }
 0x4f9   :  { %v2109_v31 = vld [vmem:[%s2108_s10] ss:$8 sm:$0x3]  ;;  %s2121_s16 = sshra.s32 %s8188_s13, 3  ;;  %s2124_s0 = sand.u32 7, %s8188_s13  ;;  %v2133_v46 = vmax.f32 %v2130_v33, %v2131_v40 }
 0x4fa   :  { %s2118_s20 = scalar_lea.vmem [#allocation2], %s2117_s24  ;;  %s6765_s4 = sshll.u32 %s2121_s16, 4 }
 0x4fb   :  { %v2119_v42 = vld [vmem:[%s2118_s20] ss:$8 sm:$0x3]  ;;  %s2127_s26 = sadd.s32 %s6765_s4, %s2124_s0  ;;  %s2143_s30 = sshra.s32 %s8190_s6, 3 }
 0x4fc   :  { %v2132_v45 = vmax.f32 %v2109_v31, %v2119_v42  ;;  %s2128_s25 = scalar_lea.vmem [#allocation2], %s2127_s26  ;;  %s2153_s3 = sshra.s32 %s8192_s27, 3 }
 0x4fd   :  { %v2129_v47 = vld [vmem:[%s2128_s25] ss:$8 sm:$0x3]  ;;  %s2146_s21 = sand.u32 7, %s8190_s6  ;;  %s6766_s8 = sshll.u32 %s2143_s30, 4 }
 0x4fe   :  { %v2134_v48 = vmax.f32 %v2132_v45, %v2129_v47  ;;  %s2163_s14 = sshra.s32 %s8194_s15, 3  ;;  %s2156_s2 = sand.u32 7, %s8192_s27 }
 0x4ff   :  { %s6767_s22 = sshll.u32 %s2153_s3, 4  ;;  %s2166_s28 = sand.u32 7, %s8194_s15 }
 0x500   :  { %v2135_v49 = vmax.f32 %v2133_v46, %v2134_v48  ;;  %s6768_s13 = sshll.u32 %s2163_s14, 4  ;;  %s2149_s23 = sadd.s32 %s6766_s8, %s2146_s21 }
 0x501   :  { %s6019_s18 = sld [smem:[#allocation4 + $0x42]]  ;;  %s2159_s19 = sadd.s32 %s6767_s22, %s2156_s2 }
 0x502   :  { %v2137_v50 = vrot.slane %v2135_v49, 1  ;;  %s6022_s12 = sld [smem:[#allocation4 + $0x43]]  ;;  %s2169_s7 = sadd.s32 %s6768_s13, %s2166_s28 }
 0x503   :  { %s8204_s9 = sld [smem:[#allocation4 + $0x44]]  ;;  %s2150_s29 = scalar_lea.vmem [#allocation2], %s2149_s23 }
 0x504   :  { %v2139_v51 = vadd.f32 %v2137_v50, %v2135_v49  ;;  %s8206_s5 = sld [smem:[#allocation4 + $0x45]]  ;;  %v2151_v53 = vld [vmem:[%s2150_s29] ss:$8 sm:$0x3]  ;;  %s2160_s10 = scalar_lea.vmem [#allocation2], %s2159_s19 }
 0x505   :  { %s8208_s6 = sld [smem:[#allocation4 + $0x46]]  ;;  %v2161_v54 = vld [vmem:[%s2160_s10] ss:$8 sm:$0x3]  ;;  %s2170_s0 = scalar_lea.vmem [#allocation2], %s2169_s7 }
 0x506   :  { %v2140_v52 = vmax.f32 %v2139_v51, 0.0  ;;  %s8210_s17 = sld [smem:[#allocation4 + $0x47]]  ;;  %v2171_v57 = vld [vmem:[%s2170_s0] ss:$8 sm:$0x3]  ;;  %v2212_v62 = vmax.f32 %v2151_v53, %v2161_v54 }
 0x507   :  { %s2173_s27 = sshra.s32 %s6019_s18, 3  ;;  %s2176_s15 = sand.u32 7, %s6019_s18 }
 0x508   :  { %2141 = vst [vmem:[#allocation13 + $0x8] sm:$0x1] %v2140_v52  ;;  %s6769_s1 = sshll.u32 %s2173_s27, 4  ;;  %s2183_s11 = sshra.s32 %s6022_s12, 3 }
 0x509   :  { %s2179_s24 = sadd.s32 %s6769_s1, %s2176_s15  ;;  %s2186_s16 = sand.u32 7, %s6022_s12 }
 0x50a   :  { %s6770_s20 = sshll.u32 %s2183_s11, 4  ;;  %s2180_s4 = scalar_lea.vmem [#allocation2], %s2179_s24 }
 0x50b   :  { %v2181_v58 = vld [vmem:[%s2180_s4] ss:$8 sm:$0x3]  ;;  %s2189_s26 = sadd.s32 %s6770_s20, %s2186_s16  ;;  %s2193_s30 = sshra.s32 %s8204_s9, 3 }
 0x50c   :  { %s2196_s25 = sand.u32 7, %s8204_s9  ;;  %s6771_s3 = sshll.u32 %s2193_s30, 4  ;;  %v2213_v63 = vmax.f32 %v2171_v57, %v2181_v58 }
 0x50d   :  { %s2203_s21 = sshra.s32 %s8206_s5, 3  ;;  %s2190_s8 = scalar_lea.vmem [#allocation2], %s2189_s26 }
 0x50e   :  { %v2191_v0 = vld [vmem:[%s2190_s8] ss:$8 sm:$0x3]  ;;  %s2199_s14 = sadd.s32 %s6771_s3, %s2196_s25  ;;  %s2206_s2 = sand.u32 7, %s8206_s5  ;;  %v2215_v39 = vmax.f32 %v2212_v62, %v2213_v63 }
 0x50f   :  { %s6772_s22 = sshll.u32 %s2203_s21, 4  ;;  %s2200_s28 = scalar_lea.vmem [#allocation2], %s2199_s14 }
 0x510   :  { %v2201_v14 = vld [vmem:[%s2200_s28] ss:$8 sm:$0x3]  ;;  %s2209_s13 = sadd.s32 %s6772_s22, %s2206_s2  ;;  %s2225_s23 = sshra.s32 %s8208_s6, 3 }
 0x511   :  { %v2214_v29 = vmax.f32 %v2191_v0, %v2201_v14  ;;  %s2210_s18 = scalar_lea.vmem [#allocation2], %s2209_s13  ;;  %s2235_s19 = sshra.s32 %s8210_s17, 3 }
 0x512   :  { %v2211_v8 = vld [vmem:[%s2210_s18] ss:$8 sm:$0x3]  ;;  %s2228_s12 = sand.u32 7, %s8208_s6  ;;  %s6773_s7 = sshll.u32 %s2225_s23, 4 }
 0x513   :  { %v2216_v24 = vmax.f32 %v2214_v29, %v2211_v8  ;;  %s2238_s9 = sand.u32 7, %s8210_s17  ;;  %s6774_s27 = sshll.u32 %s2235_s19, 4 }
 0x514   :  { %s6037_s15 = sld [smem:[#allocation4 + $0x48]]  ;;  %s2231_s29 = sadd.s32 %s6773_s7, %s2228_s12 }
 0x515   :  { %v2217_v26 = vmax.f32 %v2215_v39, %v2216_v24  ;;  %s6040_s1 = sld [smem:[#allocation4 + $0x49]]  ;;  %s2241_s5 = sadd.s32 %s6774_s27, %s2238_s9 }
 0x516   :  { %s6043_s11 = sld [smem:[#allocation4 + $0x4a]]  ;;  %s2232_s25 = scalar_lea.vmem [#allocation2], %s2231_s29 }
 0x517   :  { %v2219_v35 = vrot.slane %v2217_v26, 1  ;;  %s8220_s10 = sld [smem:[#allocation4 + $0x4b]]  ;;  %v2233_v43 = vld [vmem:[%s2232_s25] ss:$8 sm:$0x3]  ;;  %s2242_s3 = scalar_lea.vmem [#allocation2], %s2241_s5 }
 0x518   :  { %s8222_s24 = sld [smem:[#allocation4 + $0x4c]]  ;;  %v2243_v9 = vld [vmem:[%s2242_s3] ss:$8 sm:$0x3] }
 0x519   :  { %v2221_v7 = vadd.f32 %v2219_v35, %v2217_v26  ;;  %s8224_s16 = sld [smem:[#allocation4 + $0x4d]]  ;;  %v2294_v44 = vmax.f32 %v2233_v43, %v2243_v9 }
 0x51a   :  { %s2245_s0 = sshra.s32 %s6037_s15, 3  ;;  %s2248_s6 = sand.u32 7, %s6037_s15 }
 0x51b   :  { %v2222_v36 = vmax.f32 %v2221_v7, 0.0  ;;  %s6775_s20 = sshll.u32 %s2245_s0, 4  ;;  %s2255_s17 = sshra.s32 %s6040_s1, 3 }
 0x51c   :  { %s2251_s4 = sadd.s32 %s6775_s20, %s2248_s6  ;;  %s2258_s26 = sand.u32 7, %s6040_s1 }
 0x51d   :  { %2223 = vst [vmem:[#allocation13 + $0x9] sm:$0x1] %v2222_v36  ;;  %s6776_s30 = sshll.u32 %s2255_s17, 4  ;;  %s2265_s8 = sshra.s32 %s6043_s11, 3 }
 0x51e   :  { %s2261_s21 = sadd.s32 %s6776_s30, %s2258_s26  ;;  %s2252_s14 = scalar_lea.vmem [#allocation2], %s2251_s4 }
 0x51f   :  { %v2253_v13 = vld [vmem:[%s2252_s14] ss:$8 sm:$0x3]  ;;  %s2268_s2 = sand.u32 7, %s6043_s11  ;;  %s2262_s22 = scalar_lea.vmem [#allocation2], %s2261_s21 }
 0x520   :  { %v2263_v37 = vld [vmem:[%s2262_s22] ss:$8 sm:$0x3]  ;;  %s6777_s28 = sshll.u32 %s2265_s8, 4  ;;  %s2275_s13 = sshra.s32 %s8220_s10, 3 }
 0x521   :  { %s2271_s23 = sadd.s32 %s6777_s28, %s2268_s2  ;;  %s2278_s18 = sand.u32 7, %s8220_s10  ;;  %v2295_v34 = vmax.f32 %v2253_v13, %v2263_v37 }
 0x522   :  { %s6778_s19 = sshll.u32 %s2275_s13, 4  ;;  %s2272_s12 = scalar_lea.vmem [#allocation2], %s2271_s23 }
 0x523   :  { %v2273_v41 = vld [vmem:[%s2272_s12] ss:$8 sm:$0x3]  ;;  %s2281_s7 = sadd.s32 %s6778_s19, %s2278_s18  ;;  %s2285_s9 = sshra.s32 %s8222_s24, 3  ;;  %v2297_v60 = vmax.f32 %v2294_v44, %v2295_v34 }
 0x524   :  { %s2288_s27 = sand.u32 7, %s8222_s24  ;;  %s2282_s15 = scalar_lea.vmem [#allocation2], %s2281_s7 }
 0x525   :  { %v2283_v55 = vld [vmem:[%s2282_s15] ss:$8 sm:$0x3]  ;;  %s6779_s29 = sshll.u32 %s2285_s9, 4  ;;  %s2307_s1 = sshra.s32 %s8224_s16, 3 }
 0x526   :  { %s2291_s5 = sadd.s32 %s6779_s29, %s2288_s27  ;;  %v2296_v59 = vmax.f32 %v2273_v41, %v2283_v55  ;;  %s2310_s11 = sand.u32 7, %s8224_s16 }
 0x527   :  { %s6780_s0 = sshll.u32 %s2307_s1, 4  ;;  %s2292_s6 = scalar_lea.vmem [#allocation2], %s2291_s5 }
 0x528   :  { %v2293_v4 = vld [vmem:[%s2292_s6] ss:$8 sm:$0x3]  ;;  %s6055_s10 = sld [smem:[#allocation4 + $0x4e]]  ;;  %s2313_s17 = sadd.s32 %s6780_s0, %s2310_s11 }
 0x529   :  { %v2298_v61 = vmax.f32 %v2296_v59, %v2293_v4  ;;  %s6058_s20 = sld [smem:[#allocation4 + $0x4f]]  ;;  %s2314_s23 = scalar_lea.vmem [#allocation2], %s2313_s17 }
 0x52a   :  { %s6061_s4 = sld [smem:[#allocation4 + $0x50]]  ;;  %v2315_v56 = vld [vmem:[%s2314_s23] ss:$8 sm:$0x3] }
 0x52b   :  { %v2299_v5 = vmax.f32 %v2297_v60, %v2298_v61  ;;  %s8232_s26 = sld [smem:[#allocation4 + $0x51]] }
 0x52c   :  { %s8234_s24 = sld [smem:[#allocation4 + $0x52]] }
 0x52d   :  { %v2301_v10 = vrot.slane %v2299_v5, 1  ;;  %s8236_s30 = sld [smem:[#allocation4 + $0x53]] }
 0x52e   :  { %s2317_s25 = sshra.s32 %s6055_s10, 3  ;;  %s2320_s16 = sand.u32 7, %s6055_s10 }
 0x52f   :  { %v2303_v12 = vadd.f32 %v2301_v10, %v2299_v5  ;;  %s6781_s3 = sshll.u32 %s2317_s25, 4  ;;  %s2327_s21 = sshra.s32 %s6058_s20, 3 }
 0x530   :  { %s2323_s8 = sadd.s32 %s6781_s3, %s2320_s16  ;;  %s2330_s14 = sand.u32 7, %s6058_s20 }
 0x531   :  { %v2304_v3 = vmax.f32 %v2303_v12, 0.0  ;;  %s6782_s2 = sshll.u32 %s2327_s21, 4  ;;  %s2337_s28 = sshra.s32 %s6061_s4, 3 }
 0x532   :  { %s2333_s22 = sadd.s32 %s6782_s2, %s2330_s14  ;;  %s2340_s13 = sand.u32 7, %s6061_s4 }
 0x533   :  { %2305 = vst [vmem:[#allocation13 + $0xa] sm:$0x1] %v2304_v3  ;;  %s6783_s18 = sshll.u32 %s2337_s28, 4  ;;  %s2347_s19 = sshra.s32 %s8232_s26, 3 }
 0x534   :  { %s2324_s12 = scalar_lea.vmem [#allocation2], %s2323_s8  ;;  %s2343_s7 = sadd.s32 %s6783_s18, %s2340_s13 }
 0x535   :  { %v2325_v15 = vld [vmem:[%s2324_s12] ss:$8 sm:$0x3]  ;;  %s2350_s9 = sand.u32 7, %s8232_s26  ;;  %s2334_s27 = scalar_lea.vmem [#allocation2], %s2333_s22 }
 0x536   :  { %v2335_v17 = vld [vmem:[%s2334_s27] ss:$8 sm:$0x3]  ;;  %s6784_s15 = sshll.u32 %s2347_s19, 4  ;;  %s2344_s29 = scalar_lea.vmem [#allocation2], %s2343_s7  ;;  %v2376_v2 = vmax.f32 %v2315_v56, %v2325_v15 }
 0x537   :  { %v2345_v18 = vld [vmem:[%s2344_s29] ss:$8 sm:$0x3]  ;;  %s2353_s1 = sadd.s32 %s6784_s15, %s2350_s9  ;;  %s2357_s5 = sshra.s32 %s8234_s24, 3 }
 0x538   :  { %s2360_s11 = sand.u32 7, %s8234_s24  ;;  %s6785_s0 = sshll.u32 %s2357_s5, 4  ;;  %v2377_v16 = vmax.f32 %v2335_v17, %v2345_v18 }
 0x539   :  { %s2367_s6 = sshra.s32 %s8236_s30, 3  ;;  %s2354_s10 = scalar_lea.vmem [#allocation2], %s2353_s1 }
 0x53a   :  { %v2355_v19 = vld [vmem:[%s2354_s10] ss:$8 sm:$0x3]  ;;  %s2363_s20 = sadd.s32 %s6785_s0, %s2360_s11  ;;  %s2370_s17 = sand.u32 7, %s8236_s30  ;;  %v2379_v20 = vmax.f32 %v2376_v2, %v2377_v16 }
 0x53b   :  { %s6786_s4 = sshll.u32 %s2367_s6, 4  ;;  %s2364_s25 = scalar_lea.vmem [#allocation2], %s2363_s20 }
 0x53c   :  { %v2365_v38 = vld [vmem:[%s2364_s25] ss:$8 sm:$0x3]  ;;  %s2373_s26 = sadd.s32 %s6786_s4, %s2370_s17  ;;  %s6073_s16 = sld [smem:[#allocation4 + $0x54]] }
 0x53d   :  { %v2378_v27 = vmax.f32 %v2355_v19, %v2365_v38  ;;  %s6076_s3 = sld [smem:[#allocation4 + $0x55]]  ;;  %s2374_s21 = scalar_lea.vmem [#allocation2], %s2373_s26 }
 0x53e   :  { %v2375_v30 = vld [vmem:[%s2374_s21] ss:$8 sm:$0x3]  ;;  %s6079_s8 = sld [smem:[#allocation4 + $0x56]] }
 0x53f   :  { %v2380_v25 = vmax.f32 %v2378_v27, %v2375_v30  ;;  %s6082_s24 = sld [smem:[#allocation4 + $0x57]] }
 0x540   :  { %s6085_s14 = sld [smem:[#allocation4 + $0x58]] }
 0x541   :  { %v2381_v28 = vmax.f32 %v2379_v20, %v2380_v25  ;;  %s8244_s2 = sld [smem:[#allocation4 + $0x59]] }
 0x542   :  { %s2389_s22 = sshra.s32 %s6073_s16, 3  ;;  %s2392_s28 = sand.u32 7, %s6073_s16 }
 0x543   :  { %v2383_v32 = vrot.slane %v2381_v28, 1  ;;  %s6787_s30 = sshll.u32 %s2389_s22, 4  ;;  %s2399_s13 = sshra.s32 %s6076_s3, 3 }
 0x544   :  { %s2395_s23 = sadd.s32 %s6787_s30, %s2392_s28  ;;  %s2402_s18 = sand.u32 7, %s6076_s3 }
 0x545   :  { %v2385_v6 = vadd.f32 %v2383_v32, %v2381_v28  ;;  %s6788_s19 = sshll.u32 %s2399_s13, 4  ;;  %s2409_s7 = sshra.s32 %s6079_s8, 3 }
 0x546   :  { %s2405_s12 = sadd.s32 %s6788_s19, %s2402_s18  ;;  %s2412_s9 = sand.u32 7, %s6079_s8 }
 0x547   :  { %v2386_v1 = vmax.f32 %v2385_v6, 0.0  ;;  %s6789_s27 = sshll.u32 %s2409_s7, 4  ;;  %s2419_s15 = sshra.s32 %s6082_s24, 3 }
 0x548   :  { %s2415_s29 = sadd.s32 %s6789_s27, %s2412_s9  ;;  %s2422_s1 = sand.u32 7, %s6082_s24 }
 0x549   :  { %2387 = vst [vmem:[#allocation13 + $0xb] sm:$0x1] %v2386_v1  ;;  %s6790_s5 = sshll.u32 %s2419_s15, 4  ;;  %s2429_s0 = sshra.s32 %s6085_s14, 3 }
 0x54a   :  { %s2425_s11 = sadd.s32 %s6790_s5, %s2422_s1  ;;  %s2432_s6 = sand.u32 7, %s6085_s14 }
 0x54b   :  { %s6791_s10 = sshll.u32 %s2429_s0, 4  ;;  %s2439_s20 = sshra.s32 %s8244_s2, 3 }
 0x54c   :  { %s2435_s17 = sadd.s32 %s6791_s10, %s2432_s6  ;;  %s2442_s4 = sand.u32 7, %s8244_s2 }
 0x54d   :  { %s6792_s25 = sshll.u32 %s2439_s20, 4  ;;  %s2396_s26 = scalar_lea.vmem [#allocation2], %s2395_s23 }
 0x54e   :  { %v2397_v11 = vld [vmem:[%s2396_s26] ss:$8 sm:$0x3]  ;;  %s2406_s16 = scalar_lea.vmem [#allocation2], %s2405_s12  ;;  %s2445_s3 = sadd.s32 %s6792_s25, %s2442_s4 }
 0x54f   :  { %v2407_v21 = vld [vmem:[%s2406_s16] ss:$8 sm:$0x3]  ;;  %s6091_s21 = sld [smem:[#allocation4 + $0x5a]]  ;;  %s2416_s8 = scalar_lea.vmem [#allocation2], %s2415_s29 }
 0x550   :  { %v2417_v22 = vld [vmem:[%s2416_s8] ss:$8 sm:$0x3]  ;;  %s6094_s22 = sld [smem:[#allocation4 + $0x5b]]  ;;  %s2426_s28 = scalar_lea.vmem [#allocation2], %s2425_s11  ;;  %v2458_v40 = vmax.f32 %v2397_v11, %v2407_v21 }
 0x551   :  { %v2427_v23 = vld [vmem:[%s2426_s28] ss:$8 sm:$0x3]  ;;  %s8248_s24 = sld [smem:[#allocation4 + $0x5c]]  ;;  %s2436_s30 = scalar_lea.vmem [#allocation2], %s2435_s17 }
 0x552   :  { %v2437_v31 = vld [vmem:[%s2436_s30] ss:$8 sm:$0x3]  ;;  %s8250_s14 = sld [smem:[#allocation4 + $0x5d]]  ;;  %s2446_s13 = scalar_lea.vmem [#allocation2], %s2445_s3  ;;  %v2459_v42 = vmax.f32 %v2417_v22, %v2427_v23 }
 0x553   :  { %v2447_v33 = vld [vmem:[%s2446_s13] ss:$8 sm:$0x3]  ;;  %s8252_s2 = sld [smem:[#allocation4 + $0x5e]] }
 0x554   :  { %s8254_s23 = sld [smem:[#allocation4 + $0x5f]]  ;;  %v2460_v45 = vmax.f32 %v2437_v31, %v2447_v33  ;;  %v2461_v46 = vmax.f32 %v2458_v40, %v2459_v42 }
 0x555   :  { %s2449_s18 = sshra.s32 %s6091_s21, 3  ;;  %s2452_s19 = sand.u32 7, %s6091_s21 }
 0x556   :  { %s6793_s12 = sshll.u32 %s2449_s18, 4  ;;  %s2471_s7 = sshra.s32 %s6094_s22, 3 }
 0x557   :  { %s2455_s9 = sadd.s32 %s6793_s12, %s2452_s19  ;;  %s2474_s27 = sand.u32 7, %s6094_s22 }
 0x558   :  { %s6794_s15 = sshll.u32 %s2471_s7, 4  ;;  %s2456_s29 = scalar_lea.vmem [#allocation2], %s2455_s9 }
 0x559   :  { %v2457_v47 = vld [vmem:[%s2456_s29] ss:$8 sm:$0x3]  ;;  %s2481_s1 = sshra.s32 %s8248_s24, 3  ;;  %s2477_s5 = sadd.s32 %s6794_s15, %s2474_s27 }
 0x55a   :  { %v2462_v48 = vmax.f32 %v2460_v45, %v2457_v47  ;;  %s2484_s11 = sand.u32 7, %s8248_s24  ;;  %s6795_s0 = sshll.u32 %s2481_s1, 4 }
 0x55b   :  { %s2491_s6 = sshra.s32 %s8250_s14, 3  ;;  %s2494_s10 = sand.u32 7, %s8250_s14 }
 0x55c   :  { %v2463_v49 = vmax.f32 %v2461_v46, %v2462_v48  ;;  %s6796_s20 = sshll.u32 %s2491_s6, 4  ;;  %s2487_s17 = sadd.s32 %s6795_s0, %s2484_s11 }
 0x55d   :  { %s2501_s4 = sshra.s32 %s8252_s2, 3  ;;  %s2497_s25 = sadd.s32 %s6796_s20, %s2494_s10 }
 0x55e   :  { %v2465_v50 = vrot.slane %v2463_v49, 1  ;;  %s2504_s26 = sand.u32 7, %s8252_s2  ;;  %s6797_s16 = sshll.u32 %s2501_s4, 4 }
 0x55f   :  { %s2511_s3 = sshra.s32 %s8254_s23, 3  ;;  %s2507_s21 = sadd.s32 %s6797_s16, %s2504_s26 }
 0x560   :  { %v2467_v51 = vadd.f32 %v2465_v50, %v2463_v49  ;;  %s2514_s8 = sand.u32 7, %s8254_s23  ;;  %s6798_s22 = sshll.u32 %s2511_s3, 4 }
 0x561   :  { %s6109_s28 = sld [smem:[#allocation4 + $0x60]]  ;;  %s2478_s30 = scalar_lea.vmem [#allocation2], %s2477_s5 }
 0x562   :  { %v2468_v52 = vmax.f32 %v2467_v51, 0.0  ;;  %s6112_s24 = sld [smem:[#allocation4 + $0x61]]  ;;  %v2479_v53 = vld [vmem:[%s2478_s30] ss:$8 sm:$0x3]  ;;  %s2488_s13 = scalar_lea.vmem [#allocation2], %s2487_s17 }
 0x563   :  { %v2489_v54 = vld [vmem:[%s2488_s13] ss:$8 sm:$0x3]  ;;  %s2517_s14 = sadd.s32 %s6798_s22, %s2514_s8  ;;  %s8264_s18 = sld [smem:[#allocation4 + $0x62]] }
 0x564   :  { %2469 = vst [vmem:[#allocation13 + $0xc] sm:$0x1] %v2468_v52  ;;  %s2498_s19 = scalar_lea.vmem [#allocation2], %s2497_s25  ;;  %s8266_s2 = sld [smem:[#allocation4 + $0x63]]  ;;  %v2540_v62 = vmax.f32 %v2479_v53, %v2489_v54 }
 0x565   :  { %v2499_v57 = vld [vmem:[%s2498_s19] ss:$8 sm:$0x3]  ;;  %s2508_s12 = scalar_lea.vmem [#allocation2], %s2507_s21  ;;  %s8268_s7 = sld [smem:[#allocation4 + $0x64]] }
 0x566   :  { %v2509_v58 = vld [vmem:[%s2508_s12] ss:$8 sm:$0x3]  ;;  %s8270_s23 = sld [smem:[#allocation4 + $0x65]]  ;;  %s2518_s1 = scalar_lea.vmem [#allocation2], %s2517_s14 }
 0x567   :  { %s2521_s9 = sshra.s32 %s6109_s28, 3  ;;  %s2524_s27 = sand.u32 7, %s6109_s28  ;;  %v2541_v63 = vmax.f32 %v2499_v57, %v2509_v58  ;;  %v2519_v0 = vld [vmem:[%s2518_s1] ss:$8 sm:$0x3] }
 0x568   :  { %s6799_s15 = sshll.u32 %s2521_s9, 4  ;;  %s2531_s29 = sshra.s32 %s6112_s24, 3 }
 0x569   :  { %s2527_s5 = sadd.s32 %s6799_s15, %s2524_s27  ;;  %s2534_s11 = sand.u32 7, %s6112_s24  ;;  %v2543_v39 = vmax.f32 %v2540_v62, %v2541_v63 }
 0x56a   :  { %s6800_s0 = sshll.u32 %s2531_s29, 4  ;;  %s2528_s6 = scalar_lea.vmem [#allocation2], %s2527_s5 }
 0x56b   :  { %v2529_v14 = vld [vmem:[%s2528_s6] ss:$8 sm:$0x3]  ;;  %s2537_s10 = sadd.s32 %s6800_s0, %s2534_s11  ;;  %s2553_s20 = sshra.s32 %s8264_s18, 3 }
 0x56c   :  { %v2542_v29 = vmax.f32 %v2519_v0, %v2529_v14  ;;  %s2556_s17 = sand.u32 7, %s8264_s18  ;;  %s2538_s4 = scalar_lea.vmem [#allocation2], %s2537_s10 }
 0x56d   :  { %v2539_v8 = vld [vmem:[%s2538_s4] ss:$8 sm:$0x3]  ;;  %s6801_s25 = sshll.u32 %s2553_s20, 4  ;;  %s2563_s26 = sshra.s32 %s8266_s2, 3 }
 0x56e   :  { %v2544_v24 = vmax.f32 %v2542_v29, %v2539_v8  ;;  %s2559_s16 = sadd.s32 %s6801_s25, %s2556_s17  ;;  %s2566_s3 = sand.u32 7, %s8266_s2 }
 0x56f   :  { %s2573_s21 = sshra.s32 %s8268_s7, 3  ;;  %s6802_s8 = sshll.u32 %s2563_s26, 4 }
 0x570   :  { %v2545_v26 = vmax.f32 %v2543_v39, %v2544_v24  ;;  %s2576_s22 = sand.u32 7, %s8268_s7  ;;  %s6803_s28 = sshll.u32 %s2573_s21, 4 }
 0x571   :  { %s2583_s24 = sshra.s32 %s8270_s23, 3  ;;  %s2586_s30 = sand.u32 7, %s8270_s23 }
 0x572   :  { %v2547_v35 = vrot.slane %v2545_v26, 1  ;;  %s2569_s13 = sadd.s32 %s6802_s8, %s2566_s3  ;;  %s6804_s14 = sshll.u32 %s2583_s24, 4 }
 0x573   :  { %s2579_s19 = sadd.s32 %s6803_s28, %s2576_s22  ;;  %s6127_s18 = sld [smem:[#allocation4 + $0x66]] }
 0x574   :  { %v2549_v7 = vadd.f32 %v2547_v35, %v2545_v26  ;;  %s2589_s12 = sadd.s32 %s6804_s14, %s2586_s30  ;;  %s6130_s9 = sld [smem:[#allocation4 + $0x67]] }
 0x575   :  { %s8280_s27 = sld [smem:[#allocation4 + $0x68]]  ;;  %s2560_s7 = scalar_lea.vmem [#allocation2], %s2559_s16 }
 0x576   :  { %v2550_v36 = vmax.f32 %v2549_v7, 0.0  ;;  %s8282_s15 = sld [smem:[#allocation4 + $0x69]]  ;;  %v2561_v43 = vld [vmem:[%s2560_s7] ss:$8 sm:$0x3]  ;;  %s2570_s29 = scalar_lea.vmem [#allocation2], %s2569_s13 }
 0x577   :  { %s8284_s2 = sld [smem:[#allocation4 + $0x6a]]  ;;  %v2571_v9 = vld [vmem:[%s2570_s29] ss:$8 sm:$0x3]  ;;  %s2580_s1 = scalar_lea.vmem [#allocation2], %s2579_s19 }
 0x578   :  { %2551 = vst [vmem:[#allocation13 + $0xd] sm:$0x1] %v2550_v36  ;;  %s8286_s23 = sld [smem:[#allocation4 + $0x6b]]  ;;  %v2581_v13 = vld [vmem:[%s2580_s1] ss:$8 sm:$0x3]  ;;  %v2622_v44 = vmax.f32 %v2561_v43, %v2571_v9 }
 0x579   :  { %s2593_s5 = sshra.s32 %s6127_s18, 3  ;;  %s2596_s11 = sand.u32 7, %s6127_s18 }
 0x57a   :  { %s2590_s0 = scalar_lea.vmem [#allocation2], %s2589_s12  ;;  %s6805_s6 = sshll.u32 %s2593_s5, 4 }
 0x57b   :  { %v2591_v37 = vld [vmem:[%s2590_s0] ss:$8 sm:$0x3]  ;;  %s2603_s10 = sshra.s32 %s6130_s9, 3  ;;  %s2599_s20 = sadd.s32 %s6805_s6, %s2596_s11 }
 0x57c   :  { %s2606_s17 = sand.u32 7, %s6130_s9  ;;  %s6806_s4 = sshll.u32 %s2603_s10, 4  ;;  %v2623_v34 = vmax.f32 %v2581_v13, %v2591_v37 }
 0x57d   :  { %s2600_s25 = scalar_lea.vmem [#allocation2], %s2599_s20  ;;  %s2609_s26 = sadd.s32 %s6806_s4, %s2606_s17 }
 0x57e   :  { %v2601_v41 = vld [vmem:[%s2600_s25] ss:$8 sm:$0x3]  ;;  %s2613_s16 = sshra.s32 %s8280_s27, 3  ;;  %s2616_s3 = sand.u32 7, %s8280_s27  ;;  %v2625_v60 = vmax.f32 %v2622_v44, %v2623_v34 }
 0x57f   :  { %s2610_s21 = scalar_lea.vmem [#allocation2], %s2609_s26  ;;  %s6807_s8 = sshll.u32 %s2613_s16, 4 }
 0x580   :  { %v2611_v55 = vld [vmem:[%s2610_s21] ss:$8 sm:$0x3]  ;;  %s2619_s22 = sadd.s32 %s6807_s8, %s2616_s3  ;;  %s2635_s28 = sshra.s32 %s8282_s15, 3 }
 0x581   :  { %v2624_v59 = vmax.f32 %v2601_v41, %v2611_v55  ;;  %s2620_s24 = scalar_lea.vmem [#allocation2], %s2619_s22  ;;  %s2645_s30 = sshra.s32 %s8284_s2, 3 }
 0x582   :  { %v2621_v4 = vld [vmem:[%s2620_s24] ss:$8 sm:$0x3]  ;;  %s2638_s13 = sand.u32 7, %s8282_s15  ;;  %s6808_s14 = sshll.u32 %s2635_s28, 4 }
 0x583   :  { %v2626_v61 = vmax.f32 %v2624_v59, %v2621_v4  ;;  %s2655_s19 = sshra.s32 %s8286_s23, 3  ;;  %s2648_s18 = sand.u32 7, %s8284_s2 }
 0x584   :  { %s6809_s12 = sshll.u32 %s2645_s30, 4  ;;  %s2658_s9 = sand.u32 7, %s8286_s23 }
 0x585   :  { %v2627_v5 = vmax.f32 %v2625_v60, %v2626_v61  ;;  %s6810_s27 = sshll.u32 %s2655_s19, 4  ;;  %s2641_s7 = sadd.s32 %s6808_s14, %s2638_s13 }
 0x586   :  { %s6145_s29 = sld [smem:[#allocation4 + $0x6c]]  ;;  %s2651_s1 = sadd.s32 %s6809_s12, %s2648_s18 }
 0x587   :  { %v2629_v10 = vrot.slane %v2627_v5, 1  ;;  %s6148_s5 = sld [smem:[#allocation4 + $0x6d]]  ;;  %s2661_s11 = sadd.s32 %s6810_s27, %s2658_s9 }
 0x588   :  { %s8296_s0 = sld [smem:[#allocation4 + $0x6e]]  ;;  %s2642_s20 = scalar_lea.vmem [#allocation2], %s2641_s7 }
 0x589   :  { %v2631_v12 = vadd.f32 %v2629_v10, %v2627_v5  ;;  %s8298_s6 = sld [smem:[#allocation4 + $0x6f]]  ;;  %v2643_v56 = vld [vmem:[%s2642_s20] ss:$8 sm:$0x3]  ;;  %s2652_s25 = scalar_lea.vmem [#allocation2], %s2651_s1 }
 0x58a   :  { %s8300_s15 = sld [smem:[#allocation4 + $0x70]]  ;;  %v2653_v15 = vld [vmem:[%s2652_s25] ss:$8 sm:$0x3]  ;;  %s2662_s3 = scalar_lea.vmem [#allocation2], %s2661_s11 }
 0x58b   :  { %v2632_v3 = vmax.f32 %v2631_v12, 0.0  ;;  %s8302_s10 = sld [smem:[#allocation4 + $0x71]]  ;;  %v2663_v17 = vld [vmem:[%s2662_s3] ss:$8 sm:$0x3]  ;;  %v2704_v2 = vmax.f32 %v2643_v56, %v2653_v15 }
 0x58c   :  { %s2665_s2 = sshra.s32 %s6145_s29, 3  ;;  %s2668_s23 = sand.u32 7, %s6145_s29 }
 0x58d   :  { %2633 = vst [vmem:[#allocation13 + $0xe] sm:$0x1] %v2632_v3  ;;  %s6811_s17 = sshll.u32 %s2665_s2, 4  ;;  %s2675_s4 = sshra.s32 %s6148_s5, 3 }
 0x58e   :  { %s2671_s26 = sadd.s32 %s6811_s17, %s2668_s23  ;;  %s2678_s16 = sand.u32 7, %s6148_s5 }
 0x58f   :  { %s6812_s21 = sshll.u32 %s2675_s4, 4  ;;  %s2672_s8 = scalar_lea.vmem [#allocation2], %s2671_s26 }
 0x590   :  { %v2673_v18 = vld [vmem:[%s2672_s8] ss:$8 sm:$0x3]  ;;  %s2681_s22 = sadd.s32 %s6812_s21, %s2678_s16  ;;  %s2685_s28 = sshra.s32 %s8296_s0, 3 }
 0x591   :  { %s2688_s24 = sand.u32 7, %s8296_s0  ;;  %s6813_s30 = sshll.u32 %s2685_s28, 4  ;;  %v2705_v16 = vmax.f32 %v2663_v17, %v2673_v18 }
 0x592   :  { %s2695_s13 = sshra.s32 %s8298_s6, 3  ;;  %s2682_s14 = scalar_lea.vmem [#allocation2], %s2681_s22 }
 0x593   :  { %v2683_v19 = vld [vmem:[%s2682_s14] ss:$8 sm:$0x3]  ;;  %s2691_s19 = sadd.s32 %s6813_s30, %s2688_s24  ;;  %s2698_s18 = sand.u32 7, %s8298_s6  ;;  %v2707_v20 = vmax.f32 %v2704_v2, %v2705_v16 }
 0x594   :  { %s6814_s12 = sshll.u32 %s2695_s13, 4  ;;  %s2692_s9 = scalar_lea.vmem [#allocation2], %s2691_s19 }
 0x595   :  { %v2693_v38 = vld [vmem:[%s2692_s9] ss:$8 sm:$0x3]  ;;  %s2701_s27 = sadd.s32 %s6814_s12, %s2698_s18  ;;  %s2717_s7 = sshra.s32 %s8300_s15, 3 }
 0x596   :  { %v2706_v27 = vmax.f32 %v2683_v19, %v2693_v38  ;;  %s2702_s29 = scalar_lea.vmem [#allocation2], %s2701_s27  ;;  %s2727_s1 = sshra.s32 %s8302_s10, 3 }
 0x597   :  { %v2703_v30 = vld [vmem:[%s2702_s29] ss:$8 sm:$0x3]  ;;  %s2720_s5 = sand.u32 7, %s8300_s15  ;;  %s6815_s11 = sshll.u32 %s2717_s7, 4 }
 0x598   :  { %v2708_v25 = vmax.f32 %v2706_v27, %v2703_v30  ;;  %s2730_s0 = sand.u32 7, %s8302_s10  ;;  %s6816_s2 = sshll.u32 %s2727_s1, 4 }
 0x599   :  { %s6163_s23 = sld [smem:[#allocation4 + $0x72]]  ;;  %s2723_s20 = sadd.s32 %s6815_s11, %s2720_s5 }
 0x59a   :  { %v2709_v28 = vmax.f32 %v2707_v20, %v2708_v25  ;;  %s6166_s17 = sld [smem:[#allocation4 + $0x73]]  ;;  %s2733_s6 = sadd.s32 %s6816_s2, %s2730_s0 }
 0x59b   :  { %s6169_s4 = sld [smem:[#allocation4 + $0x74]]  ;;  %s2724_s24 = scalar_lea.vmem [#allocation2], %s2723_s20 }
 0x59c   :  { %v2711_v32 = vrot.slane %v2709_v28, 1  ;;  %s8312_s25 = sld [smem:[#allocation4 + $0x75]]  ;;  %v2725_v11 = vld [vmem:[%s2724_s24] ss:$8 sm:$0x3]  ;;  %s2734_s30 = scalar_lea.vmem [#allocation2], %s2733_s6 }
 0x59d   :  { %s8314_s26 = sld [smem:[#allocation4 + $0x76]]  ;;  %v2735_v21 = vld [vmem:[%s2734_s30] ss:$8 sm:$0x3] }
 0x59e   :  { %v2713_v6 = vadd.f32 %v2711_v32, %v2709_v28  ;;  %s8316_s16 = sld [smem:[#allocation4 + $0x77]]  ;;  %v2786_v33 = vmax.f32 %v2725_v11, %v2735_v21 }
 0x59f   :  { %s2737_s3 = sshra.s32 %s6163_s23, 3  ;;  %s2740_s15 = sand.u32 7, %s6163_s23 }
 0x5a0   :  { %v2714_v1 = vmax.f32 %v2713_v6, 0.0  ;;  %s6817_s21 = sshll.u32 %s2737_s3, 4  ;;  %s2747_s10 = sshra.s32 %s6166_s17, 3 }
 0x5a1   :  { %s2743_s8 = sadd.s32 %s6817_s21, %s2740_s15  ;;  %s2750_s22 = sand.u32 7, %s6166_s17 }
 0x5a2   :  { %2715 = vst [vmem:[#allocation13 + $0xf] sm:$0x1] %v2714_v1  ;;  %s6818_s28 = sshll.u32 %s2747_s10, 4  ;;  %s2757_s14 = sshra.s32 %s6169_s4, 3 }
 0x5a3   :  { %s2753_s13 = sadd.s32 %s6818_s28, %s2750_s22  ;;  %s2744_s19 = scalar_lea.vmem [#allocation2], %s2743_s8 }
 0x5a4   :  { %v2745_v22 = vld [vmem:[%s2744_s19] ss:$8 sm:$0x3]  ;;  %s2760_s18 = sand.u32 7, %s6169_s4  ;;  %s2754_s12 = scalar_lea.vmem [#allocation2], %s2753_s13 }
 0x5a5   :  { %v2755_v23 = vld [vmem:[%s2754_s12] ss:$8 sm:$0x3]  ;;  %s6819_s9 = sshll.u32 %s2757_s14, 4  ;;  %s2767_s27 = sshra.s32 %s8312_s25, 3 }
 0x5a6   :  { %s2763_s7 = sadd.s32 %s6819_s9, %s2760_s18  ;;  %s2770_s29 = sand.u32 7, %s8312_s25  ;;  %v2787_v40 = vmax.f32 %v2745_v22, %v2755_v23 }
 0x5a7   :  { %s6820_s1 = sshll.u32 %s2767_s27, 4  ;;  %s2764_s5 = scalar_lea.vmem [#allocation2], %s2763_s7 }
 0x5a8   :  { %v2765_v31 = vld [vmem:[%s2764_s5] ss:$8 sm:$0x3]  ;;  %s2773_s11 = sadd.s32 %s6820_s1, %s2770_s29  ;;  %s2777_s0 = sshra.s32 %s8314_s26, 3  ;;  %v2789_v46 = vmax.f32 %v2786_v33, %v2787_v40 }
 0x5a9   :  { %s2780_s2 = sand.u32 7, %s8314_s26  ;;  %s2774_s23 = scalar_lea.vmem [#allocation2], %s2773_s11 }
 0x5aa   :  { %v2775_v42 = vld [vmem:[%s2774_s23] ss:$8 sm:$0x3]  ;;  %s6821_s20 = sshll.u32 %s2777_s0, 4  ;;  %s2799_s17 = sshra.s32 %s8316_s16, 3 }
 0x5ab   :  { %s2783_s6 = sadd.s32 %s6821_s20, %s2780_s2  ;;  %v2788_v45 = vmax.f32 %v2765_v31, %v2775_v42  ;;  %s2802_s4 = sand.u32 7, %s8316_s16 }
 0x5ac   :  { %s6822_s3 = sshll.u32 %s2799_s17, 4  ;;  %s2784_s15 = scalar_lea.vmem [#allocation2], %s2783_s6 }
 0x5ad   :  { %v2785_v47 = vld [vmem:[%s2784_s15] ss:$8 sm:$0x3]  ;;  %s6181_s25 = sld [smem:[#allocation4 + $0x78]]  ;;  %s2805_s10 = sadd.s32 %s6822_s3, %s2802_s4 }
 0x5ae   :  { %v2790_v48 = vmax.f32 %v2788_v45, %v2785_v47  ;;  %s6184_s21 = sld [smem:[#allocation4 + $0x79]]  ;;  %s2806_s7 = scalar_lea.vmem [#allocation2], %s2805_s10 }
 0x5af   :  { %s6187_s8 = sld [smem:[#allocation4 + $0x7a]]  ;;  %v2807_v53 = vld [vmem:[%s2806_s7] ss:$8 sm:$0x3] }
 0x5b0   :  { %v2791_v49 = vmax.f32 %v2789_v46, %v2790_v48  ;;  %s8324_s22 = sld [smem:[#allocation4 + $0x7b]] }
 0x5b1   :  { %s8326_s26 = sld [smem:[#allocation4 + $0x7c]] }
 0x5b2   :  { %v2793_v50 = vrot.slane %v2791_v49, 1  ;;  %s8328_s28 = sld [smem:[#allocation4 + $0x7d]] }
 0x5b3   :  { %s2809_s24 = sshra.s32 %s6181_s25, 3  ;;  %s2812_s16 = sand.u32 7, %s6181_s25 }
 0x5b4   :  { %v2795_v51 = vadd.f32 %v2793_v50, %v2791_v49  ;;  %s6823_s30 = sshll.u32 %s2809_s24, 4  ;;  %s2819_s13 = sshra.s32 %s6184_s21, 3 }
 0x5b5   :  { %s2815_s14 = sadd.s32 %s6823_s30, %s2812_s16  ;;  %s2822_s19 = sand.u32 7, %s6184_s21 }
 0x5b6   :  { %v2796_v52 = vmax.f32 %v2795_v51, 0.0  ;;  %s6824_s18 = sshll.u32 %s2819_s13, 4  ;;  %s2829_s9 = sshra.s32 %s6187_s8, 3 }
 0x5b7   :  { %s2825_s12 = sadd.s32 %s6824_s18, %s2822_s19  ;;  %s2832_s27 = sand.u32 7, %s6187_s8 }
 0x5b8   :  { %2797 = vst [vmem:[#allocation13 + $0x10] sm:$0x1] %v2796_v52  ;;  %s6825_s29 = sshll.u32 %s2829_s9, 4  ;;  %s2839_s1 = sshra.s32 %s8324_s22, 3 }
 0x5b9   :  { %s2816_s5 = scalar_lea.vmem [#allocation2], %s2815_s14  ;;  %s2835_s11 = sadd.s32 %s6825_s29, %s2832_s27 }
 0x5ba   :  { %v2817_v54 = vld [vmem:[%s2816_s5] ss:$8 sm:$0x3]  ;;  %s2842_s0 = sand.u32 7, %s8324_s22  ;;  %s2826_s2 = scalar_lea.vmem [#allocation2], %s2825_s12 }
 0x5bb   :  { %v2827_v57 = vld [vmem:[%s2826_s2] ss:$8 sm:$0x3]  ;;  %s6826_s23 = sshll.u32 %s2839_s1, 4  ;;  %s2836_s20 = scalar_lea.vmem [#allocation2], %s2835_s11  ;;  %v2868_v62 = vmax.f32 %v2807_v53, %v2817_v54 }
 0x5bc   :  { %v2837_v58 = vld [vmem:[%s2836_s20] ss:$8 sm:$0x3]  ;;  %s2845_s17 = sadd.s32 %s6826_s23, %s2842_s0  ;;  %s2849_s6 = sshra.s32 %s8326_s26, 3 }
 0x5bd   :  { %s2852_s4 = sand.u32 7, %s8326_s26  ;;  %s6827_s3 = sshll.u32 %s2849_s6, 4  ;;  %v2869_v63 = vmax.f32 %v2827_v57, %v2837_v58 }
 0x5be   :  { %s2859_s15 = sshra.s32 %s8328_s28, 3  ;;  %s2846_s25 = scalar_lea.vmem [#allocation2], %s2845_s17 }
 0x5bf   :  { %v2847_v0 = vld [vmem:[%s2846_s25] ss:$8 sm:$0x3]  ;;  %s2855_s21 = sadd.s32 %s6827_s3, %s2852_s4  ;;  %s2862_s10 = sand.u32 7, %s8328_s28  ;;  %v2871_v39 = vmax.f32 %v2868_v62, %v2869_v63 }
 0x5c0   :  { %s6828_s8 = sshll.u32 %s2859_s15, 4  ;;  %s2856_s24 = scalar_lea.vmem [#allocation2], %s2855_s21 }
 0x5c1   :  { %v2857_v14 = vld [vmem:[%s2856_s24] ss:$8 sm:$0x3]  ;;  %s2865_s22 = sadd.s32 %s6828_s8, %s2862_s10  ;;  %s6199_s16 = sld [smem:[#allocation4 + $0x7e]] }
 0x5c2   :  { %v2870_v29 = vmax.f32 %v2847_v0, %v2857_v14  ;;  %s6202_s30 = sld [smem:[#allocation4 + $0x7f]]  ;;  %s2866_s13 = scalar_lea.vmem [#allocation2], %s2865_s22 }
 0x5c3   :  { %v2867_v8 = vld [vmem:[%s2866_s13] ss:$8 sm:$0x3]  ;;  %s6205_s14 = sld [smem:[#allocation4 + $0x80]] }
 0x5c4   :  { %v2872_v24 = vmax.f32 %v2870_v29, %v2867_v8  ;;  %s6208_s26 = sld [smem:[#allocation4 + $0x81]] }
 0x5c5   :  { %s6211_s19 = sld [smem:[#allocation4 + $0x82]] }
 0x5c6   :  { %v2873_v26 = vmax.f32 %v2871_v39, %v2872_v24  ;;  %s8336_s18 = sld [smem:[#allocation4 + $0x83]] }
 0x5c7   :  { %s2881_s12 = sshra.s32 %s6199_s16, 3  ;;  %s2884_s9 = sand.u32 7, %s6199_s16 }
 0x5c8   :  { %v2875_v35 = vrot.slane %v2873_v26, 1  ;;  %s6829_s28 = sshll.u32 %s2881_s12, 4  ;;  %s2891_s27 = sshra.s32 %s6202_s30, 3 }
 0x5c9   :  { %s2887_s7 = sadd.s32 %s6829_s28, %s2884_s9  ;;  %s2894_s29 = sand.u32 7, %s6202_s30 }
 0x5ca   :  { %v2877_v7 = vadd.f32 %v2875_v35, %v2873_v26  ;;  %s6830_s1 = sshll.u32 %s2891_s27, 4  ;;  %s2901_s11 = sshra.s32 %s6205_s14, 3 }
 0x5cb   :  { %s2897_s5 = sadd.s32 %s6830_s1, %s2894_s29  ;;  %s2904_s0 = sand.u32 7, %s6205_s14 }
 0x5cc   :  { %v2878_v36 = vmax.f32 %v2877_v7, 0.0  ;;  %s6831_s2 = sshll.u32 %s2901_s11, 4  ;;  %s2911_s23 = sshra.s32 %s6208_s26, 3 }
 0x5cd   :  { %s2907_s20 = sadd.s32 %s6831_s2, %s2904_s0  ;;  %s2914_s17 = sand.u32 7, %s6208_s26 }
 0x5ce   :  { %2879 = vst [vmem:[#allocation13 + $0x11] sm:$0x1] %v2878_v36  ;;  %s6832_s6 = sshll.u32 %s2911_s23, 4  ;;  %s2921_s3 = sshra.s32 %s6211_s19, 3 }
 0x5cf   :  { %s2917_s4 = sadd.s32 %s6832_s6, %s2914_s17  ;;  %s2924_s15 = sand.u32 7, %s6211_s19 }
 0x5d0   :  { %s6833_s25 = sshll.u32 %s2921_s3, 4  ;;  %s2931_s21 = sshra.s32 %s8336_s18, 3 }
 0x5d1   :  { %s2927_s10 = sadd.s32 %s6833_s25, %s2924_s15  ;;  %s2934_s8 = sand.u32 7, %s8336_s18 }
 0x5d2   :  { %s6834_s24 = sshll.u32 %s2931_s21, 4  ;;  %s2888_s22 = scalar_lea.vmem [#allocation2], %s2887_s7 }
 0x5d3   :  { %v2889_v43 = vld [vmem:[%s2888_s22] ss:$8 sm:$0x3]  ;;  %s2898_s16 = scalar_lea.vmem [#allocation2], %s2897_s5  ;;  %s2937_s30 = sadd.s32 %s6834_s24, %s2934_s8 }
 0x5d4   :  { %v2899_v9 = vld [vmem:[%s2898_s16] ss:$8 sm:$0x3]  ;;  %s6217_s13 = sld [smem:[#allocation4 + $0x84]]  ;;  %s2908_s14 = scalar_lea.vmem [#allocation2], %s2907_s20 }
 0x5d5   :  { %v2909_v13 = vld [vmem:[%s2908_s14] ss:$8 sm:$0x3]  ;;  %s6220_s12 = sld [smem:[#allocation4 + $0x85]]  ;;  %s2918_s9 = scalar_lea.vmem [#allocation2], %s2917_s4  ;;  %v2950_v34 = vmax.f32 %v2889_v43, %v2899_v9 }
 0x5d6   :  { %v2919_v37 = vld [vmem:[%s2918_s9] ss:$8 sm:$0x3]  ;;  %s8340_s26 = sld [smem:[#allocation4 + $0x86]]  ;;  %s2928_s28 = scalar_lea.vmem [#allocation2], %s2927_s10 }
 0x5d7   :  { %v2929_v41 = vld [vmem:[%s2928_s28] ss:$8 sm:$0x3]  ;;  %s8342_s19 = sld [smem:[#allocation4 + $0x87]]  ;;  %s2938_s27 = scalar_lea.vmem [#allocation2], %s2937_s30  ;;  %v2951_v55 = vmax.f32 %v2909_v13, %v2919_v37 }
 0x5d8   :  { %v2939_v44 = vld [vmem:[%s2938_s27] ss:$8 sm:$0x3]  ;;  %s8344_s18 = sld [smem:[#allocation4 + $0x88]] }
 0x5d9   :  { %s8346_s7 = sld [smem:[#allocation4 + $0x89]]  ;;  %v2952_v59 = vmax.f32 %v2929_v41, %v2939_v44  ;;  %v2953_v60 = vmax.f32 %v2950_v34, %v2951_v55 }
 0x5da   :  { %s2941_s29 = sshra.s32 %s6217_s13, 3  ;;  %s2944_s1 = sand.u32 7, %s6217_s13 }
 0x5db   :  { %s6835_s5 = sshll.u32 %s2941_s29, 4  ;;  %s2963_s11 = sshra.s32 %s6220_s12, 3 }
 0x5dc   :  { %s2947_s0 = sadd.s32 %s6835_s5, %s2944_s1  ;;  %s2966_s2 = sand.u32 7, %s6220_s12 }
 0x5dd   :  { %s6836_s23 = sshll.u32 %s2963_s11, 4  ;;  %s2948_s20 = scalar_lea.vmem [#allocation2], %s2947_s0 }
 0x5de   :  { %v2949_v4 = vld [vmem:[%s2948_s20] ss:$8 sm:$0x3]  ;;  %s2973_s17 = sshra.s32 %s8340_s26, 3  ;;  %s2969_s6 = sadd.s32 %s6836_s23, %s2966_s2 }
 0x5df   :  { %v2954_v61 = vmax.f32 %v2952_v59, %v2949_v4  ;;  %s2976_s4 = sand.u32 7, %s8340_s26  ;;  %s6837_s3 = sshll.u32 %s2973_s17, 4 }
 0x5e0   :  { %s2983_s15 = sshra.s32 %s8342_s19, 3  ;;  %s2986_s25 = sand.u32 7, %s8342_s19 }
 0x5e1   :  { %v2955_v5 = vmax.f32 %v2953_v60, %v2954_v61  ;;  %s6838_s21 = sshll.u32 %s2983_s15, 4  ;;  %s2979_s10 = sadd.s32 %s6837_s3, %s2976_s4 }
 0x5e2   :  { %s2993_s8 = sshra.s32 %s8344_s18, 3  ;;  %s2989_s24 = sadd.s32 %s6838_s21, %s2986_s25 }
 0x5e3   :  { %v2957_v10 = vrot.slane %v2955_v5, 1  ;;  %s2996_s22 = sand.u32 7, %s8344_s18  ;;  %s6839_s16 = sshll.u32 %s2993_s8, 4 }
 0x5e4   :  { %s3003_s30 = sshra.s32 %s8346_s7, 3  ;;  %s2999_s13 = sadd.s32 %s6839_s16, %s2996_s22 }
 0x5e5   :  { %v2959_v12 = vadd.f32 %v2957_v10, %v2955_v5  ;;  %s3006_s14 = sand.u32 7, %s8346_s7  ;;  %s6840_s12 = sshll.u32 %s3003_s30, 4 }
 0x5e6   :  { %s6235_s9 = sld [smem:[#allocation4 + $0x8a]]  ;;  %s2970_s28 = scalar_lea.vmem [#allocation2], %s2969_s6 }
 0x5e7   :  { %v2960_v3 = vmax.f32 %v2959_v12, 0.0  ;;  %s6238_s26 = sld [smem:[#allocation4 + $0x8b]]  ;;  %v2971_v56 = vld [vmem:[%s2970_s28] ss:$8 sm:$0x3]  ;;  %s2980_s27 = scalar_lea.vmem [#allocation2], %s2979_s10 }
 0x5e8   :  { %v2981_v15 = vld [vmem:[%s2980_s27] ss:$8 sm:$0x3]  ;;  %s3009_s19 = sadd.s32 %s6840_s12, %s3006_s14  ;;  %s8356_s29 = sld [smem:[#allocation4 + $0x8c]] }
 0x5e9   :  { %2961 = vst [vmem:[#allocation13 + $0x12] sm:$0x1] %v2960_v3  ;;  %s2990_s1 = scalar_lea.vmem [#allocation2], %s2989_s24  ;;  %s8358_s18 = sld [smem:[#allocation4 + $0x8d]]  ;;  %v3032_v2 = vmax.f32 %v2971_v56, %v2981_v15 }
 0x5ea   :  { %v2991_v17 = vld [vmem:[%s2990_s1] ss:$8 sm:$0x3]  ;;  %s3000_s5 = scalar_lea.vmem [#allocation2], %s2999_s13  ;;  %s8360_s11 = sld [smem:[#allocation4 + $0x8e]] }
 0x5eb   :  { %v3001_v18 = vld [vmem:[%s3000_s5] ss:$8 sm:$0x3]  ;;  %s8362_s7 = sld [smem:[#allocation4 + $0x8f]]  ;;  %s3010_s17 = scalar_lea.vmem [#allocation2], %s3009_s19 }
 0x5ec   :  { %s3013_s0 = sshra.s32 %s6235_s9, 3  ;;  %s3016_s2 = sand.u32 7, %s6235_s9  ;;  %v3033_v16 = vmax.f32 %v2991_v17, %v3001_v18  ;;  %v3011_v19 = vld [vmem:[%s3010_s17] ss:$8 sm:$0x3] }
 0x5ed   :  { %s6841_s23 = sshll.u32 %s3013_s0, 4  ;;  %s3023_s20 = sshra.s32 %s6238_s26, 3 }
 0x5ee   :  { %s3019_s6 = sadd.s32 %s6841_s23, %s3016_s2  ;;  %s3026_s4 = sand.u32 7, %s6238_s26  ;;  %v3035_v20 = vmax.f32 %v3032_v2, %v3033_v16 }
 0x5ef   :  { %s6842_s3 = sshll.u32 %s3023_s20, 4  ;;  %s3020_s15 = scalar_lea.vmem [#allocation2], %s3019_s6 }
 0x5f0   :  { %v3021_v38 = vld [vmem:[%s3020_s15] ss:$8 sm:$0x3]  ;;  %s3029_s25 = sadd.s32 %s6842_s3, %s3026_s4  ;;  %s3045_s21 = sshra.s32 %s8356_s29, 3 }
 0x5f1   :  { %v3034_v27 = vmax.f32 %v3011_v19, %v3021_v38  ;;  %s3048_s10 = sand.u32 7, %s8356_s29  ;;  %s3030_s8 = scalar_lea.vmem [#allocation2], %s3029_s25 }
 0x5f2   :  { %v3031_v30 = vld [vmem:[%s3030_s8] ss:$8 sm:$0x3]  ;;  %s6843_s24 = sshll.u32 %s3045_s21, 4  ;;  %s3055_s22 = sshra.s32 %s8358_s18, 3 }
 0x5f3   :  { %v3036_v25 = vmax.f32 %v3034_v27, %v3031_v30  ;;  %s3051_s16 = sadd.s32 %s6843_s24, %s3048_s10  ;;  %s3058_s30 = sand.u32 7, %s8358_s18 }
 0x5f4   :  { %s3065_s13 = sshra.s32 %s8360_s11, 3  ;;  %s6844_s14 = sshll.u32 %s3055_s22, 4 }
 0x5f5   :  { %v3037_v28 = vmax.f32 %v3035_v20, %v3036_v25  ;;  %s3068_s12 = sand.u32 7, %s8360_s11  ;;  %s6845_s9 = sshll.u32 %s3065_s13, 4 }
 0x5f6   :  { %s3075_s26 = sshra.s32 %s8362_s7, 3  ;;  %s3078_s28 = sand.u32 7, %s8362_s7 }
 0x5f7   :  { %v3039_v32 = vrot.slane %v3037_v28, 1  ;;  %s3061_s27 = sadd.s32 %s6844_s14, %s3058_s30  ;;  %s6846_s19 = sshll.u32 %s3075_s26, 4 }
 0x5f8   :  { %s3071_s1 = sadd.s32 %s6845_s9, %s3068_s12  ;;  %s6253_s29 = sld [smem:[#allocation4 + $0x90]] }
 0x5f9   :  { %v3041_v6 = vadd.f32 %v3039_v32, %v3037_v28  ;;  %s3081_s5 = sadd.s32 %s6846_s19, %s3078_s28  ;;  %s6256_s0 = sld [smem:[#allocation4 + $0x91]] }
 0x5fa   :  { %s8372_s2 = sld [smem:[#allocation4 + $0x92]]  ;;  %s3052_s11 = scalar_lea.vmem [#allocation2], %s3051_s16 }
 0x5fb   :  { %v3042_v1 = vmax.f32 %v3041_v6, 0.0  ;;  %s8374_s23 = sld [smem:[#allocation4 + $0x93]]  ;;  %v3053_v11 = vld [vmem:[%s3052_s11] ss:$8 sm:$0x3]  ;;  %s3062_s20 = scalar_lea.vmem [#allocation2], %s3061_s27 }
 0x5fc   :  { %s8376_s18 = sld [smem:[#allocation4 + $0x94]]  ;;  %v3063_v21 = vld [vmem:[%s3062_s20] ss:$8 sm:$0x3]  ;;  %s3072_s17 = scalar_lea.vmem [#allocation2], %s3071_s1 }
 0x5fd   :  { %3043 = vst [vmem:[#allocation13 + $0x13] sm:$0x1] %v3042_v1  ;;  %s8378_s7 = sld [smem:[#allocation4 + $0x95]]  ;;  %v3073_v22 = vld [vmem:[%s3072_s17] ss:$8 sm:$0x3]  ;;  %v3114_v33 = vmax.f32 %v3053_v11, %v3063_v21 }
 0x5fe   :  { %s3085_s6 = sshra.s32 %s6253_s29, 3  ;;  %s3088_s4 = sand.u32 7, %s6253_s29 }
 0x5ff   :  { %s3082_s3 = scalar_lea.vmem [#allocation2], %s3081_s5  ;;  %s6847_s15 = sshll.u32 %s3085_s6, 4 }
 0x600   :  { %v3083_v23 = vld [vmem:[%s3082_s3] ss:$8 sm:$0x3]  ;;  %s3095_s25 = sshra.s32 %s6256_s0, 3  ;;  %s3091_s21 = sadd.s32 %s6847_s15, %s3088_s4 }
 0x601   :  { %s3098_s10 = sand.u32 7, %s6256_s0  ;;  %s6848_s8 = sshll.u32 %s3095_s25, 4  ;;  %v3115_v40 = vmax.f32 %v3073_v22, %v3083_v23 }
 0x602   :  { %s3092_s24 = scalar_lea.vmem [#allocation2], %s3091_s21  ;;  %s3101_s22 = sadd.s32 %s6848_s8, %s3098_s10 }
 0x603   :  { %v3093_v31 = vld [vmem:[%s3092_s24] ss:$8 sm:$0x3]  ;;  %s3105_s16 = sshra.s32 %s8372_s2, 3  ;;  %s3108_s30 = sand.u32 7, %s8372_s2  ;;  %v3117_v46 = vmax.f32 %v3114_v33, %v3115_v40 }
 0x604   :  { %s3102_s13 = scalar_lea.vmem [#allocation2], %s3101_s22  ;;  %s6849_s14 = sshll.u32 %s3105_s16, 4 }
 0x605   :  { %v3103_v42 = vld [vmem:[%s3102_s13] ss:$8 sm:$0x3]  ;;  %s3111_s12 = sadd.s32 %s6849_s14, %s3108_s30  ;;  %s3127_s9 = sshra.s32 %s8374_s23, 3 }
 0x606   :  { %v3116_v45 = vmax.f32 %v3093_v31, %v3103_v42  ;;  %s3112_s26 = scalar_lea.vmem [#allocation2], %s3111_s12  ;;  %s3137_s28 = sshra.s32 %s8376_s18, 3 }
 0x607   :  { %v3113_v47 = vld [vmem:[%s3112_s26] ss:$8 sm:$0x3]  ;;  %s3130_s27 = sand.u32 7, %s8374_s23  ;;  %s6850_s19 = sshll.u32 %s3127_s9, 4 }
 0x608   :  { %v3118_v48 = vmax.f32 %v3116_v45, %v3113_v47  ;;  %s3147_s1 = sshra.s32 %s8378_s7, 3  ;;  %s3140_s29 = sand.u32 7, %s8376_s18 }
 0x609   :  { %s6851_s5 = sshll.u32 %s3137_s28, 4  ;;  %s3150_s0 = sand.u32 7, %s8378_s7 }
 0x60a   :  { %v3119_v49 = vmax.f32 %v3117_v46, %v3118_v48  ;;  %s6852_s2 = sshll.u32 %s3147_s1, 4  ;;  %s3133_s11 = sadd.s32 %s6850_s19, %s3130_s27 }
 0x60b   :  { %s6271_s20 = sld [smem:[#allocation4 + $0x96]]  ;;  %s3143_s17 = sadd.s32 %s6851_s5, %s3140_s29 }
 0x60c   :  { %v3121_v50 = vrot.slane %v3119_v49, 1  ;;  %s6274_s6 = sld [smem:[#allocation4 + $0x97]]  ;;  %s3153_s4 = sadd.s32 %s6852_s2, %s3150_s0 }
 0x60d   :  { %s8388_s3 = sld [smem:[#allocation4 + $0x98]]  ;;  %s3134_s21 = scalar_lea.vmem [#allocation2], %s3133_s11 }
 0x60e   :  { %v3123_v51 = vadd.f32 %v3121_v50, %v3119_v49  ;;  %s8390_s15 = sld [smem:[#allocation4 + $0x99]]  ;;  %v3135_v53 = vld [vmem:[%s3134_s21] ss:$8 sm:$0x3]  ;;  %s3144_s24 = scalar_lea.vmem [#allocation2], %s3143_s17 }
 0x60f   :  { %s8392_s23 = sld [smem:[#allocation4 + $0x9a]]  ;;  %v3145_v54 = vld [vmem:[%s3144_s24] ss:$8 sm:$0x3]  ;;  %s3154_s30 = scalar_lea.vmem [#allocation2], %s3153_s4 }
 0x610   :  { %v3124_v52 = vmax.f32 %v3123_v51, 0.0  ;;  %s8394_s25 = sld [smem:[#allocation4 + $0x9b]]  ;;  %v3155_v57 = vld [vmem:[%s3154_s30] ss:$8 sm:$0x3]  ;;  %v3196_v62 = vmax.f32 %v3135_v53, %v3145_v54 }
 0x611   :  { %s3157_s18 = sshra.s32 %s6271_s20, 3  ;;  %s3160_s7 = sand.u32 7, %s6271_s20 }
 0x612   :  { %3125 = vst [vmem:[#allocation13 + $0x14] sm:$0x1] %v3124_v52  ;;  %s6853_s10 = sshll.u32 %s3157_s18, 4  ;;  %s3167_s8 = sshra.s32 %s6274_s6, 3 }
 0x613   :  { %s3163_s22 = sadd.s32 %s6853_s10, %s3160_s7  ;;  %s3170_s16 = sand.u32 7, %s6274_s6 }
 0x614   :  { %s6854_s13 = sshll.u32 %s3167_s8, 4  ;;  %s3164_s14 = scalar_lea.vmem [#allocation2], %s3163_s22 }
 0x615   :  { %v3165_v58 = vld [vmem:[%s3164_s14] ss:$8 sm:$0x3]  ;;  %s3173_s12 = sadd.s32 %s6854_s13, %s3170_s16  ;;  %s3177_s9 = sshra.s32 %s8388_s3, 3 }
 0x616   :  { %s3180_s26 = sand.u32 7, %s8388_s3  ;;  %s6855_s28 = sshll.u32 %s3177_s9, 4  ;;  %v3197_v63 = vmax.f32 %v3155_v57, %v3165_v58 }
 0x617   :  { %s3187_s27 = sshra.s32 %s8390_s15, 3  ;;  %s3174_s19 = scalar_lea.vmem [#allocation2], %s3173_s12 }
 0x618   :  { %v3175_v0 = vld [vmem:[%s3174_s19] ss:$8 sm:$0x3]  ;;  %s3183_s1 = sadd.s32 %s6855_s28, %s3180_s26  ;;  %s3190_s29 = sand.u32 7, %s8390_s15  ;;  %v3199_v39 = vmax.f32 %v3196_v62, %v3197_v63 }
 0x619   :  { %s6856_s5 = sshll.u32 %s3187_s27, 4  ;;  %s3184_s0 = scalar_lea.vmem [#allocation2], %s3183_s1 }
 0x61a   :  { %v3185_v14 = vld [vmem:[%s3184_s0] ss:$8 sm:$0x3]  ;;  %s3193_s2 = sadd.s32 %s6856_s5, %s3190_s29  ;;  %s3209_s11 = sshra.s32 %s8392_s23, 3 }
 0x61b   :  { %v3198_v29 = vmax.f32 %v3175_v0, %v3185_v14  ;;  %s3194_s20 = scalar_lea.vmem [#allocation2], %s3193_s2  ;;  %s3219_s17 = sshra.s32 %s8394_s25, 3 }
 0x61c   :  { %v3195_v8 = vld [vmem:[%s3194_s20] ss:$8 sm:$0x3]  ;;  %s3212_s6 = sand.u32 7, %s8392_s23  ;;  %s6857_s4 = sshll.u32 %s3209_s11, 4 }
 0x61d   :  { %v3200_v24 = vmax.f32 %v3198_v29, %v3195_v8  ;;  %s3222_s3 = sand.u32 7, %s8394_s25  ;;  %s6858_s18 = sshll.u32 %s3219_s17, 4 }
 0x61e   :  { %s6289_s7 = sld [smem:[#allocation4 + $0x9c]]  ;;  %s3215_s21 = sadd.s32 %s6857_s4, %s3212_s6 }
 0x61f   :  { %v3201_v26 = vmax.f32 %v3199_v39, %v3200_v24  ;;  %s6292_s10 = sld [smem:[#allocation4 + $0x9d]]  ;;  %s3225_s15 = sadd.s32 %s6858_s18, %s3222_s3 }
 0x620   :  { %s6295_s8 = sld [smem:[#allocation4 + $0x9e]]  ;;  %s3216_s26 = scalar_lea.vmem [#allocation2], %s3215_s21 }
 0x621   :  { %v3203_v35 = vrot.slane %v3201_v26, 1  ;;  %s8404_s24 = sld [smem:[#allocation4 + $0x9f]]  ;;  %v3217_v43 = vld [vmem:[%s3216_s26] ss:$8 sm:$0x3]  ;;  %s3226_s28 = scalar_lea.vmem [#allocation2], %s3225_s15 }
 0x622   :  { %s8406_s22 = sld [smem:[#allocation4 + $0xa0]]  ;;  %v3227_v9 = vld [vmem:[%s3226_s28] ss:$8 sm:$0x3] }
 0x623   :  { %v3205_v7 = vadd.f32 %v3203_v35, %v3201_v26  ;;  %s8408_s16 = sld [smem:[#allocation4 + $0xa1]]  ;;  %v3278_v44 = vmax.f32 %v3217_v43, %v3227_v9 }
 0x624   :  { %s3229_s30 = sshra.s32 %s6289_s7, 3  ;;  %s3232_s23 = sand.u32 7, %s6289_s7 }
 0x625   :  { %v3206_v36 = vmax.f32 %v3205_v7, 0.0  ;;  %s6859_s13 = sshll.u32 %s3229_s30, 4  ;;  %s3239_s25 = sshra.s32 %s6292_s10, 3 }
 0x626   :  { %s3235_s14 = sadd.s32 %s6859_s13, %s3232_s23  ;;  %s3242_s12 = sand.u32 7, %s6292_s10 }
 0x627   :  { %3207 = vst [vmem:[#allocation13 + $0x15] sm:$0x1] %v3206_v36  ;;  %s6860_s9 = sshll.u32 %s3239_s25, 4  ;;  %s3249_s19 = sshra.s32 %s6295_s8, 3 }
 0x628   :  { %s3245_s27 = sadd.s32 %s6860_s9, %s3242_s12  ;;  %s3236_s1 = scalar_lea.vmem [#allocation2], %s3235_s14 }
 0x629   :  { %v3237_v13 = vld [vmem:[%s3236_s1] ss:$8 sm:$0x3]  ;;  %s3252_s29 = sand.u32 7, %s6295_s8  ;;  %s3246_s5 = scalar_lea.vmem [#allocation2], %s3245_s27 }
 0x62a   :  { %v3247_v37 = vld [vmem:[%s3246_s5] ss:$8 sm:$0x3]  ;;  %s6861_s0 = sshll.u32 %s3249_s19, 4  ;;  %s3259_s2 = sshra.s32 %s8404_s24, 3 }
 0x62b   :  { %s3255_s11 = sadd.s32 %s6861_s0, %s3252_s29  ;;  %s3262_s20 = sand.u32 7, %s8404_s24  ;;  %v3279_v34 = vmax.f32 %v3237_v13, %v3247_v37 }
 0x62c   :  { %s6862_s17 = sshll.u32 %s3259_s2, 4  ;;  %s3256_s6 = scalar_lea.vmem [#allocation2], %s3255_s11 }
 0x62d   :  { %v3257_v41 = vld [vmem:[%s3256_s6] ss:$8 sm:$0x3]  ;;  %s3265_s4 = sadd.s32 %s6862_s17, %s3262_s20  ;;  %s3269_s3 = sshra.s32 %s8406_s22, 3  ;;  %v3281_v60 = vmax.f32 %v3278_v44, %v3279_v34 }
 0x62e   :  { %s3272_s18 = sand.u32 7, %s8406_s22  ;;  %s3266_s7 = scalar_lea.vmem [#allocation2], %s3265_s4 }
 0x62f   :  { %v3267_v55 = vld [vmem:[%s3266_s7] ss:$8 sm:$0x3]  ;;  %s6863_s21 = sshll.u32 %s3269_s3, 4  ;;  %s3291_s10 = sshra.s32 %s8408_s16, 3 }
 0x630   :  { %s3275_s15 = sadd.s32 %s6863_s21, %s3272_s18  ;;  %v3280_v59 = vmax.f32 %v3257_v41, %v3267_v55  ;;  %s3294_s8 = sand.u32 7, %s8408_s16 }
 0x631   :  { %s6864_s30 = sshll.u32 %s3291_s10, 4  ;;  %s3276_s23 = scalar_lea.vmem [#allocation2], %s3275_s15 }
 0x632   :  { %v3277_v4 = vld [vmem:[%s3276_s23] ss:$8 sm:$0x3]  ;;  %s6307_s24 = sld [smem:[#allocation4 + $0xa2]]  ;;  %s3297_s25 = sadd.s32 %s6864_s30, %s3294_s8 }
 0x633   :  { %v3282_v61 = vmax.f32 %v3280_v59, %v3277_v4  ;;  %s6310_s13 = sld [smem:[#allocation4 + $0xa3]]  ;;  %s3298_s11 = scalar_lea.vmem [#allocation2], %s3297_s25 }
 0x634   :  { %s6313_s14 = sld [smem:[#allocation4 + $0xa4]]  ;;  %v3299_v56 = vld [vmem:[%s3298_s11] ss:$8 sm:$0x3] }
 0x635   :  { %v3283_v5 = vmax.f32 %v3281_v60, %v3282_v61  ;;  %s8416_s12 = sld [smem:[#allocation4 + $0xa5]] }
 0x636   :  { %s8418_s22 = sld [smem:[#allocation4 + $0xa6]] }
 0x637   :  { %v3285_v10 = vrot.slane %v3283_v5, 1  ;;  %s8420_s9 = sld [smem:[#allocation4 + $0xa7]] }
 0x638   :  { %s3301_s26 = sshra.s32 %s6307_s24, 3  ;;  %s3304_s16 = sand.u32 7, %s6307_s24 }
 0x639   :  { %v3287_v12 = vadd.f32 %v3285_v10, %v3283_v5  ;;  %s6865_s28 = sshll.u32 %s3301_s26, 4  ;;  %s3311_s27 = sshra.s32 %s6310_s13, 3 }
 0x63a   :  { %s3307_s19 = sadd.s32 %s6865_s28, %s3304_s16  ;;  %s3314_s1 = sand.u32 7, %s6310_s13 }
 0x63b   :  { %v3288_v3 = vmax.f32 %v3287_v12, 0.0  ;;  %s6866_s29 = sshll.u32 %s3311_s27, 4  ;;  %s3321_s0 = sshra.s32 %s6313_s14, 3 }
 0x63c   :  { %s3317_s5 = sadd.s32 %s6866_s29, %s3314_s1  ;;  %s3324_s2 = sand.u32 7, %s6313_s14 }
 0x63d   :  { %3289 = vst [vmem:[#allocation13 + $0x16] sm:$0x1] %v3288_v3  ;;  %s6867_s20 = sshll.u32 %s3321_s0, 4  ;;  %s3331_s17 = sshra.s32 %s8416_s12, 3 }
 0x63e   :  { %s3308_s6 = scalar_lea.vmem [#allocation2], %s3307_s19  ;;  %s3327_s4 = sadd.s32 %s6867_s20, %s3324_s2 }
 0x63f   :  { %v3309_v15 = vld [vmem:[%s3308_s6] ss:$8 sm:$0x3]  ;;  %s3334_s3 = sand.u32 7, %s8416_s12  ;;  %s3318_s18 = scalar_lea.vmem [#allocation2], %s3317_s5 }
 0x640   :  { %v3319_v17 = vld [vmem:[%s3318_s18] ss:$8 sm:$0x3]  ;;  %s6868_s7 = sshll.u32 %s3331_s17, 4  ;;  %s3328_s21 = scalar_lea.vmem [#allocation2], %s3327_s4  ;;  %v3360_v2 = vmax.f32 %v3299_v56, %v3309_v15 }
 0x641   :  { %v3329_v18 = vld [vmem:[%s3328_s21] ss:$8 sm:$0x3]  ;;  %s3337_s10 = sadd.s32 %s6868_s7, %s3334_s3  ;;  %s3341_s15 = sshra.s32 %s8418_s22, 3 }
 0x642   :  { %s3344_s8 = sand.u32 7, %s8418_s22  ;;  %s6869_s30 = sshll.u32 %s3341_s15, 4  ;;  %v3361_v16 = vmax.f32 %v3319_v17, %v3329_v18 }
 0x643   :  { %s3351_s23 = sshra.s32 %s8420_s9, 3  ;;  %s3338_s24 = scalar_lea.vmem [#allocation2], %s3337_s10 }
 0x644   :  { %v3339_v19 = vld [vmem:[%s3338_s24] ss:$8 sm:$0x3]  ;;  %s3347_s13 = sadd.s32 %s6869_s30, %s3344_s8  ;;  %s3354_s25 = sand.u32 7, %s8420_s9  ;;  %v3363_v20 = vmax.f32 %v3360_v2, %v3361_v16 }
 0x645   :  { %s6870_s14 = sshll.u32 %s3351_s23, 4  ;;  %s3348_s26 = scalar_lea.vmem [#allocation2], %s3347_s13 }
 0x646   :  { %v3349_v38 = vld [vmem:[%s3348_s26] ss:$8 sm:$0x3]  ;;  %s3357_s12 = sadd.s32 %s6870_s14, %s3354_s25  ;;  %s6325_s16 = sld [smem:[#allocation4 + $0xa8]] }
 0x647   :  { %v3362_v27 = vmax.f32 %v3339_v19, %v3349_v38  ;;  %s6328_s28 = sld [smem:[#allocation4 + $0xa9]]  ;;  %s3358_s27 = scalar_lea.vmem [#allocation2], %s3357_s12 }
 0x648   :  { %v3359_v30 = vld [vmem:[%s3358_s27] ss:$8 sm:$0x3]  ;;  %s6331_s19 = sld [smem:[#allocation4 + $0xaa]] }
 0x649   :  { %v3364_v25 = vmax.f32 %v3362_v27, %v3359_v30  ;;  %s6334_s22 = sld [smem:[#allocation4 + $0xab]] }
 0x64a   :  { %s6337_s1 = sld [smem:[#allocation4 + $0xac]] }
 0x64b   :  { %v3365_v28 = vmax.f32 %v3363_v20, %v3364_v25  ;;  %s8428_s29 = sld [smem:[#allocation4 + $0xad]] }
 0x64c   :  { %s3373_s5 = sshra.s32 %s6325_s16, 3  ;;  %s3376_s0 = sand.u32 7, %s6325_s16 }
 0x64d   :  { %v3367_v32 = vrot.slane %v3365_v28, 1  ;;  %s6871_s9 = sshll.u32 %s3373_s5, 4  ;;  %s3383_s2 = sshra.s32 %s6328_s28, 3 }
 0x64e   :  { %s3379_s11 = sadd.s32 %s6871_s9, %s3376_s0  ;;  %s3386_s20 = sand.u32 7, %s6328_s28 }
 0x64f   :  { %v3369_v6 = vadd.f32 %v3367_v32, %v3365_v28  ;;  %s6872_s17 = sshll.u32 %s3383_s2, 4  ;;  %s3393_s4 = sshra.s32 %s6331_s19, 3 }
 0x650   :  { %s3389_s6 = sadd.s32 %s6872_s17, %s3386_s20  ;;  %s3396_s3 = sand.u32 7, %s6331_s19 }
 0x651   :  { %v3370_v1 = vmax.f32 %v3369_v6, 0.0  ;;  %s6873_s18 = sshll.u32 %s3393_s4, 4  ;;  %s3403_s7 = sshra.s32 %s6334_s22, 3 }
 0x652   :  { %s3399_s21 = sadd.s32 %s6873_s18, %s3396_s3  ;;  %s3406_s10 = sand.u32 7, %s6334_s22 }
 0x653   :  { %3371 = vst [vmem:[#allocation13 + $0x17] sm:$0x1] %v3370_v1  ;;  %s6874_s15 = sshll.u32 %s3403_s7, 4  ;;  %s3413_s30 = sshra.s32 %s6337_s1, 3 }
 0x654   :  { %s3409_s8 = sadd.s32 %s6874_s15, %s3406_s10  ;;  %s3416_s23 = sand.u32 7, %s6337_s1 }
 0x655   :  { %s6875_s24 = sshll.u32 %s3413_s30, 4  ;;  %s3423_s13 = sshra.s32 %s8428_s29, 3 }
 0x656   :  { %s3419_s25 = sadd.s32 %s6875_s24, %s3416_s23  ;;  %s3426_s14 = sand.u32 7, %s8428_s29 }
 0x657   :  { %s6876_s26 = sshll.u32 %s3423_s13, 4  ;;  %s3380_s12 = scalar_lea.vmem [#allocation2], %s3379_s11 }
 0x658   :  { %v3381_v11 = vld [vmem:[%s3380_s12] ss:$8 sm:$0x3]  ;;  %s3390_s16 = scalar_lea.vmem [#allocation2], %s3389_s6  ;;  %s3429_s28 = sadd.s32 %s6876_s26, %s3426_s14 }
 0x659   :  { %v3391_v21 = vld [vmem:[%s3390_s16] ss:$8 sm:$0x3]  ;;  %s6343_s27 = sld [smem:[#allocation4 + $0xae]]  ;;  %s3400_s19 = scalar_lea.vmem [#allocation2], %s3399_s21 }
 0x65a   :  { %v3401_v22 = vld [vmem:[%s3400_s19] ss:$8 sm:$0x3]  ;;  %s6346_s5 = sld [smem:[#allocation4 + $0xaf]]  ;;  %s3410_s0 = scalar_lea.vmem [#allocation2], %s3409_s8  ;;  %v3442_v40 = vmax.f32 %v3381_v11, %v3391_v21 }
 0x65b   :  { %v3411_v23 = vld [vmem:[%s3410_s0] ss:$8 sm:$0x3]  ;;  %s8432_s22 = sld [smem:[#allocation4 + $0xb0]]  ;;  %s3420_s9 = scalar_lea.vmem [#allocation2], %s3419_s25 }
 0x65c   :  { %v3421_v31 = vld [vmem:[%s3420_s9] ss:$8 sm:$0x3]  ;;  %s8434_s1 = sld [smem:[#allocation4 + $0xb1]]  ;;  %s3430_s2 = scalar_lea.vmem [#allocation2], %s3429_s28  ;;  %v3443_v42 = vmax.f32 %v3401_v22, %v3411_v23 }
 0x65d   :  { %v3431_v33 = vld [vmem:[%s3430_s2] ss:$8 sm:$0x3]  ;;  %s8436_s29 = sld [smem:[#allocation4 + $0xb2]] }
 0x65e   :  { %s8438_s11 = sld [smem:[#allocation4 + $0xb3]]  ;;  %v3444_v45 = vmax.f32 %v3421_v31, %v3431_v33  ;;  %v3445_v46 = vmax.f32 %v3442_v40, %v3443_v42 }
 0x65f   :  { %s3433_s20 = sshra.s32 %s6343_s27, 3  ;;  %s3436_s17 = sand.u32 7, %s6343_s27 }
 0x660   :  { %s6877_s6 = sshll.u32 %s3433_s20, 4  ;;  %s3455_s4 = sshra.s32 %s6346_s5, 3 }
 0x661   :  { %s3439_s3 = sadd.s32 %s6877_s6, %s3436_s17  ;;  %s3458_s18 = sand.u32 7, %s6346_s5 }
 0x662   :  { %s6878_s7 = sshll.u32 %s3455_s4, 4  ;;  %s3440_s21 = scalar_lea.vmem [#allocation2], %s3439_s3 }
 0x663   :  { %v3441_v47 = vld [vmem:[%s3440_s21] ss:$8 sm:$0x3]  ;;  %s3465_s10 = sshra.s32 %s8432_s22, 3  ;;  %s3461_s15 = sadd.s32 %s6878_s7, %s3458_s18 }
 0x664   :  { %v3446_v48 = vmax.f32 %v3444_v45, %v3441_v47  ;;  %s3468_s8 = sand.u32 7, %s8432_s22  ;;  %s6879_s30 = sshll.u32 %s3465_s10, 4 }
 0x665   :  { %s3475_s23 = sshra.s32 %s8434_s1, 3  ;;  %s3478_s24 = sand.u32 7, %s8434_s1 }
 0x666   :  { %v3447_v49 = vmax.f32 %v3445_v46, %v3446_v48  ;;  %s6880_s13 = sshll.u32 %s3475_s23, 4  ;;  %s3471_s25 = sadd.s32 %s6879_s30, %s3468_s8 }
 0x667   :  { %s3485_s14 = sshra.s32 %s8436_s29, 3  ;;  %s3481_s26 = sadd.s32 %s6880_s13, %s3478_s24 }
 0x668   :  { %v3449_v50 = vrot.slane %v3447_v49, 1  ;;  %s3488_s12 = sand.u32 7, %s8436_s29  ;;  %s6881_s16 = sshll.u32 %s3485_s14, 4 }
 0x669   :  { %s3495_s28 = sshra.s32 %s8438_s11, 3  ;;  %s3491_s27 = sadd.s32 %s6881_s16, %s3488_s12 }
 0x66a   :  { %v3451_v51 = vadd.f32 %v3449_v50, %v3447_v49  ;;  %s3498_s19 = sand.u32 7, %s8438_s11  ;;  %s6882_s5 = sshll.u32 %s3495_s28, 4 }
 0x66b   :  { %s6361_s0 = sld [smem:[#allocation4 + $0xb4]]  ;;  %s3462_s9 = scalar_lea.vmem [#allocation2], %s3461_s15 }
 0x66c   :  { %v3452_v52 = vmax.f32 %v3451_v51, 0.0  ;;  %s6364_s22 = sld [smem:[#allocation4 + $0xb5]]  ;;  %v3463_v53 = vld [vmem:[%s3462_s9] ss:$8 sm:$0x3]  ;;  %s3472_s2 = scalar_lea.vmem [#allocation2], %s3471_s25 }
 0x66d   :  { %v3473_v54 = vld [vmem:[%s3472_s2] ss:$8 sm:$0x3]  ;;  %s3501_s1 = sadd.s32 %s6882_s5, %s3498_s19  ;;  %s8448_s20 = sld [smem:[#allocation4 + $0xb6]] }
 0x66e   :  { %3453 = vst [vmem:[#allocation13 + $0x18] sm:$0x1] %v3452_v52  ;;  %s3482_s17 = scalar_lea.vmem [#allocation2], %s3481_s26  ;;  %s8450_s29 = sld [smem:[#allocation4 + $0xb7]]  ;;  %v3524_v62 = vmax.f32 %v3463_v53, %v3473_v54 }
 0x66f   :  { %v3483_v57 = vld [vmem:[%s3482_s17] ss:$8 sm:$0x3]  ;;  %s3492_s6 = scalar_lea.vmem [#allocation2], %s3491_s27  ;;  %s8452_s4 = sld [smem:[#allocation4 + $0xb8]] }
 0x670   :  { %v3493_v58 = vld [vmem:[%s3492_s6] ss:$8 sm:$0x3]  ;;  %s8454_s11 = sld [smem:[#allocation4 + $0xb9]]  ;;  %s3502_s10 = scalar_lea.vmem [#allocation2], %s3501_s1 }
 0x671   :  { %s3505_s3 = sshra.s32 %s6361_s0, 3  ;;  %s3508_s18 = sand.u32 7, %s6361_s0  ;;  %v3525_v63 = vmax.f32 %v3483_v57, %v3493_v58  ;;  %v3503_v0 = vld [vmem:[%s3502_s10] ss:$8 sm:$0x3] }
 0x672   :  { %s6883_s7 = sshll.u32 %s3505_s3, 4  ;;  %s3515_s21 = sshra.s32 %s6364_s22, 3 }
 0x673   :  { %s3511_s15 = sadd.s32 %s6883_s7, %s3508_s18  ;;  %s3518_s8 = sand.u32 7, %s6364_s22  ;;  %v3527_v39 = vmax.f32 %v3524_v62, %v3525_v63 }
 0x674   :  { %s6884_s30 = sshll.u32 %s3515_s21, 4  ;;  %s3512_s23 = scalar_lea.vmem [#allocation2], %s3511_s15 }
 0x675   :  { %v3513_v14 = vld [vmem:[%s3512_s23] ss:$8 sm:$0x3]  ;;  %s3521_s24 = sadd.s32 %s6884_s30, %s3518_s8  ;;  %s3537_s13 = sshra.s32 %s8448_s20, 3 }
 0x676   :  { %v3526_v29 = vmax.f32 %v3503_v0, %v3513_v14  ;;  %s3540_s25 = sand.u32 7, %s8448_s20  ;;  %s3522_s14 = scalar_lea.vmem [#allocation2], %s3521_s24 }
 0x677   :  { %v3523_v8 = vld [vmem:[%s3522_s14] ss:$8 sm:$0x3]  ;;  %s6885_s26 = sshll.u32 %s3537_s13, 4  ;;  %s3547_s12 = sshra.s32 %s8450_s29, 3 }
 0x678   :  { %v3528_v24 = vmax.f32 %v3526_v29, %v3523_v8  ;;  %s3543_s16 = sadd.s32 %s6885_s26, %s3540_s25  ;;  %s3550_s28 = sand.u32 7, %s8450_s29 }
 0x679   :  { %s3557_s27 = sshra.s32 %s8452_s4, 3  ;;  %s6886_s19 = sshll.u32 %s3547_s12, 4 }
 0x67a   :  { %v3529_v26 = vmax.f32 %v3527_v39, %v3528_v24  ;;  %s3560_s5 = sand.u32 7, %s8452_s4  ;;  %s6887_s0 = sshll.u32 %s3557_s27, 4 }
 0x67b   :  { %s3567_s22 = sshra.s32 %s8454_s11, 3  ;;  %s3570_s9 = sand.u32 7, %s8454_s11 }
 0x67c   :  { %v3531_v35 = vrot.slane %v3529_v26, 1  ;;  %s3553_s2 = sadd.s32 %s6886_s19, %s3550_s28  ;;  %s6888_s1 = sshll.u32 %s3567_s22, 4 }
 0x67d   :  { %s3563_s17 = sadd.s32 %s6887_s0, %s3560_s5  ;;  %s6379_s20 = sld [smem:[#allocation4 + $0xba]] }
 0x67e   :  { %v3533_v7 = vadd.f32 %v3531_v35, %v3529_v26  ;;  %s3573_s6 = sadd.s32 %s6888_s1, %s3570_s9  ;;  %s6382_s3 = sld [smem:[#allocation4 + $0xbb]] }
 0x67f   :  { %s8464_s18 = sld [smem:[#allocation4 + $0xbc]]  ;;  %s3544_s4 = scalar_lea.vmem [#allocation2], %s3543_s16 }
 0x680   :  { %v3534_v36 = vmax.f32 %v3533_v7, 0.0  ;;  %s8466_s7 = sld [smem:[#allocation4 + $0xbd]]  ;;  %v3545_v43 = vld [vmem:[%s3544_s4] ss:$8 sm:$0x3]  ;;  %s3554_s21 = scalar_lea.vmem [#allocation2], %s3553_s2 }
 0x681   :  { %s8468_s29 = sld [smem:[#allocation4 + $0xbe]]  ;;  %v3555_v9 = vld [vmem:[%s3554_s21] ss:$8 sm:$0x3]  ;;  %s3564_s10 = scalar_lea.vmem [#allocation2], %s3563_s17 }
 0x682   :  { %3535 = vst [vmem:[#allocation13 + $0x19] sm:$0x1] %v3534_v36  ;;  %s8470_s11 = sld [smem:[#allocation4 + $0xbf]]  ;;  %v3565_v13 = vld [vmem:[%s3564_s10] ss:$8 sm:$0x3]  ;;  %v3606_v44 = vmax.f32 %v3545_v43, %v3555_v9 }
 0x683   :  { %s3577_s15 = sshra.s32 %s6379_s20, 3  ;;  %s3580_s8 = sand.u32 7, %s6379_s20 }
 0x684   :  { %s3574_s30 = scalar_lea.vmem [#allocation2], %s3573_s6  ;;  %s6889_s23 = sshll.u32 %s3577_s15, 4 }
 0x685   :  { %v3575_v37 = vld [vmem:[%s3574_s30] ss:$8 sm:$0x3]  ;;  %s3587_s24 = sshra.s32 %s6382_s3, 3  ;;  %s3583_s13 = sadd.s32 %s6889_s23, %s3580_s8 }
 0x686   :  { %s3590_s25 = sand.u32 7, %s6382_s3  ;;  %s6890_s14 = sshll.u32 %s3587_s24, 4  ;;  %v3607_v34 = vmax.f32 %v3565_v13, %v3575_v37 }
 0x687   :  { %s3584_s26 = scalar_lea.vmem [#allocation2], %s3583_s13  ;;  %s3593_s12 = sadd.s32 %s6890_s14, %s3590_s25 }
 0x688   :  { %v3585_v41 = vld [vmem:[%s3584_s26] ss:$8 sm:$0x3]  ;;  %s3597_s16 = sshra.s32 %s8464_s18, 3  ;;  %s3600_s28 = sand.u32 7, %s8464_s18  ;;  %v3609_v60 = vmax.f32 %v3606_v44, %v3607_v34 }
 0x689   :  { %s3594_s27 = scalar_lea.vmem [#allocation2], %s3593_s12  ;;  %s6891_s19 = sshll.u32 %s3597_s16, 4 }
 0x68a   :  { %v3595_v55 = vld [vmem:[%s3594_s27] ss:$8 sm:$0x3]  ;;  %s3603_s5 = sadd.s32 %s6891_s19, %s3600_s28  ;;  %s3619_s0 = sshra.s32 %s8466_s7, 3 }
 0x68b   :  { %v3608_v59 = vmax.f32 %v3585_v41, %v3595_v55  ;;  %s3604_s22 = scalar_lea.vmem [#allocation2], %s3603_s5  ;;  %s3629_s9 = sshra.s32 %s8468_s29, 3 }
 0x68c   :  { %v3605_v4 = vld [vmem:[%s3604_s22] ss:$8 sm:$0x3]  ;;  %s3622_s2 = sand.u32 7, %s8466_s7  ;;  %s6892_s1 = sshll.u32 %s3619_s0, 4 }
 0x68d   :  { %v3610_v61 = vmax.f32 %v3608_v59, %v3605_v4  ;;  %s3639_s17 = sshra.s32 %s8470_s11, 3  ;;  %s3632_s20 = sand.u32 7, %s8468_s29 }
 0x68e   :  { %s6893_s6 = sshll.u32 %s3629_s9, 4  ;;  %s3642_s3 = sand.u32 7, %s8470_s11 }
 0x68f   :  { %v3611_v5 = vmax.f32 %v3609_v60, %v3610_v61  ;;  %s6894_s18 = sshll.u32 %s3639_s17, 4  ;;  %s3625_s4 = sadd.s32 %s6892_s1, %s3622_s2 }
 0x690   :  { %s6397_s21 = sld [smem:[#allocation4 + $0xc0]]  ;;  %s3635_s10 = sadd.s32 %s6893_s6, %s3632_s20 }
 0x691   :  { %v3613_v10 = vrot.slane %v3611_v5, 1  ;;  %s6400_s15 = sld [smem:[#allocation4 + $0xc1]]  ;;  %s3645_s8 = sadd.s32 %s6894_s18, %s3642_s3 }
 0x692   :  { %s8480_s30 = sld [smem:[#allocation4 + $0xc2]]  ;;  %s3626_s13 = scalar_lea.vmem [#allocation2], %s3625_s4 }
 0x693   :  { %v3615_v12 = vadd.f32 %v3613_v10, %v3611_v5  ;;  %s8482_s23 = sld [smem:[#allocation4 + $0xc3]]  ;;  %v3627_v56 = vld [vmem:[%s3626_s13] ss:$8 sm:$0x3]  ;;  %s3636_s26 = scalar_lea.vmem [#allocation2], %s3635_s10 }
 0x694   :  { %s8484_s7 = sld [smem:[#allocation4 + $0xc4]]  ;;  %v3637_v15 = vld [vmem:[%s3636_s26] ss:$8 sm:$0x3]  ;;  %s3646_s28 = scalar_lea.vmem [#allocation2], %s3645_s8 }
 0x695   :  { %v3616_v3 = vmax.f32 %v3615_v12, 0.0  ;;  %s8486_s24 = sld [smem:[#allocation4 + $0xc5]]  ;;  %v3647_v17 = vld [vmem:[%s3646_s28] ss:$8 sm:$0x3]  ;;  %v3688_v2 = vmax.f32 %v3627_v56, %v3637_v15 }
 0x696   :  { %s3649_s29 = sshra.s32 %s6397_s21, 3  ;;  %s3652_s11 = sand.u32 7, %s6397_s21 }
 0x697   :  { %3617 = vst [vmem:[#allocation13 + $0x1a] sm:$0x1] %v3616_v3  ;;  %s6895_s25 = sshll.u32 %s3649_s29, 4  ;;  %s3659_s14 = sshra.s32 %s6400_s15, 3 }
 0x698   :  { %s3655_s12 = sadd.s32 %s6895_s25, %s3652_s11  ;;  %s3662_s16 = sand.u32 7, %s6400_s15 }
 0x699   :  { %s6896_s27 = sshll.u32 %s3659_s14, 4  ;;  %s3656_s19 = scalar_lea.vmem [#allocation2], %s3655_s12 }
 0x69a   :  { %v3657_v18 = vld [vmem:[%s3656_s19] ss:$8 sm:$0x3]  ;;  %s3665_s5 = sadd.s32 %s6896_s27, %s3662_s16  ;;  %s3669_s0 = sshra.s32 %s8480_s30, 3 }
 0x69b   :  { %s3672_s22 = sand.u32 7, %s8480_s30  ;;  %s6897_s9 = sshll.u32 %s3669_s0, 4  ;;  %v3689_v16 = vmax.f32 %v3647_v17, %v3657_v18 }
 0x69c   :  { %s3679_s2 = sshra.s32 %s8482_s23, 3  ;;  %s3666_s1 = scalar_lea.vmem [#allocation2], %s3665_s5 }
 0x69d   :  { %v3667_v19 = vld [vmem:[%s3666_s1] ss:$8 sm:$0x3]  ;;  %s3675_s17 = sadd.s32 %s6897_s9, %s3672_s22  ;;  %s3682_s20 = sand.u32 7, %s8482_s23  ;;  %v3691_v20 = vmax.f32 %v3688_v2, %v3689_v16 }
 0x69e   :  { %s6898_s6 = sshll.u32 %s3679_s2, 4  ;;  %s3676_s3 = scalar_lea.vmem [#allocation2], %s3675_s17 }
 0x69f   :  { %v3677_v38 = vld [vmem:[%s3676_s3] ss:$8 sm:$0x3]  ;;  %s3685_s18 = sadd.s32 %s6898_s6, %s3682_s20  ;;  %s3701_s4 = sshra.s32 %s8484_s7, 3 }
 0x6a0   :  { %v3690_v27 = vmax.f32 %v3667_v19, %v3677_v38  ;;  %s3686_s21 = scalar_lea.vmem [#allocation2], %s3685_s18  ;;  %s3711_s10 = sshra.s32 %s8486_s24, 3 }
 0x6a1   :  { %v3687_v30 = vld [vmem:[%s3686_s21] ss:$8 sm:$0x3]  ;;  %s3704_s15 = sand.u32 7, %s8484_s7  ;;  %s6899_s8 = sshll.u32 %s3701_s4, 4 }
 0x6a2   :  { %v3692_v25 = vmax.f32 %v3690_v27, %v3687_v30  ;;  %s3714_s30 = sand.u32 7, %s8486_s24  ;;  %s6900_s29 = sshll.u32 %s3711_s10, 4 }
 0x6a3   :  { %s6415_s11 = sld [smem:[#allocation4 + $0xc6]]  ;;  %s3707_s13 = sadd.s32 %s6899_s8, %s3704_s15 }
 0x6a4   :  { %v3693_v28 = vmax.f32 %v3691_v20, %v3692_v25  ;;  %s6418_s25 = sld [smem:[#allocation4 + $0xc7]]  ;;  %s3717_s23 = sadd.s32 %s6900_s29, %s3714_s30 }
 0x6a5   :  { %s6421_s14 = sld [smem:[#allocation4 + $0xc8]]  ;;  %s3708_s22 = scalar_lea.vmem [#allocation2], %s3707_s13 }
 0x6a6   :  { %v3695_v32 = vrot.slane %v3693_v28, 1  ;;  %s8496_s26 = sld [smem:[#allocation4 + $0xc9]]  ;;  %v3709_v11 = vld [vmem:[%s3708_s22] ss:$8 sm:$0x3]  ;;  %s3718_s9 = scalar_lea.vmem [#allocation2], %s3717_s23 }
 0x6a7   :  { %s8498_s12 = sld [smem:[#allocation4 + $0xca]]  ;;  %v3719_v21 = vld [vmem:[%s3718_s9] ss:$8 sm:$0x3] }
 0x6a8   :  { %v3697_v6 = vadd.f32 %v3695_v32, %v3693_v28  ;;  %s8500_s16 = sld [smem:[#allocation4 + $0xcb]]  ;;  %v3770_v33 = vmax.f32 %v3709_v11, %v3719_v21 }
 0x6a9   :  { %s3721_s28 = sshra.s32 %s6415_s11, 3  ;;  %s3724_s7 = sand.u32 7, %s6415_s11 }
 0x6aa   :  { %v3698_v1 = vmax.f32 %v3697_v6, 0.0  ;;  %s6901_s27 = sshll.u32 %s3721_s28, 4  ;;  %s3731_s24 = sshra.s32 %s6418_s25, 3 }
 0x6ab   :  { %s3727_s19 = sadd.s32 %s6901_s27, %s3724_s7  ;;  %s3734_s5 = sand.u32 7, %s6418_s25 }
 0x6ac   :  { %3699 = vst [vmem:[#allocation13 + $0x1b] sm:$0x1] %v3698_v1  ;;  %s6902_s0 = sshll.u32 %s3731_s24, 4  ;;  %s3741_s1 = sshra.s32 %s6421_s14, 3 }
 0x6ad   :  { %s3737_s2 = sadd.s32 %s6902_s0, %s3734_s5  ;;  %s3728_s17 = scalar_lea.vmem [#allocation2], %s3727_s19 }
 0x6ae   :  { %v3729_v22 = vld [vmem:[%s3728_s17] ss:$8 sm:$0x3]  ;;  %s3744_s20 = sand.u32 7, %s6421_s14  ;;  %s3738_s6 = scalar_lea.vmem [#allocation2], %s3737_s2 }
 0x6af   :  { %v3739_v23 = vld [vmem:[%s3738_s6] ss:$8 sm:$0x3]  ;;  %s6903_s3 = sshll.u32 %s3741_s1, 4  ;;  %s3751_s18 = sshra.s32 %s8496_s26, 3 }
 0x6b0   :  { %s3747_s4 = sadd.s32 %s6903_s3, %s3744_s20  ;;  %s3754_s21 = sand.u32 7, %s8496_s26  ;;  %v3771_v40 = vmax.f32 %v3729_v22, %v3739_v23 }
 0x6b1   :  { %s6904_s10 = sshll.u32 %s3751_s18, 4  ;;  %s3748_s15 = scalar_lea.vmem [#allocation2], %s3747_s4 }
 0x6b2   :  { %v3749_v31 = vld [vmem:[%s3748_s15] ss:$8 sm:$0x3]  ;;  %s3757_s8 = sadd.s32 %s6904_s10, %s3754_s21  ;;  %s3761_s30 = sshra.s32 %s8498_s12, 3  ;;  %v3773_v46 = vmax.f32 %v3770_v33, %v3771_v40 }
 0x6b3   :  { %s3764_s29 = sand.u32 7, %s8498_s12  ;;  %s3758_s11 = scalar_lea.vmem [#allocation2], %s3757_s8 }
 0x6b4   :  { %v3759_v42 = vld [vmem:[%s3758_s11] ss:$8 sm:$0x3]  ;;  %s6905_s13 = sshll.u32 %s3761_s30, 4  ;;  %s3783_s25 = sshra.s32 %s8500_s16, 3 }
 0x6b5   :  { %s3767_s23 = sadd.s32 %s6905_s13, %s3764_s29  ;;  %v3772_v45 = vmax.f32 %v3749_v31, %v3759_v42  ;;  %s3786_s14 = sand.u32 7, %s8500_s16 }
 0x6b6   :  { %s6906_s28 = sshll.u32 %s3783_s25, 4  ;;  %s3768_s7 = scalar_lea.vmem [#allocation2], %s3767_s23 }
 0x6b7   :  { %v3769_v47 = vld [vmem:[%s3768_s7] ss:$8 sm:$0x3]  ;;  %s6433_s26 = sld [smem:[#allocation4 + $0xcc]]  ;;  %s3789_s24 = sadd.s32 %s6906_s28, %s3786_s14 }
 0x6b8   :  { %v3774_v48 = vmax.f32 %v3772_v45, %v3769_v47  ;;  %s6436_s27 = sld [smem:[#allocation4 + $0xcd]]  ;;  %s3790_s4 = scalar_lea.vmem [#allocation2], %s3789_s24 }
 0x6b9   :  { %s6439_s19 = sld [smem:[#allocation4 + $0xce]]  ;;  %v3791_v53 = vld [vmem:[%s3790_s4] ss:$8 sm:$0x3] }
 0x6ba   :  { %v3775_v49 = vmax.f32 %v3773_v46, %v3774_v48  ;;  %s8508_s5 = sld [smem:[#allocation4 + $0xcf]] }
 0x6bb   :  { %s8510_s12 = sld [smem:[#allocation4 + $0xd0]] }
 0x6bc   :  { %v3777_v50 = vrot.slane %v3775_v49, 1  ;;  %s8512_s0 = sld [smem:[#allocation4 + $0xd1]] }
 0x6bd   :  { %s3793_s22 = sshra.s32 %s6433_s26, 3  ;;  %s3796_s16 = sand.u32 7, %s6433_s26 }
 0x6be   :  { %v3779_v51 = vadd.f32 %v3777_v50, %v3775_v49  ;;  %s6907_s9 = sshll.u32 %s3793_s22, 4  ;;  %s3803_s2 = sshra.s32 %s6436_s27, 3 }
 0x6bf   :  { %s3799_s1 = sadd.s32 %s6907_s9, %s3796_s16  ;;  %s3806_s17 = sand.u32 7, %s6436_s27 }
 0x6c0   :  { %v3780_v52 = vmax.f32 %v3779_v51, 0.0  ;;  %s6908_s20 = sshll.u32 %s3803_s2, 4  ;;  %s3813_s3 = sshra.s32 %s6439_s19, 3 }
 0x6c1   :  { %s3809_s6 = sadd.s32 %s6908_s20, %s3806_s17  ;;  %s3816_s18 = sand.u32 7, %s6439_s19 }
 0x6c2   :  { %3781 = vst [vmem:[#allocation13 + $0x1c] sm:$0x1] %v3780_v52  ;;  %s6909_s21 = sshll.u32 %s3813_s3, 4  ;;  %s3823_s10 = sshra.s32 %s8508_s5, 3 }
 0x6c3   :  { %s3800_s15 = scalar_lea.vmem [#allocation2], %s3799_s1  ;;  %s3819_s8 = sadd.s32 %s6909_s21, %s3816_s18 }
 0x6c4   :  { %v3801_v54 = vld [vmem:[%s3800_s15] ss:$8 sm:$0x3]  ;;  %s3826_s30 = sand.u32 7, %s8508_s5  ;;  %s3810_s29 = scalar_lea.vmem [#allocation2], %s3809_s6 }
 0x6c5   :  { %v3811_v57 = vld [vmem:[%s3810_s29] ss:$8 sm:$0x3]  ;;  %s6910_s11 = sshll.u32 %s3823_s10, 4  ;;  %s3820_s13 = scalar_lea.vmem [#allocation2], %s3819_s8  ;;  %v3852_v62 = vmax.f32 %v3791_v53, %v3801_v54 }
 0x6c6   :  { %v3821_v58 = vld [vmem:[%s3820_s13] ss:$8 sm:$0x3]  ;;  %s3829_s25 = sadd.s32 %s6910_s11, %s3826_s30  ;;  %s3833_s23 = sshra.s32 %s8510_s12, 3 }
 0x6c7   :  { %s3836_s14 = sand.u32 7, %s8510_s12  ;;  %s6911_s28 = sshll.u32 %s3833_s23, 4  ;;  %v3853_v63 = vmax.f32 %v3811_v57, %v3821_v58 }
 0x6c8   :  { %s3843_s7 = sshra.s32 %s8512_s0, 3  ;;  %s3830_s26 = scalar_lea.vmem [#allocation2], %s3829_s25 }
 0x6c9   :  { %v3831_v0 = vld [vmem:[%s3830_s26] ss:$8 sm:$0x3]  ;;  %s3839_s27 = sadd.s32 %s6911_s28, %s3836_s14  ;;  %s3846_s24 = sand.u32 7, %s8512_s0  ;;  %v3855_v39 = vmax.f32 %v3852_v62, %v3853_v63 }
 0x6ca   :  { %s6912_s19 = sshll.u32 %s3843_s7, 4  ;;  %s3840_s22 = scalar_lea.vmem [#allocation2], %s3839_s27 }
 0x6cb   :  { %v3841_v14 = vld [vmem:[%s3840_s22] ss:$8 sm:$0x3]  ;;  %s3849_s5 = sadd.s32 %s6912_s19, %s3846_s24  ;;  %s6451_s16 = sld [smem:[#allocation4 + $0xd2]] }
 0x6cc   :  { %v3854_v29 = vmax.f32 %v3831_v0, %v3841_v14  ;;  %s6454_s9 = sld [smem:[#allocation4 + $0xd3]]  ;;  %s3850_s2 = scalar_lea.vmem [#allocation2], %s3849_s5 }
 0x6cd   :  { %v3851_v8 = vld [vmem:[%s3850_s2] ss:$8 sm:$0x3]  ;;  %s6457_s1 = sld [smem:[#allocation4 + $0xd4]] }
 0x6ce   :  { %v3856_v24 = vmax.f32 %v3854_v29, %v3851_v8  ;;  %s6460_s12 = sld [smem:[#allocation4 + $0xd5]] }
 0x6cf   :  { %s6463_s17 = sld [smem:[#allocation4 + $0xd6]] }
 0x6d0   :  { %v3857_v26 = vmax.f32 %v3855_v39, %v3856_v24  ;;  %s8520_s20 = sld [smem:[#allocation4 + $0xd7]] }
 0x6d1   :  { %s3865_s6 = sshra.s32 %s6451_s16, 3  ;;  %s3868_s3 = sand.u32 7, %s6451_s16 }
 0x6d2   :  { %v3859_v35 = vrot.slane %v3857_v26, 1  ;;  %s6913_s0 = sshll.u32 %s3865_s6, 4  ;;  %s3875_s18 = sshra.s32 %s6454_s9, 3 }
 0x6d3   :  { %s3871_s4 = sadd.s32 %s6913_s0, %s3868_s3  ;;  %s3878_s21 = sand.u32 7, %s6454_s9 }
 0x6d4   :  { %v3861_v7 = vadd.f32 %v3859_v35, %v3857_v26  ;;  %s6914_s10 = sshll.u32 %s3875_s18, 4  ;;  %s3885_s8 = sshra.s32 %s6457_s1, 3 }
 0x6d5   :  { %s3881_s15 = sadd.s32 %s6914_s10, %s3878_s21  ;;  %s3888_s30 = sand.u32 7, %s6457_s1 }
 0x6d6   :  { %v3862_v36 = vmax.f32 %v3861_v7, 0.0  ;;  %s6915_s29 = sshll.u32 %s3885_s8, 4  ;;  %s3895_s11 = sshra.s32 %s6460_s12, 3 }
 0x6d7   :  { %s3891_s13 = sadd.s32 %s6915_s29, %s3888_s30  ;;  %s3898_s25 = sand.u32 7, %s6460_s12 }
 0x6d8   :  { %3863 = vst [vmem:[#allocation13 + $0x1d] sm:$0x1] %v3862_v36  ;;  %s6916_s23 = sshll.u32 %s3895_s11, 4  ;;  %s3905_s28 = sshra.s32 %s6463_s17, 3 }
 0x6d9   :  { %s3901_s14 = sadd.s32 %s6916_s23, %s3898_s25  ;;  %s3908_s7 = sand.u32 7, %s6463_s17 }
 0x6da   :  { %s6917_s26 = sshll.u32 %s3905_s28, 4  ;;  %s3915_s27 = sshra.s32 %s8520_s20, 3 }
 0x6db   :  { %s3911_s24 = sadd.s32 %s6917_s26, %s3908_s7  ;;  %s3918_s19 = sand.u32 7, %s8520_s20 }
 0x6dc   :  { %s6918_s22 = sshll.u32 %s3915_s27, 4  ;;  %s3872_s5 = scalar_lea.vmem [#allocation2], %s3871_s4 }
 0x6dd   :  { %v3873_v43 = vld [vmem:[%s3872_s5] ss:$8 sm:$0x3]  ;;  %s3882_s16 = scalar_lea.vmem [#allocation2], %s3881_s15  ;;  %s3921_s9 = sadd.s32 %s6918_s22, %s3918_s19 }
 0x6de   :  { %v3883_v9 = vld [vmem:[%s3882_s16] ss:$8 sm:$0x3]  ;;  %s6469_s2 = sld [smem:[#allocation4 + $0xd8]]  ;;  %s3892_s1 = scalar_lea.vmem [#allocation2], %s3891_s13 }
 0x6df   :  { %v3893_v13 = vld [vmem:[%s3892_s1] ss:$8 sm:$0x3]  ;;  %s6472_s6 = sld [smem:[#allocation4 + $0xd9]]  ;;  %s3902_s3 = scalar_lea.vmem [#allocation2], %s3901_s14  ;;  %v3934_v34 = vmax.f32 %v3873_v43, %v3883_v9 }
 0x6e0   :  { %v3903_v37 = vld [vmem:[%s3902_s3] ss:$8 sm:$0x3]  ;;  %s8524_s12 = sld [smem:[#allocation4 + $0xda]]  ;;  %s3912_s0 = scalar_lea.vmem [#allocation2], %s3911_s24 }
 0x6e1   :  { %v3913_v41 = vld [vmem:[%s3912_s0] ss:$8 sm:$0x3]  ;;  %s8526_s17 = sld [smem:[#allocation4 + $0xdb]]  ;;  %s3922_s18 = scalar_lea.vmem [#allocation2], %s3921_s9  ;;  %v3935_v55 = vmax.f32 %v3893_v13, %v3903_v37 }
 0x6e2   :  { %v3923_v44 = vld [vmem:[%s3922_s18] ss:$8 sm:$0x3]  ;;  %s8528_s20 = sld [smem:[#allocation4 + $0xdc]] }
 0x6e3   :  { %s8530_s4 = sld [smem:[#allocation4 + $0xdd]]  ;;  %v3936_v59 = vmax.f32 %v3913_v41, %v3923_v44  ;;  %v3937_v60 = vmax.f32 %v3934_v34, %v3935_v55 }
 0x6e4   :  { %s3925_s21 = sshra.s32 %s6469_s2, 3  ;;  %s3928_s10 = sand.u32 7, %s6469_s2 }
 0x6e5   :  { %s6919_s15 = sshll.u32 %s3925_s21, 4  ;;  %s3947_s8 = sshra.s32 %s6472_s6, 3 }
 0x6e6   :  { %s3931_s30 = sadd.s32 %s6919_s15, %s3928_s10  ;;  %s3950_s29 = sand.u32 7, %s6472_s6 }
 0x6e7   :  { %s6920_s11 = sshll.u32 %s3947_s8, 4  ;;  %s3932_s13 = scalar_lea.vmem [#allocation2], %s3931_s30 }
 0x6e8   :  { %v3933_v4 = vld [vmem:[%s3932_s13] ss:$8 sm:$0x3]  ;;  %s3957_s25 = sshra.s32 %s8524_s12, 3  ;;  %s3953_s23 = sadd.s32 %s6920_s11, %s3950_s29 }
 0x6e9   :  { %v3938_v61 = vmax.f32 %v3936_v59, %v3933_v4  ;;  %s3960_s14 = sand.u32 7, %s8524_s12  ;;  %s6921_s28 = sshll.u32 %s3957_s25, 4 }
 0x6ea   :  { %s3967_s7 = sshra.s32 %s8526_s17, 3  ;;  %s3970_s26 = sand.u32 7, %s8526_s17 }
 0x6eb   :  { %v3939_v5 = vmax.f32 %v3937_v60, %v3938_v61  ;;  %s6922_s27 = sshll.u32 %s3967_s7, 4  ;;  %s3963_s24 = sadd.s32 %s6921_s28, %s3960_s14 }
 0x6ec   :  { %s3977_s19 = sshra.s32 %s8528_s20, 3  ;;  %s3973_s22 = sadd.s32 %s6922_s27, %s3970_s26 }
 0x6ed   :  { %v3941_v10 = vrot.slane %v3939_v5, 1  ;;  %s3980_s5 = sand.u32 7, %s8528_s20  ;;  %s6923_s16 = sshll.u32 %s3977_s19, 4 }
 0x6ee   :  { %s3987_s9 = sshra.s32 %s8530_s4, 3  ;;  %s3983_s2 = sadd.s32 %s6923_s16, %s3980_s5 }
 0x6ef   :  { %v3943_v12 = vadd.f32 %v3941_v10, %v3939_v5  ;;  %s3990_s1 = sand.u32 7, %s8530_s4  ;;  %s6924_s6 = sshll.u32 %s3987_s9, 4 }
 0x6f0   :  { %s6487_s3 = sld [smem:[#allocation4 + $0xde]]  ;;  %s3954_s0 = scalar_lea.vmem [#allocation2], %s3953_s23 }
 0x6f1   :  { %v3944_v3 = vmax.f32 %v3943_v12, 0.0  ;;  %s6490_s12 = sld [smem:[#allocation4 + $0xdf]]  ;;  %v3955_v56 = vld [vmem:[%s3954_s0] ss:$8 sm:$0x3]  ;;  %s3964_s18 = scalar_lea.vmem [#allocation2], %s3963_s24 }
 0x6f2   :  { %v3965_v15 = vld [vmem:[%s3964_s18] ss:$8 sm:$0x3]  ;;  %s3993_s17 = sadd.s32 %s6924_s6, %s3990_s1  ;;  %s8540_s21 = sld [smem:[#allocation4 + $0xe0]] }
 0x6f3   :  { %3945 = vst [vmem:[#allocation13 + $0x1e] sm:$0x1] %v3944_v3  ;;  %s3974_s10 = scalar_lea.vmem [#allocation2], %s3973_s22  ;;  %s8542_s20 = sld [smem:[#allocation4 + $0xe1]]  ;;  %v4016_v2 = vmax.f32 %v3955_v56, %v3965_v15 }
 0x6f4   :  { %v3975_v17 = vld [vmem:[%s3974_s10] ss:$8 sm:$0x3]  ;;  %s3984_s15 = scalar_lea.vmem [#allocation2], %s3983_s2  ;;  %s8544_s8 = sld [smem:[#allocation4 + $0xe2]] }
 0x6f5   :  { %v3985_v18 = vld [vmem:[%s3984_s15] ss:$8 sm:$0x3]  ;;  %s8546_s4 = sld [smem:[#allocation4 + $0xe3]]  ;;  %s3994_s25 = scalar_lea.vmem [#allocation2], %s3993_s17 }
 0x6f6   :  { %s3997_s30 = sshra.s32 %s6487_s3, 3  ;;  %s4000_s29 = sand.u32 7, %s6487_s3  ;;  %v4017_v16 = vmax.f32 %v3975_v17, %v3985_v18  ;;  %v3995_v19 = vld [vmem:[%s3994_s25] ss:$8 sm:$0x3] }
 0x6f7   :  { %s6925_s11 = sshll.u32 %s3997_s30, 4  ;;  %s4007_s13 = sshra.s32 %s6490_s12, 3 }
 0x6f8   :  { %s4003_s23 = sadd.s32 %s6925_s11, %s4000_s29  ;;  %s4010_s14 = sand.u32 7, %s6490_s12  ;;  %v4019_v20 = vmax.f32 %v4016_v2, %v4017_v16 }
 0x6f9   :  { %s6926_s28 = sshll.u32 %s4007_s13, 4  ;;  %s4004_s7 = scalar_lea.vmem [#allocation2], %s4003_s23 }
 0x6fa   :  { %v4005_v38 = vld [vmem:[%s4004_s7] ss:$8 sm:$0x3]  ;;  %s4013_s26 = sadd.s32 %s6926_s28, %s4010_s14  ;;  %s4029_s27 = sshra.s32 %s8540_s21, 3 }
 0x6fb   :  { %v4018_v27 = vmax.f32 %v3995_v19, %v4005_v38  ;;  %s4032_s24 = sand.u32 7, %s8540_s21  ;;  %s4014_s19 = scalar_lea.vmem [#allocation2], %s4013_s26 }
 0x6fc   :  { %v4015_v30 = vld [vmem:[%s4014_s19] ss:$8 sm:$0x3]  ;;  %s6927_s22 = sshll.u32 %s4029_s27, 4  ;;  %s4039_s5 = sshra.s32 %s8542_s20, 3 }
 0x6fd   :  { %v4020_v25 = vmax.f32 %v4018_v27, %v4015_v30  ;;  %s4035_s16 = sadd.s32 %s6927_s22, %s4032_s24  ;;  %s4042_s9 = sand.u32 7, %s8542_s20 }
 0x6fe   :  { %s4049_s2 = sshra.s32 %s8544_s8, 3  ;;  %s6928_s1 = sshll.u32 %s4039_s5, 4 }
 0x6ff   :  { %v4021_v28 = vmax.f32 %v4019_v20, %v4020_v25  ;;  %s4052_s6 = sand.u32 7, %s8544_s8  ;;  %s6929_s3 = sshll.u32 %s4049_s2, 4 }
 0x700   :  { %s4059_s12 = sshra.s32 %s8546_s4, 3  ;;  %s4062_s0 = sand.u32 7, %s8546_s4 }
 0x701   :  { %v4023_v32 = vrot.slane %v4021_v28, 1  ;;  %s4045_s18 = sadd.s32 %s6928_s1, %s4042_s9  ;;  %s6930_s17 = sshll.u32 %s4059_s12, 4 }
 0x702   :  { %s4055_s10 = sadd.s32 %s6929_s3, %s4052_s6  ;;  %s6505_s21 = sld [smem:[#allocation4 + $0xe4]] }
 0x703   :  { %v4025_v6 = vadd.f32 %v4023_v32, %v4021_v28  ;;  %s4065_s15 = sadd.s32 %s6930_s17, %s4062_s0  ;;  %s6508_s30 = sld [smem:[#allocation4 + $0xe5]] }
 0x704   :  { %s8556_s29 = sld [smem:[#allocation4 + $0xe6]]  ;;  %s4036_s8 = scalar_lea.vmem [#allocation2], %s4035_s16 }
 0x705   :  { %v4026_v1 = vmax.f32 %v4025_v6, 0.0  ;;  %s8558_s11 = sld [smem:[#allocation4 + $0xe7]]  ;;  %v4037_v11 = vld [vmem:[%s4036_s8] ss:$8 sm:$0x3]  ;;  %s4046_s13 = scalar_lea.vmem [#allocation2], %s4045_s18 }
 0x706   :  { %s8560_s20 = sld [smem:[#allocation4 + $0xe8]]  ;;  %v4047_v21 = vld [vmem:[%s4046_s13] ss:$8 sm:$0x3]  ;;  %s4056_s25 = scalar_lea.vmem [#allocation2], %s4055_s10 }
 0x707   :  { %4027 = vst [vmem:[#allocation13 + $0x1f] sm:$0x1] %v4026_v1  ;;  %s8562_s4 = sld [smem:[#allocation4 + $0xe9]]  ;;  %v4057_v22 = vld [vmem:[%s4056_s25] ss:$8 sm:$0x3]  ;;  %v4098_v33 = vmax.f32 %v4037_v11, %v4047_v21 }
 0x708   :  { %s4069_s23 = sshra.s32 %s6505_s21, 3  ;;  %s4072_s14 = sand.u32 7, %s6505_s21 }
 0x709   :  { %s4066_s28 = scalar_lea.vmem [#allocation2], %s4065_s15  ;;  %s6931_s7 = sshll.u32 %s4069_s23, 4 }
 0x70a   :  { %v4067_v23 = vld [vmem:[%s4066_s28] ss:$8 sm:$0x3]  ;;  %s4079_s26 = sshra.s32 %s6508_s30, 3  ;;  %s4075_s27 = sadd.s32 %s6931_s7, %s4072_s14 }
 0x70b   :  { %s4082_s24 = sand.u32 7, %s6508_s30  ;;  %s6932_s19 = sshll.u32 %s4079_s26, 4  ;;  %v4099_v40 = vmax.f32 %v4057_v22, %v4067_v23 }
 0x70c   :  { %s4076_s22 = scalar_lea.vmem [#allocation2], %s4075_s27  ;;  %s4085_s5 = sadd.s32 %s6932_s19, %s4082_s24 }
 0x70d   :  { %v4077_v31 = vld [vmem:[%s4076_s22] ss:$8 sm:$0x3]  ;;  %s4089_s16 = sshra.s32 %s8556_s29, 3  ;;  %s4092_s9 = sand.u32 7, %s8556_s29  ;;  %v4101_v46 = vmax.f32 %v4098_v33, %v4099_v40 }
 0x70e   :  { %s4086_s2 = scalar_lea.vmem [#allocation2], %s4085_s5  ;;  %s6933_s1 = sshll.u32 %s4089_s16, 4 }
 0x70f   :  { %v4087_v42 = vld [vmem:[%s4086_s2] ss:$8 sm:$0x3]  ;;  %s4095_s6 = sadd.s32 %s6933_s1, %s4092_s9  ;;  %s4111_s3 = sshra.s32 %s8558_s11, 3 }
 0x710   :  { %v4100_v45 = vmax.f32 %v4077_v31, %v4087_v42  ;;  %s4096_s12 = scalar_lea.vmem [#allocation2], %s4095_s6  ;;  %s4121_s0 = sshra.s32 %s8560_s20, 3 }
 0x711   :  { %v4097_v47 = vld [vmem:[%s4096_s12] ss:$8 sm:$0x3]  ;;  %s4114_s18 = sand.u32 7, %s8558_s11  ;;  %s6934_s17 = sshll.u32 %s4111_s3, 4 }
 0x712   :  { %v4102_v48 = vmax.f32 %v4100_v45, %v4097_v47  ;;  %s4131_s10 = sshra.s32 %s8562_s4, 3  ;;  %s4124_s21 = sand.u32 7, %s8560_s20 }
 0x713   :  { %s6935_s15 = sshll.u32 %s4121_s0, 4  ;;  %s4134_s30 = sand.u32 7, %s8562_s4 }
 0x714   :  { %v4103_v49 = vmax.f32 %v4101_v46, %v4102_v48  ;;  %s6936_s29 = sshll.u32 %s4131_s10, 4  ;;  %s4117_s8 = sadd.s32 %s6934_s17, %s4114_s18 }
 0x715   :  { %s6523_s13 = sld [smem:[#allocation4 + $0xea]]  ;;  %s4127_s25 = sadd.s32 %s6935_s15, %s4124_s21 }
 0x716   :  { %v4105_v50 = vrot.slane %v4103_v49, 1  ;;  %s6526_s23 = sld [smem:[#allocation4 + $0xeb]]  ;;  %s4137_s14 = sadd.s32 %s6936_s29, %s4134_s30 }
 0x717   :  { %s8572_s28 = sld [smem:[#allocation4 + $0xec]]  ;;  %s4118_s27 = scalar_lea.vmem [#allocation2], %s4117_s8 }
 0x718   :  { %v4107_v51 = vadd.f32 %v4105_v50, %v4103_v49  ;;  %s8574_s7 = sld [smem:[#allocation4 + $0xed]]  ;;  %v4119_v53 = vld [vmem:[%s4118_s27] ss:$8 sm:$0x3]  ;;  %s4128_s22 = scalar_lea.vmem [#allocation2], %s4127_s25 }
 0x719   :  { %s8576_s11 = sld [smem:[#allocation4 + $0xee]]  ;;  %v4129_v54 = vld [vmem:[%s4128_s22] ss:$8 sm:$0x3]  ;;  %s4138_s9 = scalar_lea.vmem [#allocation2], %s4137_s14 }
 0x71a   :  { %v4108_v52 = vmax.f32 %v4107_v51, 0.0  ;;  %s8578_s26 = sld [smem:[#allocation4 + $0xef]]  ;;  %v4139_v57 = vld [vmem:[%s4138_s9] ss:$8 sm:$0x3]  ;;  %v4180_v62 = vmax.f32 %v4119_v53, %v4129_v54 }
 0x71b   :  { %s4141_s20 = sshra.s32 %s6523_s13, 3  ;;  %s4144_s4 = sand.u32 7, %s6523_s13 }
 0x71c   :  { %4109 = vst [vmem:[#allocation13 + $0x20] sm:$0x1] %v4108_v52  ;;  %s6937_s24 = sshll.u32 %s4141_s20, 4  ;;  %s4151_s19 = sshra.s32 %s6526_s23, 3 }
 0x71d   :  { %s4147_s5 = sadd.s32 %s6937_s24, %s4144_s4  ;;  %s4154_s16 = sand.u32 7, %s6526_s23 }
 0x71e   :  { %s6938_s2 = sshll.u32 %s4151_s19, 4  ;;  %s4148_s1 = scalar_lea.vmem [#allocation2], %s4147_s5 }
 0x71f   :  { %v4149_v58 = vld [vmem:[%s4148_s1] ss:$8 sm:$0x3]  ;;  %s4157_s6 = sadd.s32 %s6938_s2, %s4154_s16  ;;  %s4161_s3 = sshra.s32 %s8572_s28, 3 }
 0x720   :  { %s4164_s12 = sand.u32 7, %s8572_s28  ;;  %s6939_s0 = sshll.u32 %s4161_s3, 4  ;;  %v4181_v63 = vmax.f32 %v4139_v57, %v4149_v58 }
 0x721   :  { %s4171_s18 = sshra.s32 %s8574_s7, 3  ;;  %s4158_s17 = scalar_lea.vmem [#allocation2], %s4157_s6 }
 0x722   :  { %v4159_v0 = vld [vmem:[%s4158_s17] ss:$8 sm:$0x3]  ;;  %s4167_s10 = sadd.s32 %s6939_s0, %s4164_s12  ;;  %s4174_s21 = sand.u32 7, %s8574_s7  ;;  %v4183_v39 = vmax.f32 %v4180_v62, %v4181_v63 }
 0x723   :  { %s6940_s15 = sshll.u32 %s4171_s18, 4  ;;  %s4168_s30 = scalar_lea.vmem [#allocation2], %s4167_s10 }
 0x724   :  { %v4169_v14 = vld [vmem:[%s4168_s30] ss:$8 sm:$0x3]  ;;  %s4177_s29 = sadd.s32 %s6940_s15, %s4174_s21  ;;  %s4193_s8 = sshra.s32 %s8576_s11, 3 }
 0x725   :  { %v4182_v29 = vmax.f32 %v4159_v0, %v4169_v14  ;;  %s4178_s13 = scalar_lea.vmem [#allocation2], %s4177_s29  ;;  %s4203_s25 = sshra.s32 %s8578_s26, 3 }
 0x726   :  { %v4179_v8 = vld [vmem:[%s4178_s13] ss:$8 sm:$0x3]  ;;  %s4196_s23 = sand.u32 7, %s8576_s11  ;;  %s6941_s14 = sshll.u32 %s4193_s8, 4 }
 0x727   :  { %v4184_v24 = vmax.f32 %v4182_v29, %v4179_v8  ;;  %s4206_s28 = sand.u32 7, %s8578_s26  ;;  %s6942_s20 = sshll.u32 %s4203_s25, 4 }
 0x728   :  { %s6541_s4 = sld [smem:[#allocation4 + $0xf0]]  ;;  %s4199_s27 = sadd.s32 %s6941_s14, %s4196_s23 }
 0x729   :  { %v4185_v26 = vmax.f32 %v4183_v39, %v4184_v24  ;;  %s6544_s24 = sld [smem:[#allocation4 + $0xf1]]  ;;  %s4209_s7 = sadd.s32 %s6942_s20, %s4206_s28 }
 0x72a   :  { %s6547_s19 = sld [smem:[#allocation4 + $0xf2]]  ;;  %s4200_s12 = scalar_lea.vmem [#allocation2], %s4199_s27 }
 0x72b   :  { %v4187_v35 = vrot.slane %v4185_v26, 1  ;;  %s8588_s22 = sld [smem:[#allocation4 + $0xf3]]  ;;  %v4201_v43 = vld [vmem:[%s4200_s12] ss:$8 sm:$0x3]  ;;  %s4210_s0 = scalar_lea.vmem [#allocation2], %s4209_s7 }
 0x72c   :  { %s8590_s5 = sld [smem:[#allocation4 + $0xf4]]  ;;  %v4211_v9 = vld [vmem:[%s4210_s0] ss:$8 sm:$0x3] }
 0x72d   :  { %v4189_v7 = vadd.f32 %v4187_v35, %v4185_v26  ;;  %s8592_s16 = sld [smem:[#allocation4 + $0xf5]]  ;;  %v4262_v44 = vmax.f32 %v4201_v43, %v4211_v9 }
 0x72e   :  { %s4213_s9 = sshra.s32 %s6541_s4, 3  ;;  %s4216_s11 = sand.u32 7, %s6541_s4 }
 0x72f   :  { %v4190_v36 = vmax.f32 %v4189_v7, 0.0  ;;  %s6943_s2 = sshll.u32 %s4213_s9, 4  ;;  %s4223_s26 = sshra.s32 %s6544_s24, 3 }
 0x730   :  { %s4219_s1 = sadd.s32 %s6943_s2, %s4216_s11  ;;  %s4226_s6 = sand.u32 7, %s6544_s24 }
 0x731   :  { %4191 = vst [vmem:[#allocation13 + $0x21] sm:$0x1] %v4190_v36  ;;  %s6944_s3 = sshll.u32 %s4223_s26, 4  ;;  %s4233_s17 = sshra.s32 %s6547_s19, 3 }
 0x732   :  { %s4229_s18 = sadd.s32 %s6944_s3, %s4226_s6  ;;  %s4220_s10 = scalar_lea.vmem [#allocation2], %s4219_s1 }
 0x733   :  { %v4221_v13 = vld [vmem:[%s4220_s10] ss:$8 sm:$0x3]  ;;  %s4236_s21 = sand.u32 7, %s6547_s19  ;;  %s4230_s15 = scalar_lea.vmem [#allocation2], %s4229_s18 }
 0x734   :  { %v4231_v37 = vld [vmem:[%s4230_s15] ss:$8 sm:$0x3]  ;;  %s6945_s30 = sshll.u32 %s4233_s17, 4  ;;  %s4243_s29 = sshra.s32 %s8588_s22, 3 }
 0x735   :  { %s4239_s8 = sadd.s32 %s6945_s30, %s4236_s21  ;;  %s4246_s13 = sand.u32 7, %s8588_s22  ;;  %v4263_v34 = vmax.f32 %v4221_v13, %v4231_v37 }
 0x736   :  { %s6946_s25 = sshll.u32 %s4243_s29, 4  ;;  %s4240_s23 = scalar_lea.vmem [#allocation2], %s4239_s8 }
 0x737   :  { %v4241_v41 = vld [vmem:[%s4240_s23] ss:$8 sm:$0x3]  ;;  %s4249_s14 = sadd.s32 %s6946_s25, %s4246_s13  ;;  %s4253_s28 = sshra.s32 %s8590_s5, 3  ;;  %v4265_v60 = vmax.f32 %v4262_v44, %v4263_v34 }
 0x738   :  { %s4256_s20 = sand.u32 7, %s8590_s5  ;;  %s4250_s4 = scalar_lea.vmem [#allocation2], %s4249_s14 }
 0x739   :  { %v4251_v55 = vld [vmem:[%s4250_s4] ss:$8 sm:$0x3]  ;;  %s6947_s27 = sshll.u32 %s4253_s28, 4  ;;  %s4275_s24 = sshra.s32 %s8592_s16, 3 }
 0x73a   :  { %s4259_s7 = sadd.s32 %s6947_s27, %s4256_s20  ;;  %v4264_v59 = vmax.f32 %v4241_v41, %v4251_v55  ;;  %s4278_s19 = sand.u32 7, %s8592_s16 }
 0x73b   :  { %s6948_s9 = sshll.u32 %s4275_s24, 4  ;;  %s4260_s11 = scalar_lea.vmem [#allocation2], %s4259_s7 }
 0x73c   :  { %v4261_v4 = vld [vmem:[%s4260_s11] ss:$8 sm:$0x3]  ;;  %s6559_s22 = sld [smem:[#allocation4 + $0xf6]]  ;;  %s4281_s26 = sadd.s32 %s6948_s9, %s4278_s19 }
 0x73d   :  { %v4266_v61 = vmax.f32 %v4264_v59, %v4261_v4  ;;  %s6562_s2 = sld [smem:[#allocation4 + $0xf7]]  ;;  %s4282_s8 = scalar_lea.vmem [#allocation2], %s4281_s26 }
 0x73e   :  { %s6565_s1 = sld [smem:[#allocation4 + $0xf8]]  ;;  %v4283_v56 = vld [vmem:[%s4282_s8] ss:$8 sm:$0x3] }
 0x73f   :  { %v4267_v5 = vmax.f32 %v4265_v60, %v4266_v61  ;;  %s8600_s6 = sld [smem:[#allocation4 + $0xf9]] }
 0x740   :  { %s8602_s5 = sld [smem:[#allocation4 + $0xfa]] }
 0x741   :  { %v4269_v10 = vrot.slane %v4267_v5, 1  ;;  %s8604_s3 = sld [smem:[#allocation4 + $0xfb]] }
 0x742   :  { %s4285_s12 = sshra.s32 %s6559_s22, 3  ;;  %s4288_s16 = sand.u32 7, %s6559_s22 }
 0x743   :  { %v4271_v12 = vadd.f32 %v4269_v10, %v4267_v5  ;;  %s6949_s0 = sshll.u32 %s4285_s12, 4  ;;  %s4295_s18 = sshra.s32 %s6562_s2, 3 }
 0x744   :  { %s4291_s17 = sadd.s32 %s6949_s0, %s4288_s16  ;;  %s4298_s10 = sand.u32 7, %s6562_s2 }
 0x745   :  { %v4272_v3 = vmax.f32 %v4271_v12, 0.0  ;;  %s6950_s21 = sshll.u32 %s4295_s18, 4  ;;  %s4305_s30 = sshra.s32 %s6565_s1, 3 }
 0x746   :  { %s4301_s15 = sadd.s32 %s6950_s21, %s4298_s10  ;;  %s4308_s29 = sand.u32 7, %s6565_s1 }
 0x747   :  { %4273 = vst [vmem:[#allocation13 + $0x22] sm:$0x1] %v4272_v3  ;;  %s6951_s13 = sshll.u32 %s4305_s30, 4  ;;  %s4315_s25 = sshra.s32 %s8600_s6, 3 }
 0x748   :  { %s4292_s23 = scalar_lea.vmem [#allocation2], %s4291_s17  ;;  %s4311_s14 = sadd.s32 %s6951_s13, %s4308_s29 }
 0x749   :  { %v4293_v15 = vld [vmem:[%s4292_s23] ss:$8 sm:$0x3]  ;;  %s4318_s28 = sand.u32 7, %s8600_s6  ;;  %s4302_s20 = scalar_lea.vmem [#allocation2], %s4301_s15 }
 0x74a   :  { %v4303_v17 = vld [vmem:[%s4302_s20] ss:$8 sm:$0x3]  ;;  %s6952_s4 = sshll.u32 %s4315_s25, 4  ;;  %s4312_s27 = scalar_lea.vmem [#allocation2], %s4311_s14  ;;  %v4344_v2 = vmax.f32 %v4283_v56, %v4293_v15 }
 0x74b   :  { %v4313_v18 = vld [vmem:[%s4312_s27] ss:$8 sm:$0x3]  ;;  %s4321_s24 = sadd.s32 %s6952_s4, %s4318_s28  ;;  %s4325_s7 = sshra.s32 %s8602_s5, 3 }
 0x74c   :  { %s4328_s19 = sand.u32 7, %s8602_s5  ;;  %s6953_s9 = sshll.u32 %s4325_s7, 4  ;;  %v4345_v16 = vmax.f32 %v4303_v17, %v4313_v18 }
 0x74d   :  { %s4335_s11 = sshra.s32 %s8604_s3, 3  ;;  %s4322_s22 = scalar_lea.vmem [#allocation2], %s4321_s24 }
 0x74e   :  { %v4323_v19 = vld [vmem:[%s4322_s22] ss:$8 sm:$0x3]  ;;  %s4331_s2 = sadd.s32 %s6953_s9, %s4328_s19  ;;  %s4338_s26 = sand.u32 7, %s8604_s3  ;;  %v4347_v20 = vmax.f32 %v4344_v2, %v4345_v16 }
 0x74f   :  { %s6954_s1 = sshll.u32 %s4335_s11, 4  ;;  %s4332_s12 = scalar_lea.vmem [#allocation2], %s4331_s2 }
 0x750   :  { %v4333_v38 = vld [vmem:[%s4332_s12] ss:$8 sm:$0x3]  ;;  %s4341_s6 = sadd.s32 %s6954_s1, %s4338_s26  ;;  %s6577_s16 = sld [smem:[#allocation4 + $0xfc]] }
 0x751   :  { %v4346_v27 = vmax.f32 %v4323_v19, %v4333_v38  ;;  %s6580_s0 = sld [smem:[#allocation4 + $0xfd]]  ;;  %s4342_s18 = scalar_lea.vmem [#allocation2], %s4341_s6 }
 0x752   :  { %v4343_v30 = vld [vmem:[%s4342_s18] ss:$8 sm:$0x3]  ;;  %s6583_s17 = sld [smem:[#allocation4 + $0xfe]] }
 0x753   :  { %v4348_v25 = vmax.f32 %v4346_v27, %v4343_v30  ;;  %s6586_s5 = sld [smem:[#allocation4 + $0xff]] }
 0x754   :  { %s6589_s10 = sld [smem:[#allocation4 + $0x100]] }
 0x755   :  { %v4349_v28 = vmax.f32 %v4347_v20, %v4348_v25  ;;  %s8612_s21 = sld [smem:[#allocation4 + $0x101]] }
 0x756   :  { %s4357_s15 = sshra.s32 %s6577_s16, 3  ;;  %s4360_s30 = sand.u32 7, %s6577_s16 }
 0x757   :  { %v4351_v32 = vrot.slane %v4349_v28, 1  ;;  %s6955_s3 = sshll.u32 %s4357_s15, 4  ;;  %s4367_s29 = sshra.s32 %s6580_s0, 3 }
 0x758   :  { %s4363_s8 = sadd.s32 %s6955_s3, %s4360_s30  ;;  %s4370_s13 = sand.u32 7, %s6580_s0 }
 0x759   :  { %v4353_v6 = vadd.f32 %v4351_v32, %v4349_v28  ;;  %s6956_s25 = sshll.u32 %s4367_s29, 4  ;;  %s4377_s14 = sshra.s32 %s6583_s17, 3 }
 0x75a   :  { %s4373_s23 = sadd.s32 %s6956_s25, %s4370_s13  ;;  %s4380_s28 = sand.u32 7, %s6583_s17 }
 0x75b   :  { %v4354_v1 = vmax.f32 %v4353_v6, 0.0  ;;  %s6957_s20 = sshll.u32 %s4377_s14, 4  ;;  %s4387_s4 = sshra.s32 %s6586_s5, 3 }
 0x75c   :  { %s4383_s27 = sadd.s32 %s6957_s20, %s4380_s28  ;;  %s4390_s24 = sand.u32 7, %s6586_s5 }
 0x75d   :  { %4355 = vst [vmem:[#allocation13 + $0x23] sm:$0x1] %v4354_v1  ;;  %s6958_s7 = sshll.u32 %s4387_s4, 4  ;;  %s4397_s9 = sshra.s32 %s6589_s10, 3 }
 0x75e   :  { %s4393_s19 = sadd.s32 %s6958_s7, %s4390_s24  ;;  %s4400_s11 = sand.u32 7, %s6589_s10 }
 0x75f   :  { %s6959_s22 = sshll.u32 %s4397_s9, 4  ;;  %s4407_s2 = sshra.s32 %s8612_s21, 3 }
 0x760   :  { %s4403_s26 = sadd.s32 %s6959_s22, %s4400_s11  ;;  %s4410_s1 = sand.u32 7, %s8612_s21 }
 0x761   :  { %s6960_s12 = sshll.u32 %s4407_s2, 4  ;;  %s4364_s6 = scalar_lea.vmem [#allocation2], %s4363_s8 }
 0x762   :  { %v4365_v11 = vld [vmem:[%s4364_s6] ss:$8 sm:$0x3]  ;;  %s4374_s16 = scalar_lea.vmem [#allocation2], %s4373_s23  ;;  %s4413_s0 = sadd.s32 %s6960_s12, %s4410_s1 }
 0x763   :  { %v4375_v21 = vld [vmem:[%s4374_s16] ss:$8 sm:$0x3]  ;;  %s6595_s18 = sld [smem:[#allocation4 + $0x102]]  ;;  %s4384_s17 = scalar_lea.vmem [#allocation2], %s4383_s27 }
 0x764   :  { %v4385_v22 = vld [vmem:[%s4384_s17] ss:$8 sm:$0x3]  ;;  %s6598_s15 = sld [smem:[#allocation4 + $0x103]]  ;;  %s4394_s30 = scalar_lea.vmem [#allocation2], %s4393_s19  ;;  %v4426_v40 = vmax.f32 %v4365_v11, %v4375_v21 }
 0x765   :  { %v4395_v23 = vld [vmem:[%s4394_s30] ss:$8 sm:$0x3]  ;;  %s8616_s5 = sld [smem:[#allocation4 + $0x104]]  ;;  %s4404_s3 = scalar_lea.vmem [#allocation2], %s4403_s26 }
 0x766   :  { %v4405_v31 = vld [vmem:[%s4404_s3] ss:$8 sm:$0x3]  ;;  %s8618_s10 = sld [smem:[#allocation4 + $0x105]]  ;;  %s4414_s29 = scalar_lea.vmem [#allocation2], %s4413_s0  ;;  %v4427_v42 = vmax.f32 %v4385_v22, %v4395_v23 }
 0x767   :  { %v4415_v33 = vld [vmem:[%s4414_s29] ss:$8 sm:$0x3]  ;;  %s8620_s21 = sld [smem:[#allocation4 + $0x106]] }
 0x768   :  { %s8622_s8 = sld [smem:[#allocation4 + $0x107]]  ;;  %v4428_v45 = vmax.f32 %v4405_v31, %v4415_v33  ;;  %v4429_v46 = vmax.f32 %v4426_v40, %v4427_v42 }
 0x769   :  { %s4417_s13 = sshra.s32 %s6595_s18, 3  ;;  %s4420_s25 = sand.u32 7, %s6595_s18 }
 0x76a   :  { %s6961_s23 = sshll.u32 %s4417_s13, 4  ;;  %s4439_s14 = sshra.s32 %s6598_s15, 3 }
 0x76b   :  { %s4423_s28 = sadd.s32 %s6961_s23, %s4420_s25  ;;  %s4442_s20 = sand.u32 7, %s6598_s15 }
 0x76c   :  { %s6962_s4 = sshll.u32 %s4439_s14, 4  ;;  %s4424_s27 = scalar_lea.vmem [#allocation2], %s4423_s28 }
 0x76d   :  { %v4425_v47 = vld [vmem:[%s4424_s27] ss:$8 sm:$0x3]  ;;  %s4449_s24 = sshra.s32 %s8616_s5, 3  ;;  %s4445_s7 = sadd.s32 %s6962_s4, %s4442_s20 }
 0x76e   :  { %v4430_v48 = vmax.f32 %v4428_v45, %v4425_v47  ;;  %s4452_s19 = sand.u32 7, %s8616_s5  ;;  %s6963_s9 = sshll.u32 %s4449_s24, 4 }
 0x76f   :  { %s4459_s11 = sshra.s32 %s8618_s10, 3  ;;  %s4462_s22 = sand.u32 7, %s8618_s10 }
 0x770   :  { %v4431_v49 = vmax.f32 %v4429_v46, %v4430_v48  ;;  %s6964_s2 = sshll.u32 %s4459_s11, 4  ;;  %s4455_s26 = sadd.s32 %s6963_s9, %s4452_s19 }
 0x771   :  { %s4469_s1 = sshra.s32 %s8620_s21, 3  ;;  %s4465_s12 = sadd.s32 %s6964_s2, %s4462_s22 }
 0x772   :  { %v4433_v50 = vrot.slane %v4431_v49, 1  ;;  %s4472_s6 = sand.u32 7, %s8620_s21  ;;  %s6965_s16 = sshll.u32 %s4469_s1, 4 }
 0x773   :  { %s4479_s0 = sshra.s32 %s8622_s8, 3  ;;  %s4475_s18 = sadd.s32 %s6965_s16, %s4472_s6 }
 0x774   :  { %v4435_v51 = vadd.f32 %v4433_v50, %v4431_v49  ;;  %s4482_s17 = sand.u32 7, %s8622_s8  ;;  %s6966_s15 = sshll.u32 %s4479_s0, 4 }
 0x775   :  { %s6613_s30 = sld [smem:[#allocation4 + $0x108]]  ;;  %s4446_s3 = scalar_lea.vmem [#allocation2], %s4445_s7 }
 0x776   :  { %v4436_v52 = vmax.f32 %v4435_v51, 0.0  ;;  %s6616_s5 = sld [smem:[#allocation4 + $0x109]]  ;;  %v4447_v53 = vld [vmem:[%s4446_s3] ss:$8 sm:$0x3]  ;;  %s4456_s29 = scalar_lea.vmem [#allocation2], %s4455_s26 }
 0x777   :  { %v4457_v54 = vld [vmem:[%s4456_s29] ss:$8 sm:$0x3]  ;;  %s4485_s10 = sadd.s32 %s6966_s15, %s4482_s17  ;;  %s8632_s13 = sld [smem:[#allocation4 + $0x10a]] }
 0x778   :  { %4437 = vst [vmem:[#allocation13 + $0x24] sm:$0x1] %v4436_v52  ;;  %s4466_s25 = scalar_lea.vmem [#allocation2], %s4465_s12  ;;  %s8634_s21 = sld [smem:[#allocation4 + $0x10b]]  ;;  %v4508_v62 = vmax.f32 %v4447_v53, %v4457_v54 }
 0x779   :  { %v4467_v57 = vld [vmem:[%s4466_s25] ss:$8 sm:$0x3]  ;;  %s4476_s23 = scalar_lea.vmem [#allocation2], %s4475_s18  ;;  %s8636_s14 = sld [smem:[#allocation4 + $0x10c]] }
 0x77a   :  { %v4477_v58 = vld [vmem:[%s4476_s23] ss:$8 sm:$0x3]  ;;  %s8638_s8 = sld [smem:[#allocation4 + $0x10d]]  ;;  %s4486_s24 = scalar_lea.vmem [#allocation2], %s4485_s10 }
 0x77b   :  { %s4489_s28 = sshra.s32 %s6613_s30, 3  ;;  %s4492_s20 = sand.u32 7, %s6613_s30  ;;  %v4509_v63 = vmax.f32 %v4467_v57, %v4477_v58  ;;  %v4487_v0 = vld [vmem:[%s4486_s24] ss:$8 sm:$0x3] }
 0x77c   :  { %s6967_s4 = sshll.u32 %s4489_s28, 4  ;;  %s4499_s27 = sshra.s32 %s6616_s5, 3 }
 0x77d   :  { %s4495_s7 = sadd.s32 %s6967_s4, %s4492_s20  ;;  %s4502_s19 = sand.u32 7, %s6616_s5  ;;  %v4511_v39 = vmax.f32 %v4508_v62, %v4509_v63 }
 0x77e   :  { %s6968_s9 = sshll.u32 %s4499_s27, 4  ;;  %s4496_s11 = scalar_lea.vmem [#allocation2], %s4495_s7 }
 0x77f   :  { %v4497_v14 = vld [vmem:[%s4496_s11] ss:$8 sm:$0x3]  ;;  %s4505_s22 = sadd.s32 %s6968_s9, %s4502_s19  ;;  %s4521_s2 = sshra.s32 %s8632_s13, 3 }
 0x780   :  { %v4510_v29 = vmax.f32 %v4487_v0, %v4497_v14  ;;  %s4524_s26 = sand.u32 7, %s8632_s13  ;;  %s4506_s1 = scalar_lea.vmem [#allocation2], %s4505_s22 }
 0x781   :  { %v4507_v8 = vld [vmem:[%s4506_s1] ss:$8 sm:$0x3]  ;;  %s6969_s12 = sshll.u32 %s4521_s2, 4  ;;  %s4531_s6 = sshra.s32 %s8634_s21, 3 }
 0x782   :  { %v4512_v24 = vmax.f32 %v4510_v29, %v4507_v8  ;;  %s4527_s16 = sadd.s32 %s6969_s12, %s4524_s26  ;;  %s4534_s0 = sand.u32 7, %s8634_s21 }
 0x783   :  { %s4541_s18 = sshra.s32 %s8636_s14, 3  ;;  %s6970_s17 = sshll.u32 %s4531_s6, 4 }
 0x784   :  { %v4513_v26 = vmax.f32 %v4511_v39, %v4512_v24  ;;  %s4544_s15 = sand.u32 7, %s8636_s14  ;;  %s6971_s30 = sshll.u32 %s4541_s18, 4 }
 0x785   :  { %s4551_s5 = sshra.s32 %s8638_s8, 3  ;;  %s4554_s3 = sand.u32 7, %s8638_s8 }
 0x786   :  { %v4515_v35 = vrot.slane %v4513_v26, 1  ;;  %s4537_s29 = sadd.s32 %s6970_s17, %s4534_s0  ;;  %s6972_s10 = sshll.u32 %s4551_s5, 4 }
 0x787   :  { %s4547_s25 = sadd.s32 %s6971_s30, %s4544_s15  ;;  %s6631_s13 = sld [smem:[#allocation4 + $0x10e]] }
 0x788   :  { %v4517_v7 = vadd.f32 %v4515_v35, %v4513_v26  ;;  %s4557_s23 = sadd.s32 %s6972_s10, %s4554_s3  ;;  %s6634_s28 = sld [smem:[#allocation4 + $0x10f]] }
 0x789   :  { %s8648_s20 = sld [smem:[#allocation4 + $0x110]]  ;;  %s4528_s14 = scalar_lea.vmem [#allocation2], %s4527_s16 }
 0x78a   :  { %v4518_v36 = vmax.f32 %v4517_v7, 0.0  ;;  %s8650_s4 = sld [smem:[#allocation4 + $0x111]]  ;;  %v4529_v43 = vld [vmem:[%s4528_s14] ss:$8 sm:$0x3]  ;;  %s4538_s27 = scalar_lea.vmem [#allocation2], %s4537_s29 }
 0x78b   :  { %s8652_s21 = sld [smem:[#allocation4 + $0x112]]  ;;  %v4539_v9 = vld [vmem:[%s4538_s27] ss:$8 sm:$0x3]  ;;  %s4548_s24 = scalar_lea.vmem [#allocation2], %s4547_s25 }
 0x78c   :  { %4519 = vst [vmem:[#allocation13 + $0x25] sm:$0x1] %v4518_v36  ;;  %s8654_s8 = sld [smem:[#allocation4 + $0x113]]  ;;  %v4549_v13 = vld [vmem:[%s4548_s24] ss:$8 sm:$0x3]  ;;  %v4590_v44 = vmax.f32 %v4529_v43, %v4539_v9 }
 0x78d   :  { %s4561_s7 = sshra.s32 %s6631_s13, 3  ;;  %s4564_s19 = sand.u32 7, %s6631_s13 }
 0x78e   :  { %s4558_s9 = scalar_lea.vmem [#allocation2], %s4557_s23  ;;  %s6973_s11 = sshll.u32 %s4561_s7, 4 }
 0x78f   :  { %v4559_v37 = vld [vmem:[%s4558_s9] ss:$8 sm:$0x3]  ;;  %s4571_s22 = sshra.s32 %s6634_s28, 3  ;;  %s4567_s2 = sadd.s32 %s6973_s11, %s4564_s19 }
 0x790   :  { %s4574_s26 = sand.u32 7, %s6634_s28  ;;  %s6974_s1 = sshll.u32 %s4571_s22, 4  ;;  %v4591_v34 = vmax.f32 %v4549_v13, %v4559_v37 }
 0x791   :  { %s4568_s12 = scalar_lea.vmem [#allocation2], %s4567_s2  ;;  %s4577_s6 = sadd.s32 %s6974_s1, %s4574_s26 }
 0x792   :  { %v4569_v41 = vld [vmem:[%s4568_s12] ss:$8 sm:$0x3]  ;;  %s4581_s16 = sshra.s32 %s8648_s20, 3  ;;  %s4584_s0 = sand.u32 7, %s8648_s20  ;;  %v4593_v60 = vmax.f32 %v4590_v44, %v4591_v34 }
 0x793   :  { %s4578_s18 = scalar_lea.vmem [#allocation2], %s4577_s6  ;;  %s6975_s17 = sshll.u32 %s4581_s16, 4 }
 0x794   :  { %v4579_v55 = vld [vmem:[%s4578_s18] ss:$8 sm:$0x3]  ;;  %s4587_s15 = sadd.s32 %s6975_s17, %s4584_s0  ;;  %s4603_s30 = sshra.s32 %s8650_s4, 3 }
 0x795   :  { %v4592_v59 = vmax.f32 %v4569_v41, %v4579_v55  ;;  %s4588_s5 = scalar_lea.vmem [#allocation2], %s4587_s15  ;;  %s4613_s3 = sshra.s32 %s8652_s21, 3 }
 0x796   :  { %v4589_v4 = vld [vmem:[%s4588_s5] ss:$8 sm:$0x3]  ;;  %s4606_s29 = sand.u32 7, %s8650_s4  ;;  %s6976_s10 = sshll.u32 %s4603_s30, 4 }
 0x797   :  { %v4594_v61 = vmax.f32 %v4592_v59, %v4589_v4  ;;  %s4623_s25 = sshra.s32 %s8654_s8, 3  ;;  %s4616_s13 = sand.u32 7, %s8652_s21 }
 0x798   :  { %s6977_s23 = sshll.u32 %s4613_s3, 4  ;;  %s4626_s28 = sand.u32 7, %s8654_s8 }
 0x799   :  { %v4595_v5 = vmax.f32 %v4593_v60, %v4594_v61  ;;  %s6978_s20 = sshll.u32 %s4623_s25, 4  ;;  %s4609_s14 = sadd.s32 %s6976_s10, %s4606_s29 }
 0x79a   :  { %s6649_s27 = sld [smem:[#allocation4 + $0x114]]  ;;  %s4619_s24 = sadd.s32 %s6977_s23, %s4616_s13 }
 0x79b   :  { %v4597_v10 = vrot.slane %v4595_v5, 1  ;;  %s6652_s7 = sld [smem:[#allocation4 + $0x115]]  ;;  %s4629_s19 = sadd.s32 %s6978_s20, %s4626_s28 }
 0x79c   :  { %s8664_s9 = sld [smem:[#allocation4 + $0x116]]  ;;  %s4610_s2 = scalar_lea.vmem [#allocation2], %s4609_s14 }
 0x79d   :  { %v4599_v12 = vadd.f32 %v4597_v10, %v4595_v5  ;;  %s8666_s11 = sld [smem:[#allocation4 + $0x117]]  ;;  %v4611_v56 = vld [vmem:[%s4610_s2] ss:$8 sm:$0x3]  ;;  %s4620_s12 = scalar_lea.vmem [#allocation2], %s4619_s24 }
 0x79e   :  { %s8668_s4 = sld [smem:[#allocation4 + $0x118]]  ;;  %v4621_v15 = vld [vmem:[%s4620_s12] ss:$8 sm:$0x3]  ;;  %s4630_s0 = scalar_lea.vmem [#allocation2], %s4629_s19 }
 0x79f   :  { %v4600_v3 = vmax.f32 %v4599_v12, 0.0  ;;  %s8670_s22 = sld [smem:[#allocation4 + $0x119]]  ;;  %v4631_v17 = vld [vmem:[%s4630_s0] ss:$8 sm:$0x3]  ;;  %v4672_v2 = vmax.f32 %v4611_v56, %v4621_v15 }
 0x7a0   :  { %s4633_s21 = sshra.s32 %s6649_s27, 3  ;;  %s4636_s8 = sand.u32 7, %s6649_s27 }
 0x7a1   :  { %4601 = vst [vmem:[#allocation13 + $0x26] sm:$0x1] %v4600_v3  ;;  %s6979_s26 = sshll.u32 %s4633_s21, 4  ;;  %s4643_s1 = sshra.s32 %s6652_s7, 3 }
 0x7a2   :  { %s4639_s6 = sadd.s32 %s6979_s26, %s4636_s8  ;;  %s4646_s16 = sand.u32 7, %s6652_s7 }
 0x7a3   :  { %s6980_s18 = sshll.u32 %s4643_s1, 4  ;;  %s4640_s17 = scalar_lea.vmem [#allocation2], %s4639_s6 }
 0x7a4   :  { %v4641_v18 = vld [vmem:[%s4640_s17] ss:$8 sm:$0x3]  ;;  %s4649_s15 = sadd.s32 %s6980_s18, %s4646_s16  ;;  %s4653_s30 = sshra.s32 %s8664_s9, 3 }
 0x7a5   :  { %s4656_s5 = sand.u32 7, %s8664_s9  ;;  %s6981_s3 = sshll.u32 %s4653_s30, 4  ;;  %v4673_v16 = vmax.f32 %v4631_v17, %v4641_v18 }
 0x7a6   :  { %s4663_s29 = sshra.s32 %s8666_s11, 3  ;;  %s4650_s10 = scalar_lea.vmem [#allocation2], %s4649_s15 }
 0x7a7   :  { %v4651_v19 = vld [vmem:[%s4650_s10] ss:$8 sm:$0x3]  ;;  %s4659_s25 = sadd.s32 %s6981_s3, %s4656_s5  ;;  %s4666_s13 = sand.u32 7, %s8666_s11  ;;  %v4675_v20 = vmax.f32 %v4672_v2, %v4673_v16 }
 0x7a8   :  { %s6982_s23 = sshll.u32 %s4663_s29, 4  ;;  %s4660_s28 = scalar_lea.vmem [#allocation2], %s4659_s25 }
 0x7a9   :  { %v4661_v38 = vld [vmem:[%s4660_s28] ss:$8 sm:$0x3]  ;;  %s4669_s20 = sadd.s32 %s6982_s23, %s4666_s13  ;;  %s4685_s14 = sshra.s32 %s8668_s4, 3 }
 0x7aa   :  { %v4674_v27 = vmax.f32 %v4651_v19, %v4661_v38  ;;  %s4670_s27 = scalar_lea.vmem [#allocation2], %s4669_s20  ;;  %s4695_s24 = sshra.s32 %s8670_s22, 3 }
 0x7ab   :  { %v4671_v30 = vld [vmem:[%s4670_s27] ss:$8 sm:$0x3]  ;;  %s4688_s7 = sand.u32 7, %s8668_s4  ;;  %s6983_s19 = sshll.u32 %s4685_s14, 4 }
 0x7ac   :  { %v4676_v25 = vmax.f32 %v4674_v27, %v4671_v30  ;;  %s4698_s9 = sand.u32 7, %s8670_s22  ;;  %s6984_s21 = sshll.u32 %s4695_s24, 4 }
 0x7ad   :  { %s6667_s8 = sld [smem:[#allocation4 + $0x11a]]  ;;  %s4691_s2 = sadd.s32 %s6983_s19, %s4688_s7 }
 0x7ae   :  { %v4677_v28 = vmax.f32 %v4675_v20, %v4676_v25  ;;  %s6670_s26 = sld [smem:[#allocation4 + $0x11b]]  ;;  %s4701_s11 = sadd.s32 %s6984_s21, %s4698_s9 }
 0x7af   :  { %s6673_s1 = sld [smem:[#allocation4 + $0x11c]]  ;;  %s4692_s5 = scalar_lea.vmem [#allocation2], %s4691_s2 }
 0x7b0   :  { %v4679_v32 = vrot.slane %v4677_v28, 1  ;;  %s8680_s12 = sld [smem:[#allocation4 + $0x11d]]  ;;  %v4693_v11 = vld [vmem:[%s4692_s5] ss:$8 sm:$0x3]  ;;  %s4702_s3 = scalar_lea.vmem [#allocation2], %s4701_s11 }
 0x7b1   :  { %s8682_s6 = sld [smem:[#allocation4 + $0x11e]]  ;;  %v4703_v21 = vld [vmem:[%s4702_s3] ss:$8 sm:$0x3] }
 0x7b2   :  { %v4681_v6 = vadd.f32 %v4679_v32, %v4677_v28  ;;  %s8684_s16 = sld [smem:[#allocation4 + $0x11f]]  ;;  %v4754_v33 = vmax.f32 %v4693_v11, %v4703_v21 }
 0x7b3   :  { %s4705_s0 = sshra.s32 %s6667_s8, 3  ;;  %s4708_s4 = sand.u32 7, %s6667_s8 }
 0x7b4   :  { %v4682_v1 = vmax.f32 %v4681_v6, 0.0  ;;  %s6985_s18 = sshll.u32 %s4705_s0, 4  ;;  %s4715_s22 = sshra.s32 %s6670_s26, 3 }
 0x7b5   :  { %s4711_s17 = sadd.s32 %s6985_s18, %s4708_s4  ;;  %s4718_s15 = sand.u32 7, %s6670_s26 }
 0x7b6   :  { %4683 = vst [vmem:[#allocation13 + $0x27] sm:$0x1] %v4682_v1  ;;  %s6986_s30 = sshll.u32 %s4715_s22, 4  ;;  %s4725_s10 = sshra.s32 %s6673_s1, 3 }
 0x7b7   :  { %s4721_s29 = sadd.s32 %s6986_s30, %s4718_s15  ;;  %s4712_s25 = scalar_lea.vmem [#allocation2], %s4711_s17 }
 0x7b8   :  { %v4713_v22 = vld [vmem:[%s4712_s25] ss:$8 sm:$0x3]  ;;  %s4728_s13 = sand.u32 7, %s6673_s1  ;;  %s4722_s23 = scalar_lea.vmem [#allocation2], %s4721_s29 }
 0x7b9   :  { %v4723_v23 = vld [vmem:[%s4722_s23] ss:$8 sm:$0x3]  ;;  %s6987_s28 = sshll.u32 %s4725_s10, 4  ;;  %s4735_s20 = sshra.s32 %s8680_s12, 3 }
 0x7ba   :  { %s4731_s14 = sadd.s32 %s6987_s28, %s4728_s13  ;;  %s4738_s27 = sand.u32 7, %s8680_s12  ;;  %v4755_v40 = vmax.f32 %v4713_v22, %v4723_v23 }
 0x7bb   :  { %s6988_s24 = sshll.u32 %s4735_s20, 4  ;;  %s4732_s7 = scalar_lea.vmem [#allocation2], %s4731_s14 }
 0x7bc   :  { %v4733_v31 = vld [vmem:[%s4732_s7] ss:$8 sm:$0x3]  ;;  %s4741_s19 = sadd.s32 %s6988_s24, %s4738_s27  ;;  %s4745_s9 = sshra.s32 %s8682_s6, 3  ;;  %v4757_v46 = vmax.f32 %v4754_v33, %v4755_v40 }
 0x7bd   :  { %s4748_s21 = sand.u32 7, %s8682_s6  ;;  %s4742_s8 = scalar_lea.vmem [#allocation2], %s4741_s19 }
 0x7be   :  { %v4743_v42 = vld [vmem:[%s4742_s8] ss:$8 sm:$0x3]  ;;  %s6989_s2 = sshll.u32 %s4745_s9, 4  ;;  %s4767_s26 = sshra.s32 %s8684_s16, 3 }
 0x7bf   :  { %s4751_s11 = sadd.s32 %s6989_s2, %s4748_s21  ;;  %v4756_v45 = vmax.f32 %v4733_v31, %v4743_v42  ;;  %s4770_s1 = sand.u32 7, %s8684_s16 }
 0x7c0   :  { %s6990_s0 = sshll.u32 %s4767_s26, 4  ;;  %s4752_s4 = scalar_lea.vmem [#allocation2], %s4751_s11 }
 0x7c1   :  { %v4753_v47 = vld [vmem:[%s4752_s4] ss:$8 sm:$0x3]  ;;  %s6685_s12 = sld [smem:[#allocation4 + $0x120]]  ;;  %s4773_s22 = sadd.s32 %s6990_s0, %s4770_s1 }
 0x7c2   :  { %v4758_v48 = vmax.f32 %v4756_v45, %v4753_v47  ;;  %s6688_s18 = sld [smem:[#allocation4 + $0x121]]  ;;  %s4774_s14 = scalar_lea.vmem [#allocation2], %s4773_s22 }
 0x7c3   :  { %s6691_s17 = sld [smem:[#allocation4 + $0x122]]  ;;  %v4775_v53 = vld [vmem:[%s4774_s14] ss:$8 sm:$0x3] }
 0x7c4   :  { %v4759_v49 = vmax.f32 %v4757_v46, %v4758_v48  ;;  %s8692_s15 = sld [smem:[#allocation4 + $0x123]] }
 0x7c5   :  { %s8694_s6 = sld [smem:[#allocation4 + $0x124]] }
 0x7c6   :  { %v4761_v50 = vrot.slane %v4759_v49, 1  ;;  %s8696_s30 = sld [smem:[#allocation4 + $0x125]] }
 0x7c7   :  { %s4777_s5 = sshra.s32 %s6685_s12, 3  ;;  %s4780_s16 = sand.u32 7, %s6685_s12 }
 0x7c8   :  { %v4763_v51 = vadd.f32 %v4761_v50, %v4759_v49  ;;  %s6991_s3 = sshll.u32 %s4777_s5, 4  ;;  %s4787_s29 = sshra.s32 %s6688_s18, 3 }
 0x7c9   :  { %s4783_s10 = sadd.s32 %s6991_s3, %s4780_s16  ;;  %s4790_s25 = sand.u32 7, %s6688_s18 }
 0x7ca   :  { %v4764_v52 = vmax.f32 %v4763_v51, 0.0  ;;  %s6992_s13 = sshll.u32 %s4787_s29, 4  ;;  %s4797_s28 = sshra.s32 %s6691_s17, 3 }
 0x7cb   :  { %s4793_s23 = sadd.s32 %s6992_s13, %s4790_s25  ;;  %s4800_s20 = sand.u32 7, %s6691_s17 }
 0x7cc   :  { %4765 = vst [vmem:[#allocation13 + $0x28] sm:$0x1] %v4764_v52  ;;  %s6993_s27 = sshll.u32 %s4797_s28, 4  ;;  %s4807_s24 = sshra.s32 %s8692_s15, 3 }
 0x7cd   :  { %s4784_s7 = scalar_lea.vmem [#allocation2], %s4783_s10  ;;  %s4803_s19 = sadd.s32 %s6993_s27, %s4800_s20 }
 0x7ce   :  { %v4785_v54 = vld [vmem:[%s4784_s7] ss:$8 sm:$0x3]  ;;  %s4810_s9 = sand.u32 7, %s8692_s15  ;;  %s4794_s21 = scalar_lea.vmem [#allocation2], %s4793_s23 }
 0x7cf   :  { %v4795_v57 = vld [vmem:[%s4794_s21] ss:$8 sm:$0x3]  ;;  %s6994_s8 = sshll.u32 %s4807_s24, 4  ;;  %s4804_s2 = scalar_lea.vmem [#allocation2], %s4803_s19  ;;  %v4836_v62 = vmax.f32 %v4775_v53, %v4785_v54 }
 0x7d0   :  { %v4805_v58 = vld [vmem:[%s4804_s2] ss:$8 sm:$0x3]  ;;  %s4813_s26 = sadd.s32 %s6994_s8, %s4810_s9  ;;  %s4817_s11 = sshra.s32 %s8694_s6, 3 }
 0x7d1   :  { %s4820_s1 = sand.u32 7, %s8694_s6  ;;  %s6995_s0 = sshll.u32 %s4817_s11, 4  ;;  %v4837_v63 = vmax.f32 %v4795_v57, %v4805_v58 }
 0x7d2   :  { %s4827_s4 = sshra.s32 %s8696_s30, 3  ;;  %s4814_s12 = scalar_lea.vmem [#allocation2], %s4813_s26 }
 0x7d3   :  { %v4815_v0 = vld [vmem:[%s4814_s12] ss:$8 sm:$0x3]  ;;  %s4823_s18 = sadd.s32 %s6995_s0, %s4820_s1  ;;  %s4830_s22 = sand.u32 7, %s8696_s30  ;;  %v4839_v39 = vmax.f32 %v4836_v62, %v4837_v63 }
 0x7d4   :  { %s6996_s17 = sshll.u32 %s4827_s4, 4  ;;  %s4824_s5 = scalar_lea.vmem [#allocation2], %s4823_s18 }
 0x7d5   :  { %v4825_v14 = vld [vmem:[%s4824_s5] ss:$8 sm:$0x3]  ;;  %s4833_s15 = sadd.s32 %s6996_s17, %s4830_s22  ;;  %s7551_s6 = smov [#allocation13]  }
 0x7d6   :  { %v4838_v29 = vmax.f32 %v4815_v0, %v4825_v14  ;;  %s4834_s16 = scalar_lea.vmem [#allocation2], %s4833_s15  ;;  %s4853_s3 = sshll.u32 %s7551_s6, 4  ;;  %s4854_s3 = int_to_ptr.vmem [resolvable:$true] %s4853_s3 }
 0x7d7   :  { %v4835_v8 = vld [vmem:[%s4834_s16] ss:$8 sm:$0x3]  ;;  %s7511_s29 = scalar_lea.vmem %s4854_s3, 768  ;;  %p7516_p7 = scmp.lt.s32.totalorder %s4854_s3, %s4854_s3 }
 0x7d8   :  { %v4840_v24 = vmax.f32 %v4838_v29, %v4835_v8  ;;  %p7512_p6 = scmp.ne.s32.totalorder %s4854_s3, %s7511_s29  ;;  %p7517_p8 = scmp.lt.s32.totalorder %s7511_s29, %s7511_s29 }
 0x7da   :  { %v4841_v26 = vmax.f32 %v4839_v39, %v4840_v24  ;;  %p7518_p9 = por %p7517_p8, %p7516_p7 }
 0x7dc   :  { %v4843_v35 = vrot.slane %v4841_v26, 1  ;;  %p7519_p10 = pnand %p7518_p9, %p7512_p6 }
 0x7de   :  { %v4845_v7 = vadd.f32 %v4843_v35, %v4841_v26 }
 0x7e0   :  { %v4846_v36 = vmax.f32 %v4845_v7, 0.0 }
 0x7e2   :  { %4847 = vst [vmem:[#allocation13 + $0x29] sm:$0x1] %v4846_v36 }
 0x7e3   :  { %7522 = shalt.err (!%p7519_p10)
}
 0x7e4   :  { %s8771_s30 = smov 8   ;;  %s8772_s10 = smov 128  }
 0x7e5   :  { %s8773_s23 = sld [smem:[#allocation44_spill]] }
 0x7eb   :  { %4859 = dma.vmem_to_hbm [thread:$0]  %s4854_s3, 768, %s8773_s23, [#allocation7], %s8772_s10, %s8772_s10, %s8771_s30  }
 0x7ec   :  { %7539 = dma.done.wait [#allocation7], 768  }
 0x7ed   :  { %7540 = vsyncadd [#allocation7], 4294966528 }
 0x7ee   :  { %4863 = vsyncpa [#allocation6], 1 }
 0x7ef   :  { %4864 = vsyncpa [#allocation9], 1 }
 0x7f0   :  { %4865 = vsyncpa [#allocation12], 1 }
 0x7f1   :  { %4866 = vsyncpa [#allocation7], 1 }

</bundles_post_ra>
